<compile_context>
chip_gen: v5e
topology: v5e:2x2
jax: 0.10.0
libtpu: 0.0.40
codegen_flags: <defaults>
</compile_context>

<pallas_src>
import numpy as np
import jax
import jax.numpy as jnp
from jax import lax
from jax.experimental import pallas as pl
from jax.experimental.pallas import tpu as pltpu


# ----------------------------------------------------------------------------
# Pallas kernel: 2-layer bidirectional LSTM (h0 = 0, c0 = actor_target for
# every layer/direction), fwd/bwd merged per layer, hoisted input projections,
# followed by the fused x_gen/y_gen head as one lane-dense matmul.
# ----------------------------------------------------------------------------
def _generate_net_kernel(x_ref, c0_ref, wih0_ref, whh0_ref, b0_ref,
                         wih1_ref, whh1_ref, b1_ref, wout_ref, bout_ref,
                         delta_ref, xp_scr, h0_scr, h1_scr):
    T, Bp, H = x_ref.shape          # padded batch rows Bp (multiple of 8)
    B2 = 2 * Bp                     # fwd rows then bwd rows
    H4 = 4 * H

    # ---- hoisted small constants --------------------------------------------
    # Block-diagonal selection mask for the recurrent matmul operand:
    # fwd rows (< Bp) keep lanes [:H], bwd rows keep lanes [H:2H].
    row = lax.broadcasted_iota(jnp.int32, (B2, 2 * H), 0)
    col = lax.broadcasted_iota(jnp.int32, (B2, 2 * H), 1)
    hsel = jnp.logical_or(jnp.logical_and(row < Bp, col < H),
                          jnp.logical_and(row >= Bp, col >= H))    # (2Bp, 2H)

    c_init = jnp.concatenate([c0_ref[...], c0_ref[...]], axis=0)   # (2Bp, H)

    def cell(xg, h, c, whh_ref):
        # Only the recurrent path is on the serial chain: one block-diagonal
        # matmul (K = 2H, N = 4H), then the gate math.
        h2 = jnp.where(hsel, jnp.concatenate([h, h], axis=-1), 0.0)  # (2Bp, 2H)
        gates = xg + jnp.dot(h2, whh_ref[...],
                             preferred_element_type=jnp.float32)     # (2Bp, 4H)
        sg = jax.nn.sigmoid(gates)                                   # one EUP pass
        i_g = sg[:, 0:H]
        f_g = sg[:, H:2 * H]
        o_g = sg[:, 3 * H:4 * H]
        g_g = jnp.tanh(gates[:, 2 * H:3 * H])
        c_new = f_g * c + i_g * g_g
        h_new = o_g * jnp.tanh(c_new)
        return h_new, c_new

    # ---- layer 0: hoisted input projection + bias (off the critical path) ----
    b0 = b0_ref[...]
    b0f = jnp.broadcast_to(b0[0:1, :], (Bp, H4))
    b0b = jnp.broadcast_to(b0[1:2, :], (Bp, H4))
    for s in range(T):
        pf = jnp.dot(x_ref[s], wih0_ref[:, 0:H4],
                     preferred_element_type=jnp.float32)             # fwd, time s
        pb = jnp.dot(x_ref[T - 1 - s], wih0_ref[:, H4:2 * H4],
                     preferred_element_type=jnp.float32)             # bwd, time T-1-s
        xp_scr[s, 0:Bp, :] = pf + b0f
        xp_scr[s, Bp:B2, :] = pb + b0b

    # ---- layer 0 recurrence: fwd + bwd merged, T unrolled ---------------------
    h = jnp.zeros_like(c_init)
    c = c_init
    for s in range(T):
        h, c = cell(xp_scr[s], h, c, whh0_ref)
        h0_scr[s, :, 0:H] = h[0:Bp]                  # fwd output at time s
        h0_scr[T - 1 - s, :, H:2 * H] = h[Bp:B2]     # bwd output at time T-1-s

    # ---- layer 1: hoisted input projection from the layer-0 outputs -----------
    b1 = b1_ref[...]
    b1f = jnp.broadcast_to(b1[0:1, :], (Bp, H4))
    b1b = jnp.broadcast_to(b1[1:2, :], (Bp, H4))
    for s in range(T):
        pf = jnp.dot(h0_scr[s], wih1_ref[:, 0:H4],
                     preferred_element_type=jnp.float32)
        pb = jnp.dot(h0_scr[T - 1 - s], wih1_ref[:, H4:2 * H4],
                     preferred_element_type=jnp.float32)
        xp_scr[s, 0:Bp, :] = pf + b1f                # xp_scr reused for layer 1
        xp_scr[s, Bp:B2, :] = pb + b1b

    # ---- layer 1 recurrence ----------------------------------------------------
    h = jnp.zeros_like(c_init)
    c = c_init
    for s in range(T):
        h, c = cell(xp_scr[s], h, c, whh1_ref)
        h1_scr[s * Bp:(s + 1) * Bp, 0:H] = h[0:Bp]
        h1_scr[(T - 1 - s) * Bp:(T - s) * Bp, H:2 * H] = h[Bp:B2]

    # ---- fused, lane-dense output head (cols >= 2 are zero weight/bias) -------
    delta_ref[...] = (jnp.dot(h1_scr[...], wout_ref[...],
                              preferred_element_type=jnp.float32)
                      + bout_ref[...])


def lstm_generate_pallas(mus_in, c0, kp):
    T, B, H = mus_in.shape
    assert H % 32 == 0, "n_actor must be a multiple of 32 (4H lane alignment)"
    Bp = ((B + 7) // 8) * 8                  # pad rows to sublane multiple
    pad = Bp - B
    x = jnp.pad(mus_in, ((0, 0), (0, pad), (0, 0)))        # (T, Bp, H)
    c0p = jnp.pad(c0, ((0, pad), (0, 0)))                  # (Bp, H)

    vmem = pl.BlockSpec(memory_space=pltpu.MemorySpace.VMEM)
    delta_full = pl.pallas_call(
        _generate_net_kernel,
        out_shape=jax.ShapeDtypeStruct((T * Bp, 128), jnp.float32),
        in_specs=[vmem] * 10,
        out_specs=vmem,
        scratch_shapes=[pltpu.VMEM((T, 2 * Bp, 4 * H), jnp.float32),  # staged gate inputs
                        pltpu.VMEM((T, Bp, 2 * H), jnp.float32),      # layer-0 outputs
                        pltpu.VMEM((T * Bp, 2 * H), jnp.float32)],    # layer-1 outputs
    )(x, c0p, kp['wih0m'], kp['whh0bd'], kp['b0'],
      kp['wih1m'], kp['whh1bd'], kp['b1'], kp['wout_pad'], kp['bout_pad'])

    # Drop the lane padding of the head and the batch-row padding.
    return delta_full.reshape(T, Bp, 128)[:, :B, :2]


# ----------------------------------------------------------------------------
# Deterministic parameter initialization (same tensor shapes as the nn.Module).
# ----------------------------------------------------------------------------
def init_params(key, n_actor):
    H = n_actor
    k = 1.0 / np.sqrt(H)
    keys = jax.random.split(key, 32)
    it = iter(keys)

    def u(shape):
        return jax.random.uniform(next(it), shape, jnp.float32, -k, k)

    lstm = {}
    for layer in (0, 1):
        in_dim = H if layer == 0 else 2 * H
        for d in (0, 1):  # 0 = forward, 1 = reverse
            lstm[(layer, d)] = dict(
                w_ih=u((4 * H, in_dim)),
                w_hh=u((4 * H, H)),
                b_ih=u((4 * H,)),
                b_hh=u((4 * H,)),
            )
    x_w, x_b = u((1, 2 * H)), u((1,))
    y_w, y_b = u((1, 2 * H)), u((1,))

    def bsum(l, d):
        return lstm[(l, d)]['b_ih'] + lstm[(l, d)]['b_hh']            # (4H,)

    wout = jnp.concatenate([x_w.T, y_w.T], axis=1)                    # (2H, 2)
    bout = jnp.concatenate([x_b, y_b])[None, :]                       # (1, 2)

    return dict(
        # ---- kernel packing ----
        # input weights, both directions column-stacked: (in_dim, 8H)
        wih0m=jnp.concatenate([lstm[(0, 0)]['w_ih'].T,
                               lstm[(0, 1)]['w_ih'].T], axis=1),      # (H, 8H)
        wih1m=jnp.concatenate([lstm[(1, 0)]['w_ih'].T,
                               lstm[(1, 1)]['w_ih'].T], axis=1),      # (2H, 8H)
        # recurrent weights row-stacked for the block-diagonal matmul: (2H, 4H)
        whh0bd=jnp.concatenate([lstm[(0, 0)]['w_hh'].T,
                                lstm[(0, 1)]['w_hh'].T], axis=0),
        whh1bd=jnp.concatenate([lstm[(1, 0)]['w_hh'].T,
                                lstm[(1, 1)]['w_hh'].T], axis=0),
        b0=jnp.stack([bsum(0, 0), bsum(0, 1)]),                       # (2, 4H)
        b1=jnp.stack([bsum(1, 0), bsum(1, 1)]),                       # (2, 4H)
        # lane-dense head: (2H, 128) / (1, 128), columns >= 2 are zero
        wout_pad=jnp.pad(wout, ((0, 0), (0, 126))),
        bout_pad=jnp.pad(bout, ((0, 0), (0, 126))),
        # ---- per-direction packing (pure-JAX reference) ----
        wout=wout, bout=bout,
        wih0=jnp.stack([lstm[(0, 0)]['w_ih'].T, lstm[(0, 1)]['w_ih'].T]),
        whh0=jnp.stack([lstm[(0, 0)]['w_hh'].T, lstm[(0, 1)]['w_hh'].T]),
        wih1=jnp.stack([lstm[(1, 0)]['w_ih'].T, lstm[(1, 1)]['w_ih'].T]),
        whh1=jnp.stack([lstm[(1, 0)]['w_hh'].T, lstm[(1, 1)]['w_hh'].T]),
    )


# ----------------------------------------------------------------------------
# Host-side glue reproducing the PyTorch list-comprehension preprocessing.
# TODO(synk): ragged argmax-based actor gathering has no clean Pallas
# equivalent; kept as host-side NumPy exactly mirroring the PyTorch code.
# ----------------------------------------------------------------------------
def _preprocess(mus_enc, actors, actors_idcs, batch_num):
    actors_idcs_np = np.asarray(actors_idcs)
    actors_np = np.asarray(actors)
    actor_idcs_mod = [actors_idcs_np[i, :int(np.argmax(actors_idcs_np[i])) + 1]
                      - actors_idcs_np[i, 0] for i in range(batch_num)]
    actor_mod = np.concatenate(
        [actors_np[i, :len(actor_idcs_mod[i]), :] for i in range(batch_num)], axis=0)
    mus_in = jnp.concatenate(mus_enc, axis=1).astype(jnp.float32)   # (T, 6*B, H)
    actor_target = np.concatenate(
        [np.repeat(actor_mod[int(actor_idcs_mod[i][1]):int(actor_idcs_mod[i][1]) + 1],
                   6, axis=0)
         for i in range(len(actor_idcs_mod))], axis=0)              # (6*B, H)
    c0 = jnp.asarray(actor_target, dtype=jnp.float32)
    return mus_in, c0


def generate_net_forward(kp, mus_enc, actors, actors_idcs, batch_num):
    mus_in, c0 = _preprocess(mus_enc, actors, actors_idcs, batch_num)
    delta = lstm_generate_pallas(mus_in, c0, kp)        # (T, 6*batch_num, 2)
    delta_t = jnp.transpose(delta, (1, 0, 2))           # (6*batch_num, T, 2)
    return [delta_t[6 * i:6 * (i + 1)][None] for i in range(batch_num)]


# ----------------------------------------------------------------------------
# Pure-JAX reference (same math, no Pallas) for a sanity check.
# ----------------------------------------------------------------------------
def _ref_dir(x_seq, c0, wih, whh, b, reverse):
    T = x_seq.shape[0]
    H = c0.shape[1]
    h = jnp.zeros_like(c0)
    c = c0
    outs = [None] * T
    order = range(T - 1, -1, -1) if reverse else range(T)
    for t in order:
        gates = x_seq[t] @ wih + h @ whh + b
        i_g = jax.nn.sigmoid(gates[:, :H])
        f_g = jax.nn.sigmoid(gates[:, H:2 * H])
        g_g = jnp.tanh(gates[:, 2 * H:3 * H])
        o_g = jax.nn.sigmoid(gates[:, 3 * H:])
        c = f_g * c + i_g * g_g
        h = o_g * jnp.tanh(c)
        outs[t] = h
    return jnp.stack(outs, 0)


def ref_forward(mus_in, c0, kp):
    l0f = _ref_dir(mus_in, c0, kp['wih0'][0], kp['whh0'][0], kp['b0'][0], False)
    l0b = _ref_dir(mus_in, c0, kp['wih0'][1], kp['whh0'][1], kp['b0'][1], True)
    x1 = jnp.concatenate([l0f, l0b], axis=-1)
    l1f = _ref_dir(x1, c0, kp['wih1'][0], kp['whh1'][0], kp['b1'][0], False)
    l1b = _ref_dir(x1, c0, kp['wih1'][1], kp['whh1'][1], kp['b1'][1], True)
    out = jnp.concatenate([l1f, l1b], axis=-1)
    return out @ kp['wout'] + kp['bout']


if __name__ == "__main__":
    n_actor = 32          # config['n_actor']
    T = 8                 # sequence length of mus_enc
    batch_num = 2
    max_actors = 5

    kp = init_params(jax.random.PRNGKey(0), n_actor)

    kd = jax.random.PRNGKey(1)
    mus_enc = [jax.random.normal(jax.random.fold_in(kd, i), (T, 6, n_actor),
                                 jnp.float32) for i in range(batch_num)]
    actors = jax.random.normal(jax.random.fold_in(kd, 100),
                               (batch_num, max_actors, n_actor), jnp.float32)
    # per-batch global actor indices (consecutive, zero-padded), >= 2 actors each
    actors_idcs = jnp.array([[0, 1, 2, 0, 0],
                             [3, 4, 5, 6, 0]], dtype=jnp.int32)

    # Full forward (list of (1, 6, T, 2) tensors, like the PyTorch module)
    delta_list = generate_net_forward(kp, mus_enc, actors, actors_idcs, batch_num)
    for d in delta_list:
        jax.block_until_ready(d)
    assert len(delta_list) == batch_num
    assert delta_list[0].shape == (1, 6, T, 2)

    # Sanity check: Pallas kernel vs pure-JAX reference
    mus_in, c0 = _preprocess(mus_enc, actors, actors_idcs, batch_num)
    ker = jax.block_until_ready(lstm_generate_pallas(mus_in, c0, kp))
    ref = jax.block_until_ready(ref_forward(mus_in, c0, kp))
    np.testing.assert_allclose(np.asarray(ker), np.asarray(ref),
                               rtol=1e-4, atol=1e-4)

    print("KERNEL_OK")
</pallas_src>

<mosaic_0001>
module attributes {stable_mosaic.version = 11 : i64} {
  func.func @_generate_net_kernel(%arg0: memref<8x16x32xf32, #tpu.memory_space<vmem>>, %arg1: memref<16x32xf32, #tpu.memory_space<vmem>>, %arg2: memref<32x256xf32, #tpu.memory_space<vmem>>, %arg3: memref<64x128xf32, #tpu.memory_space<vmem>>, %arg4: memref<2x128xf32, #tpu.memory_space<vmem>>, %arg5: memref<64x256xf32, #tpu.memory_space<vmem>>, %arg6: memref<64x128xf32, #tpu.memory_space<vmem>>, %arg7: memref<2x128xf32, #tpu.memory_space<vmem>>, %arg8: memref<64x128xf32, #tpu.memory_space<vmem>>, %arg9: memref<1x128xf32, #tpu.memory_space<vmem>>, %arg10: memref<128x128xf32, #tpu.memory_space<vmem>>, %arg11: memref<8x32x128xf32, #tpu.memory_space<vmem>>, %arg12: memref<8x16x64xf32, #tpu.memory_space<vmem>>, %arg13: memref<128x64xf32, #tpu.memory_space<vmem>>) attributes {dimension_semantics = [], scalar_prefetch = 0 : i64, scratch_operands = 3 : i64, tpu.core_type = #tpu.core_type<tc>} {
    %0 = tpu.iota {dimensions = array<i32: 0>} : vector<32x64xi32>
    %1 = tpu.iota {dimensions = array<i32: 1>} : vector<32x64xi32>
    %c16_i32 = arith.constant 16 : i32
    %2 = vector.broadcast %c16_i32 : i32 to vector<32x64xi32>
    %3 = arith.cmpi slt, %0, %2 : vector<32x64xi32>
    %c32_i32 = arith.constant 32 : i32
    %4 = vector.broadcast %c32_i32 : i32 to vector<32x64xi32>
    %5 = arith.cmpi slt, %1, %4 : vector<32x64xi32>
    %6 = arith.andi %3, %5 : vector<32x64xi1>
    %c16_i32_0 = arith.constant 16 : i32
    %7 = vector.broadcast %c16_i32_0 : i32 to vector<32x64xi32>
    %8 = arith.cmpi sge, %0, %7 : vector<32x64xi32>
    %c32_i32_1 = arith.constant 32 : i32
    %9 = vector.broadcast %c32_i32_1 : i32 to vector<32x64xi32>
    %10 = arith.cmpi sge, %1, %9 : vector<32x64xi32>
    %11 = arith.andi %8, %10 : vector<32x64xi1>
    %12 = arith.ori %6, %11 : vector<32x64xi1>
    %c0 = arith.constant 0 : index
    %c0_2 = arith.constant 0 : index
    %13 = vector.load %arg1[%c0, %c0_2] : memref<16x32xf32, #tpu.memory_space<vmem>>, vector<16x32xf32>
    %c0_3 = arith.constant 0 : index
    %c0_4 = arith.constant 0 : index
    %14 = vector.load %arg1[%c0_3, %c0_4] : memref<16x32xf32, #tpu.memory_space<vmem>>, vector<16x32xf32>
    %15 = tpu.concatenate %13, %14 in 0 : vector<16x32xf32>, vector<16x32xf32> -> vector<32x32xf32>
    %c0_5 = arith.constant 0 : index
    %c0_6 = arith.constant 0 : index
    %16 = vector.load %arg4[%c0_5, %c0_6] : memref<2x128xf32, #tpu.memory_space<vmem>>, vector<2x128xf32>
    %17 = vector.extract_strided_slice %16 {offsets = [0, 0], sizes = [1, 128], strides = [1, 1]} : vector<2x128xf32> to vector<1x128xf32>
    %18 = vector.shape_cast %17 : vector<1x128xf32> to vector<1x128xf32>
    %19 = vector.broadcast %18 : vector<1x128xf32> to vector<16x128xf32>
    %20 = vector.extract_strided_slice %16 {offsets = [1, 0], sizes = [1, 128], strides = [1, 1]} : vector<2x128xf32> to vector<1x128xf32>
    %21 = vector.shape_cast %20 : vector<1x128xf32> to vector<1x128xf32>
    %22 = vector.broadcast %21 : vector<1x128xf32> to vector<16x128xf32>
    %c0_7 = arith.constant 0 : index
    %c0_8 = arith.constant 0 : index
    %c0_9 = arith.constant 0 : index
    %23 = vector.load %arg0[%c0_7, %c0_8, %c0_9] : memref<8x16x32xf32, #tpu.memory_space<vmem>>, vector<1x16x32xf32>
    %24 = vector.shape_cast %23 : vector<1x16x32xf32> to vector<16x32xf32>
    %c0_10 = arith.constant 0 : index
    %c0_11 = arith.constant 0 : index
    %25 = vector.load %arg2[%c0_10, %c0_11] : memref<32x256xf32, #tpu.memory_space<vmem>>, vector<32x128xf32>
    %cst = arith.constant dense<0.000000e+00> : vector<16x128xf32>
    %26 = tpu.matmul %24, %25, %cst {dimension_numbers = #tpu.dot_dimension_numbers<[1], [0], [0], [1], [0, 0, 1, 1], [], []>} : vector<16x32xf32>, vector<32x128xf32>, vector<16x128xf32> -> vector<16x128xf32>
    %c7 = arith.constant 7 : index
    %c0_12 = arith.constant 0 : index
    %c0_13 = arith.constant 0 : index
    %27 = vector.load %arg0[%c7, %c0_12, %c0_13] : memref<8x16x32xf32, #tpu.memory_space<vmem>>, vector<1x16x32xf32>
    %28 = vector.shape_cast %27 : vector<1x16x32xf32> to vector<16x32xf32>
    %c0_14 = arith.constant 0 : index
    %c128 = arith.constant 128 : index
    %29 = vector.load %arg2[%c0_14, %c128] : memref<32x256xf32, #tpu.memory_space<vmem>>, vector<32x128xf32>
    %cst_15 = arith.constant dense<0.000000e+00> : vector<16x128xf32>
    %30 = tpu.matmul %28, %29, %cst_15 {dimension_numbers = #tpu.dot_dimension_numbers<[1], [0], [0], [1], [0, 0, 1, 1], [], []>} : vector<16x32xf32>, vector<32x128xf32>, vector<16x128xf32> -> vector<16x128xf32>
    %31 = arith.addf %26, %19 : vector<16x128xf32>
    %c0_16 = arith.constant 0 : index
    %c0_17 = arith.constant 0 : index
    %c0_18 = arith.constant 0 : index
    %32 = vector.load %arg11[%c0_16, %c0_17, %c0_18] : memref<8x32x128xf32, #tpu.memory_space<vmem>>, vector<1x16x128xf32>
    %33 = vector.shape_cast %32 : vector<1x16x128xf32> to vector<16x128xf32>
    %34 = vector.shape_cast %31 : vector<16x128xf32> to vector<1x16x128xf32>
    tpu.vector_store %arg11[%c0_16, %c0_17, %c0_18], %34 {strides = array<i32>} : memref<8x32x128xf32, #tpu.memory_space<vmem>>, vector<1x16x128xf32>,
    %35 = arith.addf %30, %22 : vector<16x128xf32>
    %c0_19 = arith.constant 0 : index
    %c16 = arith.constant 16 : index
    %c0_20 = arith.constant 0 : index
    %36 = vector.load %arg11[%c0_19, %c16, %c0_20] : memref<8x32x128xf32, #tpu.memory_space<vmem>>, vector<1x16x128xf32>
    %37 = vector.shape_cast %36 : vector<1x16x128xf32> to vector<16x128xf32>
    %38 = vector.shape_cast %35 : vector<16x128xf32> to vector<1x16x128xf32>
    tpu.vector_store %arg11[%c0_19, %c16, %c0_20], %38 {strides = array<i32>} : memref<8x32x128xf32, #tpu.memory_space<vmem>>, vector<1x16x128xf32>,
    %c1 = arith.constant 1 : index
    %c0_21 = arith.constant 0 : index
    %c0_22 = arith.constant 0 : index
    %39 = vector.load %arg0[%c1, %c0_21, %c0_22] : memref<8x16x32xf32, #tpu.memory_space<vmem>>, vector<1x16x32xf32>
    %40 = vector.shape_cast %39 : vector<1x16x32xf32> to vector<16x32xf32>
    %c0_23 = arith.constant 0 : index
    %c0_24 = arith.constant 0 : index
    %41 = vector.load %arg2[%c0_23, %c0_24] : memref<32x256xf32, #tpu.memory_space<vmem>>, vector<32x128xf32>
    %cst_25 = arith.constant dense<0.000000e+00> : vector<16x128xf32>
    %42 = tpu.matmul %40, %41, %cst_25 {dimension_numbers = #tpu.dot_dimension_numbers<[1], [0], [0], [1], [0, 0, 1, 1], [], []>} : vector<16x32xf32>, vector<32x128xf32>, vector<16x128xf32> -> vector<16x128xf32>
    %c6 = arith.constant 6 : index
    %c0_26 = arith.constant 0 : index
    %c0_27 = arith.constant 0 : index
    %43 = vector.load %arg0[%c6, %c0_26, %c0_27] : memref<8x16x32xf32, #tpu.memory_space<vmem>>, vector<1x16x32xf32>
    %44 = vector.shape_cast %43 : vector<1x16x32xf32> to vector<16x32xf32>
    %c0_28 = arith.constant 0 : index
    %c128_29 = arith.constant 128 : index
    %45 = vector.load %arg2[%c0_28, %c128_29] : memref<32x256xf32, #tpu.memory_space<vmem>>, vector<32x128xf32>
    %cst_30 = arith.constant dense<0.000000e+00> : vector<16x128xf32>
    %46 = tpu.matmul %44, %45, %cst_30 {dimension_numbers = #tpu.dot_dimension_numbers<[1], [0], [0], [1], [0, 0, 1, 1], [], []>} : vector<16x32xf32>, vector<32x128xf32>, vector<16x128xf32> -> vector<16x128xf32>
    %47 = arith.addf %42, %19 : vector<16x128xf32>
    %c1_31 = arith.constant 1 : index
    %c0_32 = arith.constant 0 : index
    %c0_33 = arith.constant 0 : index
    %48 = vector.load %arg11[%c1_31, %c0_32, %c0_33] : memref<8x32x128xf32, #tpu.memory_space<vmem>>, vector<1x16x128xf32>
    %49 = vector.shape_cast %48 : vector<1x16x128xf32> to vector<16x128xf32>
    %50 = vector.shape_cast %47 : vector<16x128xf32> to vector<1x16x128xf32>
    tpu.vector_store %arg11[%c1_31, %c0_32, %c0_33], %50 {strides = array<i32>} : memref<8x32x128xf32, #tpu.memory_space<vmem>>, vector<1x16x128xf32>,
    %51 = arith.addf %46, %22 : vector<16x128xf32>
    %c1_34 = arith.constant 1 : index
    %c16_35 = arith.constant 16 : index
    %c0_36 = arith.constant 0 : index
    %52 = vector.load %arg11[%c1_34, %c16_35, %c0_36] : memref<8x32x128xf32, #tpu.memory_space<vmem>>, vector<1x16x128xf32>
    %53 = vector.shape_cast %52 : vector<1x16x128xf32> to vector<16x128xf32>
    %54 = vector.shape_cast %51 : vector<16x128xf32> to vector<1x16x128xf32>
    tpu.vector_store %arg11[%c1_34, %c16_35, %c0_36], %54 {strides = array<i32>} : memref<8x32x128xf32, #tpu.memory_space<vmem>>, vector<1x16x128xf32>,
    %c2 = arith.constant 2 : index
    %c0_37 = arith.constant 0 : index
    %c0_38 = arith.constant 0 : index
    %55 = vector.load %arg0[%c2, %c0_37, %c0_38] : memref<8x16x32xf32, #tpu.memory_space<vmem>>, vector<1x16x32xf32>
    %56 = vector.shape_cast %55 : vector<1x16x32xf32> to vector<16x32xf32>
    %c0_39 = arith.constant 0 : index
    %c0_40 = arith.constant 0 : index
    %57 = vector.load %arg2[%c0_39, %c0_40] : memref<32x256xf32, #tpu.memory_space<vmem>>, vector<32x128xf32>
    %cst_41 = arith.constant dense<0.000000e+00> : vector<16x128xf32>
    %58 = tpu.matmul %56, %57, %cst_41 {dimension_numbers = #tpu.dot_dimension_numbers<[1], [0], [0], [1], [0, 0, 1, 1], [], []>} : vector<16x32xf32>, vector<32x128xf32>, vector<16x128xf32> -> vector<16x128xf32>
    %c5 = arith.constant 5 : index
    %c0_42 = arith.constant 0 : index
    %c0_43 = arith.constant 0 : index
    %59 = vector.load %arg0[%c5, %c0_42, %c0_43] : memref<8x16x32xf32, #tpu.memory_space<vmem>>, vector<1x16x32xf32>
    %60 = vector.shape_cast %59 : vector<1x16x32xf32> to vector<16x32xf32>
    %c0_44 = arith.constant 0 : index
    %c128_45 = arith.constant 128 : index
    %61 = vector.load %arg2[%c0_44, %c128_45] : memref<32x256xf32, #tpu.memory_space<vmem>>, vector<32x128xf32>
    %cst_46 = arith.constant dense<0.000000e+00> : vector<16x128xf32>
    %62 = tpu.matmul %60, %61, %cst_46 {dimension_numbers = #tpu.dot_dimension_numbers<[1], [0], [0], [1], [0, 0, 1, 1], [], []>} : vector<16x32xf32>, vector<32x128xf32>, vector<16x128xf32> -> vector<16x128xf32>
    %63 = arith.addf %58, %19 : vector<16x128xf32>
    %c2_47 = arith.constant 2 : index
    %c0_48 = arith.constant 0 : index
    %c0_49 = arith.constant 0 : index
    %64 = vector.load %arg11[%c2_47, %c0_48, %c0_49] : memref<8x32x128xf32, #tpu.memory_space<vmem>>, vector<1x16x128xf32>
    %65 = vector.shape_cast %64 : vector<1x16x128xf32> to vector<16x128xf32>
    %66 = vector.shape_cast %63 : vector<16x128xf32> to vector<1x16x128xf32>
    tpu.vector_store %arg11[%c2_47, %c0_48, %c0_49], %66 {strides = array<i32>} : memref<8x32x128xf32, #tpu.memory_space<vmem>>, vector<1x16x128xf32>,
    %67 = arith.addf %62, %22 : vector<16x128xf32>
    %c2_50 = arith.constant 2 : index
    %c16_51 = arith.constant 16 : index
    %c0_52 = arith.constant 0 : index
    %68 = vector.load %arg11[%c2_50, %c16_51, %c0_52] : memref<8x32x128xf32, #tpu.memory_space<vmem>>, vector<1x16x128xf32>
    %69 = vector.shape_cast %68 : vector<1x16x128xf32> to vector<16x128xf32>
    %70 = vector.shape_cast %67 : vector<16x128xf32> to vector<1x16x128xf32>
    tpu.vector_store %arg11[%c2_50, %c16_51, %c0_52], %70 {strides = array<i32>} : memref<8x32x128xf32, #tpu.memory_space<vmem>>, vector<1x16x128xf32>,
    %c3 = arith.constant 3 : index
    %c0_53 = arith.constant 0 : index
    %c0_54 = arith.constant 0 : index
    %71 = vector.load %arg0[%c3, %c0_53, %c0_54] : memref<8x16x32xf32, #tpu.memory_space<vmem>>, vector<1x16x32xf32>
    %72 = vector.shape_cast %71 : vector<1x16x32xf32> to vector<16x32xf32>
    %c0_55 = arith.constant 0 : index
    %c0_56 = arith.constant 0 : index
    %73 = vector.load %arg2[%c0_55, %c0_56] : memref<32x256xf32, #tpu.memory_space<vmem>>, vector<32x128xf32>
    %cst_57 = arith.constant dense<0.000000e+00> : vector<16x128xf32>
    %74 = tpu.matmul %72, %73, %cst_57 {dimension_numbers = #tpu.dot_dimension_numbers<[1], [0], [0], [1], [0, 0, 1, 1], [], []>} : vector<16x32xf32>, vector<32x128xf32>, vector<16x128xf32> -> vector<16x128xf32>
    %c4 = arith.constant 4 : index
    %c0_58 = arith.constant 0 : index
    %c0_59 = arith.constant 0 : index
    %75 = vector.load %arg0[%c4, %c0_58, %c0_59] : memref<8x16x32xf32, #tpu.memory_space<vmem>>, vector<1x16x32xf32>
    %76 = vector.shape_cast %75 : vector<1x16x32xf32> to vector<16x32xf32>
    %c0_60 = arith.constant 0 : index
    %c128_61 = arith.constant 128 : index
    %77 = vector.load %arg2[%c0_60, %c128_61] : memref<32x256xf32, #tpu.memory_space<vmem>>, vector<32x128xf32>
    %cst_62 = arith.constant dense<0.000000e+00> : vector<16x128xf32>
    %78 = tpu.matmul %76, %77, %cst_62 {dimension_numbers = #tpu.dot_dimension_numbers<[1], [0], [0], [1], [0, 0, 1, 1], [], []>} : vector<16x32xf32>, vector<32x128xf32>, vector<16x128xf32> -> vector<16x128xf32>
    %79 = arith.addf %74, %19 : vector<16x128xf32>
    %c3_63 = arith.constant 3 : index
    %c0_64 = arith.constant 0 : index
    %c0_65 = arith.constant 0 : index
    %80 = vector.load %arg11[%c3_63, %c0_64, %c0_65] : memref<8x32x128xf32, #tpu.memory_space<vmem>>, vector<1x16x128xf32>
    %81 = vector.shape_cast %80 : vector<1x16x128xf32> to vector<16x128xf32>
    %82 = vector.shape_cast %79 : vector<16x128xf32> to vector<1x16x128xf32>
    tpu.vector_store %arg11[%c3_63, %c0_64, %c0_65], %82 {strides = array<i32>} : memref<8x32x128xf32, #tpu.memory_space<vmem>>, vector<1x16x128xf32>,
    %83 = arith.addf %78, %22 : vector<16x128xf32>
    %c3_66 = arith.constant 3 : index
    %c16_67 = arith.constant 16 : index
    %c0_68 = arith.constant 0 : index
    %84 = vector.load %arg11[%c3_66, %c16_67, %c0_68] : memref<8x32x128xf32, #tpu.memory_space<vmem>>, vector<1x16x128xf32>
    %85 = vector.shape_cast %84 : vector<1x16x128xf32> to vector<16x128xf32>
    %86 = vector.shape_cast %83 : vector<16x128xf32> to vector<1x16x128xf32>
    tpu.vector_store %arg11[%c3_66, %c16_67, %c0_68], %86 {strides = array<i32>} : memref<8x32x128xf32, #tpu.memory_space<vmem>>, vector<1x16x128xf32>,
    %c4_69 = arith.constant 4 : index
    %c0_70 = arith.constant 0 : index
    %c0_71 = arith.constant 0 : index
    %87 = vector.load %arg0[%c4_69, %c0_70, %c0_71] : memref<8x16x32xf32, #tpu.memory_space<vmem>>, vector<1x16x32xf32>
    %88 = vector.shape_cast %87 : vector<1x16x32xf32> to vector<16x32xf32>
    %c0_72 = arith.constant 0 : index
    %c0_73 = arith.constant 0 : index
    %89 = vector.load %arg2[%c0_72, %c0_73] : memref<32x256xf32, #tpu.memory_space<vmem>>, vector<32x128xf32>
    %cst_74 = arith.constant dense<0.000000e+00> : vector<16x128xf32>
    %90 = tpu.matmul %88, %89, %cst_74 {dimension_numbers = #tpu.dot_dimension_numbers<[1], [0], [0], [1], [0, 0, 1, 1], [], []>} : vector<16x32xf32>, vector<32x128xf32>, vector<16x128xf32> -> vector<16x128xf32>
    %c3_75 = arith.constant 3 : index
    %c0_76 = arith.constant 0 : index
    %c0_77 = arith.constant 0 : index
    %91 = vector.load %arg0[%c3_75, %c0_76, %c0_77] : memref<8x16x32xf32, #tpu.memory_space<vmem>>, vector<1x16x32xf32>
    %92 = vector.shape_cast %91 : vector<1x16x32xf32> to vector<16x32xf32>
    %c0_78 = arith.constant 0 : index
    %c128_79 = arith.constant 128 : index
    %93 = vector.load %arg2[%c0_78, %c128_79] : memref<32x256xf32, #tpu.memory_space<vmem>>, vector<32x128xf32>
    %cst_80 = arith.constant dense<0.000000e+00> : vector<16x128xf32>
    %94 = tpu.matmul %92, %93, %cst_80 {dimension_numbers = #tpu.dot_dimension_numbers<[1], [0], [0], [1], [0, 0, 1, 1], [], []>} : vector<16x32xf32>, vector<32x128xf32>, vector<16x128xf32> -> vector<16x128xf32>
    %95 = arith.addf %90, %19 : vector<16x128xf32>
    %c4_81 = arith.constant 4 : index
    %c0_82 = arith.constant 0 : index
    %c0_83 = arith.constant 0 : index
    %96 = vector.load %arg11[%c4_81, %c0_82, %c0_83] : memref<8x32x128xf32, #tpu.memory_space<vmem>>, vector<1x16x128xf32>
    %97 = vector.shape_cast %96 : vector<1x16x128xf32> to vector<16x128xf32>
    %98 = vector.shape_cast %95 : vector<16x128xf32> to vector<1x16x128xf32>
    tpu.vector_store %arg11[%c4_81, %c0_82, %c0_83], %98 {strides = array<i32>} : memref<8x32x128xf32, #tpu.memory_space<vmem>>, vector<1x16x128xf32>,
    %99 = arith.addf %94, %22 : vector<16x128xf32>
    %c4_84 = arith.constant 4 : index
    %c16_85 = arith.constant 16 : index
    %c0_86 = arith.constant 0 : index
    %100 = vector.load %arg11[%c4_84, %c16_85, %c0_86] : memref<8x32x128xf32, #tpu.memory_space<vmem>>, vector<1x16x128xf32>
    %101 = vector.shape_cast %100 : vector<1x16x128xf32> to vector<16x128xf32>
    %102 = vector.shape_cast %99 : vector<16x128xf32> to vector<1x16x128xf32>
    tpu.vector_store %arg11[%c4_84, %c16_85, %c0_86], %102 {strides = array<i32>} : memref<8x32x128xf32, #tpu.memory_space<vmem>>, vector<1x16x128xf32>,
    %c5_87 = arith.constant 5 : index
    %c0_88 = arith.constant 0 : index
    %c0_89 = arith.constant 0 : index
    %103 = vector.load %arg0[%c5_87, %c0_88, %c0_89] : memref<8x16x32xf32, #tpu.memory_space<vmem>>, vector<1x16x32xf32>
    %104 = vector.shape_cast %103 : vector<1x16x32xf32> to vector<16x32xf32>
    %c0_90 = arith.constant 0 : index
    %c0_91 = arith.constant 0 : index
    %105 = vector.load %arg2[%c0_90, %c0_91] : memref<32x256xf32, #tpu.memory_space<vmem>>, vector<32x128xf32>
    %cst_92 = arith.constant dense<0.000000e+00> : vector<16x128xf32>
    %106 = tpu.matmul %104, %105, %cst_92 {dimension_numbers = #tpu.dot_dimension_numbers<[1], [0], [0], [1], [0, 0, 1, 1], [], []>} : vector<16x32xf32>, vector<32x128xf32>, vector<16x128xf32> -> vector<16x128xf32>
    %c2_93 = arith.constant 2 : index
    %c0_94 = arith.constant 0 : index
    %c0_95 = arith.constant 0 : index
    %107 = vector.load %arg0[%c2_93, %c0_94, %c0_95] : memref<8x16x32xf32, #tpu.memory_space<vmem>>, vector<1x16x32xf32>
    %108 = vector.shape_cast %107 : vector<1x16x32xf32> to vector<16x32xf32>
    %c0_96 = arith.constant 0 : index
    %c128_97 = arith.constant 128 : index
    %109 = vector.load %arg2[%c0_96, %c128_97] : memref<32x256xf32, #tpu.memory_space<vmem>>, vector<32x128xf32>
    %cst_98 = arith.constant dense<0.000000e+00> : vector<16x128xf32>
    %110 = tpu.matmul %108, %109, %cst_98 {dimension_numbers = #tpu.dot_dimension_numbers<[1], [0], [0], [1], [0, 0, 1, 1], [], []>} : vector<16x32xf32>, vector<32x128xf32>, vector<16x128xf32> -> vector<16x128xf32>
    %111 = arith.addf %106, %19 : vector<16x128xf32>
    %c5_99 = arith.constant 5 : index
    %c0_100 = arith.constant 0 : index
    %c0_101 = arith.constant 0 : index
    %112 = vector.load %arg11[%c5_99, %c0_100, %c0_101] : memref<8x32x128xf32, #tpu.memory_space<vmem>>, vector<1x16x128xf32>
    %113 = vector.shape_cast %112 : vector<1x16x128xf32> to vector<16x128xf32>
    %114 = vector.shape_cast %111 : vector<16x128xf32> to vector<1x16x128xf32>
    tpu.vector_store %arg11[%c5_99, %c0_100, %c0_101], %114 {strides = array<i32>} : memref<8x32x128xf32, #tpu.memory_space<vmem>>, vector<1x16x128xf32>,
    %115 = arith.addf %110, %22 : vector<16x128xf32>
    %c5_102 = arith.constant 5 : index
    %c16_103 = arith.constant 16 : index
    %c0_104 = arith.constant 0 : index
    %116 = vector.load %arg11[%c5_102, %c16_103, %c0_104] : memref<8x32x128xf32, #tpu.memory_space<vmem>>, vector<1x16x128xf32>
    %117 = vector.shape_cast %116 : vector<1x16x128xf32> to vector<16x128xf32>
    %118 = vector.shape_cast %115 : vector<16x128xf32> to vector<1x16x128xf32>
    tpu.vector_store %arg11[%c5_102, %c16_103, %c0_104], %118 {strides = array<i32>} : memref<8x32x128xf32, #tpu.memory_space<vmem>>, vector<1x16x128xf32>,
    %c6_105 = arith.constant 6 : index
    %c0_106 = arith.constant 0 : index
    %c0_107 = arith.constant 0 : index
    %119 = vector.load %arg0[%c6_105, %c0_106, %c0_107] : memref<8x16x32xf32, #tpu.memory_space<vmem>>, vector<1x16x32xf32>
    %120 = vector.shape_cast %119 : vector<1x16x32xf32> to vector<16x32xf32>
    %c0_108 = arith.constant 0 : index
    %c0_109 = arith.constant 0 : index
    %121 = vector.load %arg2[%c0_108, %c0_109] : memref<32x256xf32, #tpu.memory_space<vmem>>, vector<32x128xf32>
    %cst_110 = arith.constant dense<0.000000e+00> : vector<16x128xf32>
    %122 = tpu.matmul %120, %121, %cst_110 {dimension_numbers = #tpu.dot_dimension_numbers<[1], [0], [0], [1], [0, 0, 1, 1], [], []>} : vector<16x32xf32>, vector<32x128xf32>, vector<16x128xf32> -> vector<16x128xf32>
    %c1_111 = arith.constant 1 : index
    %c0_112 = arith.constant 0 : index
    %c0_113 = arith.constant 0 : index
    %123 = vector.load %arg0[%c1_111, %c0_112, %c0_113] : memref<8x16x32xf32, #tpu.memory_space<vmem>>, vector<1x16x32xf32>
    %124 = vector.shape_cast %123 : vector<1x16x32xf32> to vector<16x32xf32>
    %c0_114 = arith.constant 0 : index
    %c128_115 = arith.constant 128 : index
    %125 = vector.load %arg2[%c0_114, %c128_115] : memref<32x256xf32, #tpu.memory_space<vmem>>, vector<32x128xf32>
    %cst_116 = arith.constant dense<0.000000e+00> : vector<16x128xf32>
    %126 = tpu.matmul %124, %125, %cst_116 {dimension_numbers = #tpu.dot_dimension_numbers<[1], [0], [0], [1], [0, 0, 1, 1], [], []>} : vector<16x32xf32>, vector<32x128xf32>, vector<16x128xf32> -> vector<16x128xf32>
    %127 = arith.addf %122, %19 : vector<16x128xf32>
    %c6_117 = arith.constant 6 : index
    %c0_118 = arith.constant 0 : index
    %c0_119 = arith.constant 0 : index
    %128 = vector.load %arg11[%c6_117, %c0_118, %c0_119] : memref<8x32x128xf32, #tpu.memory_space<vmem>>, vector<1x16x128xf32>
    %129 = vector.shape_cast %128 : vector<1x16x128xf32> to vector<16x128xf32>
    %130 = vector.shape_cast %127 : vector<16x128xf32> to vector<1x16x128xf32>
    tpu.vector_store %arg11[%c6_117, %c0_118, %c0_119], %130 {strides = array<i32>} : memref<8x32x128xf32, #tpu.memory_space<vmem>>, vector<1x16x128xf32>,
    %131 = arith.addf %126, %22 : vector<16x128xf32>
    %c6_120 = arith.constant 6 : index
    %c16_121 = arith.constant 16 : index
    %c0_122 = arith.constant 0 : index
    %132 = vector.load %arg11[%c6_120, %c16_121, %c0_122] : memref<8x32x128xf32, #tpu.memory_space<vmem>>, vector<1x16x128xf32>
    %133 = vector.shape_cast %132 : vector<1x16x128xf32> to vector<16x128xf32>
    %134 = vector.shape_cast %131 : vector<16x128xf32> to vector<1x16x128xf32>
    tpu.vector_store %arg11[%c6_120, %c16_121, %c0_122], %134 {strides = array<i32>} : memref<8x32x128xf32, #tpu.memory_space<vmem>>, vector<1x16x128xf32>,
    %c7_123 = arith.constant 7 : index
    %c0_124 = arith.constant 0 : index
    %c0_125 = arith.constant 0 : index
    %135 = vector.load %arg0[%c7_123, %c0_124, %c0_125] : memref<8x16x32xf32, #tpu.memory_space<vmem>>, vector<1x16x32xf32>
    %136 = vector.shape_cast %135 : vector<1x16x32xf32> to vector<16x32xf32>
    %c0_126 = arith.constant 0 : index
    %c0_127 = arith.constant 0 : index
    %137 = vector.load %arg2[%c0_126, %c0_127] : memref<32x256xf32, #tpu.memory_space<vmem>>, vector<32x128xf32>
    %cst_128 = arith.constant dense<0.000000e+00> : vector<16x128xf32>
    %138 = tpu.matmul %136, %137, %cst_128 {dimension_numbers = #tpu.dot_dimension_numbers<[1], [0], [0], [1], [0, 0, 1, 1], [], []>} : vector<16x32xf32>, vector<32x128xf32>, vector<16x128xf32> -> vector<16x128xf32>
    %c0_129 = arith.constant 0 : index
    %c0_130 = arith.constant 0 : index
    %c0_131 = arith.constant 0 : index
    %139 = vector.load %arg0[%c0_129, %c0_130, %c0_131] : memref<8x16x32xf32, #tpu.memory_space<vmem>>, vector<1x16x32xf32>
    %140 = vector.shape_cast %139 : vector<1x16x32xf32> to vector<16x32xf32>
    %c0_132 = arith.constant 0 : index
    %c128_133 = arith.constant 128 : index
    %141 = vector.load %arg2[%c0_132, %c128_133] : memref<32x256xf32, #tpu.memory_space<vmem>>, vector<32x128xf32>
    %cst_134 = arith.constant dense<0.000000e+00> : vector<16x128xf32>
    %142 = tpu.matmul %140, %141, %cst_134 {dimension_numbers = #tpu.dot_dimension_numbers<[1], [0], [0], [1], [0, 0, 1, 1], [], []>} : vector<16x32xf32>, vector<32x128xf32>, vector<16x128xf32> -> vector<16x128xf32>
    %143 = arith.addf %138, %19 : vector<16x128xf32>
    %c7_135 = arith.constant 7 : index
    %c0_136 = arith.constant 0 : index
    %c0_137 = arith.constant 0 : index
    %144 = vector.load %arg11[%c7_135, %c0_136, %c0_137] : memref<8x32x128xf32, #tpu.memory_space<vmem>>, vector<1x16x128xf32>
    %145 = vector.shape_cast %144 : vector<1x16x128xf32> to vector<16x128xf32>
    %146 = vector.shape_cast %143 : vector<16x128xf32> to vector<1x16x128xf32>
    tpu.vector_store %arg11[%c7_135, %c0_136, %c0_137], %146 {strides = array<i32>} : memref<8x32x128xf32, #tpu.memory_space<vmem>>, vector<1x16x128xf32>,
    %147 = arith.addf %142, %22 : vector<16x128xf32>
    %c7_138 = arith.constant 7 : index
    %c16_139 = arith.constant 16 : index
    %c0_140 = arith.constant 0 : index
    %148 = vector.load %arg11[%c7_138, %c16_139, %c0_140] : memref<8x32x128xf32, #tpu.memory_space<vmem>>, vector<1x16x128xf32>
    %149 = vector.shape_cast %148 : vector<1x16x128xf32> to vector<16x128xf32>
    %150 = vector.shape_cast %147 : vector<16x128xf32> to vector<1x16x128xf32>
    tpu.vector_store %arg11[%c7_138, %c16_139, %c0_140], %150 {strides = array<i32>} : memref<8x32x128xf32, #tpu.memory_space<vmem>>, vector<1x16x128xf32>,
    %cst_141 = arith.constant 0.000000e+00 : f32
    %151 = vector.broadcast %cst_141 : f32 to vector<32x32xf32>
    %c0_142 = arith.constant 0 : index
    %c0_143 = arith.constant 0 : index
    %c0_144 = arith.constant 0 : index
    %152 = vector.load %arg11[%c0_142, %c0_143, %c0_144] : memref<8x32x128xf32, #tpu.memory_space<vmem>>, vector<1x32x128xf32>
    %153 = vector.shape_cast %152 : vector<1x32x128xf32> to vector<32x128xf32>
    %154 = tpu.concatenate %151, %151 in 1 : vector<32x32xf32>, vector<32x32xf32> -> vector<32x64xf32>
    %cst_145 = arith.constant 0.000000e+00 : f32
    %155 = vector.broadcast %cst_145 : f32 to vector<32x64xf32>
    %156 = arith.select %12, %154, %155 : vector<32x64xi1>, vector<32x64xf32>
    %c0_146 = arith.constant 0 : index
    %c0_147 = arith.constant 0 : index
    %157 = vector.load %arg3[%c0_146, %c0_147] : memref<64x128xf32, #tpu.memory_space<vmem>>, vector<64x128xf32>
    %cst_148 = arith.constant dense<0.000000e+00> : vector<32x128xf32>
    %158 = tpu.matmul %156, %157, %cst_148 {dimension_numbers = #tpu.dot_dimension_numbers<[1], [0], [0], [1], [0, 0, 1, 1], [], []>} : vector<32x64xf32>, vector<64x128xf32>, vector<32x128xf32> -> vector<32x128xf32>
    %159 = arith.addf %153, %158 : vector<32x128xf32>
    %160 = arith.negf %159 : vector<32x128xf32>
    %161 = math.exp %160 : vector<32x128xf32>
    %cst_149 = arith.constant 1.000000e+00 : f32
    %162 = vector.broadcast %cst_149 : f32 to vector<32x128xf32>
    %163 = arith.addf %162, %161 : vector<32x128xf32>
    %164 = arith.divf %162, %163 : vector<32x128xf32>
    %165 = vector.extract_strided_slice %164 {offsets = [0, 0], sizes = [32, 32], strides = [1, 1]} : vector<32x128xf32> to vector<32x32xf32>
    %166 = vector.extract_strided_slice %164 {offsets = [0, 32], sizes = [32, 32], strides = [1, 1]} : vector<32x128xf32> to vector<32x32xf32>
    %167 = vector.extract_strided_slice %164 {offsets = [0, 96], sizes = [32, 32], strides = [1, 1]} : vector<32x128xf32> to vector<32x32xf32>
    %168 = vector.extract_strided_slice %159 {offsets = [0, 64], sizes = [32, 32], strides = [1, 1]} : vector<32x128xf32> to vector<32x32xf32>
    %169 = math.tanh %168 : vector<32x32xf32>
    %170 = arith.mulf %166, %15 : vector<32x32xf32>
    %171 = arith.mulf %165, %169 : vector<32x32xf32>
    %172 = arith.addf %170, %171 : vector<32x32xf32>
    %173 = math.tanh %172 : vector<32x32xf32>
    %174 = arith.mulf %167, %173 : vector<32x32xf32>
    %175 = vector.extract_strided_slice %174 {offsets = [0, 0], sizes = [16, 32], strides = [1, 1]} : vector<32x32xf32> to vector<16x32xf32>
    %c0_150 = arith.constant 0 : index
    %c0_151 = arith.constant 0 : index
    %c0_152 = arith.constant 0 : index
    %176 = vector.load %arg12[%c0_150, %c0_151, %c0_152] : memref<8x16x64xf32, #tpu.memory_space<vmem>>, vector<1x16x32xf32>
    %177 = vector.shape_cast %176 : vector<1x16x32xf32> to vector<16x32xf32>
    %178 = vector.shape_cast %175 : vector<16x32xf32> to vector<1x16x32xf32>
    tpu.vector_store %arg12[%c0_150, %c0_151, %c0_152], %178 {strides = array<i32>} : memref<8x16x64xf32, #tpu.memory_space<vmem>>, vector<1x16x32xf32>,
    %179 = vector.extract_strided_slice %174 {offsets = [16, 0], sizes = [16, 32], strides = [1, 1]} : vector<32x32xf32> to vector<16x32xf32>
    %c7_153 = arith.constant 7 : index
    %c0_154 = arith.constant 0 : index
    %c32 = arith.constant 32 : index
    %180 = vector.load %arg12[%c7_153, %c0_154, %c32] : memref<8x16x64xf32, #tpu.memory_space<vmem>>, vector<1x16x32xf32>
    %181 = vector.shape_cast %180 : vector<1x16x32xf32> to vector<16x32xf32>
    %182 = vector.shape_cast %179 : vector<16x32xf32> to vector<1x16x32xf32>
    tpu.vector_store %arg12[%c7_153, %c0_154, %c32], %182 {strides = array<i32>} : memref<8x16x64xf32, #tpu.memory_space<vmem>>, vector<1x16x32xf32>,
    %c1_155 = arith.constant 1 : index
    %c0_156 = arith.constant 0 : index
    %c0_157 = arith.constant 0 : index
    %183 = vector.load %arg11[%c1_155, %c0_156, %c0_157] : memref<8x32x128xf32, #tpu.memory_space<vmem>>, vector<1x32x128xf32>
    %184 = vector.shape_cast %183 : vector<1x32x128xf32> to vector<32x128xf32>
    %185 = tpu.concatenate %174, %174 in 1 : vector<32x32xf32>, vector<32x32xf32> -> vector<32x64xf32>
    %cst_158 = arith.constant 0.000000e+00 : f32
    %186 = vector.broadcast %cst_158 : f32 to vector<32x64xf32>
    %187 = arith.select %12, %185, %186 : vector<32x64xi1>, vector<32x64xf32>
    %c0_159 = arith.constant 0 : index
    %c0_160 = arith.constant 0 : index
    %188 = vector.load %arg3[%c0_159, %c0_160] : memref<64x128xf32, #tpu.memory_space<vmem>>, vector<64x128xf32>
    %cst_161 = arith.constant dense<0.000000e+00> : vector<32x128xf32>
    %189 = tpu.matmul %187, %188, %cst_161 {dimension_numbers = #tpu.dot_dimension_numbers<[1], [0], [0], [1], [0, 0, 1, 1], [], []>} : vector<32x64xf32>, vector<64x128xf32>, vector<32x128xf32> -> vector<32x128xf32>
    %190 = arith.addf %184, %189 : vector<32x128xf32>
    %191 = arith.negf %190 : vector<32x128xf32>
    %192 = math.exp %191 : vector<32x128xf32>
    %cst_162 = arith.constant 1.000000e+00 : f32
    %193 = vector.broadcast %cst_162 : f32 to vector<32x128xf32>
    %194 = arith.addf %193, %192 : vector<32x128xf32>
    %195 = arith.divf %193, %194 : vector<32x128xf32>
    %196 = vector.extract_strided_slice %195 {offsets = [0, 0], sizes = [32, 32], strides = [1, 1]} : vector<32x128xf32> to vector<32x32xf32>
    %197 = vector.extract_strided_slice %195 {offsets = [0, 32], sizes = [32, 32], strides = [1, 1]} : vector<32x128xf32> to vector<32x32xf32>
    %198 = vector.extract_strided_slice %195 {offsets = [0, 96], sizes = [32, 32], strides = [1, 1]} : vector<32x128xf32> to vector<32x32xf32>
    %199 = vector.extract_strided_slice %190 {offsets = [0, 64], sizes = [32, 32], strides = [1, 1]} : vector<32x128xf32> to vector<32x32xf32>
    %200 = math.tanh %199 : vector<32x32xf32>
    %201 = arith.mulf %197, %172 : vector<32x32xf32>
    %202 = arith.mulf %196, %200 : vector<32x32xf32>
    %203 = arith.addf %201, %202 : vector<32x32xf32>
    %204 = math.tanh %203 : vector<32x32xf32>
    %205 = arith.mulf %198, %204 : vector<32x32xf32>
    %206 = vector.extract_strided_slice %205 {offsets = [0, 0], sizes = [16, 32], strides = [1, 1]} : vector<32x32xf32> to vector<16x32xf32>
    %c1_163 = arith.constant 1 : index
    %c0_164 = arith.constant 0 : index
    %c0_165 = arith.constant 0 : index
    %207 = vector.load %arg12[%c1_163, %c0_164, %c0_165] : memref<8x16x64xf32, #tpu.memory_space<vmem>>, vector<1x16x32xf32>
    %208 = vector.shape_cast %207 : vector<1x16x32xf32> to vector<16x32xf32>
    %209 = vector.shape_cast %206 : vector<16x32xf32> to vector<1x16x32xf32>
    tpu.vector_store %arg12[%c1_163, %c0_164, %c0_165], %209 {strides = array<i32>} : memref<8x16x64xf32, #tpu.memory_space<vmem>>, vector<1x16x32xf32>,
    %210 = vector.extract_strided_slice %205 {offsets = [16, 0], sizes = [16, 32], strides = [1, 1]} : vector<32x32xf32> to vector<16x32xf32>
    %c6_166 = arith.constant 6 : index
    %c0_167 = arith.constant 0 : index
    %c32_168 = arith.constant 32 : index
    %211 = vector.load %arg12[%c6_166, %c0_167, %c32_168] : memref<8x16x64xf32, #tpu.memory_space<vmem>>, vector<1x16x32xf32>
    %212 = vector.shape_cast %211 : vector<1x16x32xf32> to vector<16x32xf32>
    %213 = vector.shape_cast %210 : vector<16x32xf32> to vector<1x16x32xf32>
    tpu.vector_store %arg12[%c6_166, %c0_167, %c32_168], %213 {strides = array<i32>} : memref<8x16x64xf32, #tpu.memory_space<vmem>>, vector<1x16x32xf32>,
    %c2_169 = arith.constant 2 : index
    %c0_170 = arith.constant 0 : index
    %c0_171 = arith.constant 0 : index
    %214 = vector.load %arg11[%c2_169, %c0_170, %c0_171] : memref<8x32x128xf32, #tpu.memory_space<vmem>>, vector<1x32x128xf32>
    %215 = vector.shape_cast %214 : vector<1x32x128xf32> to vector<32x128xf32>
    %216 = tpu.concatenate %205, %205 in 1 : vector<32x32xf32>, vector<32x32xf32> -> vector<32x64xf32>
    %cst_172 = arith.constant 0.000000e+00 : f32
    %217 = vector.broadcast %cst_172 : f32 to vector<32x64xf32>
    %218 = arith.select %12, %216, %217 : vector<32x64xi1>, vector<32x64xf32>
    %c0_173 = arith.constant 0 : index
    %c0_174 = arith.constant 0 : index
    %219 = vector.load %arg3[%c0_173, %c0_174] : memref<64x128xf32, #tpu.memory_space<vmem>>, vector<64x128xf32>
    %cst_175 = arith.constant dense<0.000000e+00> : vector<32x128xf32>
    %220 = tpu.matmul %218, %219, %cst_175 {dimension_numbers = #tpu.dot_dimension_numbers<[1], [0], [0], [1], [0, 0, 1, 1], [], []>} : vector<32x64xf32>, vector<64x128xf32>, vector<32x128xf32> -> vector<32x128xf32>
    %221 = arith.addf %215, %220 : vector<32x128xf32>
    %222 = arith.negf %221 : vector<32x128xf32>
    %223 = math.exp %222 : vector<32x128xf32>
    %cst_176 = arith.constant 1.000000e+00 : f32
    %224 = vector.broadcast %cst_176 : f32 to vector<32x128xf32>
    %225 = arith.addf %224, %223 : vector<32x128xf32>
    %226 = arith.divf %224, %225 : vector<32x128xf32>
    %227 = vector.extract_strided_slice %226 {offsets = [0, 0], sizes = [32, 32], strides = [1, 1]} : vector<32x128xf32> to vector<32x32xf32>
    %228 = vector.extract_strided_slice %226 {offsets = [0, 32], sizes = [32, 32], strides = [1, 1]} : vector<32x128xf32> to vector<32x32xf32>
    %229 = vector.extract_strided_slice %226 {offsets = [0, 96], sizes = [32, 32], strides = [1, 1]} : vector<32x128xf32> to vector<32x32xf32>
    %230 = vector.extract_strided_slice %221 {offsets = [0, 64], sizes = [32, 32], strides = [1, 1]} : vector<32x128xf32> to vector<32x32xf32>
    %231 = math.tanh %230 : vector<32x32xf32>
    %232 = arith.mulf %228, %203 : vector<32x32xf32>
    %233 = arith.mulf %227, %231 : vector<32x32xf32>
    %234 = arith.addf %232, %233 : vector<32x32xf32>
    %235 = math.tanh %234 : vector<32x32xf32>
    %236 = arith.mulf %229, %235 : vector<32x32xf32>
    %237 = vector.extract_strided_slice %236 {offsets = [0, 0], sizes = [16, 32], strides = [1, 1]} : vector<32x32xf32> to vector<16x32xf32>
    %c2_177 = arith.constant 2 : index
    %c0_178 = arith.constant 0 : index
    %c0_179 = arith.constant 0 : index
    %238 = vector.load %arg12[%c2_177, %c0_178, %c0_179] : memref<8x16x64xf32, #tpu.memory_space<vmem>>, vector<1x16x32xf32>
    %239 = vector.shape_cast %238 : vector<1x16x32xf32> to vector<16x32xf32>
    %240 = vector.shape_cast %237 : vector<16x32xf32> to vector<1x16x32xf32>
    tpu.vector_store %arg12[%c2_177, %c0_178, %c0_179], %240 {strides = array<i32>} : memref<8x16x64xf32, #tpu.memory_space<vmem>>, vector<1x16x32xf32>,
    %241 = vector.extract_strided_slice %236 {offsets = [16, 0], sizes = [16, 32], strides = [1, 1]} : vector<32x32xf32> to vector<16x32xf32>
    %c5_180 = arith.constant 5 : index
    %c0_181 = arith.constant 0 : index
    %c32_182 = arith.constant 32 : index
    %242 = vector.load %arg12[%c5_180, %c0_181, %c32_182] : memref<8x16x64xf32, #tpu.memory_space<vmem>>, vector<1x16x32xf32>
    %243 = vector.shape_cast %242 : vector<1x16x32xf32> to vector<16x32xf32>
    %244 = vector.shape_cast %241 : vector<16x32xf32> to vector<1x16x32xf32>
    tpu.vector_store %arg12[%c5_180, %c0_181, %c32_182], %244 {strides = array<i32>} : memref<8x16x64xf32, #tpu.memory_space<vmem>>, vector<1x16x32xf32>,
    %c3_183 = arith.constant 3 : index
    %c0_184 = arith.constant 0 : index
    %c0_185 = arith.constant 0 : index
    %245 = vector.load %arg11[%c3_183, %c0_184, %c0_185] : memref<8x32x128xf32, #tpu.memory_space<vmem>>, vector<1x32x128xf32>
    %246 = vector.shape_cast %245 : vector<1x32x128xf32> to vector<32x128xf32>
    %247 = tpu.concatenate %236, %236 in 1 : vector<32x32xf32>, vector<32x32xf32> -> vector<32x64xf32>
    %cst_186 = arith.constant 0.000000e+00 : f32
    %248 = vector.broadcast %cst_186 : f32 to vector<32x64xf32>
    %249 = arith.select %12, %247, %248 : vector<32x64xi1>, vector<32x64xf32>
    %c0_187 = arith.constant 0 : index
    %c0_188 = arith.constant 0 : index
    %250 = vector.load %arg3[%c0_187, %c0_188] : memref<64x128xf32, #tpu.memory_space<vmem>>, vector<64x128xf32>
    %cst_189 = arith.constant dense<0.000000e+00> : vector<32x128xf32>
    %251 = tpu.matmul %249, %250, %cst_189 {dimension_numbers = #tpu.dot_dimension_numbers<[1], [0], [0], [1], [0, 0, 1, 1], [], []>} : vector<32x64xf32>, vector<64x128xf32>, vector<32x128xf32> -> vector<32x128xf32>
    %252 = arith.addf %246, %251 : vector<32x128xf32>
    %253 = arith.negf %252 : vector<32x128xf32>
    %254 = math.exp %253 : vector<32x128xf32>
    %cst_190 = arith.constant 1.000000e+00 : f32
    %255 = vector.broadcast %cst_190 : f32 to vector<32x128xf32>
    %256 = arith.addf %255, %254 : vector<32x128xf32>
    %257 = arith.divf %255, %256 : vector<32x128xf32>
    %258 = vector.extract_strided_slice %257 {offsets = [0, 0], sizes = [32, 32], strides = [1, 1]} : vector<32x128xf32> to vector<32x32xf32>
    %259 = vector.extract_strided_slice %257 {offsets = [0, 32], sizes = [32, 32], strides = [1, 1]} : vector<32x128xf32> to vector<32x32xf32>
    %260 = vector.extract_strided_slice %257 {offsets = [0, 96], sizes = [32, 32], strides = [1, 1]} : vector<32x128xf32> to vector<32x32xf32>
    %261 = vector.extract_strided_slice %252 {offsets = [0, 64], sizes = [32, 32], strides = [1, 1]} : vector<32x128xf32> to vector<32x32xf32>
    %262 = math.tanh %261 : vector<32x32xf32>
    %263 = arith.mulf %259, %234 : vector<32x32xf32>
    %264 = arith.mulf %258, %262 : vector<32x32xf32>
    %265 = arith.addf %263, %264 : vector<32x32xf32>
    %266 = math.tanh %265 : vector<32x32xf32>
    %267 = arith.mulf %260, %266 : vector<32x32xf32>
    %268 = vector.extract_strided_slice %267 {offsets = [0, 0], sizes = [16, 32], strides = [1, 1]} : vector<32x32xf32> to vector<16x32xf32>
    %c3_191 = arith.constant 3 : index
    %c0_192 = arith.constant 0 : index
    %c0_193 = arith.constant 0 : index
    %269 = vector.load %arg12[%c3_191, %c0_192, %c0_193] : memref<8x16x64xf32, #tpu.memory_space<vmem>>, vector<1x16x32xf32>
    %270 = vector.shape_cast %269 : vector<1x16x32xf32> to vector<16x32xf32>
    %271 = vector.shape_cast %268 : vector<16x32xf32> to vector<1x16x32xf32>
    tpu.vector_store %arg12[%c3_191, %c0_192, %c0_193], %271 {strides = array<i32>} : memref<8x16x64xf32, #tpu.memory_space<vmem>>, vector<1x16x32xf32>,
    %272 = vector.extract_strided_slice %267 {offsets = [16, 0], sizes = [16, 32], strides = [1, 1]} : vector<32x32xf32> to vector<16x32xf32>
    %c4_194 = arith.constant 4 : index
    %c0_195 = arith.constant 0 : index
    %c32_196 = arith.constant 32 : index
    %273 = vector.load %arg12[%c4_194, %c0_195, %c32_196] : memref<8x16x64xf32, #tpu.memory_space<vmem>>, vector<1x16x32xf32>
    %274 = vector.shape_cast %273 : vector<1x16x32xf32> to vector<16x32xf32>
    %275 = vector.shape_cast %272 : vector<16x32xf32> to vector<1x16x32xf32>
    tpu.vector_store %arg12[%c4_194, %c0_195, %c32_196], %275 {strides = array<i32>} : memref<8x16x64xf32, #tpu.memory_space<vmem>>, vector<1x16x32xf32>,
    %c4_197 = arith.constant 4 : index
    %c0_198 = arith.constant 0 : index
    %c0_199 = arith.constant 0 : index
    %276 = vector.load %arg11[%c4_197, %c0_198, %c0_199] : memref<8x32x128xf32, #tpu.memory_space<vmem>>, vector<1x32x128xf32>
    %277 = vector.shape_cast %276 : vector<1x32x128xf32> to vector<32x128xf32>
    %278 = tpu.concatenate %267, %267 in 1 : vector<32x32xf32>, vector<32x32xf32> -> vector<32x64xf32>
    %cst_200 = arith.constant 0.000000e+00 : f32
    %279 = vector.broadcast %cst_200 : f32 to vector<32x64xf32>
    %280 = arith.select %12, %278, %279 : vector<32x64xi1>, vector<32x64xf32>
    %c0_201 = arith.constant 0 : index
    %c0_202 = arith.constant 0 : index
    %281 = vector.load %arg3[%c0_201, %c0_202] : memref<64x128xf32, #tpu.memory_space<vmem>>, vector<64x128xf32>
    %cst_203 = arith.constant dense<0.000000e+00> : vector<32x128xf32>
    %282 = tpu.matmul %280, %281, %cst_203 {dimension_numbers = #tpu.dot_dimension_numbers<[1], [0], [0], [1], [0, 0, 1, 1], [], []>} : vector<32x64xf32>, vector<64x128xf32>, vector<32x128xf32> -> vector<32x128xf32>
    %283 = arith.addf %277, %282 : vector<32x128xf32>
    %284 = arith.negf %283 : vector<32x128xf32>
    %285 = math.exp %284 : vector<32x128xf32>
    %cst_204 = arith.constant 1.000000e+00 : f32
    %286 = vector.broadcast %cst_204 : f32 to vector<32x128xf32>
    %287 = arith.addf %286, %285 : vector<32x128xf32>
    %288 = arith.divf %286, %287 : vector<32x128xf32>
    %289 = vector.extract_strided_slice %288 {offsets = [0, 0], sizes = [32, 32], strides = [1, 1]} : vector<32x128xf32> to vector<32x32xf32>
    %290 = vector.extract_strided_slice %288 {offsets = [0, 32], sizes = [32, 32], strides = [1, 1]} : vector<32x128xf32> to vector<32x32xf32>
    %291 = vector.extract_strided_slice %288 {offsets = [0, 96], sizes = [32, 32], strides = [1, 1]} : vector<32x128xf32> to vector<32x32xf32>
    %292 = vector.extract_strided_slice %283 {offsets = [0, 64], sizes = [32, 32], strides = [1, 1]} : vector<32x128xf32> to vector<32x32xf32>
    %293 = math.tanh %292 : vector<32x32xf32>
    %294 = arith.mulf %290, %265 : vector<32x32xf32>
    %295 = arith.mulf %289, %293 : vector<32x32xf32>
    %296 = arith.addf %294, %295 : vector<32x32xf32>
    %297 = math.tanh %296 : vector<32x32xf32>
    %298 = arith.mulf %291, %297 : vector<32x32xf32>
    %299 = vector.extract_strided_slice %298 {offsets = [0, 0], sizes = [16, 32], strides = [1, 1]} : vector<32x32xf32> to vector<16x32xf32>
    %c4_205 = arith.constant 4 : index
    %c0_206 = arith.constant 0 : index
    %c0_207 = arith.constant 0 : index
    %300 = vector.load %arg12[%c4_205, %c0_206, %c0_207] : memref<8x16x64xf32, #tpu.memory_space<vmem>>, vector<1x16x32xf32>
    %301 = vector.shape_cast %300 : vector<1x16x32xf32> to vector<16x32xf32>
    %302 = vector.shape_cast %299 : vector<16x32xf32> to vector<1x16x32xf32>
    tpu.vector_store %arg12[%c4_205, %c0_206, %c0_207], %302 {strides = array<i32>} : memref<8x16x64xf32, #tpu.memory_space<vmem>>, vector<1x16x32xf32>,
    %303 = vector.extract_strided_slice %298 {offsets = [16, 0], sizes = [16, 32], strides = [1, 1]} : vector<32x32xf32> to vector<16x32xf32>
    %c3_208 = arith.constant 3 : index
    %c0_209 = arith.constant 0 : index
    %c32_210 = arith.constant 32 : index
    %304 = vector.load %arg12[%c3_208, %c0_209, %c32_210] : memref<8x16x64xf32, #tpu.memory_space<vmem>>, vector<1x16x32xf32>
    %305 = vector.shape_cast %304 : vector<1x16x32xf32> to vector<16x32xf32>
    %306 = vector.shape_cast %303 : vector<16x32xf32> to vector<1x16x32xf32>
    tpu.vector_store %arg12[%c3_208, %c0_209, %c32_210], %306 {strides = array<i32>} : memref<8x16x64xf32, #tpu.memory_space<vmem>>, vector<1x16x32xf32>,
    %c5_211 = arith.constant 5 : index
    %c0_212 = arith.constant 0 : index
    %c0_213 = arith.constant 0 : index
    %307 = vector.load %arg11[%c5_211, %c0_212, %c0_213] : memref<8x32x128xf32, #tpu.memory_space<vmem>>, vector<1x32x128xf32>
    %308 = vector.shape_cast %307 : vector<1x32x128xf32> to vector<32x128xf32>
    %309 = tpu.concatenate %298, %298 in 1 : vector<32x32xf32>, vector<32x32xf32> -> vector<32x64xf32>
    %cst_214 = arith.constant 0.000000e+00 : f32
    %310 = vector.broadcast %cst_214 : f32 to vector<32x64xf32>
    %311 = arith.select %12, %309, %310 : vector<32x64xi1>, vector<32x64xf32>
    %c0_215 = arith.constant 0 : index
    %c0_216 = arith.constant 0 : index
    %312 = vector.load %arg3[%c0_215, %c0_216] : memref<64x128xf32, #tpu.memory_space<vmem>>, vector<64x128xf32>
    %cst_217 = arith.constant dense<0.000000e+00> : vector<32x128xf32>
    %313 = tpu.matmul %311, %312, %cst_217 {dimension_numbers = #tpu.dot_dimension_numbers<[1], [0], [0], [1], [0, 0, 1, 1], [], []>} : vector<32x64xf32>, vector<64x128xf32>, vector<32x128xf32> -> vector<32x128xf32>
    %314 = arith.addf %308, %313 : vector<32x128xf32>
    %315 = arith.negf %314 : vector<32x128xf32>
    %316 = math.exp %315 : vector<32x128xf32>
    %cst_218 = arith.constant 1.000000e+00 : f32
    %317 = vector.broadcast %cst_218 : f32 to vector<32x128xf32>
    %318 = arith.addf %317, %316 : vector<32x128xf32>
    %319 = arith.divf %317, %318 : vector<32x128xf32>
    %320 = vector.extract_strided_slice %319 {offsets = [0, 0], sizes = [32, 32], strides = [1, 1]} : vector<32x128xf32> to vector<32x32xf32>
    %321 = vector.extract_strided_slice %319 {offsets = [0, 32], sizes = [32, 32], strides = [1, 1]} : vector<32x128xf32> to vector<32x32xf32>
    %322 = vector.extract_strided_slice %319 {offsets = [0, 96], sizes = [32, 32], strides = [1, 1]} : vector<32x128xf32> to vector<32x32xf32>
    %323 = vector.extract_strided_slice %314 {offsets = [0, 64], sizes = [32, 32], strides = [1, 1]} : vector<32x128xf32> to vector<32x32xf32>
    %324 = math.tanh %323 : vector<32x32xf32>
    %325 = arith.mulf %321, %296 : vector<32x32xf32>
    %326 = arith.mulf %320, %324 : vector<32x32xf32>
    %327 = arith.addf %325, %326 : vector<32x32xf32>
    %328 = math.tanh %327 : vector<32x32xf32>
    %329 = arith.mulf %322, %328 : vector<32x32xf32>
    %330 = vector.extract_strided_slice %329 {offsets = [0, 0], sizes = [16, 32], strides = [1, 1]} : vector<32x32xf32> to vector<16x32xf32>
    %c5_219 = arith.constant 5 : index
    %c0_220 = arith.constant 0 : index
    %c0_221 = arith.constant 0 : index
    %331 = vector.load %arg12[%c5_219, %c0_220, %c0_221] : memref<8x16x64xf32, #tpu.memory_space<vmem>>, vector<1x16x32xf32>
    %332 = vector.shape_cast %331 : vector<1x16x32xf32> to vector<16x32xf32>
    %333 = vector.shape_cast %330 : vector<16x32xf32> to vector<1x16x32xf32>
    tpu.vector_store %arg12[%c5_219, %c0_220, %c0_221], %333 {strides = array<i32>} : memref<8x16x64xf32, #tpu.memory_space<vmem>>, vector<1x16x32xf32>,
    %334 = vector.extract_strided_slice %329 {offsets = [16, 0], sizes = [16, 32], strides = [1, 1]} : vector<32x32xf32> to vector<16x32xf32>
    %c2_222 = arith.constant 2 : index
    %c0_223 = arith.constant 0 : index
    %c32_224 = arith.constant 32 : index
    %335 = vector.load %arg12[%c2_222, %c0_223, %c32_224] : memref<8x16x64xf32, #tpu.memory_space<vmem>>, vector<1x16x32xf32>
    %336 = vector.shape_cast %335 : vector<1x16x32xf32> to vector<16x32xf32>
    %337 = vector.shape_cast %334 : vector<16x32xf32> to vector<1x16x32xf32>
    tpu.vector_store %arg12[%c2_222, %c0_223, %c32_224], %337 {strides = array<i32>} : memref<8x16x64xf32, #tpu.memory_space<vmem>>, vector<1x16x32xf32>,
    %c6_225 = arith.constant 6 : index
    %c0_226 = arith.constant 0 : index
    %c0_227 = arith.constant 0 : index
    %338 = vector.load %arg11[%c6_225, %c0_226, %c0_227] : memref<8x32x128xf32, #tpu.memory_space<vmem>>, vector<1x32x128xf32>
    %339 = vector.shape_cast %338 : vector<1x32x128xf32> to vector<32x128xf32>
    %340 = tpu.concatenate %329, %329 in 1 : vector<32x32xf32>, vector<32x32xf32> -> vector<32x64xf32>
    %cst_228 = arith.constant 0.000000e+00 : f32
    %341 = vector.broadcast %cst_228 : f32 to vector<32x64xf32>
    %342 = arith.select %12, %340, %341 : vector<32x64xi1>, vector<32x64xf32>
    %c0_229 = arith.constant 0 : index
    %c0_230 = arith.constant 0 : index
    %343 = vector.load %arg3[%c0_229, %c0_230] : memref<64x128xf32, #tpu.memory_space<vmem>>, vector<64x128xf32>
    %cst_231 = arith.constant dense<0.000000e+00> : vector<32x128xf32>
    %344 = tpu.matmul %342, %343, %cst_231 {dimension_numbers = #tpu.dot_dimension_numbers<[1], [0], [0], [1], [0, 0, 1, 1], [], []>} : vector<32x64xf32>, vector<64x128xf32>, vector<32x128xf32> -> vector<32x128xf32>
    %345 = arith.addf %339, %344 : vector<32x128xf32>
    %346 = arith.negf %345 : vector<32x128xf32>
    %347 = math.exp %346 : vector<32x128xf32>
    %cst_232 = arith.constant 1.000000e+00 : f32
    %348 = vector.broadcast %cst_232 : f32 to vector<32x128xf32>
    %349 = arith.addf %348, %347 : vector<32x128xf32>
    %350 = arith.divf %348, %349 : vector<32x128xf32>
    %351 = vector.extract_strided_slice %350 {offsets = [0, 0], sizes = [32, 32], strides = [1, 1]} : vector<32x128xf32> to vector<32x32xf32>
    %352 = vector.extract_strided_slice %350 {offsets = [0, 32], sizes = [32, 32], strides = [1, 1]} : vector<32x128xf32> to vector<32x32xf32>
    %353 = vector.extract_strided_slice %350 {offsets = [0, 96], sizes = [32, 32], strides = [1, 1]} : vector<32x128xf32> to vector<32x32xf32>
    %354 = vector.extract_strided_slice %345 {offsets = [0, 64], sizes = [32, 32], strides = [1, 1]} : vector<32x128xf32> to vector<32x32xf32>
    %355 = math.tanh %354 : vector<32x32xf32>
    %356 = arith.mulf %352, %327 : vector<32x32xf32>
    %357 = arith.mulf %351, %355 : vector<32x32xf32>
    %358 = arith.addf %356, %357 : vector<32x32xf32>
    %359 = math.tanh %358 : vector<32x32xf32>
    %360 = arith.mulf %353, %359 : vector<32x32xf32>
    %361 = vector.extract_strided_slice %360 {offsets = [0, 0], sizes = [16, 32], strides = [1, 1]} : vector<32x32xf32> to vector<16x32xf32>
    %c6_233 = arith.constant 6 : index
    %c0_234 = arith.constant 0 : index
    %c0_235 = arith.constant 0 : index
    %362 = vector.load %arg12[%c6_233, %c0_234, %c0_235] : memref<8x16x64xf32, #tpu.memory_space<vmem>>, vector<1x16x32xf32>
    %363 = vector.shape_cast %362 : vector<1x16x32xf32> to vector<16x32xf32>
    %364 = vector.shape_cast %361 : vector<16x32xf32> to vector<1x16x32xf32>
    tpu.vector_store %arg12[%c6_233, %c0_234, %c0_235], %364 {strides = array<i32>} : memref<8x16x64xf32, #tpu.memory_space<vmem>>, vector<1x16x32xf32>,
    %365 = vector.extract_strided_slice %360 {offsets = [16, 0], sizes = [16, 32], strides = [1, 1]} : vector<32x32xf32> to vector<16x32xf32>
    %c1_236 = arith.constant 1 : index
    %c0_237 = arith.constant 0 : index
    %c32_238 = arith.constant 32 : index
    %366 = vector.load %arg12[%c1_236, %c0_237, %c32_238] : memref<8x16x64xf32, #tpu.memory_space<vmem>>, vector<1x16x32xf32>
    %367 = vector.shape_cast %366 : vector<1x16x32xf32> to vector<16x32xf32>
    %368 = vector.shape_cast %365 : vector<16x32xf32> to vector<1x16x32xf32>
    tpu.vector_store %arg12[%c1_236, %c0_237, %c32_238], %368 {strides = array<i32>} : memref<8x16x64xf32, #tpu.memory_space<vmem>>, vector<1x16x32xf32>,
    %c7_239 = arith.constant 7 : index
    %c0_240 = arith.constant 0 : index
    %c0_241 = arith.constant 0 : index
    %369 = vector.load %arg11[%c7_239, %c0_240, %c0_241] : memref<8x32x128xf32, #tpu.memory_space<vmem>>, vector<1x32x128xf32>
    %370 = vector.shape_cast %369 : vector<1x32x128xf32> to vector<32x128xf32>
    %371 = tpu.concatenate %360, %360 in 1 : vector<32x32xf32>, vector<32x32xf32> -> vector<32x64xf32>
    %cst_242 = arith.constant 0.000000e+00 : f32
    %372 = vector.broadcast %cst_242 : f32 to vector<32x64xf32>
    %373 = arith.select %12, %371, %372 : vector<32x64xi1>, vector<32x64xf32>
    %c0_243 = arith.constant 0 : index
    %c0_244 = arith.constant 0 : index
    %374 = vector.load %arg3[%c0_243, %c0_244] : memref<64x128xf32, #tpu.memory_space<vmem>>, vector<64x128xf32>
    %cst_245 = arith.constant dense<0.000000e+00> : vector<32x128xf32>
    %375 = tpu.matmul %373, %374, %cst_245 {dimension_numbers = #tpu.dot_dimension_numbers<[1], [0], [0], [1], [0, 0, 1, 1], [], []>} : vector<32x64xf32>, vector<64x128xf32>, vector<32x128xf32> -> vector<32x128xf32>
    %376 = arith.addf %370, %375 : vector<32x128xf32>
    %377 = arith.negf %376 : vector<32x128xf32>
    %378 = math.exp %377 : vector<32x128xf32>
    %cst_246 = arith.constant 1.000000e+00 : f32
    %379 = vector.broadcast %cst_246 : f32 to vector<32x128xf32>
    %380 = arith.addf %379, %378 : vector<32x128xf32>
    %381 = arith.divf %379, %380 : vector<32x128xf32>
    %382 = vector.extract_strided_slice %381 {offsets = [0, 0], sizes = [32, 32], strides = [1, 1]} : vector<32x128xf32> to vector<32x32xf32>
    %383 = vector.extract_strided_slice %381 {offsets = [0, 32], sizes = [32, 32], strides = [1, 1]} : vector<32x128xf32> to vector<32x32xf32>
    %384 = vector.extract_strided_slice %381 {offsets = [0, 96], sizes = [32, 32], strides = [1, 1]} : vector<32x128xf32> to vector<32x32xf32>
    %385 = vector.extract_strided_slice %376 {offsets = [0, 64], sizes = [32, 32], strides = [1, 1]} : vector<32x128xf32> to vector<32x32xf32>
    %386 = math.tanh %385 : vector<32x32xf32>
    %387 = arith.mulf %383, %358 : vector<32x32xf32>
    %388 = arith.mulf %382, %386 : vector<32x32xf32>
    %389 = arith.addf %387, %388 : vector<32x32xf32>
    %390 = math.tanh %389 : vector<32x32xf32>
    %391 = arith.mulf %384, %390 : vector<32x32xf32>
    %392 = vector.extract_strided_slice %391 {offsets = [0, 0], sizes = [16, 32], strides = [1, 1]} : vector<32x32xf32> to vector<16x32xf32>
    %c7_247 = arith.constant 7 : index
    %c0_248 = arith.constant 0 : index
    %c0_249 = arith.constant 0 : index
    %393 = vector.load %arg12[%c7_247, %c0_248, %c0_249] : memref<8x16x64xf32, #tpu.memory_space<vmem>>, vector<1x16x32xf32>
    %394 = vector.shape_cast %393 : vector<1x16x32xf32> to vector<16x32xf32>
    %395 = vector.shape_cast %392 : vector<16x32xf32> to vector<1x16x32xf32>
    tpu.vector_store %arg12[%c7_247, %c0_248, %c0_249], %395 {strides = array<i32>} : memref<8x16x64xf32, #tpu.memory_space<vmem>>, vector<1x16x32xf32>,
    %396 = vector.extract_strided_slice %391 {offsets = [16, 0], sizes = [16, 32], strides = [1, 1]} : vector<32x32xf32> to vector<16x32xf32>
    %c0_250 = arith.constant 0 : index
    %c0_251 = arith.constant 0 : index
    %c32_252 = arith.constant 32 : index
    %397 = vector.load %arg12[%c0_250, %c0_251, %c32_252] : memref<8x16x64xf32, #tpu.memory_space<vmem>>, vector<1x16x32xf32>
    %398 = vector.shape_cast %397 : vector<1x16x32xf32> to vector<16x32xf32>
    %399 = vector.shape_cast %396 : vector<16x32xf32> to vector<1x16x32xf32>
    tpu.vector_store %arg12[%c0_250, %c0_251, %c32_252], %399 {strides = array<i32>} : memref<8x16x64xf32, #tpu.memory_space<vmem>>, vector<1x16x32xf32>,
    %c0_253 = arith.constant 0 : index
    %c0_254 = arith.constant 0 : index
    %400 = vector.load %arg7[%c0_253, %c0_254] : memref<2x128xf32, #tpu.memory_space<vmem>>, vector<2x128xf32>
    %401 = vector.extract_strided_slice %400 {offsets = [0, 0], sizes = [1, 128], strides = [1, 1]} : vector<2x128xf32> to vector<1x128xf32>
    %402 = vector.shape_cast %401 : vector<1x128xf32> to vector<1x128xf32>
    %403 = vector.broadcast %402 : vector<1x128xf32> to vector<16x128xf32>
    %404 = vector.extract_strided_slice %400 {offsets = [1, 0], sizes = [1, 128], strides = [1, 1]} : vector<2x128xf32> to vector<1x128xf32>
    %405 = vector.shape_cast %404 : vector<1x128xf32> to vector<1x128xf32>
    %406 = vector.broadcast %405 : vector<1x128xf32> to vector<16x128xf32>
    %c0_255 = arith.constant 0 : index
    %c0_256 = arith.constant 0 : index
    %c0_257 = arith.constant 0 : index
    %407 = vector.load %arg12[%c0_255, %c0_256, %c0_257] : memref<8x16x64xf32, #tpu.memory_space<vmem>>, vector<1x16x64xf32>
    %408 = vector.shape_cast %407 : vector<1x16x64xf32> to vector<16x64xf32>
    %c0_258 = arith.constant 0 : index
    %c0_259 = arith.constant 0 : index
    %409 = vector.load %arg5[%c0_258, %c0_259] : memref<64x256xf32, #tpu.memory_space<vmem>>, vector<64x128xf32>
    %cst_260 = arith.constant dense<0.000000e+00> : vector<16x128xf32>
    %410 = tpu.matmul %408, %409, %cst_260 {dimension_numbers = #tpu.dot_dimension_numbers<[1], [0], [0], [1], [0, 0, 1, 1], [], []>} : vector<16x64xf32>, vector<64x128xf32>, vector<16x128xf32> -> vector<16x128xf32>
    %c7_261 = arith.constant 7 : index
    %c0_262 = arith.constant 0 : index
    %c0_263 = arith.constant 0 : index
    %411 = vector.load %arg12[%c7_261, %c0_262, %c0_263] : memref<8x16x64xf32, #tpu.memory_space<vmem>>, vector<1x16x64xf32>
    %412 = vector.shape_cast %411 : vector<1x16x64xf32> to vector<16x64xf32>
    %c0_264 = arith.constant 0 : index
    %c128_265 = arith.constant 128 : index
    %413 = vector.load %arg5[%c0_264, %c128_265] : memref<64x256xf32, #tpu.memory_space<vmem>>, vector<64x128xf32>
    %cst_266 = arith.constant dense<0.000000e+00> : vector<16x128xf32>
    %414 = tpu.matmul %412, %413, %cst_266 {dimension_numbers = #tpu.dot_dimension_numbers<[1], [0], [0], [1], [0, 0, 1, 1], [], []>} : vector<16x64xf32>, vector<64x128xf32>, vector<16x128xf32> -> vector<16x128xf32>
    %415 = arith.addf %410, %403 : vector<16x128xf32>
    %c0_267 = arith.constant 0 : index
    %c0_268 = arith.constant 0 : index
    %c0_269 = arith.constant 0 : index
    %416 = vector.load %arg11[%c0_267, %c0_268, %c0_269] : memref<8x32x128xf32, #tpu.memory_space<vmem>>, vector<1x16x128xf32>
    %417 = vector.shape_cast %416 : vector<1x16x128xf32> to vector<16x128xf32>
    %418 = vector.shape_cast %415 : vector<16x128xf32> to vector<1x16x128xf32>
    tpu.vector_store %arg11[%c0_267, %c0_268, %c0_269], %418 {strides = array<i32>} : memref<8x32x128xf32, #tpu.memory_space<vmem>>, vector<1x16x128xf32>,
    %419 = arith.addf %414, %406 : vector<16x128xf32>
    %c0_270 = arith.constant 0 : index
    %c16_271 = arith.constant 16 : index
    %c0_272 = arith.constant 0 : index
    %420 = vector.load %arg11[%c0_270, %c16_271, %c0_272] : memref<8x32x128xf32, #tpu.memory_space<vmem>>, vector<1x16x128xf32>
    %421 = vector.shape_cast %420 : vector<1x16x128xf32> to vector<16x128xf32>
    %422 = vector.shape_cast %419 : vector<16x128xf32> to vector<1x16x128xf32>
    tpu.vector_store %arg11[%c0_270, %c16_271, %c0_272], %422 {strides = array<i32>} : memref<8x32x128xf32, #tpu.memory_space<vmem>>, vector<1x16x128xf32>,
    %c1_273 = arith.constant 1 : index
    %c0_274 = arith.constant 0 : index
    %c0_275 = arith.constant 0 : index
    %423 = vector.load %arg12[%c1_273, %c0_274, %c0_275] : memref<8x16x64xf32, #tpu.memory_space<vmem>>, vector<1x16x64xf32>
    %424 = vector.shape_cast %423 : vector<1x16x64xf32> to vector<16x64xf32>
    %c0_276 = arith.constant 0 : index
    %c0_277 = arith.constant 0 : index
    %425 = vector.load %arg5[%c0_276, %c0_277] : memref<64x256xf32, #tpu.memory_space<vmem>>, vector<64x128xf32>
    %cst_278 = arith.constant dense<0.000000e+00> : vector<16x128xf32>
    %426 = tpu.matmul %424, %425, %cst_278 {dimension_numbers = #tpu.dot_dimension_numbers<[1], [0], [0], [1], [0, 0, 1, 1], [], []>} : vector<16x64xf32>, vector<64x128xf32>, vector<16x128xf32> -> vector<16x128xf32>
    %c6_279 = arith.constant 6 : index
    %c0_280 = arith.constant 0 : index
    %c0_281 = arith.constant 0 : index
    %427 = vector.load %arg12[%c6_279, %c0_280, %c0_281] : memref<8x16x64xf32, #tpu.memory_space<vmem>>, vector<1x16x64xf32>
    %428 = vector.shape_cast %427 : vector<1x16x64xf32> to vector<16x64xf32>
    %c0_282 = arith.constant 0 : index
    %c128_283 = arith.constant 128 : index
    %429 = vector.load %arg5[%c0_282, %c128_283] : memref<64x256xf32, #tpu.memory_space<vmem>>, vector<64x128xf32>
    %cst_284 = arith.constant dense<0.000000e+00> : vector<16x128xf32>
    %430 = tpu.matmul %428, %429, %cst_284 {dimension_numbers = #tpu.dot_dimension_numbers<[1], [0], [0], [1], [0, 0, 1, 1], [], []>} : vector<16x64xf32>, vector<64x128xf32>, vector<16x128xf32> -> vector<16x128xf32>
    %431 = arith.addf %426, %403 : vector<16x128xf32>
    %c1_285 = arith.constant 1 : index
    %c0_286 = arith.constant 0 : index
    %c0_287 = arith.constant 0 : index
    %432 = vector.load %arg11[%c1_285, %c0_286, %c0_287] : memref<8x32x128xf32, #tpu.memory_space<vmem>>, vector<1x16x128xf32>
    %433 = vector.shape_cast %432 : vector<1x16x128xf32> to vector<16x128xf32>
    %434 = vector.shape_cast %431 : vector<16x128xf32> to vector<1x16x128xf32>
    tpu.vector_store %arg11[%c1_285, %c0_286, %c0_287], %434 {strides = array<i32>} : memref<8x32x128xf32, #tpu.memory_space<vmem>>, vector<1x16x128xf32>,
    %435 = arith.addf %430, %406 : vector<16x128xf32>
    %c1_288 = arith.constant 1 : index
    %c16_289 = arith.constant 16 : index
    %c0_290 = arith.constant 0 : index
    %436 = vector.load %arg11[%c1_288, %c16_289, %c0_290] : memref<8x32x128xf32, #tpu.memory_space<vmem>>, vector<1x16x128xf32>
    %437 = vector.shape_cast %436 : vector<1x16x128xf32> to vector<16x128xf32>
    %438 = vector.shape_cast %435 : vector<16x128xf32> to vector<1x16x128xf32>
    tpu.vector_store %arg11[%c1_288, %c16_289, %c0_290], %438 {strides = array<i32>} : memref<8x32x128xf32, #tpu.memory_space<vmem>>, vector<1x16x128xf32>,
    %c2_291 = arith.constant 2 : index
    %c0_292 = arith.constant 0 : index
    %c0_293 = arith.constant 0 : index
    %439 = vector.load %arg12[%c2_291, %c0_292, %c0_293] : memref<8x16x64xf32, #tpu.memory_space<vmem>>, vector<1x16x64xf32>
    %440 = vector.shape_cast %439 : vector<1x16x64xf32> to vector<16x64xf32>
    %c0_294 = arith.constant 0 : index
    %c0_295 = arith.constant 0 : index
    %441 = vector.load %arg5[%c0_294, %c0_295] : memref<64x256xf32, #tpu.memory_space<vmem>>, vector<64x128xf32>
    %cst_296 = arith.constant dense<0.000000e+00> : vector<16x128xf32>
    %442 = tpu.matmul %440, %441, %cst_296 {dimension_numbers = #tpu.dot_dimension_numbers<[1], [0], [0], [1], [0, 0, 1, 1], [], []>} : vector<16x64xf32>, vector<64x128xf32>, vector<16x128xf32> -> vector<16x128xf32>
    %c5_297 = arith.constant 5 : index
    %c0_298 = arith.constant 0 : index
    %c0_299 = arith.constant 0 : index
    %443 = vector.load %arg12[%c5_297, %c0_298, %c0_299] : memref<8x16x64xf32, #tpu.memory_space<vmem>>, vector<1x16x64xf32>
    %444 = vector.shape_cast %443 : vector<1x16x64xf32> to vector<16x64xf32>
    %c0_300 = arith.constant 0 : index
    %c128_301 = arith.constant 128 : index
    %445 = vector.load %arg5[%c0_300, %c128_301] : memref<64x256xf32, #tpu.memory_space<vmem>>, vector<64x128xf32>
    %cst_302 = arith.constant dense<0.000000e+00> : vector<16x128xf32>
    %446 = tpu.matmul %444, %445, %cst_302 {dimension_numbers = #tpu.dot_dimension_numbers<[1], [0], [0], [1], [0, 0, 1, 1], [], []>} : vector<16x64xf32>, vector<64x128xf32>, vector<16x128xf32> -> vector<16x128xf32>
    %447 = arith.addf %442, %403 : vector<16x128xf32>
    %c2_303 = arith.constant 2 : index
    %c0_304 = arith.constant 0 : index
    %c0_305 = arith.constant 0 : index
    %448 = vector.load %arg11[%c2_303, %c0_304, %c0_305] : memref<8x32x128xf32, #tpu.memory_space<vmem>>, vector<1x16x128xf32>
    %449 = vector.shape_cast %448 : vector<1x16x128xf32> to vector<16x128xf32>
    %450 = vector.shape_cast %447 : vector<16x128xf32> to vector<1x16x128xf32>
    tpu.vector_store %arg11[%c2_303, %c0_304, %c0_305], %450 {strides = array<i32>} : memref<8x32x128xf32, #tpu.memory_space<vmem>>, vector<1x16x128xf32>,
    %451 = arith.addf %446, %406 : vector<16x128xf32>
    %c2_306 = arith.constant 2 : index
    %c16_307 = arith.constant 16 : index
    %c0_308 = arith.constant 0 : index
    %452 = vector.load %arg11[%c2_306, %c16_307, %c0_308] : memref<8x32x128xf32, #tpu.memory_space<vmem>>, vector<1x16x128xf32>
    %453 = vector.shape_cast %452 : vector<1x16x128xf32> to vector<16x128xf32>
    %454 = vector.shape_cast %451 : vector<16x128xf32> to vector<1x16x128xf32>
    tpu.vector_store %arg11[%c2_306, %c16_307, %c0_308], %454 {strides = array<i32>} : memref<8x32x128xf32, #tpu.memory_space<vmem>>, vector<1x16x128xf32>,
    %c3_309 = arith.constant 3 : index
    %c0_310 = arith.constant 0 : index
    %c0_311 = arith.constant 0 : index
    %455 = vector.load %arg12[%c3_309, %c0_310, %c0_311] : memref<8x16x64xf32, #tpu.memory_space<vmem>>, vector<1x16x64xf32>
    %456 = vector.shape_cast %455 : vector<1x16x64xf32> to vector<16x64xf32>
    %c0_312 = arith.constant 0 : index
    %c0_313 = arith.constant 0 : index
    %457 = vector.load %arg5[%c0_312, %c0_313] : memref<64x256xf32, #tpu.memory_space<vmem>>, vector<64x128xf32>
    %cst_314 = arith.constant dense<0.000000e+00> : vector<16x128xf32>
    %458 = tpu.matmul %456, %457, %cst_314 {dimension_numbers = #tpu.dot_dimension_numbers<[1], [0], [0], [1], [0, 0, 1, 1], [], []>} : vector<16x64xf32>, vector<64x128xf32>, vector<16x128xf32> -> vector<16x128xf32>
    %c4_315 = arith.constant 4 : index
    %c0_316 = arith.constant 0 : index
    %c0_317 = arith.constant 0 : index
    %459 = vector.load %arg12[%c4_315, %c0_316, %c0_317] : memref<8x16x64xf32, #tpu.memory_space<vmem>>, vector<1x16x64xf32>
    %460 = vector.shape_cast %459 : vector<1x16x64xf32> to vector<16x64xf32>
    %c0_318 = arith.constant 0 : index
    %c128_319 = arith.constant 128 : index
    %461 = vector.load %arg5[%c0_318, %c128_319] : memref<64x256xf32, #tpu.memory_space<vmem>>, vector<64x128xf32>
    %cst_320 = arith.constant dense<0.000000e+00> : vector<16x128xf32>
    %462 = tpu.matmul %460, %461, %cst_320 {dimension_numbers = #tpu.dot_dimension_numbers<[1], [0], [0], [1], [0, 0, 1, 1], [], []>} : vector<16x64xf32>, vector<64x128xf32>, vector<16x128xf32> -> vector<16x128xf32>
    %463 = arith.addf %458, %403 : vector<16x128xf32>
    %c3_321 = arith.constant 3 : index
    %c0_322 = arith.constant 0 : index
    %c0_323 = arith.constant 0 : index
    %464 = vector.load %arg11[%c3_321, %c0_322, %c0_323] : memref<8x32x128xf32, #tpu.memory_space<vmem>>, vector<1x16x128xf32>
    %465 = vector.shape_cast %464 : vector<1x16x128xf32> to vector<16x128xf32>
    %466 = vector.shape_cast %463 : vector<16x128xf32> to vector<1x16x128xf32>
    tpu.vector_store %arg11[%c3_321, %c0_322, %c0_323], %466 {strides = array<i32>} : memref<8x32x128xf32, #tpu.memory_space<vmem>>, vector<1x16x128xf32>,
    %467 = arith.addf %462, %406 : vector<16x128xf32>
    %c3_324 = arith.constant 3 : index
    %c16_325 = arith.constant 16 : index
    %c0_326 = arith.constant 0 : index
    %468 = vector.load %arg11[%c3_324, %c16_325, %c0_326] : memref<8x32x128xf32, #tpu.memory_space<vmem>>, vector<1x16x128xf32>
    %469 = vector.shape_cast %468 : vector<1x16x128xf32> to vector<16x128xf32>
    %470 = vector.shape_cast %467 : vector<16x128xf32> to vector<1x16x128xf32>
    tpu.vector_store %arg11[%c3_324, %c16_325, %c0_326], %470 {strides = array<i32>} : memref<8x32x128xf32, #tpu.memory_space<vmem>>, vector<1x16x128xf32>,
    %c4_327 = arith.constant 4 : index
    %c0_328 = arith.constant 0 : index
    %c0_329 = arith.constant 0 : index
    %471 = vector.load %arg12[%c4_327, %c0_328, %c0_329] : memref<8x16x64xf32, #tpu.memory_space<vmem>>, vector<1x16x64xf32>
    %472 = vector.shape_cast %471 : vector<1x16x64xf32> to vector<16x64xf32>
    %c0_330 = arith.constant 0 : index
    %c0_331 = arith.constant 0 : index
    %473 = vector.load %arg5[%c0_330, %c0_331] : memref<64x256xf32, #tpu.memory_space<vmem>>, vector<64x128xf32>
    %cst_332 = arith.constant dense<0.000000e+00> : vector<16x128xf32>
    %474 = tpu.matmul %472, %473, %cst_332 {dimension_numbers = #tpu.dot_dimension_numbers<[1], [0], [0], [1], [0, 0, 1, 1], [], []>} : vector<16x64xf32>, vector<64x128xf32>, vector<16x128xf32> -> vector<16x128xf32>
    %c3_333 = arith.constant 3 : index
    %c0_334 = arith.constant 0 : index
    %c0_335 = arith.constant 0 : index
    %475 = vector.load %arg12[%c3_333, %c0_334, %c0_335] : memref<8x16x64xf32, #tpu.memory_space<vmem>>, vector<1x16x64xf32>
    %476 = vector.shape_cast %475 : vector<1x16x64xf32> to vector<16x64xf32>
    %c0_336 = arith.constant 0 : index
    %c128_337 = arith.constant 128 : index
    %477 = vector.load %arg5[%c0_336, %c128_337] : memref<64x256xf32, #tpu.memory_space<vmem>>, vector<64x128xf32>
    %cst_338 = arith.constant dense<0.000000e+00> : vector<16x128xf32>
    %478 = tpu.matmul %476, %477, %cst_338 {dimension_numbers = #tpu.dot_dimension_numbers<[1], [0], [0], [1], [0, 0, 1, 1], [], []>} : vector<16x64xf32>, vector<64x128xf32>, vector<16x128xf32> -> vector<16x128xf32>
    %479 = arith.addf %474, %403 : vector<16x128xf32>
    %c4_339 = arith.constant 4 : index
    %c0_340 = arith.constant 0 : index
    %c0_341 = arith.constant 0 : index
    %480 = vector.load %arg11[%c4_339, %c0_340, %c0_341] : memref<8x32x128xf32, #tpu.memory_space<vmem>>, vector<1x16x128xf32>
    %481 = vector.shape_cast %480 : vector<1x16x128xf32> to vector<16x128xf32>
    %482 = vector.shape_cast %479 : vector<16x128xf32> to vector<1x16x128xf32>
    tpu.vector_store %arg11[%c4_339, %c0_340, %c0_341], %482 {strides = array<i32>} : memref<8x32x128xf32, #tpu.memory_space<vmem>>, vector<1x16x128xf32>,
    %483 = arith.addf %478, %406 : vector<16x128xf32>
    %c4_342 = arith.constant 4 : index
    %c16_343 = arith.constant 16 : index
    %c0_344 = arith.constant 0 : index
    %484 = vector.load %arg11[%c4_342, %c16_343, %c0_344] : memref<8x32x128xf32, #tpu.memory_space<vmem>>, vector<1x16x128xf32>
    %485 = vector.shape_cast %484 : vector<1x16x128xf32> to vector<16x128xf32>
    %486 = vector.shape_cast %483 : vector<16x128xf32> to vector<1x16x128xf32>
    tpu.vector_store %arg11[%c4_342, %c16_343, %c0_344], %486 {strides = array<i32>} : memref<8x32x128xf32, #tpu.memory_space<vmem>>, vector<1x16x128xf32>,
    %c5_345 = arith.constant 5 : index
    %c0_346 = arith.constant 0 : index
    %c0_347 = arith.constant 0 : index
    %487 = vector.load %arg12[%c5_345, %c0_346, %c0_347] : memref<8x16x64xf32, #tpu.memory_space<vmem>>, vector<1x16x64xf32>
    %488 = vector.shape_cast %487 : vector<1x16x64xf32> to vector<16x64xf32>
    %c0_348 = arith.constant 0 : index
    %c0_349 = arith.constant 0 : index
    %489 = vector.load %arg5[%c0_348, %c0_349] : memref<64x256xf32, #tpu.memory_space<vmem>>, vector<64x128xf32>
    %cst_350 = arith.constant dense<0.000000e+00> : vector<16x128xf32>
    %490 = tpu.matmul %488, %489, %cst_350 {dimension_numbers = #tpu.dot_dimension_numbers<[1], [0], [0], [1], [0, 0, 1, 1], [], []>} : vector<16x64xf32>, vector<64x128xf32>, vector<16x128xf32> -> vector<16x128xf32>
    %c2_351 = arith.constant 2 : index
    %c0_352 = arith.constant 0 : index
    %c0_353 = arith.constant 0 : index
    %491 = vector.load %arg12[%c2_351, %c0_352, %c0_353] : memref<8x16x64xf32, #tpu.memory_space<vmem>>, vector<1x16x64xf32>
    %492 = vector.shape_cast %491 : vector<1x16x64xf32> to vector<16x64xf32>
    %c0_354 = arith.constant 0 : index
    %c128_355 = arith.constant 128 : index
    %493 = vector.load %arg5[%c0_354, %c128_355] : memref<64x256xf32, #tpu.memory_space<vmem>>, vector<64x128xf32>
    %cst_356 = arith.constant dense<0.000000e+00> : vector<16x128xf32>
    %494 = tpu.matmul %492, %493, %cst_356 {dimension_numbers = #tpu.dot_dimension_numbers<[1], [0], [0], [1], [0, 0, 1, 1], [], []>} : vector<16x64xf32>, vector<64x128xf32>, vector<16x128xf32> -> vector<16x128xf32>
    %495 = arith.addf %490, %403 : vector<16x128xf32>
    %c5_357 = arith.constant 5 : index
    %c0_358 = arith.constant 0 : index
    %c0_359 = arith.constant 0 : index
    %496 = vector.load %arg11[%c5_357, %c0_358, %c0_359] : memref<8x32x128xf32, #tpu.memory_space<vmem>>, vector<1x16x128xf32>
    %497 = vector.shape_cast %496 : vector<1x16x128xf32> to vector<16x128xf32>
    %498 = vector.shape_cast %495 : vector<16x128xf32> to vector<1x16x128xf32>
    tpu.vector_store %arg11[%c5_357, %c0_358, %c0_359], %498 {strides = array<i32>} : memref<8x32x128xf32, #tpu.memory_space<vmem>>, vector<1x16x128xf32>,
    %499 = arith.addf %494, %406 : vector<16x128xf32>
    %c5_360 = arith.constant 5 : index
    %c16_361 = arith.constant 16 : index
    %c0_362 = arith.constant 0 : index
    %500 = vector.load %arg11[%c5_360, %c16_361, %c0_362] : memref<8x32x128xf32, #tpu.memory_space<vmem>>, vector<1x16x128xf32>
    %501 = vector.shape_cast %500 : vector<1x16x128xf32> to vector<16x128xf32>
    %502 = vector.shape_cast %499 : vector<16x128xf32> to vector<1x16x128xf32>
    tpu.vector_store %arg11[%c5_360, %c16_361, %c0_362], %502 {strides = array<i32>} : memref<8x32x128xf32, #tpu.memory_space<vmem>>, vector<1x16x128xf32>,
    %c6_363 = arith.constant 6 : index
    %c0_364 = arith.constant 0 : index
    %c0_365 = arith.constant 0 : index
    %503 = vector.load %arg12[%c6_363, %c0_364, %c0_365] : memref<8x16x64xf32, #tpu.memory_space<vmem>>, vector<1x16x64xf32>
    %504 = vector.shape_cast %503 : vector<1x16x64xf32> to vector<16x64xf32>
    %c0_366 = arith.constant 0 : index
    %c0_367 = arith.constant 0 : index
    %505 = vector.load %arg5[%c0_366, %c0_367] : memref<64x256xf32, #tpu.memory_space<vmem>>, vector<64x128xf32>
    %cst_368 = arith.constant dense<0.000000e+00> : vector<16x128xf32>
    %506 = tpu.matmul %504, %505, %cst_368 {dimension_numbers = #tpu.dot_dimension_numbers<[1], [0], [0], [1], [0, 0, 1, 1], [], []>} : vector<16x64xf32>, vector<64x128xf32>, vector<16x128xf32> -> vector<16x128xf32>
    %c1_369 = arith.constant 1 : index
    %c0_370 = arith.constant 0 : index
    %c0_371 = arith.constant 0 : index
    %507 = vector.load %arg12[%c1_369, %c0_370, %c0_371] : memref<8x16x64xf32, #tpu.memory_space<vmem>>, vector<1x16x64xf32>
    %508 = vector.shape_cast %507 : vector<1x16x64xf32> to vector<16x64xf32>
    %c0_372 = arith.constant 0 : index
    %c128_373 = arith.constant 128 : index
    %509 = vector.load %arg5[%c0_372, %c128_373] : memref<64x256xf32, #tpu.memory_space<vmem>>, vector<64x128xf32>
    %cst_374 = arith.constant dense<0.000000e+00> : vector<16x128xf32>
    %510 = tpu.matmul %508, %509, %cst_374 {dimension_numbers = #tpu.dot_dimension_numbers<[1], [0], [0], [1], [0, 0, 1, 1], [], []>} : vector<16x64xf32>, vector<64x128xf32>, vector<16x128xf32> -> vector<16x128xf32>
    %511 = arith.addf %506, %403 : vector<16x128xf32>
    %c6_375 = arith.constant 6 : index
    %c0_376 = arith.constant 0 : index
    %c0_377 = arith.constant 0 : index
    %512 = vector.load %arg11[%c6_375, %c0_376, %c0_377] : memref<8x32x128xf32, #tpu.memory_space<vmem>>, vector<1x16x128xf32>
    %513 = vector.shape_cast %512 : vector<1x16x128xf32> to vector<16x128xf32>
    %514 = vector.shape_cast %511 : vector<16x128xf32> to vector<1x16x128xf32>
    tpu.vector_store %arg11[%c6_375, %c0_376, %c0_377], %514 {strides = array<i32>} : memref<8x32x128xf32, #tpu.memory_space<vmem>>, vector<1x16x128xf32>,
    %515 = arith.addf %510, %406 : vector<16x128xf32>
    %c6_378 = arith.constant 6 : index
    %c16_379 = arith.constant 16 : index
    %c0_380 = arith.constant 0 : index
    %516 = vector.load %arg11[%c6_378, %c16_379, %c0_380] : memref<8x32x128xf32, #tpu.memory_space<vmem>>, vector<1x16x128xf32>
    %517 = vector.shape_cast %516 : vector<1x16x128xf32> to vector<16x128xf32>
    %518 = vector.shape_cast %515 : vector<16x128xf32> to vector<1x16x128xf32>
    tpu.vector_store %arg11[%c6_378, %c16_379, %c0_380], %518 {strides = array<i32>} : memref<8x32x128xf32, #tpu.memory_space<vmem>>, vector<1x16x128xf32>,
    %c7_381 = arith.constant 7 : index
    %c0_382 = arith.constant 0 : index
    %c0_383 = arith.constant 0 : index
    %519 = vector.load %arg12[%c7_381, %c0_382, %c0_383] : memref<8x16x64xf32, #tpu.memory_space<vmem>>, vector<1x16x64xf32>
    %520 = vector.shape_cast %519 : vector<1x16x64xf32> to vector<16x64xf32>
    %c0_384 = arith.constant 0 : index
    %c0_385 = arith.constant 0 : index
    %521 = vector.load %arg5[%c0_384, %c0_385] : memref<64x256xf32, #tpu.memory_space<vmem>>, vector<64x128xf32>
    %cst_386 = arith.constant dense<0.000000e+00> : vector<16x128xf32>
    %522 = tpu.matmul %520, %521, %cst_386 {dimension_numbers = #tpu.dot_dimension_numbers<[1], [0], [0], [1], [0, 0, 1, 1], [], []>} : vector<16x64xf32>, vector<64x128xf32>, vector<16x128xf32> -> vector<16x128xf32>
    %c0_387 = arith.constant 0 : index
    %c0_388 = arith.constant 0 : index
    %c0_389 = arith.constant 0 : index
    %523 = vector.load %arg12[%c0_387, %c0_388, %c0_389] : memref<8x16x64xf32, #tpu.memory_space<vmem>>, vector<1x16x64xf32>
    %524 = vector.shape_cast %523 : vector<1x16x64xf32> to vector<16x64xf32>
    %c0_390 = arith.constant 0 : index
    %c128_391 = arith.constant 128 : index
    %525 = vector.load %arg5[%c0_390, %c128_391] : memref<64x256xf32, #tpu.memory_space<vmem>>, vector<64x128xf32>
    %cst_392 = arith.constant dense<0.000000e+00> : vector<16x128xf32>
    %526 = tpu.matmul %524, %525, %cst_392 {dimension_numbers = #tpu.dot_dimension_numbers<[1], [0], [0], [1], [0, 0, 1, 1], [], []>} : vector<16x64xf32>, vector<64x128xf32>, vector<16x128xf32> -> vector<16x128xf32>
    %527 = arith.addf %522, %403 : vector<16x128xf32>
    %c7_393 = arith.constant 7 : index
    %c0_394 = arith.constant 0 : index
    %c0_395 = arith.constant 0 : index
    %528 = vector.load %arg11[%c7_393, %c0_394, %c0_395] : memref<8x32x128xf32, #tpu.memory_space<vmem>>, vector<1x16x128xf32>
    %529 = vector.shape_cast %528 : vector<1x16x128xf32> to vector<16x128xf32>
    %530 = vector.shape_cast %527 : vector<16x128xf32> to vector<1x16x128xf32>
    tpu.vector_store %arg11[%c7_393, %c0_394, %c0_395], %530 {strides = array<i32>} : memref<8x32x128xf32, #tpu.memory_space<vmem>>, vector<1x16x128xf32>,
    %531 = arith.addf %526, %406 : vector<16x128xf32>
    %c7_396 = arith.constant 7 : index
    %c16_397 = arith.constant 16 : index
    %c0_398 = arith.constant 0 : index
    %532 = vector.load %arg11[%c7_396, %c16_397, %c0_398] : memref<8x32x128xf32, #tpu.memory_space<vmem>>, vector<1x16x128xf32>
    %533 = vector.shape_cast %532 : vector<1x16x128xf32> to vector<16x128xf32>
    %534 = vector.shape_cast %531 : vector<16x128xf32> to vector<1x16x128xf32>
    tpu.vector_store %arg11[%c7_396, %c16_397, %c0_398], %534 {strides = array<i32>} : memref<8x32x128xf32, #tpu.memory_space<vmem>>, vector<1x16x128xf32>,
    %cst_399 = arith.constant 0.000000e+00 : f32
    %535 = vector.broadcast %cst_399 : f32 to vector<32x32xf32>
    %c0_400 = arith.constant 0 : index
    %c0_401 = arith.constant 0 : index
    %c0_402 = arith.constant 0 : index
    %536 = vector.load %arg11[%c0_400, %c0_401, %c0_402] : memref<8x32x128xf32, #tpu.memory_space<vmem>>, vector<1x32x128xf32>
    %537 = vector.shape_cast %536 : vector<1x32x128xf32> to vector<32x128xf32>
    %538 = tpu.concatenate %535, %535 in 1 : vector<32x32xf32>, vector<32x32xf32> -> vector<32x64xf32>
    %cst_403 = arith.constant 0.000000e+00 : f32
    %539 = vector.broadcast %cst_403 : f32 to vector<32x64xf32>
    %540 = arith.select %12, %538, %539 : vector<32x64xi1>, vector<32x64xf32>
    %c0_404 = arith.constant 0 : index
    %c0_405 = arith.constant 0 : index
    %541 = vector.load %arg6[%c0_404, %c0_405] : memref<64x128xf32, #tpu.memory_space<vmem>>, vector<64x128xf32>
    %cst_406 = arith.constant dense<0.000000e+00> : vector<32x128xf32>
    %542 = tpu.matmul %540, %541, %cst_406 {dimension_numbers = #tpu.dot_dimension_numbers<[1], [0], [0], [1], [0, 0, 1, 1], [], []>} : vector<32x64xf32>, vector<64x128xf32>, vector<32x128xf32> -> vector<32x128xf32>
    %543 = arith.addf %537, %542 : vector<32x128xf32>
    %544 = arith.negf %543 : vector<32x128xf32>
    %545 = math.exp %544 : vector<32x128xf32>
    %cst_407 = arith.constant 1.000000e+00 : f32
    %546 = vector.broadcast %cst_407 : f32 to vector<32x128xf32>
    %547 = arith.addf %546, %545 : vector<32x128xf32>
    %548 = arith.divf %546, %547 : vector<32x128xf32>
    %549 = vector.extract_strided_slice %548 {offsets = [0, 0], sizes = [32, 32], strides = [1, 1]} : vector<32x128xf32> to vector<32x32xf32>
    %550 = vector.extract_strided_slice %548 {offsets = [0, 32], sizes = [32, 32], strides = [1, 1]} : vector<32x128xf32> to vector<32x32xf32>
    %551 = vector.extract_strided_slice %548 {offsets = [0, 96], sizes = [32, 32], strides = [1, 1]} : vector<32x128xf32> to vector<32x32xf32>
    %552 = vector.extract_strided_slice %543 {offsets = [0, 64], sizes = [32, 32], strides = [1, 1]} : vector<32x128xf32> to vector<32x32xf32>
    %553 = math.tanh %552 : vector<32x32xf32>
    %554 = arith.mulf %550, %15 : vector<32x32xf32>
    %555 = arith.mulf %549, %553 : vector<32x32xf32>
    %556 = arith.addf %554, %555 : vector<32x32xf32>
    %557 = math.tanh %556 : vector<32x32xf32>
    %558 = arith.mulf %551, %557 : vector<32x32xf32>
    %559 = vector.extract_strided_slice %558 {offsets = [0, 0], sizes = [16, 32], strides = [1, 1]} : vector<32x32xf32> to vector<16x32xf32>
    %c0_408 = arith.constant 0 : index
    %c0_409 = arith.constant 0 : index
    %560 = vector.load %arg13[%c0_408, %c0_409] : memref<128x64xf32, #tpu.memory_space<vmem>>, vector<16x32xf32>
    tpu.vector_store %arg13[%c0_408, %c0_409], %559 {strides = array<i32>} : memref<128x64xf32, #tpu.memory_space<vmem>>, vector<16x32xf32>,
    %561 = vector.extract_strided_slice %558 {offsets = [16, 0], sizes = [16, 32], strides = [1, 1]} : vector<32x32xf32> to vector<16x32xf32>
    %c112 = arith.constant 112 : index
    %c32_410 = arith.constant 32 : index
    %562 = vector.load %arg13[%c112, %c32_410] : memref<128x64xf32, #tpu.memory_space<vmem>>, vector<16x32xf32>
    tpu.vector_store %arg13[%c112, %c32_410], %561 {strides = array<i32>} : memref<128x64xf32, #tpu.memory_space<vmem>>, vector<16x32xf32>,
    %c1_411 = arith.constant 1 : index
    %c0_412 = arith.constant 0 : index
    %c0_413 = arith.constant 0 : index
    %563 = vector.load %arg11[%c1_411, %c0_412, %c0_413] : memref<8x32x128xf32, #tpu.memory_space<vmem>>, vector<1x32x128xf32>
    %564 = vector.shape_cast %563 : vector<1x32x128xf32> to vector<32x128xf32>
    %565 = tpu.concatenate %558, %558 in 1 : vector<32x32xf32>, vector<32x32xf32> -> vector<32x64xf32>
    %cst_414 = arith.constant 0.000000e+00 : f32
    %566 = vector.broadcast %cst_414 : f32 to vector<32x64xf32>
    %567 = arith.select %12, %565, %566 : vector<32x64xi1>, vector<32x64xf32>
    %c0_415 = arith.constant 0 : index
    %c0_416 = arith.constant 0 : index
    %568 = vector.load %arg6[%c0_415, %c0_416] : memref<64x128xf32, #tpu.memory_space<vmem>>, vector<64x128xf32>
    %cst_417 = arith.constant dense<0.000000e+00> : vector<32x128xf32>
    %569 = tpu.matmul %567, %568, %cst_417 {dimension_numbers = #tpu.dot_dimension_numbers<[1], [0], [0], [1], [0, 0, 1, 1], [], []>} : vector<32x64xf32>, vector<64x128xf32>, vector<32x128xf32> -> vector<32x128xf32>
    %570 = arith.addf %564, %569 : vector<32x128xf32>
    %571 = arith.negf %570 : vector<32x128xf32>
    %572 = math.exp %571 : vector<32x128xf32>
    %cst_418 = arith.constant 1.000000e+00 : f32
    %573 = vector.broadcast %cst_418 : f32 to vector<32x128xf32>
    %574 = arith.addf %573, %572 : vector<32x128xf32>
    %575 = arith.divf %573, %574 : vector<32x128xf32>
    %576 = vector.extract_strided_slice %575 {offsets = [0, 0], sizes = [32, 32], strides = [1, 1]} : vector<32x128xf32> to vector<32x32xf32>
    %577 = vector.extract_strided_slice %575 {offsets = [0, 32], sizes = [32, 32], strides = [1, 1]} : vector<32x128xf32> to vector<32x32xf32>
    %578 = vector.extract_strided_slice %575 {offsets = [0, 96], sizes = [32, 32], strides = [1, 1]} : vector<32x128xf32> to vector<32x32xf32>
    %579 = vector.extract_strided_slice %570 {offsets = [0, 64], sizes = [32, 32], strides = [1, 1]} : vector<32x128xf32> to vector<32x32xf32>
    %580 = math.tanh %579 : vector<32x32xf32>
    %581 = arith.mulf %577, %556 : vector<32x32xf32>
    %582 = arith.mulf %576, %580 : vector<32x32xf32>
    %583 = arith.addf %581, %582 : vector<32x32xf32>
    %584 = math.tanh %583 : vector<32x32xf32>
    %585 = arith.mulf %578, %584 : vector<32x32xf32>
    %586 = vector.extract_strided_slice %585 {offsets = [0, 0], sizes = [16, 32], strides = [1, 1]} : vector<32x32xf32> to vector<16x32xf32>
    %c16_419 = arith.constant 16 : index
    %c0_420 = arith.constant 0 : index
    %587 = vector.load %arg13[%c16_419, %c0_420] : memref<128x64xf32, #tpu.memory_space<vmem>>, vector<16x32xf32>
    tpu.vector_store %arg13[%c16_419, %c0_420], %586 {strides = array<i32>} : memref<128x64xf32, #tpu.memory_space<vmem>>, vector<16x32xf32>,
    %588 = vector.extract_strided_slice %585 {offsets = [16, 0], sizes = [16, 32], strides = [1, 1]} : vector<32x32xf32> to vector<16x32xf32>
    %c96 = arith.constant 96 : index
    %c32_421 = arith.constant 32 : index
    %589 = vector.load %arg13[%c96, %c32_421] : memref<128x64xf32, #tpu.memory_space<vmem>>, vector<16x32xf32>
    tpu.vector_store %arg13[%c96, %c32_421], %588 {strides = array<i32>} : memref<128x64xf32, #tpu.memory_space<vmem>>, vector<16x32xf32>,
    %c2_422 = arith.constant 2 : index
    %c0_423 = arith.constant 0 : index
    %c0_424 = arith.constant 0 : index
    %590 = vector.load %arg11[%c2_422, %c0_423, %c0_424] : memref<8x32x128xf32, #tpu.memory_space<vmem>>, vector<1x32x128xf32>
    %591 = vector.shape_cast %590 : vector<1x32x128xf32> to vector<32x128xf32>
    %592 = tpu.concatenate %585, %585 in 1 : vector<32x32xf32>, vector<32x32xf32> -> vector<32x64xf32>
    %cst_425 = arith.constant 0.000000e+00 : f32
    %593 = vector.broadcast %cst_425 : f32 to vector<32x64xf32>
    %594 = arith.select %12, %592, %593 : vector<32x64xi1>, vector<32x64xf32>
    %c0_426 = arith.constant 0 : index
    %c0_427 = arith.constant 0 : index
    %595 = vector.load %arg6[%c0_426, %c0_427] : memref<64x128xf32, #tpu.memory_space<vmem>>, vector<64x128xf32>
    %cst_428 = arith.constant dense<0.000000e+00> : vector<32x128xf32>
    %596 = tpu.matmul %594, %595, %cst_428 {dimension_numbers = #tpu.dot_dimension_numbers<[1], [0], [0], [1], [0, 0, 1, 1], [], []>} : vector<32x64xf32>, vector<64x128xf32>, vector<32x128xf32> -> vector<32x128xf32>
    %597 = arith.addf %591, %596 : vector<32x128xf32>
    %598 = arith.negf %597 : vector<32x128xf32>
    %599 = math.exp %598 : vector<32x128xf32>
    %cst_429 = arith.constant 1.000000e+00 : f32
    %600 = vector.broadcast %cst_429 : f32 to vector<32x128xf32>
    %601 = arith.addf %600, %599 : vector<32x128xf32>
    %602 = arith.divf %600, %601 : vector<32x128xf32>
    %603 = vector.extract_strided_slice %602 {offsets = [0, 0], sizes = [32, 32], strides = [1, 1]} : vector<32x128xf32> to vector<32x32xf32>
    %604 = vector.extract_strided_slice %602 {offsets = [0, 32], sizes = [32, 32], strides = [1, 1]} : vector<32x128xf32> to vector<32x32xf32>
    %605 = vector.extract_strided_slice %602 {offsets = [0, 96], sizes = [32, 32], strides = [1, 1]} : vector<32x128xf32> to vector<32x32xf32>
    %606 = vector.extract_strided_slice %597 {offsets = [0, 64], sizes = [32, 32], strides = [1, 1]} : vector<32x128xf32> to vector<32x32xf32>
    %607 = math.tanh %606 : vector<32x32xf32>
    %608 = arith.mulf %604, %583 : vector<32x32xf32>
    %609 = arith.mulf %603, %607 : vector<32x32xf32>
    %610 = arith.addf %608, %609 : vector<32x32xf32>
    %611 = math.tanh %610 : vector<32x32xf32>
    %612 = arith.mulf %605, %611 : vector<32x32xf32>
    %613 = vector.extract_strided_slice %612 {offsets = [0, 0], sizes = [16, 32], strides = [1, 1]} : vector<32x32xf32> to vector<16x32xf32>
    %c32_430 = arith.constant 32 : index
    %c0_431 = arith.constant 0 : index
    %614 = vector.load %arg13[%c32_430, %c0_431] : memref<128x64xf32, #tpu.memory_space<vmem>>, vector<16x32xf32>
    tpu.vector_store %arg13[%c32_430, %c0_431], %613 {strides = array<i32>} : memref<128x64xf32, #tpu.memory_space<vmem>>, vector<16x32xf32>,
    %615 = vector.extract_strided_slice %612 {offsets = [16, 0], sizes = [16, 32], strides = [1, 1]} : vector<32x32xf32> to vector<16x32xf32>
    %c80 = arith.constant 80 : index
    %c32_432 = arith.constant 32 : index
    %616 = vector.load %arg13[%c80, %c32_432] : memref<128x64xf32, #tpu.memory_space<vmem>>, vector<16x32xf32>
    tpu.vector_store %arg13[%c80, %c32_432], %615 {strides = array<i32>} : memref<128x64xf32, #tpu.memory_space<vmem>>, vector<16x32xf32>,
    %c3_433 = arith.constant 3 : index
    %c0_434 = arith.constant 0 : index
    %c0_435 = arith.constant 0 : index
    %617 = vector.load %arg11[%c3_433, %c0_434, %c0_435] : memref<8x32x128xf32, #tpu.memory_space<vmem>>, vector<1x32x128xf32>
    %618 = vector.shape_cast %617 : vector<1x32x128xf32> to vector<32x128xf32>
    %619 = tpu.concatenate %612, %612 in 1 : vector<32x32xf32>, vector<32x32xf32> -> vector<32x64xf32>
    %cst_436 = arith.constant 0.000000e+00 : f32
    %620 = vector.broadcast %cst_436 : f32 to vector<32x64xf32>
    %621 = arith.select %12, %619, %620 : vector<32x64xi1>, vector<32x64xf32>
    %c0_437 = arith.constant 0 : index
    %c0_438 = arith.constant 0 : index
    %622 = vector.load %arg6[%c0_437, %c0_438] : memref<64x128xf32, #tpu.memory_space<vmem>>, vector<64x128xf32>
    %cst_439 = arith.constant dense<0.000000e+00> : vector<32x128xf32>
    %623 = tpu.matmul %621, %622, %cst_439 {dimension_numbers = #tpu.dot_dimension_numbers<[1], [0], [0], [1], [0, 0, 1, 1], [], []>} : vector<32x64xf32>, vector<64x128xf32>, vector<32x128xf32> -> vector<32x128xf32>
    %624 = arith.addf %618, %623 : vector<32x128xf32>
    %625 = arith.negf %624 : vector<32x128xf32>
    %626 = math.exp %625 : vector<32x128xf32>
    %cst_440 = arith.constant 1.000000e+00 : f32
    %627 = vector.broadcast %cst_440 : f32 to vector<32x128xf32>
    %628 = arith.addf %627, %626 : vector<32x128xf32>
    %629 = arith.divf %627, %628 : vector<32x128xf32>
    %630 = vector.extract_strided_slice %629 {offsets = [0, 0], sizes = [32, 32], strides = [1, 1]} : vector<32x128xf32> to vector<32x32xf32>
    %631 = vector.extract_strided_slice %629 {offsets = [0, 32], sizes = [32, 32], strides = [1, 1]} : vector<32x128xf32> to vector<32x32xf32>
    %632 = vector.extract_strided_slice %629 {offsets = [0, 96], sizes = [32, 32], strides = [1, 1]} : vector<32x128xf32> to vector<32x32xf32>
    %633 = vector.extract_strided_slice %624 {offsets = [0, 64], sizes = [32, 32], strides = [1, 1]} : vector<32x128xf32> to vector<32x32xf32>
    %634 = math.tanh %633 : vector<32x32xf32>
    %635 = arith.mulf %631, %610 : vector<32x32xf32>
    %636 = arith.mulf %630, %634 : vector<32x32xf32>
    %637 = arith.addf %635, %636 : vector<32x32xf32>
    %638 = math.tanh %637 : vector<32x32xf32>
    %639 = arith.mulf %632, %638 : vector<32x32xf32>
    %640 = vector.extract_strided_slice %639 {offsets = [0, 0], sizes = [16, 32], strides = [1, 1]} : vector<32x32xf32> to vector<16x32xf32>
    %c48 = arith.constant 48 : index
    %c0_441 = arith.constant 0 : index
    %641 = vector.load %arg13[%c48, %c0_441] : memref<128x64xf32, #tpu.memory_space<vmem>>, vector<16x32xf32>
    tpu.vector_store %arg13[%c48, %c0_441], %640 {strides = array<i32>} : memref<128x64xf32, #tpu.memory_space<vmem>>, vector<16x32xf32>,
    %642 = vector.extract_strided_slice %639 {offsets = [16, 0], sizes = [16, 32], strides = [1, 1]} : vector<32x32xf32> to vector<16x32xf32>
    %c64 = arith.constant 64 : index
    %c32_442 = arith.constant 32 : index
    %643 = vector.load %arg13[%c64, %c32_442] : memref<128x64xf32, #tpu.memory_space<vmem>>, vector<16x32xf32>
    tpu.vector_store %arg13[%c64, %c32_442], %642 {strides = array<i32>} : memref<128x64xf32, #tpu.memory_space<vmem>>, vector<16x32xf32>,
    %c4_443 = arith.constant 4 : index
    %c0_444 = arith.constant 0 : index
    %c0_445 = arith.constant 0 : index
    %644 = vector.load %arg11[%c4_443, %c0_444, %c0_445] : memref<8x32x128xf32, #tpu.memory_space<vmem>>, vector<1x32x128xf32>
    %645 = vector.shape_cast %644 : vector<1x32x128xf32> to vector<32x128xf32>
    %646 = tpu.concatenate %639, %639 in 1 : vector<32x32xf32>, vector<32x32xf32> -> vector<32x64xf32>
    %cst_446 = arith.constant 0.000000e+00 : f32
    %647 = vector.broadcast %cst_446 : f32 to vector<32x64xf32>
    %648 = arith.select %12, %646, %647 : vector<32x64xi1>, vector<32x64xf32>
    %c0_447 = arith.constant 0 : index
    %c0_448 = arith.constant 0 : index
    %649 = vector.load %arg6[%c0_447, %c0_448] : memref<64x128xf32, #tpu.memory_space<vmem>>, vector<64x128xf32>
    %cst_449 = arith.constant dense<0.000000e+00> : vector<32x128xf32>
    %650 = tpu.matmul %648, %649, %cst_449 {dimension_numbers = #tpu.dot_dimension_numbers<[1], [0], [0], [1], [0, 0, 1, 1], [], []>} : vector<32x64xf32>, vector<64x128xf32>, vector<32x128xf32> -> vector<32x128xf32>
    %651 = arith.addf %645, %650 : vector<32x128xf32>
    %652 = arith.negf %651 : vector<32x128xf32>
    %653 = math.exp %652 : vector<32x128xf32>
    %cst_450 = arith.constant 1.000000e+00 : f32
    %654 = vector.broadcast %cst_450 : f32 to vector<32x128xf32>
    %655 = arith.addf %654, %653 : vector<32x128xf32>
    %656 = arith.divf %654, %655 : vector<32x128xf32>
    %657 = vector.extract_strided_slice %656 {offsets = [0, 0], sizes = [32, 32], strides = [1, 1]} : vector<32x128xf32> to vector<32x32xf32>
    %658 = vector.extract_strided_slice %656 {offsets = [0, 32], sizes = [32, 32], strides = [1, 1]} : vector<32x128xf32> to vector<32x32xf32>
    %659 = vector.extract_strided_slice %656 {offsets = [0, 96], sizes = [32, 32], strides = [1, 1]} : vector<32x128xf32> to vector<32x32xf32>
    %660 = vector.extract_strided_slice %651 {offsets = [0, 64], sizes = [32, 32], strides = [1, 1]} : vector<32x128xf32> to vector<32x32xf32>
    %661 = math.tanh %660 : vector<32x32xf32>
    %662 = arith.mulf %658, %637 : vector<32x32xf32>
    %663 = arith.mulf %657, %661 : vector<32x32xf32>
    %664 = arith.addf %662, %663 : vector<32x32xf32>
    %665 = math.tanh %664 : vector<32x32xf32>
    %666 = arith.mulf %659, %665 : vector<32x32xf32>
    %667 = vector.extract_strided_slice %666 {offsets = [0, 0], sizes = [16, 32], strides = [1, 1]} : vector<32x32xf32> to vector<16x32xf32>
    %c64_451 = arith.constant 64 : index
    %c0_452 = arith.constant 0 : index
    %668 = vector.load %arg13[%c64_451, %c0_452] : memref<128x64xf32, #tpu.memory_space<vmem>>, vector<16x32xf32>
    tpu.vector_store %arg13[%c64_451, %c0_452], %667 {strides = array<i32>} : memref<128x64xf32, #tpu.memory_space<vmem>>, vector<16x32xf32>,
    %669 = vector.extract_strided_slice %666 {offsets = [16, 0], sizes = [16, 32], strides = [1, 1]} : vector<32x32xf32> to vector<16x32xf32>
    %c48_453 = arith.constant 48 : index
    %c32_454 = arith.constant 32 : index
    %670 = vector.load %arg13[%c48_453, %c32_454] : memref<128x64xf32, #tpu.memory_space<vmem>>, vector<16x32xf32>
    tpu.vector_store %arg13[%c48_453, %c32_454], %669 {strides = array<i32>} : memref<128x64xf32, #tpu.memory_space<vmem>>, vector<16x32xf32>,
    %c5_455 = arith.constant 5 : index
    %c0_456 = arith.constant 0 : index
    %c0_457 = arith.constant 0 : index
    %671 = vector.load %arg11[%c5_455, %c0_456, %c0_457] : memref<8x32x128xf32, #tpu.memory_space<vmem>>, vector<1x32x128xf32>
    %672 = vector.shape_cast %671 : vector<1x32x128xf32> to vector<32x128xf32>
    %673 = tpu.concatenate %666, %666 in 1 : vector<32x32xf32>, vector<32x32xf32> -> vector<32x64xf32>
    %cst_458 = arith.constant 0.000000e+00 : f32
    %674 = vector.broadcast %cst_458 : f32 to vector<32x64xf32>
    %675 = arith.select %12, %673, %674 : vector<32x64xi1>, vector<32x64xf32>
    %c0_459 = arith.constant 0 : index
    %c0_460 = arith.constant 0 : index
    %676 = vector.load %arg6[%c0_459, %c0_460] : memref<64x128xf32, #tpu.memory_space<vmem>>, vector<64x128xf32>
    %cst_461 = arith.constant dense<0.000000e+00> : vector<32x128xf32>
    %677 = tpu.matmul %675, %676, %cst_461 {dimension_numbers = #tpu.dot_dimension_numbers<[1], [0], [0], [1], [0, 0, 1, 1], [], []>} : vector<32x64xf32>, vector<64x128xf32>, vector<32x128xf32> -> vector<32x128xf32>
    %678 = arith.addf %672, %677 : vector<32x128xf32>
    %679 = arith.negf %678 : vector<32x128xf32>
    %680 = math.exp %679 : vector<32x128xf32>
    %cst_462 = arith.constant 1.000000e+00 : f32
    %681 = vector.broadcast %cst_462 : f32 to vector<32x128xf32>
    %682 = arith.addf %681, %680 : vector<32x128xf32>
    %683 = arith.divf %681, %682 : vector<32x128xf32>
    %684 = vector.extract_strided_slice %683 {offsets = [0, 0], sizes = [32, 32], strides = [1, 1]} : vector<32x128xf32> to vector<32x32xf32>
    %685 = vector.extract_strided_slice %683 {offsets = [0, 32], sizes = [32, 32], strides = [1, 1]} : vector<32x128xf32> to vector<32x32xf32>
    %686 = vector.extract_strided_slice %683 {offsets = [0, 96], sizes = [32, 32], strides = [1, 1]} : vector<32x128xf32> to vector<32x32xf32>
    %687 = vector.extract_strided_slice %678 {offsets = [0, 64], sizes = [32, 32], strides = [1, 1]} : vector<32x128xf32> to vector<32x32xf32>
    %688 = math.tanh %687 : vector<32x32xf32>
    %689 = arith.mulf %685, %664 : vector<32x32xf32>
    %690 = arith.mulf %684, %688 : vector<32x32xf32>
    %691 = arith.addf %689, %690 : vector<32x32xf32>
    %692 = math.tanh %691 : vector<32x32xf32>
    %693 = arith.mulf %686, %692 : vector<32x32xf32>
    %694 = vector.extract_strided_slice %693 {offsets = [0, 0], sizes = [16, 32], strides = [1, 1]} : vector<32x32xf32> to vector<16x32xf32>
    %c80_463 = arith.constant 80 : index
    %c0_464 = arith.constant 0 : index
    %695 = vector.load %arg13[%c80_463, %c0_464] : memref<128x64xf32, #tpu.memory_space<vmem>>, vector<16x32xf32>
    tpu.vector_store %arg13[%c80_463, %c0_464], %694 {strides = array<i32>} : memref<128x64xf32, #tpu.memory_space<vmem>>, vector<16x32xf32>,
    %696 = vector.extract_strided_slice %693 {offsets = [16, 0], sizes = [16, 32], strides = [1, 1]} : vector<32x32xf32> to vector<16x32xf32>
    %c32_465 = arith.constant 32 : index
    %c32_466 = arith.constant 32 : index
    %697 = vector.load %arg13[%c32_465, %c32_466] : memref<128x64xf32, #tpu.memory_space<vmem>>, vector<16x32xf32>
    tpu.vector_store %arg13[%c32_465, %c32_466], %696 {strides = array<i32>} : memref<128x64xf32, #tpu.memory_space<vmem>>, vector<16x32xf32>,
    %c6_467 = arith.constant 6 : index
    %c0_468 = arith.constant 0 : index
    %c0_469 = arith.constant 0 : index
    %698 = vector.load %arg11[%c6_467, %c0_468, %c0_469] : memref<8x32x128xf32, #tpu.memory_space<vmem>>, vector<1x32x128xf32>
    %699 = vector.shape_cast %698 : vector<1x32x128xf32> to vector<32x128xf32>
    %700 = tpu.concatenate %693, %693 in 1 : vector<32x32xf32>, vector<32x32xf32> -> vector<32x64xf32>
    %cst_470 = arith.constant 0.000000e+00 : f32
    %701 = vector.broadcast %cst_470 : f32 to vector<32x64xf32>
    %702 = arith.select %12, %700, %701 : vector<32x64xi1>, vector<32x64xf32>
    %c0_471 = arith.constant 0 : index
    %c0_472 = arith.constant 0 : index
    %703 = vector.load %arg6[%c0_471, %c0_472] : memref<64x128xf32, #tpu.memory_space<vmem>>, vector<64x128xf32>
    %cst_473 = arith.constant dense<0.000000e+00> : vector<32x128xf32>
    %704 = tpu.matmul %702, %703, %cst_473 {dimension_numbers = #tpu.dot_dimension_numbers<[1], [0], [0], [1], [0, 0, 1, 1], [], []>} : vector<32x64xf32>, vector<64x128xf32>, vector<32x128xf32> -> vector<32x128xf32>
    %705 = arith.addf %699, %704 : vector<32x128xf32>
    %706 = arith.negf %705 : vector<32x128xf32>
    %707 = math.exp %706 : vector<32x128xf32>
    %cst_474 = arith.constant 1.000000e+00 : f32
    %708 = vector.broadcast %cst_474 : f32 to vector<32x128xf32>
    %709 = arith.addf %708, %707 : vector<32x128xf32>
    %710 = arith.divf %708, %709 : vector<32x128xf32>
    %711 = vector.extract_strided_slice %710 {offsets = [0, 0], sizes = [32, 32], strides = [1, 1]} : vector<32x128xf32> to vector<32x32xf32>
    %712 = vector.extract_strided_slice %710 {offsets = [0, 32], sizes = [32, 32], strides = [1, 1]} : vector<32x128xf32> to vector<32x32xf32>
    %713 = vector.extract_strided_slice %710 {offsets = [0, 96], sizes = [32, 32], strides = [1, 1]} : vector<32x128xf32> to vector<32x32xf32>
    %714 = vector.extract_strided_slice %705 {offsets = [0, 64], sizes = [32, 32], strides = [1, 1]} : vector<32x128xf32> to vector<32x32xf32>
    %715 = math.tanh %714 : vector<32x32xf32>
    %716 = arith.mulf %712, %691 : vector<32x32xf32>
    %717 = arith.mulf %711, %715 : vector<32x32xf32>
    %718 = arith.addf %716, %717 : vector<32x32xf32>
    %719 = math.tanh %718 : vector<32x32xf32>
    %720 = arith.mulf %713, %719 : vector<32x32xf32>
    %721 = vector.extract_strided_slice %720 {offsets = [0, 0], sizes = [16, 32], strides = [1, 1]} : vector<32x32xf32> to vector<16x32xf32>
    %c96_475 = arith.constant 96 : index
    %c0_476 = arith.constant 0 : index
    %722 = vector.load %arg13[%c96_475, %c0_476] : memref<128x64xf32, #tpu.memory_space<vmem>>, vector<16x32xf32>
    tpu.vector_store %arg13[%c96_475, %c0_476], %721 {strides = array<i32>} : memref<128x64xf32, #tpu.memory_space<vmem>>, vector<16x32xf32>,
    %723 = vector.extract_strided_slice %720 {offsets = [16, 0], sizes = [16, 32], strides = [1, 1]} : vector<32x32xf32> to vector<16x32xf32>
    %c16_477 = arith.constant 16 : index
    %c32_478 = arith.constant 32 : index
    %724 = vector.load %arg13[%c16_477, %c32_478] : memref<128x64xf32, #tpu.memory_space<vmem>>, vector<16x32xf32>
    tpu.vector_store %arg13[%c16_477, %c32_478], %723 {strides = array<i32>} : memref<128x64xf32, #tpu.memory_space<vmem>>, vector<16x32xf32>,
    %c7_479 = arith.constant 7 : index
    %c0_480 = arith.constant 0 : index
    %c0_481 = arith.constant 0 : index
    %725 = vector.load %arg11[%c7_479, %c0_480, %c0_481] : memref<8x32x128xf32, #tpu.memory_space<vmem>>, vector<1x32x128xf32>
    %726 = vector.shape_cast %725 : vector<1x32x128xf32> to vector<32x128xf32>
    %727 = tpu.concatenate %720, %720 in 1 : vector<32x32xf32>, vector<32x32xf32> -> vector<32x64xf32>
    %cst_482 = arith.constant 0.000000e+00 : f32
    %728 = vector.broadcast %cst_482 : f32 to vector<32x64xf32>
    %729 = arith.select %12, %727, %728 : vector<32x64xi1>, vector<32x64xf32>
    %c0_483 = arith.constant 0 : index
    %c0_484 = arith.constant 0 : index
    %730 = vector.load %arg6[%c0_483, %c0_484] : memref<64x128xf32, #tpu.memory_space<vmem>>, vector<64x128xf32>
    %cst_485 = arith.constant dense<0.000000e+00> : vector<32x128xf32>
    %731 = tpu.matmul %729, %730, %cst_485 {dimension_numbers = #tpu.dot_dimension_numbers<[1], [0], [0], [1], [0, 0, 1, 1], [], []>} : vector<32x64xf32>, vector<64x128xf32>, vector<32x128xf32> -> vector<32x128xf32>
    %732 = arith.addf %726, %731 : vector<32x128xf32>
    %733 = arith.negf %732 : vector<32x128xf32>
    %734 = math.exp %733 : vector<32x128xf32>
    %cst_486 = arith.constant 1.000000e+00 : f32
    %735 = vector.broadcast %cst_486 : f32 to vector<32x128xf32>
    %736 = arith.addf %735, %734 : vector<32x128xf32>
    %737 = arith.divf %735, %736 : vector<32x128xf32>
    %738 = vector.extract_strided_slice %737 {offsets = [0, 0], sizes = [32, 32], strides = [1, 1]} : vector<32x128xf32> to vector<32x32xf32>
    %739 = vector.extract_strided_slice %737 {offsets = [0, 32], sizes = [32, 32], strides = [1, 1]} : vector<32x128xf32> to vector<32x32xf32>
    %740 = vector.extract_strided_slice %737 {offsets = [0, 96], sizes = [32, 32], strides = [1, 1]} : vector<32x128xf32> to vector<32x32xf32>
    %741 = vector.extract_strided_slice %732 {offsets = [0, 64], sizes = [32, 32], strides = [1, 1]} : vector<32x128xf32> to vector<32x32xf32>
    %742 = math.tanh %741 : vector<32x32xf32>
    %743 = arith.mulf %739, %718 : vector<32x32xf32>
    %744 = arith.mulf %738, %742 : vector<32x32xf32>
    %745 = arith.addf %743, %744 : vector<32x32xf32>
    %746 = math.tanh %745 : vector<32x32xf32>
    %747 = arith.mulf %740, %746 : vector<32x32xf32>
    %748 = vector.extract_strided_slice %747 {offsets = [0, 0], sizes = [16, 32], strides = [1, 1]} : vector<32x32xf32> to vector<16x32xf32>
    %c112_487 = arith.constant 112 : index
    %c0_488 = arith.constant 0 : index
    %749 = vector.load %arg13[%c112_487, %c0_488] : memref<128x64xf32, #tpu.memory_space<vmem>>, vector<16x32xf32>
    tpu.vector_store %arg13[%c112_487, %c0_488], %748 {strides = array<i32>} : memref<128x64xf32, #tpu.memory_space<vmem>>, vector<16x32xf32>,
    %750 = vector.extract_strided_slice %747 {offsets = [16, 0], sizes = [16, 32], strides = [1, 1]} : vector<32x32xf32> to vector<16x32xf32>
    %c0_489 = arith.constant 0 : index
    %c32_490 = arith.constant 32 : index
    %751 = vector.load %arg13[%c0_489, %c32_490] : memref<128x64xf32, #tpu.memory_space<vmem>>, vector<16x32xf32>
    tpu.vector_store %arg13[%c0_489, %c32_490], %750 {strides = array<i32>} : memref<128x64xf32, #tpu.memory_space<vmem>>, vector<16x32xf32>,
    %c0_491 = arith.constant 0 : index
    %c0_492 = arith.constant 0 : index
    %752 = vector.load %arg13[%c0_491, %c0_492] : memref<128x64xf32, #tpu.memory_space<vmem>>, vector<128x64xf32>
    %c0_493 = arith.constant 0 : index
    %c0_494 = arith.constant 0 : index
    %753 = vector.load %arg8[%c0_493, %c0_494] : memref<64x128xf32, #tpu.memory_space<vmem>>, vector<64x128xf32>
    %cst_495 = arith.constant dense<0.000000e+00> : vector<128x128xf32>
    %754 = tpu.matmul %752, %753, %cst_495 {dimension_numbers = #tpu.dot_dimension_numbers<[1], [0], [0], [1], [0, 0, 1, 1], [], []>} : vector<128x64xf32>, vector<64x128xf32>, vector<128x128xf32> -> vector<128x128xf32>
    %c0_496 = arith.constant 0 : index
    %c0_497 = arith.constant 0 : index
    %755 = vector.load %arg9[%c0_496, %c0_497] : memref<1x128xf32, #tpu.memory_space<vmem>>, vector<1x128xf32>
    %756 = vector.broadcast %755 : vector<1x128xf32> to vector<128x128xf32>
    %757 = arith.addf %754, %756 : vector<128x128xf32>
    %c0_498 = arith.constant 0 : index
    %c0_499 = arith.constant 0 : index
    %758 = vector.load %arg10[%c0_498, %c0_499] : memref<128x128xf32, #tpu.memory_space<vmem>>, vector<128x128xf32>
    tpu.vector_store %arg10[%c0_498, %c0_499], %757 {strides = array<i32>} : memref<128x128xf32, #tpu.memory_space<vmem>>, vector<128x128xf32>,
    return
  }
}

</mosaic_0001>

<bundles_post_ra>
// kernel: tpu_custom_call.1
= control target key start
LH: loop header
LB: loop body
LE: loop exit
PB: predicated region body
PF: predicated region fallthrough
CT: control target
= control target key end

     0   :  { %15 = vsyncpa [#allocation6], 0  ;;  %s8131_s0 = inlined_call_operand.hbm [shape: f32[8,16,32], index: 0, kind: input, shape index: {}]   ;;  %s8132_s1 = inlined_call_operand.hbm [shape: f32[16,32], index: 1, kind: input, shape index: {}]   ;;  %s8133_s2 = inlined_call_operand.hbm [shape: f32[32,256], index: 2, kind: input, shape index: {}]   ;;  %s8134_s3 = inlined_call_operand.hbm [shape: f32[64,128], index: 3, kind: input, shape index: {}]   ;;  %s8135_s4 = inlined_call_operand.vmem [shape: f32[2,128], index: 4, kind: input, shape index: {}]   ;;  %s8136_s5 = inlined_call_operand.hbm [shape: f32[64,256], index: 5, kind: input, shape index: {}]   ;;  %s8137_s6 = inlined_call_operand.hbm [shape: f32[64,128], index: 6, kind: input, shape index: {}]   ;;  %s8138_s7 = inlined_call_operand.vmem [shape: f32[2,128], index: 7, kind: input, shape index: {}]   ;;  %s8139_s8 = inlined_call_operand.hbm [shape: f32[64,128], index: 8, kind: input, shape index: {}]   ;;  %s8140_s9 = inlined_call_operand.vmem [shape: f32[1,128], index: 9, kind: input, shape index: {}]   ;;  %s8141_s10 = inlined_call_operand.hbm [shape: f32[128,128], index: 10, kind: output, shape index: {}]  }
   0x1   :  { %16 = vsyncpa [#allocation9], 0 }
   0x2   :  { %17 = vsyncpa [#allocation12], 0 }
   0x3   :  { %18 = vsyncpa [#allocation15], 0 }
   0x4   :  { %19 = vsyncpa [#allocation7], 0  ;;  %s37_s15 = sshll.u32 %s8132_s1, 4  ;;  %s6430_s16 = smov [#allocation8]   ;;  %s38_s15 = int_to_ptr.hbm [resolvable:$true] %s37_s15 }
   0x5   :  { %s39_s17 = sshll.u32 %s6430_s16, 4  ;;  %s63_s20 = sshll.u32 %s8134_s3, 4  ;;  %s40_s17 = int_to_ptr.vmem [resolvable:$true] %s39_s17  ;;  %s64_s20 = int_to_ptr.hbm [resolvable:$true] %s63_s20 }
   0x6   :  { %s6431_s21 = smov 128   ;;  %s6432_s22 = smov 8  }
   0x7   :  { %45 = dma.hbm_to_vmem [thread:$0]  %s38_s15, 256, %s40_s17, [#allocation9], %s6431_s21, %s6431_s21, %s6432_s22  }
   0x8   :  { %s6433_s23 = smov [#allocation11]   ;;  %s91_s1 = sshll.u32 %s8137_s6, 4  ;;  %s92_s1 = int_to_ptr.hbm [resolvable:$true] %s91_s1 }
   0x9   :  { %s65_s24 = sshll.u32 %s6433_s23, 4  ;;  %s24_s28 = sshll.u32 %s8131_s0, 4  ;;  %s66_s24 = int_to_ptr.vmem [resolvable:$true] %s65_s24  ;;  %s25_s28 = int_to_ptr.hbm [resolvable:$true] %s24_s28 }
   0xa   :  { %71 = dma.hbm_to_vmem [thread:$0]  %s64_s20, 1024, %s66_s24, [#allocation12], %s6431_s21, %s6431_s21, %s6432_s22  }
   0xb   :  { %s6434_s29 = smov [#allocation14]   ;;  %s6435_s11 = smov [#allocation5]  }
   0xc   :  { %s93_s30 = sshll.u32 %s6434_s29, 4  ;;  %s26_s6 = sshll.u32 %s6435_s11, 4  ;;  %s94_s30 = int_to_ptr.vmem [resolvable:$true] %s93_s30  ;;  %s27_s6 = int_to_ptr.vmem [resolvable:$true] %s26_s6 }
   0xd   :  { %99 = dma.hbm_to_vmem [thread:$0]  %s92_s1, 1024, %s94_s30, [#allocation15], %s6431_s21, %s6431_s21, %s6432_s22  }
   0xe   :  { %s50_s14 = sshll.u32 %s8133_s2, 4  ;;  %s6436_s0 = smov [#allocation10]   ;;  %s51_s14 = int_to_ptr.hbm [resolvable:$true] %s50_s14 }
   0xf   :  { %32 = dma.hbm_to_vmem [thread:$0]  %s25_s28, 2048, %s27_s6, [#allocation6], %s6431_s21, %s6431_s21, %s6432_s22  }
  0x10   :  { %s52_s15 = sshll.u32 %s6436_s0, 4  ;;  %s78_s18 = sshll.u32 %s8136_s5, 4  ;;  %s53_s15 = int_to_ptr.vmem [resolvable:$true] %s52_s15  ;;  %s79_s18 = int_to_ptr.hbm [resolvable:$true] %s78_s18 }
  0x11   :  { %s6437_s19 = smov 256   ;;  %s6438_s20 = smov 16  }
  0x12   :  { %58 = dma.hbm_to_vmem [thread:$0]  %s51_s14, 1024, %s53_s15, [#allocation9], %s6437_s19, %s6437_s19, %s6438_s20  }
  0x13   :  { %s6439_s23 = smov [#allocation13]   ;;  %s106_s26 = sshll.u32 %s8139_s8, 4  ;;  %s107_s26 = int_to_ptr.hbm [resolvable:$true] %s106_s26 }
  0x14   :  { %s80_s24 = sshll.u32 %s6439_s23, 4  ;;  %s6440_s1 = smov [#allocation16]   ;;  %s81_s24 = int_to_ptr.vmem [resolvable:$true] %s80_s24 }
  0x15   :  { %86 = dma.hbm_to_vmem [thread:$0]  %s79_s18, 2048, %s81_s24, [#allocation12], %s6437_s19, %s6437_s19, %s6438_s20  }
  0x16   :  { %s108_s3 = sshll.u32 %s6440_s1, 4  ;;  %s109_s3 = int_to_ptr.vmem [resolvable:$true] %s108_s3 }
  0x17   :  { %114 = dma.hbm_to_vmem [thread:$0]  %s107_s26, 1024, %s109_s3, [#allocation15], %s6431_s21, %s6431_s21, %s6432_s22  }
  0x18   :  { %6420 = dma.done.wait [#allocation6], 2048  }
  0x19   :  { %6421 = vsyncadd [#allocation6], 4294965248 }
  0x1a   :  { %6422 = dma.done.wait [#allocation9], 1280  }
  0x1b   :  { %6423 = vsyncadd [#allocation9], 4294966016 }
  0x1c   :  { %6424 = dma.done.wait [#allocation12], 3072  }
  0x1d   :  { %6425 = vsyncadd [#allocation12], 4294964224 }
  0x1e   :  { %6426 = dma.done.wait [#allocation15], 2048  }
  0x1f   :  { %6427 = vsyncadd [#allocation15], 4294965248  ;;  %v191_v0 = vld [vmem:[#allocation10 + $0x38] sm:$0xff]  ;;  %v190_v1 = vld [vmem:[#allocation10 + $0x28] sm:$0xff]  ;;  %vm192_vm0 = vcmask 261120   ;;  %v6441_v26 = vmov 0.0  }
  0x20   :  { %242 = vmatpush.msra.mxu1 %v191_v0  ;;  %319 = vmatpush.msra.mxu3 %v191_v0  ;;  %v189_v2 = vld [vmem:[#allocation10 + $0x18] sm:$0xff]  ;;  %v188_v3 = vld [vmem:[#allocation10 + $0x8] sm:$0xff]  ;;  %v6536_v4 = vld [vmem:[#allocation5 + $0x70] sm:$0xff]  ;;  %s6442_s5 = smov 32   ;;  %s6443_s28 = smov 64  }
  0x21   :  { %v6540_v5 = vld [vmem:[#allocation5 + $0x78] sm:$0xff]  ;;  %v6544_v6 = vld [vmem:[#allocation5 + $0x50] sm:$0xff]  ;;  %v184_v7 = vld [vmem:[#allocation10 + $0x30] sm:$0xff]  ;;  %s5484_s13 = sshll.u32 %s8141_s10, 4  ;;  %s5485_s13 = int_to_ptr.hbm [resolvable:$true] %s5484_s13 }
  0x22   :  { %243 = vmatpush.msra.mxu1 %v190_v1  ;;  %320 = vmatpush.msra.mxu3 %v190_v1  ;;  %v6548_v8 = vld [vmem:[#allocation5 + $0x58] sm:$0xff]  ;;  %v183_v9 = vld [vmem:[#allocation10 + $0x20] sm:$0xff]  ;;  %v182_v10 = vld [vmem:[#allocation10 + $0x10] sm:$0xff] }
  0x23   :  { %211 = vmatpush.msra.mxu0 %v184_v7  ;;  %287 = vmatpush.msra.mxu2 %v184_v7  ;;  %v181_v11 = vld [vmem:[#allocation10] sm:$0xff]  ;;  %v179_v12 = vld [vmem:[#allocation5] sm:$0xff]  ;;  %v797_v15 = vld [vmem:[#allocation11 + $0x38] sm:$0xff] }
  0x24   :  { %244 = vmatpush.msra.mxu1 %v189_v2  ;;  %321 = vmatpush.msra.mxu3 %v189_v2  ;;  %v492_v13 = vld [vmem:[#allocation5 + $0x30] sm:$0xff]  ;;  %v796_v16 = vld [vmem:[#allocation11 + $0x30] sm:$0xff]  ;;  %v795_v17 = vld [vmem:[#allocation11 + $0x28] sm:$0xff] }
  0x25   :  { %212 = vmatpush.msra.mxu0 %v183_v9  ;;  %288 = vmatpush.msra.mxu2 %v183_v9  ;;  %v642_v14 = vld [vmem:[#allocation5 + $0x10] sm:$0xff]  ;;  %v180_v18 = vld [vmem:[#allocation5 + $0x8] sm:$0xff]  ;;  %v493_v20 = vld [vmem:[#allocation5 + $0x38] sm:$0xff] }
  0x26   :  { %245 = vmatpush.msra.mxu1 %v188_v3  ;;  %322 = vmatpush.msra.mxu3 %v188_v3  ;;  %v794_v19 = vld [vmem:[#allocation11 + $0x20] sm:$0xff]  ;;  %v643_v21 = vld [vmem:[#allocation5 + $0x18] sm:$0xff]  ;;  %v793_v22 = vld [vmem:[#allocation11 + $0x18] sm:$0xff] }
  0x27   :  { %5502 = vmatmul.msk.f32.vlgmr.msra.gmra.mxu1 %vm192_vm0, %v6536_v4  ;;  %213 = vmatpush.msra.mxu0 %v182_v10  ;;  %v792_v23 = vld [vmem:[#allocation11 + $0x10] sm:$0xff]  ;;  %v791_v24 = vld [vmem:[#allocation11 + $0x8] sm:$0xff]  ;;  %v790_v25 = vld [vmem:[#allocation11] sm:$0xff] }
  0x28   :  { %396 = vmatpush.msrb.mxu1 %v191_v0  ;;  %289 = vmatpush.msra.mxu2 %v182_v10  ;;  %v174_v27 = vld [vmem:[#allocation8] sm:$0xff]  ;;  %v175_v53 = vld [vmem:[#allocation8 + $0x8] sm:$0xff] }
  0x29   :  { %214 = vmatpush.msra.mxu0 %v181_v11  ;;  %917 = vrot.lane.b32.xlu2 %v174_v27, %s6442_s5  ;;  %v176_v35 = vld [vmem:[%s8135_s4] sm:$0x3] }
  0x2a   :  { %397 = vmatpush.msrb.mxu1 %v190_v1  ;;  %290 = vmatpush.msra.mxu2 %v181_v11  ;;  %v6590_v38 = vperm.slane %v176_v35, 0  ;;  %v6595_v47 = vperm.slane %v176_v35, 1 }
  0x2b   :  { %5500 = vmatmul.msk.f32.vlgmr.msra.gmra.mxu0 %vm192_vm0, %v179_v12  ;;  %5504 = vmatmul.msk.f32.vlgmr.msra.gmra.mxu2 %vm192_vm0, %v642_v14 }
  0x2c   :  { %398 = vmatpush.msrb.mxu1 %v189_v2  ;;  %441 = vmatpush.msrb.mxu2 %v184_v7 }
  0x2d   :  { %364 = vmatpush.msrb.mxu0 %v184_v7 }
  0x2e   :  { %399 = vmatpush.msrb.mxu1 %v188_v3  ;;  %442 = vmatpush.msrb.mxu2 %v183_v9 }
  0x2f   :  { %5503 = vmatmul.msk.f32.gmra.mxu1 %vm192_vm0, %v6540_v5  ;;  %365 = vmatpush.msrb.mxu0 %v183_v9 }
  0x30   :  { %548 = vmatpush.msra.mxu1 %v191_v0  ;;  %443 = vmatpush.msrb.mxu2 %v182_v10 }
  0x31   :  { %366 = vmatpush.msrb.mxu0 %v182_v10 }
  0x32   :  { %549 = vmatpush.msra.mxu1 %v190_v1  ;;  %444 = vmatpush.msrb.mxu2 %v181_v11 }
  0x33   :  { %5501 = vmatmul.msk.f32.gmra.mxu0 %vm192_vm0, %v180_v18  ;;  %5505 = vmatmul.msk.f32.gmra.mxu2 %vm192_vm0, %v643_v21 }
  0x34   :  { %550 = vmatpush.msra.mxu1 %v189_v2  ;;  %591 = vmatpush.msra.mxu2 %v184_v7 }
  0x35   :  { %367 = vmatpush.msrb.mxu0 %v181_v11 }
  0x36   :  { %551 = vmatpush.msra.mxu1 %v188_v3  ;;  %592 = vmatpush.msra.mxu2 %v183_v9 }
  0x37   :  { %5510 = vmatmul.msk.f32.vlgmr.msrb.gmra.mxu1 %vm192_vm0, %v6544_v6 }
  0x38   :  { %698 = vmatpush.msrb.mxu1 %v191_v0  ;;  %593 = vmatpush.msra.mxu2 %v182_v10 }
  0x3a   :  { %699 = vmatpush.msrb.mxu1 %v190_v1  ;;  %594 = vmatpush.msra.mxu2 %v181_v11 }
  0x3b   :  { %5512 = vmatmul.msk.f32.vlgmr.msrb.gmra.mxu2 %vm192_vm0, %v492_v13 }
  0x3c   :  { %700 = vmatpush.msrb.mxu1 %v189_v2  ;;  %741 = vmatpush.msrb.mxu2 %v184_v7 }
  0x3e   :  { %701 = vmatpush.msrb.mxu1 %v188_v3  ;;  %742 = vmatpush.msrb.mxu2 %v183_v9 }
  0x3f   :  { %5511 = vmatmul.msk.f32.gmra.mxu1 %vm192_vm0, %v6548_v8 }
  0x40   :  { %743 = vmatpush.msrb.mxu2 %v182_v10 }
  0x42   :  { %744 = vmatpush.msrb.mxu2 %v181_v11 }
  0x43   :  { %5513 = vmatmul.msk.f32.gmra.mxu2 %vm192_vm0, %v493_v20 }
  0x47   :  { %5518 = vmatmul.msk.f32.vlgmr.msra.gmra.mxu1 %vm192_vm0, %v492_v13 }
  0x48   :  { %810 = vmatpush.msra.mxu1 %v797_v15 }
  0x4a   :  { %811 = vmatpush.msra.mxu1 %v796_v16 }
  0x4b   :  { %5520 = vmatmul.msk.f32.vlgmr.msra.gmra.mxu2 %vm192_vm0, %v6544_v6 }
  0x4c   :  { %812 = vmatpush.msra.mxu1 %v795_v17  ;;  %1312 = vmatpush.msra.mxu2 %v797_v15 }
  0x4e   :  { %813 = vmatpush.msra.mxu1 %v794_v19  ;;  %1313 = vmatpush.msra.mxu2 %v796_v16 }
  0x4f   :  { %5519 = vmatmul.msk.f32.gmra.mxu1 %vm192_vm0, %v493_v20 }
  0x50   :  { %814 = vmatpush.msra.mxu1 %v793_v22  ;;  %1314 = vmatpush.msra.mxu2 %v795_v17 }
  0x52   :  { %815 = vmatpush.msra.mxu1 %v792_v23  ;;  %1315 = vmatpush.msra.mxu2 %v794_v19 }
  0x53   :  { %5521 = vmatmul.msk.f32.gmra.mxu2 %vm192_vm0, %v6548_v8 }
  0x54   :  { %816 = vmatpush.msra.mxu1 %v791_v24  ;;  %1316 = vmatpush.msra.mxu2 %v793_v22 }
  0x56   :  { %817 = vmatpush.msra.mxu1 %v790_v25  ;;  %1317 = vmatpush.msra.mxu2 %v792_v23 }
  0x57   :  { %5526 = vmatmul.msk.f32.vlgmr.msrb.gmra.mxu1 %vm192_vm0, %v642_v14 }
  0x58   :  { %1065 = vmatpush.msrb.mxu1 %v797_v15  ;;  %1318 = vmatpush.msra.mxu2 %v791_v24 }
  0x5a   :  { %1066 = vmatpush.msrb.mxu1 %v796_v16  ;;  %1319 = vmatpush.msra.mxu2 %v790_v25 }
  0x5b   :  { %5528 = vmatmul.msk.f32.vlgmr.msrb.gmra.mxu2 %vm192_vm0, %v6536_v4 }
  0x5c   :  { %1067 = vmatpush.msrb.mxu1 %v795_v17 }
  0x5e   :  { %1068 = vmatpush.msrb.mxu1 %v794_v19 }
  0x5f   :  { %5527 = vmatmul.msk.f32.gmra.mxu1 %vm192_vm0, %v643_v21 }
  0x60   :  { %1069 = vmatpush.msrb.mxu1 %v793_v22 }
  0x62   :  { %1070 = vmatpush.msrb.mxu1 %v792_v23 }
  0x63   :  { %5529 = vmatmul.msk.f32.gmra.mxu2 %vm192_vm0, %v6540_v5 }
  0x64   :  { %1071 = vmatpush.msrb.mxu1 %v791_v24 }
  0x66   :  { %1072 = vmatpush.msrb.mxu1 %v790_v25 }
  0x67   :  { %818 = vmatmul.f32.vlgmr.msra.gmra.mxu1 %v6441_v26 }
  0x6f   :  { %821 = vmatmul.f32.gmra.mxu1 %v6441_v26 }
  0x77   :  { %824 = vmatmul.f32.gmra.mxu1 %v6441_v26 }
  0x7f   :  { %827 = vmatmul.f32.gmra.mxu1 %v6441_v26 }
  0xa4   :  { %v247_v28 = vpop.f32.mrf.mxu1 }
  0xa5   :  { %v248_v48 = vadd.f32 %v247_v28, %v6595_v47 }
  0xa8   :  { %v216_v37 = vpop.f32.mrf.mxu0 }
  0xa9   :  { %v217_v39 = vadd.f32 %v216_v37, %v6590_v38 }
  0xac   :  { %v250_v29 = vpop.f32.mrf.mxu1 }
  0xad   :  { %v251_v52 = vadd.f32 %v250_v29, %v6595_v47 }
  0xb0   :  { %v219_v42 = vpop.f32.mrf.mxu0 }
  0xb1   :  { %v220_v43 = vadd.f32 %v219_v42, %v6590_v38 }
  0xb4   :  { %v6575_v30 = vpop.f32.mrf.mxu1 }
  0xbc   :  { %v6577_v31 = vpop.f32.mrf.mxu1 }
  0xc4   :  { %v6579_v32 = vpop.f32.mrf.mxu1 }
  0xcc   :  { %v6581_v33 = vpop.f32.mrf.mxu1 }
  0xd4   :  { %v6583_v34 = vpop.f32.mrf.mxu1 }
  0xdc   :  { %v6588_v36 = vpop.f32.mrf.mxu1 }
  0xe4   :  { %v819_v40 = vpop.f32.mrf.mxu1 }
  0xe5   :  { %v831_v41 = vadd.f32 %v819_v40, %v217_v39 }
  0xe7   :  { %5716 = vtanh.f32 %v831_v41  ;;  %v5532_v58 = vmul.f32 -1.442695, %v831_v41 }
  0xec   :  { %v822_v44 = vpop.f32.mrf.mxu1 }
  0xed   :  { %v5717_v45 = vpop.eup %5716  ;;  %v832_v46 = vadd.f32 %v822_v44, %v220_v43 }
  0xee   :  { %931 = vrot.lane.b32.xlu0 %v5717_v45, %s6443_s28 }
  0xef   :  { %5718 = vtanh.f32 %v832_v46  ;;  %v5533_v59 = vmul.f32 -1.442695, %v832_v46 }
  0xf4   :  { %v825_v49 = vpop.f32.mrf.mxu1 }
  0xf5   :  { %v5719_v50 = vpop.eup %5718  ;;  %v833_v51 = vadd.f32 %v825_v49, %v248_v48 }
  0xf6   :  { %933 = vrot.lane.b32.xlu0 %v5719_v50, %s6443_s28 }
  0xf7   :  { %5720 = vtanh.f32 %v833_v51  ;;  %v5534_v62 = vmul.f32 -1.442695, %v833_v51 }
  0xfc   :  { %v828_v54 = vpop.f32.mrf.mxu1 }
  0xfd   :  { %v5721_v55 = vpop.eup %5720  ;;  %v834_v56 = vadd.f32 %v828_v54, %v251_v52 }
  0xfe   :  { %935 = vrot.lane.b32.xlu1 %v5721_v55, %s6443_s28  ;;  %919 = vrot.lane.b32.xlu0 %v175_v53, %s6442_s5 }
  0xff   :  { %5722 = vtanh.f32 %v834_v56  ;;  %v5535_v2 = vmul.f32 -1.442695, %v834_v56 }
 0x100   :  { %5724 = vpow2.f32 %v5532_v58 }
 0x101   :  { %5726 = vpow2.f32 %v5533_v59 }
 0x105   :  { %v5723_v57 = vpop.eup %5722 }
 0x106   :  { %937 = vrot.lane.b32.xlu1 %v5723_v57, %s6443_s28  ;;  %v5725_v60 = vpop.eup %5724 }
 0x107   :  { %v847_v61 = vadd.f32 1.0, %v5725_v60  ;;  %v5727_v63 = vpop.eup %5726 }
 0x108   :  { %v848_v0 = vadd.f32 1.0, %v5727_v63  ;;  %v6613_v63 = vpop.permute.xlu2 %917 }
 0x109   :  { %5728 = vrcp.f32 %v847_v61  ;;  %v862_v15 = vand.u32 2147483648, %v847_v61  ;;  %vm856_vm2 = vweird.f32 %v847_v61  ;;  %v860_v16 = vand.u32 2147483647, %v847_v61 }
 0x10a   :  { %5730 = vpow2.f32 %v5534_v62  ;;  %v877_v28 = vand.u32 2147483648, %v848_v0  ;;  %vm871_vm6 = vweird.f32 %v848_v0  ;;  %v875_v29 = vand.u32 2147483647, %v848_v0 }
 0x10b   :  { %5732 = vrcp.f32 %v848_v0  ;;  %v863_v20 = vor.u32 1.1754944e-38, %v862_v15  ;;  %vm861_vm4 = vcmp.eq.f32.partialorder %v860_v16, 8.507059e+37 }
 0x10c   :  { %5734 = vpow2.f32 %v5535_v2  ;;  %v878_v40 = vor.u32 1.1754944e-38, %v877_v28  ;;  %vm876_vm8 = vcmp.eq.f32.partialorder %v875_v29, 8.507059e+37  ;;  %v150_v28 = vlaneseq  ;;  %v264_v29 = vld [vmem:[#allocation5 + $0x68] sm:$0xff] }
 0x10f   :  { %v5729_v1 = vpop.eup %5728 }
 0x110   :  { %v5731_v3 = vpop.eup %5730  ;;  %v852_v4 = vmul.f32 %v5729_v1, %v847_v61  ;;  %vm857_vm1 = vweird.f32 %v5729_v1 }
 0x111   :  { %v849_v5 = vadd.f32 1.0, %v5731_v3  ;;  %v5733_v7 = vpop.eup %5732  ;;  %vm858_vm3 = vmor %vm856_vm2, %vm857_vm1 }
 0x112   :  { %v853_v6 = vsub.f32 1.0, %v852_v4  ;;  %v5735_v8 = vpop.eup %5734  ;;  %v867_v10 = vmul.f32 %v5733_v7, %v848_v0  ;;  %vm872_vm5 = vweird.f32 %v5733_v7 }
 0x113   :  { %5736 = vrcp.f32 %v849_v5  ;;  %v850_v11 = vadd.f32 1.0, %v5735_v8  ;;  %vm873_vm7 = vmor %vm871_vm6, %vm872_vm5  ;;  %v892_v46 = vand.u32 2147483648, %v849_v5  ;;  %vm886_vm10 = vweird.f32 %v849_v5 }
 0x114   :  { %v854_v9 = vmul.f32 %v5729_v1, %v853_v6  ;;  %v868_v13 = vsub.f32 1.0, %v867_v10  ;;  %v890_v48 = vand.u32 2147483647, %v849_v5 }
 0x115   :  { %5738 = vrcp.f32 %v850_v11  ;;  %v893_v51 = vor.u32 1.1754944e-38, %v892_v46  ;;  %v907_v56 = vand.u32 2147483648, %v850_v11  ;;  %vm901_vm14 = vweird.f32 %v850_v11 }
 0x116   :  { %v855_v12 = vadd.f32 %v5729_v1, %v854_v9  ;;  %v869_v18 = vmul.f32 %v5733_v7, %v868_v13  ;;  %vm891_vm12 = vcmp.eq.f32.partialorder %v890_v48, 8.507059e+37  ;;  %v905_v57 = vand.u32 2147483647, %v850_v11 }
 0x117   :  { %v908_v59 = vor.u32 1.1754944e-38, %v907_v56 }
 0x118   :  { %v859_v17 = vsel %vm858_vm3, %v5729_v1, %v855_v12  ;;  %v870_v24 = vadd.f32 %v5733_v7, %v869_v18  ;;  %vm906_vm1 = vcmp.eq.f32.partialorder %v905_v57, 8.507059e+37  ;;  %vm798_vm3 = vcmask 523264  }
 0x119   :  { %v5737_v14 = vpop.eup %5736  ;;  %v6603_v22 = vsel %vm861_vm4, %v863_v20, %v859_v17  ;;  %vm1010_vm4 = vcmask 523520  }
 0x11a   :  { %v882_v19 = vmul.f32 %v5737_v14, %v849_v5  ;;  %v874_v35 = vsel %vm873_vm7, %v5733_v7, %v870_v24  ;;  %vm887_vm9 = vweird.f32 %v5737_v14  ;;  %v923_v0 = vmul.f32 %v6613_v63, %v6603_v22 }
 0x11b   :  { %v5739_v27 = vpop.eup %5738  ;;  %v6607_v41 = vsel %vm876_vm8, %v878_v40, %v874_v35  ;;  %vm888_vm11 = vmor %vm886_vm10, %vm887_vm9  ;;  %v6652_v35 = vand.u32 127, %v150_v28 }
 0x11c   :  { %v883_v25 = vsub.f32 1.0, %v882_v19  ;;  %v897_v39 = vmul.f32 %v5739_v27, %v850_v11  ;;  %vm902_vm13 = vweird.f32 %v5739_v27 }
 0x11d   :  { %vm903_vm15 = vmor %vm901_vm14, %vm902_vm13  ;;  %vm156_vm2 = vcmp.lt.s32.totalorder %v6652_v35, 32  ;;  %vm165_vm5 = vcmp.ge.s32.totalorder %v6652_v35, 32 }
 0x11e   :  { %v884_v37 = vmul.f32 %v5737_v14, %v883_v25  ;;  %v898_v45 = vsub.f32 1.0, %v897_v39 }
 0x120   :  { %v885_v44 = vadd.f32 %v5737_v14, %v884_v37  ;;  %v899_v50 = vmul.f32 %v5739_v27, %v898_v45 }
 0x122   :  { %v889_v49 = vsel %vm888_vm11, %v5737_v14, %v885_v44  ;;  %v900_v55 = vadd.f32 %v5739_v27, %v899_v50 }
 0x123   :  { %v894_v53 = vsel %vm891_vm12, %v893_v51, %v889_v49 }
 0x124   :  { %v904_v58 = vsel %vm903_vm15, %v5739_v27, %v900_v55  ;;  %v925_v4 = vmul.f32 %v6613_v63, %v894_v53  ;;  %v263_v27 = vld [vmem:[#allocation5 + $0x60] sm:$0xff] }
 0x125   :  { %v909_v60 = vsel %vm906_vm1, %v908_v59, %v904_v58  ;;  %5506 = vmatmul.msk.f32.vlgmr.msra.gmra.mxu3 %vm192_vm0, %v263_v27 }
 0x12d   :  { %5507 = vmatmul.msk.f32.gmra.mxu3 %vm192_vm0, %v264_v29 }
 0x160   :  { %v932_v21 = vpop.permute.xlu0 %931 }
 0x161   :  { %v943_v23 = vmul.f32 %v932_v21, %v6603_v22 }
 0x163   :  { %951 = vrot.lane.b32.xlu2 %v943_v23, %s6442_s5 }
 0x168   :  { %v934_v42 = vpop.permute.xlu0 %933 }
 0x169   :  { %v944_v43 = vmul.f32 %v934_v42, %v6607_v41 }
 0x16b   :  { %953 = vrot.lane.b32.xlu1 %v944_v43, %s6442_s5 }
 0x170   :  { %v936_v52 = vpop.permute.xlu1 %935  ;;  %v6626_v8 = vpop.permute.xlu0 %919 }
 0x171   :  { %v945_v54 = vmul.f32 %v936_v52, %v894_v53  ;;  %v924_v9 = vmul.f32 %v6626_v8, %v6607_v41  ;;  %v926_v13 = vmul.f32 %v6626_v8, %v909_v60 }
 0x173   :  { %955 = vrot.lane.b32.xlu2 %v945_v54, %s6442_s5  ;;  %v292_v54 = vpop.f32.mrf.mxu2 }
 0x174   :  { %v293_v55 = vadd.f32 %v292_v54, %v6590_v38 }
 0x178   :  { %v938_v61 = vpop.permute.xlu1 %937 }
 0x179   :  { %v946_v62 = vmul.f32 %v938_v61, %v909_v60 }
 0x17b   :  { %957 = vrot.lane.b32.xlu0 %v946_v62, %s6442_s5  ;;  %v295_v58 = vpop.f32.mrf.mxu2 }
 0x17c   :  { %v296_v59 = vadd.f32 %v295_v58, %v6590_v38 }
 0x1bd   :  { %v952_v1 = vpop.permute.xlu2 %951 }
 0x1be   :  { %v6617_v2 = vadd.f32 %v952_v1, %v923_v0  ;;  %v324_v0 = vpop.f32.mrf.mxu3 }
 0x1bf   :  { %v325_v1 = vadd.f32 %v324_v0, %v6595_v47 }
 0x1c0   :  { %5740 = vtanh.f32 %v6617_v2 }
 0x1c6   :  { %v5741_v3 = vpop.eup %5740 }
 0x1c7   :  { %975 = vrot.lane.b32.xlu1 %v5741_v3, %s6443_s28 }
 0x1cd   :  { %v956_v5 = vpop.permute.xlu2 %955 }
 0x1ce   :  { %v6622_v6 = vadd.f32 %v956_v5, %v925_v4 }
 0x1d0   :  { %5742 = vtanh.f32 %v6622_v6 }
 0x1d6   :  { %v5743_v7 = vpop.eup %5742 }
 0x1d7   :  { %979 = vrot.lane.b32.xlu0 %v5743_v7, %s6443_s28 }
 0x1dd   :  { %v954_v10 = vpop.permute.xlu1 %953 }
 0x1de   :  { %v6630_v11 = vadd.f32 %v954_v10, %v924_v9  ;;  %v327_v9 = vpop.f32.mrf.mxu3 }
 0x1df   :  { %v328_v10 = vadd.f32 %v327_v9, %v6595_v47 }
 0x1e0   :  { %5744 = vtanh.f32 %v6630_v11 }
 0x1e6   :  { %v5745_v12 = vpop.eup %5744 }
 0x1e7   :  { %977 = vrot.lane.b32.xlu2 %v5745_v12, %s6443_s28 }
 0x1ed   :  { %v958_v14 = vpop.permute.xlu0 %957 }
 0x1ee   :  { %v6635_v15 = vadd.f32 %v958_v14, %v926_v13 }
 0x1f0   :  { %5746 = vtanh.f32 %v6635_v15 }
 0x1f6   :  { %v5747_v16 = vpop.eup %5746 }
 0x1f7   :  { %981 = vrot.lane.b32.xlu1 %v5747_v16, %s6443_s28 }
 0x239   :  { %v976_v17 = vpop.permute.xlu1 %975 }
 0x23a   :  { %v987_v18 = vmul.f32 %v976_v17, %v6603_v22 }
 0x23c   :  { %993 = vrot.lane.b32.xlu2 %v987_v18, %s6442_s5  ;;  %1023 = vrot.lane.b32.xlu0 %v987_v18, %s6443_s28 }
 0x241   :  { %v978_v19 = vpop.permute.xlu2 %977 }
 0x242   :  { %v988_v20 = vmul.f32 %v978_v19, %v6607_v41 }
 0x244   :  { %1025 = vrot.lane.b32.xlu2 %v988_v20, %s6443_s28  ;;  %995 = vrot.lane.b32.xlu1 %v988_v20, %s6442_s5 }
 0x249   :  { %v980_v21 = vpop.permute.xlu0 %979 }
 0x24a   :  { %v989_v23 = vmul.f32 %v980_v21, %v894_v53 }
 0x24c   :  { %1003 = vrot.lane.b32.xlu0 %v989_v23, %s6443_s28  ;;  %1017 = vrot.lane.b32.xlu1 %v989_v23, %s6442_s5 }
 0x269   :  { %v982_v24 = vpop.permute.xlu1 %981 }
 0x26a   :  { %v990_v25 = vmul.f32 %v982_v24, %v909_v60 }
 0x26c   :  { %1019 = vrot.lane.b32.xlu0 %v990_v25, %s6442_s5  ;;  %1005 = vrot.lane.b32.xlu2 %v990_v25, %s6443_s28 }
 0x296   :  { %v994_v22 = vpop.permute.xlu2 %993 }
 0x297   :  { %999 = vst.msk [vmem:[#allocation3] sm:$0xff] %vm192_vm0, %v994_v22 }
 0x29e   :  { %v1026_v41 = vpop.permute.xlu2 %1025 }
 0x2ae   :  { %v1024_v37 = vpop.permute.xlu0 %1023 }
 0x2af   :  { %v1029_v39 = vsel %vm192_vm0, %v994_v22, %v1024_v37 }
 0x2b0   :  { %v1033_v40 = vsel %vm156_vm2, %v1029_v39, 0.0 }
 0x2b1   :  { %5536 = vmatmul.msk.f32.vlgmr.msrb.gmra.mxu1 %vm798_vm3, %v1033_v40 }
 0x2b6   :  { %v996_v42 = vpop.permute.xlu1 %995 }
 0x2b7   :  { %1000 = vst.msk [vmem:[#allocation3 + $0x8] sm:$0xff] %vm192_vm0, %v996_v42  ;;  %v1030_v43 = vsel %vm192_vm0, %v996_v42, %v1026_v41 }
 0x2b8   :  { %v1034_v44 = vsel %vm156_vm2, %v1030_v43, 0.0 }
 0x2b9   :  { %5537 = vmatmul.msk.f32.gmra.mxu1 %vm798_vm3, %v1034_v44 }
 0x2be   :  { %v1004_v45 = vpop.permute.xlu0 %1003  ;;  %v1018_v46 = vpop.permute.xlu1 %1017 }
 0x2bf   :  { %1011 = vst.msk [vmem:[#allocation3 + $0x70] sm:$0xff] %vm1010_vm4, %v1004_v45  ;;  %v1031_v48 = vsel %vm192_vm0, %v1018_v46, %v1004_v45 }
 0x2c0   :  { %v1035_v49 = vsel %vm165_vm5, %v1031_v48, 0.0 }
 0x2c1   :  { %5538 = vmatmul.msk.f32.gmra.mxu1 %vm798_vm3, %v1035_v49 }
 0x2c6   :  { %v1006_v50 = vpop.permute.xlu2 %1005 }
 0x2c7   :  { %1012 = vst.msk [vmem:[#allocation3 + $0x78] sm:$0xff] %vm1010_vm4, %v1006_v50 }
 0x2de   :  { %v1020_v51 = vpop.permute.xlu0 %1019 }
 0x2df   :  { %v1032_v52 = vsel %vm192_vm0, %v1020_v51, %v1006_v50 }
 0x2e0   :  { %v1036_v53 = vsel %vm165_vm5, %v1032_v52, 0.0 }
 0x2e1   :  { %5539 = vmatmul.msk.f32.gmra.mxu1 %vm798_vm3, %v1036_v53 }
 0x32e   :  { %v1074_v56 = vpop.f32.mrf.mxu1 }
 0x32f   :  { %v1086_v57 = vadd.f32 %v1074_v56, %v293_v55 }
 0x331   :  { %5748 = vtanh.f32 %v1086_v57  ;;  %v5540_v19 = vmul.f32 -1.442695, %v1086_v57 }
 0x336   :  { %v1077_v60 = vpop.f32.mrf.mxu1 }
 0x337   :  { %v5749_v61 = vpop.eup %5748  ;;  %v1087_v62 = vadd.f32 %v1077_v60, %v296_v59 }
 0x338   :  { %1178 = vrot.lane.b32.xlu1 %v5749_v61, %s6443_s28 }
 0x339   :  { %5750 = vtanh.f32 %v1087_v62  ;;  %v5541_v16 = vmul.f32 -1.442695, %v1087_v62 }
 0x33e   :  { %v1080_v3 = vpop.f32.mrf.mxu1 }
 0x33f   :  { %v5751_v4 = vpop.eup %5750  ;;  %v1088_v5 = vadd.f32 %v1080_v3, %v325_v1 }
 0x340   :  { %1180 = vrot.lane.b32.xlu2 %v5751_v4, %s6443_s28 }
 0x341   :  { %5752 = vtanh.f32 %v1088_v5  ;;  %v5542_v22 = vmul.f32 -1.442695, %v1088_v5 }
 0x347   :  { %v5753_v7 = vpop.eup %5752 }
 0x348   :  { %1182 = vrot.lane.b32.xlu0 %v5753_v7, %s6443_s28 }
 0x35e   :  { %v1083_v12 = vpop.f32.mrf.mxu1 }
 0x35f   :  { %v1089_v13 = vadd.f32 %v1083_v12, %v328_v10 }
 0x361   :  { %5754 = vtanh.f32 %v1089_v13  ;;  %v5543_v62 = vmul.f32 -1.442695, %v1089_v13 }
 0x362   :  { %5756 = vpow2.f32 %v5541_v16 }
 0x367   :  { %v5755_v14 = vpop.eup %5754 }
 0x368   :  { %1184 = vrot.lane.b32.xlu1 %v5755_v14, %s6443_s28  ;;  %v5757_v17 = vpop.eup %5756 }
 0x369   :  { %v1103_v18 = vadd.f32 1.0, %v5757_v17 }
 0x36b   :  { %5758 = vrcp.f32 %v1103_v18  ;;  %v1132_v37 = vand.u32 2147483648, %v1103_v18  ;;  %vm1126_vm7 = vweird.f32 %v1103_v18  ;;  %v1130_v39 = vand.u32 2147483647, %v1103_v18 }
 0x36c   :  { %5760 = vpow2.f32 %v5540_v19 }
 0x36d   :  { %v1133_v43 = vor.u32 1.1754944e-38, %v1132_v37  ;;  %vm1131_vm9 = vcmp.eq.f32.partialorder %v1130_v39, 8.507059e+37 }
 0x371   :  { %v5759_v20 = vpop.eup %5758 }
 0x372   :  { %v5761_v21 = vpop.eup %5760  ;;  %v1122_v23 = vmul.f32 %v5759_v20, %v1103_v18  ;;  %vm1127_vm6 = vweird.f32 %v5759_v20 }
 0x373   :  { %v1102_v24 = vadd.f32 1.0, %v5761_v21  ;;  %vm1128_vm8 = vmor %vm1126_vm7, %vm1127_vm6 }
 0x374   :  { %v1123_v25 = vsub.f32 1.0, %v1122_v23 }
 0x375   :  { %5762 = vrcp.f32 %v1102_v24  ;;  %v1117_v53 = vand.u32 2147483648, %v1102_v24  ;;  %vm1111_vm11 = vweird.f32 %v1102_v24  ;;  %v1115_v54 = vand.u32 2147483647, %v1102_v24 }
 0x376   :  { %v1124_v27 = vmul.f32 %v5759_v20, %v1123_v25  ;;  %5764 = vpow2.f32 %v5542_v22 }
 0x377   :  { %v1118_v57 = vor.u32 1.1754944e-38, %v1117_v53  ;;  %vm1116_vm13 = vcmp.eq.f32.partialorder %v1115_v54, 8.507059e+37 }
 0x378   :  { %v1125_v28 = vadd.f32 %v5759_v20, %v1124_v27 }
 0x37a   :  { %v1129_v41 = vsel %vm1128_vm8, %v5759_v20, %v1125_v28 }
 0x37b   :  { %v5763_v29 = vpop.eup %5762  ;;  %v6683_v45 = vsel %vm1131_vm9, %v1133_v43, %v1129_v41 }
 0x37c   :  { %v5765_v40 = vpop.eup %5764  ;;  %v1107_v42 = vmul.f32 %v5763_v29, %v1102_v24  ;;  %vm1112_vm10 = vweird.f32 %v5763_v29 }
 0x37d   :  { %v1104_v44 = vadd.f32 1.0, %v5765_v40  ;;  %vm1113_vm12 = vmor %vm1111_vm11, %vm1112_vm10  ;;  %v1171_v40 = vmul.f32 %v6683_v45, %v6630_v11 }
 0x37e   :  { %v1108_v49 = vsub.f32 1.0, %v1107_v42 }
 0x37f   :  { %5766 = vrcp.f32 %v1104_v44  ;;  %v1147_v3 = vand.u32 2147483648, %v1104_v44  ;;  %vm1141_vm15 = vweird.f32 %v1104_v44  ;;  %v1145_v4 = vand.u32 2147483647, %v1104_v44 }
 0x380   :  { %v1109_v50 = vmul.f32 %v5763_v29, %v1108_v49  ;;  %5768 = vpow2.f32 %v5543_v62 }
 0x381   :  { %v1148_v9 = vor.u32 1.1754944e-38, %v1147_v3  ;;  %vm1146_vm6 = vcmp.eq.f32.partialorder %v1145_v4, 8.507059e+37 }
 0x382   :  { %v1110_v51 = vadd.f32 %v5763_v29, %v1109_v50 }
 0x384   :  { %v1114_v55 = vsel %vm1113_vm12, %v5763_v29, %v1110_v51 }
 0x385   :  { %v5767_v52 = vpop.eup %5766  ;;  %v6687_v59 = vsel %vm1116_vm13, %v1118_v57, %v1114_v55 }
 0x386   :  { %v1137_v56 = vmul.f32 %v5767_v52, %v1104_v44  ;;  %vm1142_vm14 = vweird.f32 %v5767_v52  ;;  %v5769_v5 = vpop.eup %5768  ;;  %v1170_v29 = vmul.f32 %v6687_v59, %v6617_v2 }
 0x387   :  { %vm1143_vm1 = vmor %vm1141_vm15, %vm1142_vm14  ;;  %v1105_v10 = vadd.f32 1.0, %v5769_v5 }
 0x388   :  { %v1138_v61 = vsub.f32 1.0, %v1137_v56 }
 0x389   :  { %5770 = vrcp.f32 %v1105_v10  ;;  %v1162_v21 = vand.u32 2147483648, %v1105_v10  ;;  %vm1156_vm8 = vweird.f32 %v1105_v10  ;;  %v1160_v23 = vand.u32 2147483647, %v1105_v10 }
 0x38a   :  { %v1139_v0 = vmul.f32 %v5767_v52, %v1138_v61 }
 0x38b   :  { %v1163_v25 = vor.u32 1.1754944e-38, %v1162_v21  ;;  %vm1161_vm10 = vcmp.eq.f32.partialorder %v1160_v23, 8.507059e+37 }
 0x38c   :  { %v1140_v1 = vadd.f32 %v5767_v52, %v1139_v0 }
 0x38e   :  { %v1144_v7 = vsel %vm1143_vm1, %v5767_v52, %v1140_v1 }
 0x38f   :  { %v1149_v14 = vsel %vm1146_vm6, %v1148_v9, %v1144_v7  ;;  %v5771_v13 = vpop.eup %5770 }
 0x390   :  { %v1152_v17 = vmul.f32 %v5771_v13, %v1105_v10  ;;  %vm1157_vm7 = vweird.f32 %v5771_v13  ;;  %v1172_v2 = vmul.f32 %v1149_v14, %v6622_v6 }
 0x391   :  { %vm1158_vm9 = vmor %vm1156_vm8, %vm1157_vm7 }
 0x392   :  { %v1153_v18 = vsub.f32 1.0, %v1152_v17 }
 0x394   :  { %v1154_v19 = vmul.f32 %v5771_v13, %v1153_v18  ;;  %v6753_v18 = vpop.f32.mrf.mxu2 }
 0x396   :  { %v1155_v20 = vadd.f32 %v5771_v13, %v1154_v19 }
 0x398   :  { %v1159_v24 = vsel %vm1158_vm9, %v5771_v13, %v1155_v20 }
 0x399   :  { %v1164_v27 = vsel %vm1161_vm10, %v1163_v25, %v1159_v24 }
 0x39a   :  { %v1181_v46 = vpop.permute.xlu2 %1180  ;;  %v1173_v11 = vmul.f32 %v1164_v27, %v6635_v15 }
 0x39b   :  { %v1191_v48 = vmul.f32 %v1181_v46, %v6683_v45 }
 0x39c   :  { %v6755_v19 = vpop.f32.mrf.mxu2 }
 0x39d   :  { %1200 = vrot.lane.b32.xlu0 %v1191_v48, %s6442_s5 }
 0x3a4   :  { %v6757_v20 = vpop.f32.mrf.mxu2 }
 0x3aa   :  { %v1179_v58 = vpop.permute.xlu1 %1178 }
 0x3ab   :  { %v1190_v60 = vmul.f32 %v1179_v58, %v6687_v59 }
 0x3ac   :  { %v6759_v21 = vpop.f32.mrf.mxu2 }
 0x3ad   :  { %1198 = vrot.lane.b32.xlu2 %v1190_v60, %s6442_s5 }
 0x3b4   :  { %v6761_v23 = vpop.f32.mrf.mxu2 }
 0x3ba   :  { %v1183_v12 = vpop.permute.xlu0 %1182 }
 0x3bb   :  { %v1192_v16 = vmul.f32 %v1183_v12, %v1149_v14 }
 0x3bc   :  { %v6763_v24 = vpop.f32.mrf.mxu2 }
 0x3bd   :  { %1202 = vrot.lane.b32.xlu1 %v1192_v16, %s6442_s5 }
 0x3da   :  { %v1185_v22 = vpop.permute.xlu1 %1184 }
 0x3db   :  { %v1193_v28 = vmul.f32 %v1185_v22, %v1164_v27 }
 0x3dd   :  { %1204 = vrot.lane.b32.xlu2 %v1193_v28, %s6442_s5 }
 0x407   :  { %v1199_v37 = vpop.permute.xlu2 %1198 }
 0x408   :  { %v6695_v39 = vadd.f32 %v1199_v37, %v1170_v29 }
 0x40a   :  { %5772 = vtanh.f32 %v6695_v39 }
 0x40f   :  { %v1201_v41 = vpop.permute.xlu0 %1200 }
 0x410   :  { %v5773_v42 = vpop.eup %5772  ;;  %v6700_v43 = vadd.f32 %v1201_v41, %v1171_v40 }
 0x411   :  { %1222 = vrot.lane.b32.xlu0 %v5773_v42, %s6443_s28 }
 0x412   :  { %5774 = vtanh.f32 %v6700_v43 }
 0x418   :  { %v5775_v44 = vpop.eup %5774 }
 0x419   :  { %1224 = vrot.lane.b32.xlu1 %v5775_v44, %s6443_s28  ;;  %v402_v44 = vadd.f32 %v6575_v30, %v6595_v47 }
 0x42f   :  { %v1203_v46 = vpop.permute.xlu1 %1202 }
 0x430   :  { %v6706_v48 = vadd.f32 %v1203_v46, %v1172_v2 }
 0x432   :  { %5776 = vtanh.f32 %v6706_v48 }
 0x437   :  { %v1205_v49 = vpop.permute.xlu2 %1204 }
 0x438   :  { %v5777_v50 = vpop.eup %5776  ;;  %v6710_v51 = vadd.f32 %v1205_v49, %v1173_v11 }
 0x439   :  { %1226 = vrot.lane.b32.xlu2 %v5777_v50, %s6443_s28  ;;  %v405_v50 = vadd.f32 %v6577_v31, %v6595_v47 }
 0x43a   :  { %5778 = vtanh.f32 %v6710_v51 }
 0x440   :  { %v5779_v52 = vpop.eup %5778 }
 0x441   :  { %1228 = vrot.lane.b32.xlu0 %v5779_v52, %s6443_s28 }
 0x483   :  { %v1223_v53 = vpop.permute.xlu0 %1222 }
 0x484   :  { %v1234_v6 = vmul.f32 %v1223_v53, %v6687_v59  ;;  %v6725_v59 = vld [vmem:[#allocation5 + $0x20] sm:$0xff] }
 0x485   :  { %5508 = vmatmul.msk.f32.vlgmr.msrb.gmra.mxu0 %vm192_vm0, %v6725_v59 }
 0x486   :  { %1270 = vrot.lane.b32.xlu2 %v1234_v6, %s6443_s28  ;;  %1240 = vrot.lane.b32.xlu1 %v1234_v6, %s6442_s5 }
 0x48b   :  { %v1225_v54 = vpop.permute.xlu1 %1224 }
 0x48c   :  { %v1235_v15 = vmul.f32 %v1225_v54, %v6683_v45  ;;  %v6729_v45 = vld [vmem:[#allocation5 + $0x28] sm:$0xff] }
 0x48d   :  { %5509 = vmatmul.msk.f32.gmra.mxu0 %vm192_vm0, %v6729_v45 }
 0x48e   :  { %1272 = vrot.lane.b32.xlu1 %v1235_v15, %s6443_s28  ;;  %1242 = vrot.lane.b32.xlu0 %v1235_v15, %s6442_s5 }
 0x493   :  { %v1227_v55 = vpop.permute.xlu2 %1226 }
 0x494   :  { %v1236_v56 = vmul.f32 %v1227_v55, %v1149_v14 }
 0x496   :  { %1264 = vrot.lane.b32.xlu0 %v1236_v56, %s6442_s5  ;;  %1251 = vrot.lane.b32.xlu2 %v1236_v56, %s6443_s28 }
 0x4b3   :  { %v1229_v57 = vpop.permute.xlu0 %1228 }
 0x4b4   :  { %v1237_v58 = vmul.f32 %v1229_v57, %v1164_v27 }
 0x4b6   :  { %1253 = vrot.lane.b32.xlu1 %v1237_v58, %s6443_s28  ;;  %1266 = vrot.lane.b32.xlu2 %v1237_v58, %s6442_s5 }
 0x4e0   :  { %v1271_v60 = vpop.permute.xlu2 %1270 }
 0x4f0   :  { %v1252_v61 = vpop.permute.xlu2 %1251 }
 0x4f1   :  { %1258 = vst.msk [vmem:[#allocation3 + $0x60] sm:$0xff] %vm1010_vm4, %v1252_v61 }
 0x4f8   :  { %v1241_v62 = vpop.permute.xlu1 %1240 }
 0x4f9   :  { %1247 = vst.msk [vmem:[#allocation3 + $0x10] sm:$0xff] %vm192_vm0, %v1241_v62  ;;  %v1276_v0 = vsel %vm192_vm0, %v1241_v62, %v1271_v60 }
 0x4fa   :  { %v1280_v1 = vsel %vm156_vm2, %v1276_v0, 0.0 }
 0x4fb   :  { %5544 = vmatmul.msk.f32.vlgmr.msra.gmra.mxu2 %vm798_vm3, %v1280_v1 }
 0x500   :  { %v1273_v3 = vpop.permute.xlu1 %1272  ;;  %v1243_v4 = vpop.permute.xlu0 %1242 }
 0x501   :  { %1248 = vst.msk [vmem:[#allocation3 + $0x18] sm:$0xff] %vm192_vm0, %v1243_v4  ;;  %v1277_v5 = vsel %vm192_vm0, %v1243_v4, %v1273_v3 }
 0x502   :  { %v1281_v7 = vsel %vm156_vm2, %v1277_v5, 0.0  ;;  %v369_v25 = vpop.f32.mrf.mxu0 }
 0x503   :  { %5545 = vmatmul.msk.f32.gmra.mxu2 %vm798_vm3, %v1281_v7  ;;  %v370_v22 = vadd.f32 %v369_v25, %v6590_v38 }
 0x508   :  { %v1265_v9 = vpop.permute.xlu0 %1264 }
 0x509   :  { %v1278_v10 = vsel %vm192_vm0, %v1265_v9, %v1252_v61 }
 0x50a   :  { %v1282_v12 = vsel %vm165_vm5, %v1278_v10, 0.0  ;;  %v372_v29 = vpop.f32.mrf.mxu0 }
 0x50b   :  { %5546 = vmatmul.msk.f32.gmra.mxu2 %vm798_vm3, %v1282_v12  ;;  %v373_v37 = vadd.f32 %v372_v29, %v6590_v38 }
 0x510   :  { %v1267_v14 = vpop.permute.xlu2 %1266 }
 0x528   :  { %v1254_v16 = vpop.permute.xlu1 %1253 }
 0x529   :  { %1259 = vst.msk [vmem:[#allocation3 + $0x68] sm:$0xff] %vm1010_vm4, %v1254_v16  ;;  %v1279_v13 = vsel %vm192_vm0, %v1267_v14, %v1254_v16 }
 0x52a   :  { %v1283_v17 = vsel %vm165_vm5, %v1279_v13, 0.0 }
 0x52b   :  { %5547 = vmatmul.msk.f32.gmra.mxu2 %vm798_vm3, %v1283_v17 }
 0x57e   :  { %v1321_v27 = vpop.f32.mrf.mxu2 }
 0x57f   :  { %v1333_v28 = vadd.f32 %v1321_v27, %v370_v22 }
 0x581   :  { %5780 = vtanh.f32 %v1333_v28  ;;  %v5548_v30 = vmul.f32 -1.442695, %v1333_v28 }
 0x586   :  { %v1324_v40 = vpop.f32.mrf.mxu2 }
 0x587   :  { %v5781_v41 = vpop.eup %5780  ;;  %v1334_v42 = vadd.f32 %v1324_v40, %v373_v37 }
 0x588   :  { %1425 = vrot.lane.b32.xlu0 %v5781_v41, %s6443_s28 }
 0x589   :  { %5782 = vtanh.f32 %v1334_v42  ;;  %v5549_v56 = vmul.f32 -1.442695, %v1334_v42 }
 0x58e   :  { %v1327_v2 = vpop.f32.mrf.mxu2 }
 0x58f   :  { %v5783_v46 = vpop.eup %5782  ;;  %v1335_v11 = vadd.f32 %v1327_v2, %v402_v44 }
 0x590   :  { %1427 = vrot.lane.b32.xlu1 %v5783_v46, %s6443_s28 }
 0x591   :  { %5784 = vtanh.f32 %v1335_v11  ;;  %v5550_v54 = vmul.f32 -1.442695, %v1335_v11 }
 0x597   :  { %v5785_v49 = vpop.eup %5784 }
 0x598   :  { %1429 = vrot.lane.b32.xlu2 %v5785_v49, %s6443_s28 }
 0x5ae   :  { %v1330_v52 = vpop.f32.mrf.mxu2 }
 0x5af   :  { %v1336_v53 = vadd.f32 %v1330_v52, %v405_v50 }
 0x5b1   :  { %5786 = vtanh.f32 %v1336_v53  ;;  %v5551_v52 = vmul.f32 -1.442695, %v1336_v53 }
 0x5b2   :  { %5788 = vpow2.f32 %v5550_v54 }
 0x5b3   :  { %5790 = vpow2.f32 %v5548_v30 }
 0x5b7   :  { %v5787_v6 = vpop.eup %5786 }
 0x5b8   :  { %1431 = vrot.lane.b32.xlu0 %v5787_v6, %s6443_s28  ;;  %v5789_v15 = vpop.eup %5788 }
 0x5b9   :  { %v1351_v55 = vadd.f32 1.0, %v5789_v15  ;;  %v5791_v57 = vpop.eup %5790 }
 0x5ba   :  { %v1349_v58 = vadd.f32 1.0, %v5791_v57 }
 0x5bb   :  { %5792 = vrcp.f32 %v1351_v55  ;;  %v1394_v10 = vand.u32 2147483648, %v1351_v55  ;;  %vm1388_vm12 = vweird.f32 %v1351_v55  ;;  %v1392_v12 = vand.u32 2147483647, %v1351_v55 }
 0x5bc   :  { %5794 = vpow2.f32 %v5549_v56  ;;  %v1364_v37 = vand.u32 2147483648, %v1349_v58  ;;  %vm1358_vm1 = vweird.f32 %v1349_v58  ;;  %v1362_v40 = vand.u32 2147483647, %v1349_v58 }
 0x5bd   :  { %5796 = vrcp.f32 %v1349_v58  ;;  %v1395_v17 = vor.u32 1.1754944e-38, %v1394_v10  ;;  %vm1393_vm14 = vcmp.eq.f32.partialorder %v1392_v12, 8.507059e+37 }
 0x5be   :  { %v1365_v44 = vor.u32 1.1754944e-38, %v1364_v37  ;;  %vm1363_vm7 = vcmp.eq.f32.partialorder %v1362_v40, 8.507059e+37 }
 0x5c1   :  { %v5793_v60 = vpop.eup %5792 }
 0x5c2   :  { %v5795_v31 = vpop.eup %5794  ;;  %v1384_v61 = vmul.f32 %v5793_v60, %v1351_v55  ;;  %vm1389_vm11 = vweird.f32 %v5793_v60 }
 0x5c3   :  { %v1350_v62 = vadd.f32 1.0, %v5795_v31  ;;  %v5797_v1 = vpop.eup %5796  ;;  %vm1390_vm13 = vmor %vm1388_vm12, %vm1389_vm11 }
 0x5c4   :  { %v1385_v0 = vsub.f32 1.0, %v1384_v61  ;;  %v1354_v4 = vmul.f32 %v5797_v1, %v1349_v58  ;;  %vm1359_vm15 = vweird.f32 %v5797_v1 }
 0x5c5   :  { %5798 = vrcp.f32 %v1350_v62  ;;  %vm1360_vm6 = vmor %vm1358_vm1, %vm1359_vm15  ;;  %v1379_v50 = vand.u32 2147483648, %v1350_v62  ;;  %vm1373_vm9 = vweird.f32 %v1350_v62  ;;  %v1377_v6 = vand.u32 2147483647, %v1350_v62 }
 0x5c6   :  { %v1386_v3 = vmul.f32 %v5793_v60, %v1385_v0  ;;  %v1355_v7 = vsub.f32 1.0, %v1354_v4  ;;  %5800 = vpow2.f32 %v5551_v52  ;;  %v421_v52 = vld [vmem:[#allocation10 + $0x28] sm:$0xff] }
 0x5c7   :  { %v1380_v30 = vor.u32 1.1754944e-38, %v1379_v50  ;;  %vm1378_vm11 = vcmp.eq.f32.partialorder %v1377_v6, 8.507059e+37  ;;  %v422_v50 = vld [vmem:[#allocation10 + $0x38] sm:$0xff]  ;;  %v419_v6 = vld [vmem:[#allocation10 + $0x8] sm:$0xff] }
 0x5c8   :  { %v1387_v5 = vadd.f32 %v5793_v60, %v1386_v3  ;;  %v1356_v16 = vmul.f32 %v5797_v1, %v1355_v7  ;;  %473 = vmatpush.msrb.mxu3 %v422_v50 }
 0x5ca   :  { %v1391_v14 = vsel %vm1390_vm13, %v5793_v60, %v1387_v5  ;;  %v1357_v28 = vadd.f32 %v5797_v1, %v1356_v16  ;;  %474 = vmatpush.msrb.mxu3 %v421_v52 }
 0x5cb   :  { %v5799_v9 = vpop.eup %5798  ;;  %v6775_v25 = vsel %vm1393_vm14, %v1395_v17, %v1391_v14 }
 0x5cc   :  { %v1369_v13 = vmul.f32 %v5799_v9, %v1350_v62  ;;  %v1361_v41 = vsel %vm1360_vm6, %v5797_v1, %v1357_v28  ;;  %vm1374_vm8 = vweird.f32 %v5799_v9  ;;  %v5801_v57 = vpop.eup %5800  ;;  %v1419_v16 = vmul.f32 %v6775_v25, %v6706_v48 }
 0x5cd   :  { %v6779_v46 = vsel %vm1363_vm7, %v1365_v44, %v1361_v41  ;;  %vm1375_vm10 = vmor %vm1373_vm9, %vm1374_vm8  ;;  %v1352_v58 = vadd.f32 1.0, %v5801_v57  ;;  %v1537_v57 = vld [vmem:[#allocation11 + $0x30] sm:$0xff] }
 0x5ce   :  { %v1370_v29 = vsub.f32 1.0, %v1369_v13 }
 0x5cf   :  { %5802 = vrcp.f32 %v1352_v58  ;;  %v1409_v62 = vand.u32 2147483648, %v1352_v58  ;;  %vm1403_vm13 = vweird.f32 %v1352_v58  ;;  %v1407_v1 = vand.u32 2147483647, %v1352_v58 }
 0x5d0   :  { %v1371_v42 = vmul.f32 %v5799_v9, %v1370_v29 }
 0x5d1   :  { %v1410_v4 = vor.u32 1.1754944e-38, %v1409_v62  ;;  %vm1408_vm15 = vcmp.eq.f32.partialorder %v1407_v1, 8.507059e+37 }
 0x5d2   :  { %v1372_v49 = vadd.f32 %v5799_v9, %v1371_v42 }
 0x5d4   :  { %v1376_v54 = vsel %vm1375_vm10, %v5799_v9, %v1372_v49 }
 0x5d5   :  { %v1381_v55 = vsel %vm1378_vm11, %v1380_v30, %v1376_v54  ;;  %v5803_v60 = vpop.eup %5802  ;;  %v6815_v54 = vld [vmem:[#allocation5 + $0x40] sm:$0xff] }
 0x5d6   :  { %v1399_v31 = vmul.f32 %v5803_v60, %v1352_v58  ;;  %vm1404_vm12 = vweird.f32 %v5803_v60  ;;  %v1418_v10 = vmul.f32 %v1381_v55, %v6700_v43  ;;  %v1536_v58 = vld [vmem:[#allocation11 + $0x28] sm:$0xff] }
 0x5d7   :  { %vm1405_vm14 = vmor %vm1403_vm13, %vm1404_vm12 }
 0x5d8   :  { %v1400_v53 = vsub.f32 1.0, %v1399_v31  ;;  %v1534_v31 = vld [vmem:[#allocation11 + $0x18] sm:$0xff] }
 0x5da   :  { %v1401_v61 = vmul.f32 %v5803_v60, %v1400_v53  ;;  %v1532_v53 = vld [vmem:[#allocation11 + $0x8] sm:$0xff] }
 0x5dc   :  { %v1402_v0 = vadd.f32 %v5803_v60, %v1401_v61  ;;  %v1531_v61 = vld [vmem:[#allocation11] sm:$0xff] }
 0x5de   :  { %v1406_v3 = vsel %vm1405_vm14, %v5803_v60, %v1402_v0  ;;  %v718_v60 = vld [vmem:[#allocation5 + $0x8] sm:$0xff] }
 0x5df   :  { %v1411_v7 = vsel %vm1408_vm15, %v1410_v4, %v1406_v3 }
 0x5e0   :  { %v1420_v37 = vmul.f32 %v1411_v7, %v6710_v51 }
 0x5f2   :  { %v1430_v22 = vpop.permute.xlu2 %1429 }
 0x5f3   :  { %v1439_v27 = vmul.f32 %v1430_v22, %v6775_v25 }
 0x5f5   :  { %1449 = vrot.lane.b32.xlu0 %v1439_v27, %s6442_s5  ;;  %v1417_v27 = vmul.f32 %v6779_v46, %v6695_v39 }
 0x5fa   :  { %v1426_v2 = vpop.permute.xlu0 %1425 }
 0x5fb   :  { %v1437_v11 = vmul.f32 %v1426_v2, %v6779_v46 }
 0x5fd   :  { %1445 = vrot.lane.b32.xlu1 %v1437_v11, %s6442_s5 }
 0x602   :  { %v1428_v15 = vpop.permute.xlu1 %1427 }
 0x603   :  { %v1438_v56 = vmul.f32 %v1428_v15, %v1381_v55 }
 0x605   :  { %1447 = vrot.lane.b32.xlu2 %v1438_v56, %s6442_s5  ;;  %v1538_v56 = vld [vmem:[#allocation11 + $0x38] sm:$0xff] }
 0x606   :  { %1806 = vmatpush.msrb.mxu2 %v1538_v56  ;;  %2051 = vmatpush.msra.mxu1 %v1538_v56 }
 0x608   :  { %1807 = vmatpush.msrb.mxu2 %v1537_v57  ;;  %2052 = vmatpush.msra.mxu1 %v1537_v57 }
 0x60a   :  { %1808 = vmatpush.msrb.mxu2 %v1536_v58  ;;  %2053 = vmatpush.msra.mxu1 %v1536_v58 }
 0x62a   :  { %v1432_v5 = vpop.permute.xlu0 %1431 }
 0x62b   :  { %v1440_v9 = vmul.f32 %v1432_v5, %v1411_v7 }
 0x62d   :  { %1451 = vrot.lane.b32.xlu1 %v1440_v9, %s6442_s5 }
 0x65f   :  { %v1448_v12 = vpop.permute.xlu2 %1447 }
 0x660   :  { %v6786_v14 = vadd.f32 %v1448_v12, %v1418_v10 }
 0x662   :  { %5804 = vtanh.f32 %v6786_v14 }
 0x667   :  { %v1450_v13 = vpop.permute.xlu0 %1449 }
 0x668   :  { %v5805_v17 = vpop.eup %5804  ;;  %v6791_v22 = vadd.f32 %v1450_v13, %v1419_v16 }
 0x669   :  { %1471 = vrot.lane.b32.xlu0 %v5805_v17, %s6443_s28 }
 0x66a   :  { %5806 = vtanh.f32 %v6791_v22 }
 0x66f   :  { %v1446_v43 = vpop.permute.xlu1 %1445 }
 0x670   :  { %v5807_v28 = vpop.eup %5806  ;;  %v6797_v29 = vadd.f32 %v1446_v43, %v1417_v27 }
 0x671   :  { %1473 = vrot.lane.b32.xlu1 %v5807_v28, %s6443_s28 }
 0x672   :  { %5808 = vtanh.f32 %v6797_v29 }
 0x678   :  { %v5809_v48 = vpop.eup %5808 }
 0x679   :  { %1469 = vrot.lane.b32.xlu2 %v5809_v48, %s6443_s28 }
 0x69f   :  { %v1452_v40 = vpop.permute.xlu1 %1451 }
 0x6a0   :  { %v6803_v41 = vadd.f32 %v1452_v40, %v1420_v37 }
 0x6a2   :  { %5810 = vtanh.f32 %v6803_v41 }
 0x6a8   :  { %v5811_v42 = vpop.eup %5810 }
 0x6a9   :  { %1475 = vrot.lane.b32.xlu2 %v5811_v42, %s6443_s28 }
 0x6d3   :  { %v1470_v39 = vpop.permute.xlu2 %1469 }
 0x6d4   :  { %v1481_v44 = vmul.f32 %v1470_v39, %v6779_v46  ;;  %v420_v46 = vld [vmem:[#allocation10 + $0x18] sm:$0xff] }
 0x6d5   :  { %475 = vmatpush.msrb.mxu3 %v420_v46 }
 0x6d6   :  { %1517 = vrot.lane.b32.xlu1 %v1481_v44, %s6443_s28  ;;  %1487 = vrot.lane.b32.xlu0 %v1481_v44, %s6442_s5 }
 0x6d7   :  { %476 = vmatpush.msrb.mxu3 %v419_v6 }
 0x6d8   :  { %5514 = vmatmul.msk.f32.vlgmr.msrb.gmra.mxu3 %vm192_vm0, %v6815_v54 }
 0x6d9   :  { %623 = vmatpush.msra.mxu3 %v422_v50 }
 0x6db   :  { %v1472_v2 = vpop.permute.xlu0 %1471  ;;  %624 = vmatpush.msra.mxu3 %v421_v52 }
 0x6dc   :  { %v1482_v11 = vmul.f32 %v1472_v2, %v1381_v55  ;;  %v717_v55 = vld [vmem:[#allocation5] sm:$0xff]  ;;  %v447_v2 = vadd.f32 %v6753_v18, %v6590_v38 }
 0x6dd   :  { %625 = vmatpush.msra.mxu3 %v420_v46 }
 0x6de   :  { %1489 = vrot.lane.b32.xlu2 %v1482_v11, %s6442_s5  ;;  %1519 = vrot.lane.b32.xlu0 %v1482_v11, %s6443_s28 }
 0x6df   :  { %626 = vmatpush.msra.mxu3 %v419_v6 }
 0x6e1   :  { %773 = vmatpush.msrb.mxu3 %v422_v50 }
 0x6e3   :  { %v1474_v51 = vpop.permute.xlu1 %1473  ;;  %774 = vmatpush.msrb.mxu3 %v421_v52 }
 0x6e4   :  { %v1483_v49 = vmul.f32 %v1474_v51, %v6775_v25  ;;  %v6819_v25 = vld [vmem:[#allocation5 + $0x48] sm:$0xff] }
 0x6e5   :  { %5515 = vmatmul.msk.f32.gmra.mxu3 %vm192_vm0, %v6819_v25 }
 0x6e6   :  { %1511 = vrot.lane.b32.xlu2 %v1483_v49, %s6442_s5  ;;  %1498 = vrot.lane.b32.xlu1 %v1483_v49, %s6443_s28  ;;  %v450_v49 = vadd.f32 %v6755_v19, %v6590_v38 }
 0x6e7   :  { %775 = vmatpush.msrb.mxu3 %v420_v46 }
 0x6e9   :  { %776 = vmatpush.msrb.mxu3 %v419_v6 }
 0x6ed   :  { %5522 = vmatmul.msk.f32.vlgmr.msra.gmra.mxu3 %vm192_vm0, %v6725_v59  ;;  %v1535_v59 = vld [vmem:[#allocation11 + $0x20] sm:$0xff] }
 0x6ee   :  { %1559 = vmatpush.msra.mxu3 %v1538_v56  ;;  %1809 = vmatpush.msrb.mxu2 %v1535_v59 }
 0x6ef   :  { %2054 = vmatpush.msra.mxu1 %v1535_v59 }
 0x6f0   :  { %1560 = vmatpush.msra.mxu3 %v1537_v57  ;;  %1810 = vmatpush.msrb.mxu2 %v1534_v31 }
 0x6f1   :  { %2055 = vmatpush.msra.mxu1 %v1534_v31 }
 0x6f2   :  { %1561 = vmatpush.msra.mxu3 %v1536_v58 }
 0x6f4   :  { %1562 = vmatpush.msra.mxu3 %v1535_v59 }
 0x6f5   :  { %5523 = vmatmul.msk.f32.gmra.mxu3 %vm192_vm0, %v6729_v45  ;;  %v1533_v45 = vld [vmem:[#allocation11 + $0x10] sm:$0xff] }
 0x6f6   :  { %1563 = vmatpush.msra.mxu3 %v1534_v31  ;;  %1811 = vmatpush.msrb.mxu2 %v1533_v45 }
 0x6f7   :  { %2056 = vmatpush.msra.mxu1 %v1533_v45 }
 0x6f8   :  { %1564 = vmatpush.msra.mxu3 %v1533_v45  ;;  %1812 = vmatpush.msrb.mxu2 %v1532_v53 }
 0x6f9   :  { %2057 = vmatpush.msra.mxu1 %v1532_v53 }
 0x6fa   :  { %1565 = vmatpush.msra.mxu3 %v1532_v53  ;;  %1813 = vmatpush.msrb.mxu2 %v1531_v61 }
 0x6fb   :  { %2058 = vmatpush.msra.mxu1 %v1531_v61 }
 0x6fc   :  { %1566 = vmatpush.msra.mxu3 %v1531_v61 }
 0x6fd   :  { %5530 = vmatmul.msk.f32.vlgmr.msrb.gmra.mxu3 %vm192_vm0, %v717_v55 }
 0x703   :  { %v1476_v30 = vpop.permute.xlu2 %1475 }
 0x704   :  { %v1484_v15 = vmul.f32 %v1476_v30, %v1411_v7 }
 0x705   :  { %5531 = vmatmul.msk.f32.gmra.mxu3 %vm192_vm0, %v718_v60 }
 0x706   :  { %1513 = vrot.lane.b32.xlu1 %v1484_v15, %s6442_s5  ;;  %1500 = vrot.lane.b32.xlu0 %v1484_v15, %s6443_s28 }
 0x738   :  { %v1490_v0 = vpop.permute.xlu2 %1489 }
 0x739   :  { %1495 = vst.msk [vmem:[#allocation3 + $0x28] sm:$0xff] %vm192_vm0, %v1490_v0 }
 0x740   :  { %v1512_v10 = vpop.permute.xlu2 %1511 }
 0x748   :  { %v1518_v62 = vpop.permute.xlu1 %1517  ;;  %v1488_v1 = vpop.permute.xlu0 %1487 }
 0x749   :  { %1494 = vst.msk [vmem:[#allocation3 + $0x20] sm:$0xff] %vm192_vm0, %v1488_v1  ;;  %v1523_v3 = vsel %vm192_vm0, %v1488_v1, %v1518_v62 }
 0x74a   :  { %v1527_v4 = vsel %vm156_vm2, %v1523_v3, 0.0 }
 0x74b   :  { %5552 = vmatmul.msk.f32.vlgmr.msra.gmra.mxu3 %vm798_vm3, %v1527_v4 }
 0x750   :  { %v1520_v5 = vpop.permute.xlu0 %1519 }
 0x751   :  { %v1524_v7 = vsel %vm192_vm0, %v1490_v0, %v1520_v5 }
 0x752   :  { %v1528_v9 = vsel %vm156_vm2, %v1524_v7, 0.0 }
 0x753   :  { %5553 = vmatmul.msk.f32.gmra.mxu3 %vm798_vm3, %v1528_v9 }
 0x758   :  { %v1499_v12 = vpop.permute.xlu1 %1498 }
 0x759   :  { %1505 = vst.msk [vmem:[#allocation3 + $0x50] sm:$0xff] %vm1010_vm4, %v1499_v12  ;;  %v1525_v16 = vsel %vm192_vm0, %v1512_v10, %v1499_v12 }
 0x75a   :  { %v1529_v13 = vsel %vm165_vm5, %v1525_v16, 0.0 }
 0x75b   :  { %5554 = vmatmul.msk.f32.gmra.mxu3 %vm798_vm3, %v1529_v13  ;;  %v478_v48 = vpop.f32.mrf.mxu3 }
 0x75c   :  { %v479_v6 = vadd.f32 %v478_v48, %v6595_v47 }
 0x768   :  { %v481_v37 = vpop.f32.mrf.mxu3 }
 0x769   :  { %v482_v56 = vadd.f32 %v481_v37, %v6595_v47 }
 0x770   :  { %v6851_v40 = vpop.f32.mrf.mxu3 }
 0x778   :  { %v1514_v17 = vpop.permute.xlu1 %1513  ;;  %v1501_v27 = vpop.permute.xlu0 %1500 }
 0x779   :  { %1506 = vst.msk [vmem:[#allocation3 + $0x58] sm:$0xff] %vm1010_vm4, %v1501_v27  ;;  %v1526_v43 = vsel %vm192_vm0, %v1514_v17, %v1501_v27  ;;  %v6853_v42 = vpop.f32.mrf.mxu3 }
 0x77a   :  { %v1530_v28 = vsel %vm165_vm5, %v1526_v43, 0.0 }
 0x77b   :  { %5555 = vmatmul.msk.f32.gmra.mxu3 %vm798_vm3, %v1530_v28 }
 0x781   :  { %v6855_v39 = vpop.f32.mrf.mxu3 }
 0x789   :  { %v6857_v44 = vpop.f32.mrf.mxu3 }
 0x7ce   :  { %v1568_v11 = vpop.f32.mrf.mxu3 }
 0x7cf   :  { %v1580_v51 = vadd.f32 %v1568_v11, %v447_v2 }
 0x7d1   :  { %5812 = vtanh.f32 %v1580_v51  ;;  %v5556_v58 = vmul.f32 -1.442695, %v1580_v51 }
 0x7d6   :  { %v1571_v50 = vpop.f32.mrf.mxu3 }
 0x7d7   :  { %v5813_v52 = vpop.eup %5812  ;;  %v1581_v46 = vadd.f32 %v1571_v50, %v450_v49 }
 0x7d8   :  { %1672 = vrot.lane.b32.xlu2 %v5813_v52, %s6443_s28 }
 0x7d9   :  { %5814 = vtanh.f32 %v1581_v46  ;;  %v5557_v0 = vmul.f32 -1.442695, %v1581_v46 }
 0x7de   :  { %v1574_v30 = vpop.f32.mrf.mxu3 }
 0x7df   :  { %v5815_v15 = vpop.eup %5814  ;;  %v1582_v55 = vadd.f32 %v1574_v30, %v479_v6 }
 0x7e0   :  { %1674 = vrot.lane.b32.xlu0 %v5815_v15, %s6443_s28 }
 0x7e1   :  { %5816 = vtanh.f32 %v1582_v55  ;;  %v5558_v4 = vmul.f32 -1.442695, %v1582_v55 }
 0x7e7   :  { %v5817_v18 = vpop.eup %5816 }
 0x7e8   :  { %1676 = vrot.lane.b32.xlu1 %v5817_v18, %s6443_s28 }
 0x7fe   :  { %v1577_v19 = vpop.f32.mrf.mxu3 }
 0x7ff   :  { %v1583_v57 = vadd.f32 %v1577_v19, %v482_v56 }
 0x801   :  { %5818 = vtanh.f32 %v1583_v57  ;;  %v5559_v27 = vmul.f32 -1.442695, %v1583_v57 }
 0x802   :  { %5820 = vpow2.f32 %v5556_v58 }
 0x807   :  { %v5819_v59 = vpop.eup %5818 }
 0x808   :  { %1678 = vrot.lane.b32.xlu2 %v5819_v59, %s6443_s28  ;;  %v5821_v60 = vpop.eup %5820 }
 0x809   :  { %v1596_v31 = vadd.f32 1.0, %v5821_v60 }
 0x80b   :  { %5822 = vrcp.f32 %v1596_v31  ;;  %v1611_v3 = vand.u32 2147483648, %v1596_v31  ;;  %vm1605_vm6 = vweird.f32 %v1596_v31  ;;  %v1609_v5 = vand.u32 2147483647, %v1596_v31 }
 0x80c   :  { %5824 = vpow2.f32 %v5557_v0 }
 0x80d   :  { %v1612_v10 = vor.u32 1.1754944e-38, %v1611_v3  ;;  %5826 = vpow2.f32 %v5558_v4  ;;  %vm1610_vm8 = vcmp.eq.f32.partialorder %v1609_v5, 8.507059e+37 }
 0x811   :  { %v5823_v45 = vpop.eup %5822 }
 0x812   :  { %v1601_v53 = vmul.f32 %v5823_v45, %v1596_v31  ;;  %vm1606_vm1 = vweird.f32 %v5823_v45  ;;  %v5825_v7 = vpop.eup %5824 }
 0x813   :  { %vm1607_vm7 = vmor %vm1605_vm6, %vm1606_vm1  ;;  %v1597_v12 = vadd.f32 1.0, %v5825_v7  ;;  %v5827_v43 = vpop.eup %5826 }
 0x814   :  { %v1602_v61 = vsub.f32 1.0, %v1601_v53  ;;  %v1598_v28 = vadd.f32 1.0, %v5827_v43 }
 0x815   :  { %5828 = vrcp.f32 %v1597_v12  ;;  %v1626_v15 = vand.u32 2147483648, %v1597_v12  ;;  %vm1620_vm10 = vweird.f32 %v1597_v12  ;;  %v1624_v55 = vand.u32 2147483647, %v1597_v12 }
 0x816   :  { %v1603_v62 = vmul.f32 %v5823_v45, %v1602_v61  ;;  %5830 = vpow2.f32 %v5559_v27  ;;  %v1641_v53 = vand.u32 2147483648, %v1598_v28  ;;  %vm1635_vm14 = vweird.f32 %v1598_v28 }
 0x817   :  { %5832 = vrcp.f32 %v1598_v28  ;;  %v1627_v57 = vor.u32 1.1754944e-38, %v1626_v15  ;;  %vm1625_vm12 = vcmp.eq.f32.partialorder %v1624_v55, 8.507059e+37  ;;  %v1639_v61 = vand.u32 2147483647, %v1598_v28 }
 0x818   :  { %v1604_v1 = vadd.f32 %v5823_v45, %v1603_v62 }
 0x819   :  { %vm1640_vm1 = vcmp.eq.f32.partialorder %v1639_v61, 8.507059e+37 }
 0x81a   :  { %v1608_v9 = vsel %vm1607_vm7, %v5823_v45, %v1604_v1  ;;  %v1642_v1 = vor.u32 1.1754944e-38, %v1641_v53 }
 0x81b   :  { %v6869_v16 = vsel %vm1610_vm8, %v1612_v10, %v1608_v9  ;;  %v5829_v48 = vpop.eup %5828 }
 0x81c   :  { %v5831_v37 = vpop.eup %5830  ;;  %v1616_v2 = vmul.f32 %v5829_v48, %v1597_v12  ;;  %vm1621_vm9 = vweird.f32 %v5829_v48 }
 0x81d   :  { %v1599_v11 = vadd.f32 1.0, %v5831_v37  ;;  %v5833_v49 = vpop.eup %5832  ;;  %vm1622_vm11 = vmor %vm1620_vm10, %vm1621_vm9 }
 0x81e   :  { %v1617_v51 = vsub.f32 1.0, %v1616_v2  ;;  %v1631_v52 = vmul.f32 %v5833_v49, %v1598_v28  ;;  %vm1636_vm13 = vweird.f32 %v5833_v49  ;;  %v1664_v28 = vmul.f32 %v6869_v16, %v6797_v29 }
 0x81f   :  { %5834 = vrcp.f32 %v1599_v11  ;;  %vm1637_vm15 = vmor %vm1635_vm14, %vm1636_vm13  ;;  %v1656_v9 = vand.u32 2147483648, %v1599_v11  ;;  %vm1650_vm7 = vweird.f32 %v1599_v11  ;;  %v1654_v10 = vand.u32 2147483647, %v1599_v11 }
 0x820   :  { %v1618_v50 = vmul.f32 %v5829_v48, %v1617_v51  ;;  %v1632_v6 = vsub.f32 1.0, %v1631_v52 }
 0x821   :  { %vm1655_vm9 = vcmp.eq.f32.partialorder %v1654_v10, 8.507059e+37 }
 0x822   :  { %v1619_v46 = vadd.f32 %v5829_v48, %v1618_v50  ;;  %v1633_v56 = vmul.f32 %v5833_v49, %v1632_v6 }
 0x824   :  { %v1623_v18 = vsel %vm1622_vm11, %v5829_v48, %v1619_v46  ;;  %v1634_v31 = vadd.f32 %v5833_v49, %v1633_v56 }
 0x825   :  { %v5835_v30 = vpop.eup %5834  ;;  %v1628_v59 = vsel %vm1625_vm12, %v1627_v57, %v1623_v18 }
 0x826   :  { %v1646_v19 = vmul.f32 %v5835_v30, %v1599_v11  ;;  %v1638_v0 = vsel %vm1637_vm15, %v5833_v49, %v1634_v31  ;;  %vm1651_vm6 = vweird.f32 %v5835_v30  ;;  %v1665_v29 = vmul.f32 %v1628_v59, %v6786_v14  ;;  %v490_v31 = vld [vmem:[#allocation10 + $0x20] sm:$0xff] }
 0x827   :  { %v1643_v4 = vsel %vm1640_vm1, %v1642_v1, %v1638_v0  ;;  %vm1652_vm8 = vmor %vm1650_vm7, %vm1651_vm6 }
 0x828   :  { %v1647_v45 = vsub.f32 1.0, %v1646_v19  ;;  %v1666_v11 = vmul.f32 %v1643_v4, %v6791_v22 }
 0x82a   :  { %v1648_v62 = vmul.f32 %v5835_v30, %v1647_v45  ;;  %v488_v45 = vld [vmem:[#allocation10] sm:$0xff] }
 0x82c   :  { %v1649_v7 = vadd.f32 %v5835_v30, %v1648_v62 }
 0x82e   :  { %v1653_v12 = vsel %vm1652_vm8, %v5835_v30, %v1649_v7 }
 0x832   :  { %v1673_v13 = vpop.permute.xlu2 %1672 }
 0x833   :  { %v1684_v17 = vmul.f32 %v1673_v13, %v6869_v16  ;;  %v1657_v13 = vor.u32 1.1754944e-38, %v1656_v9 }
 0x835   :  { %1692 = vrot.lane.b32.xlu0 %v1684_v17, %s6442_s5  ;;  %v1658_v17 = vsel %vm1655_vm9, %v1657_v13, %v1653_v12 }
 0x836   :  { %v1667_v22 = vmul.f32 %v1658_v17, %v6803_v41 }
 0x852   :  { %v1675_v58 = vpop.permute.xlu0 %1674 }
 0x853   :  { %v1685_v60 = vmul.f32 %v1675_v58, %v1628_v59 }
 0x855   :  { %1694 = vrot.lane.b32.xlu1 %v1685_v60, %s6442_s5 }
 0x85a   :  { %v1677_v3 = vpop.permute.xlu1 %1676 }
 0x85b   :  { %v1686_v5 = vmul.f32 %v1677_v3, %v1643_v4 }
 0x85d   :  { %1696 = vrot.lane.b32.xlu2 %v1686_v5, %s6442_s5 }
 0x862   :  { %v1679_v27 = vpop.permute.xlu2 %1678 }
 0x863   :  { %v1687_v43 = vmul.f32 %v1679_v27, %v1658_v17 }
 0x865   :  { %1698 = vrot.lane.b32.xlu0 %v1687_v43, %s6442_s5 }
 0x8a7   :  { %v1693_v48 = vpop.permute.xlu0 %1692 }
 0x8a8   :  { %v6878_v37 = vadd.f32 %v1693_v48, %v1664_v28 }
 0x8aa   :  { %5836 = vtanh.f32 %v6878_v37 }
 0x8b0   :  { %v5837_v2 = vpop.eup %5836 }
 0x8b1   :  { %1716 = vrot.lane.b32.xlu1 %v5837_v2, %s6443_s28 }
 0x8b7   :  { %v1697_v51 = vpop.permute.xlu2 %1696 }
 0x8b8   :  { %v6883_v49 = vadd.f32 %v1697_v51, %v1666_v11 }
 0x8ba   :  { %5838 = vtanh.f32 %v6883_v49 }
 0x8c0   :  { %v5839_v50 = vpop.eup %5838 }
 0x8c1   :  { %1720 = vrot.lane.b32.xlu0 %v5839_v50, %s6443_s28 }
 0x8c7   :  { %v1695_v52 = vpop.permute.xlu1 %1694 }
 0x8c8   :  { %v6888_v46 = vadd.f32 %v1695_v52, %v1665_v29  ;;  %v554_v52 = vadd.f32 %v6579_v32, %v6595_v47 }
 0x8ca   :  { %5840 = vtanh.f32 %v6888_v46 }
 0x8d0   :  { %v5841_v6 = vpop.eup %5840 }
 0x8d1   :  { %1718 = vrot.lane.b32.xlu2 %v5841_v6, %s6443_s28 }
 0x8d7   :  { %v1699_v30 = vpop.permute.xlu0 %1698 }
 0x8d8   :  { %v6893_v15 = vadd.f32 %v1699_v30, %v1667_v22 }
 0x8da   :  { %5842 = vtanh.f32 %v6893_v15 }
 0x8e0   :  { %v5843_v55 = vpop.eup %5842 }
 0x8e1   :  { %1722 = vrot.lane.b32.xlu1 %v5843_v55, %s6443_s28 }
 0x923   :  { %v1717_v18 = vpop.permute.xlu1 %1716 }
 0x924   :  { %v1728_v14 = vmul.f32 %v1717_v18, %v6869_v16  ;;  %v491_v16 = vld [vmem:[#allocation10 + $0x30] sm:$0xff]  ;;  %v557_v18 = vadd.f32 %v6581_v33, %v6595_v47 }
 0x925   :  { %516 = vmatpush.msra.mxu0 %v491_v16 }
 0x926   :  { %1734 = vrot.lane.b32.xlu2 %v1728_v14, %s6442_s5  ;;  %1764 = vrot.lane.b32.xlu0 %v1728_v14, %s6443_s28 }
 0x927   :  { %517 = vmatpush.msra.mxu0 %v490_v31 }
 0x92b   :  { %v1719_v56 = vpop.permute.xlu2 %1718 }
 0x92c   :  { %v1729_v19 = vmul.f32 %v1719_v56, %v1628_v59  ;;  %v489_v59 = vld [vmem:[#allocation10 + $0x10] sm:$0xff] }
 0x92d   :  { %518 = vmatpush.msra.mxu0 %v489_v59 }
 0x92e   :  { %1766 = vrot.lane.b32.xlu2 %v1729_v19, %s6443_s28  ;;  %1736 = vrot.lane.b32.xlu1 %v1729_v19, %s6442_s5 }
 0x92f   :  { %519 = vmatpush.msra.mxu0 %v488_v45 }
 0x930   :  { %5516 = vmatmul.msk.f32.vlgmr.msra.gmra.mxu0 %vm192_vm0, %v6815_v54 }
 0x931   :  { %666 = vmatpush.msrb.mxu0 %v491_v16 }
 0x933   :  { %v1721_v41 = vpop.permute.xlu0 %1720  ;;  %667 = vmatpush.msrb.mxu0 %v490_v31 }
 0x934   :  { %v1730_v57 = vmul.f32 %v1721_v41, %v1643_v4 }
 0x935   :  { %668 = vmatpush.msrb.mxu0 %v489_v59 }
 0x936   :  { %1745 = vrot.lane.b32.xlu0 %v1730_v57, %s6443_s28  ;;  %1758 = vrot.lane.b32.xlu1 %v1730_v57, %s6442_s5 }
 0x937   :  { %669 = vmatpush.msrb.mxu0 %v488_v45 }
 0x938   :  { %5517 = vmatmul.msk.f32.gmra.mxu0 %vm192_vm0, %v6819_v25 }
 0x953   :  { %v1723_v58 = vpop.permute.xlu1 %1722 }
 0x954   :  { %v1731_v60 = vmul.f32 %v1723_v58, %v1658_v17 }
 0x956   :  { %1760 = vrot.lane.b32.xlu0 %v1731_v60, %s6442_s5  ;;  %1747 = vrot.lane.b32.xlu2 %v1731_v60, %s6443_s28 }
 0x980   :  { %v1735_v53 = vpop.permute.xlu2 %1734 }
 0x981   :  { %1741 = vst.msk [vmem:[#allocation3 + $0x30] sm:$0xff] %vm192_vm0, %v1735_v53 }
 0x988   :  { %v1767_v1 = vpop.permute.xlu2 %1766 }
 0x998   :  { %v1765_v61 = vpop.permute.xlu0 %1764 }
 0x999   :  { %v1770_v0 = vsel %vm192_vm0, %v1735_v53, %v1765_v61 }
 0x99a   :  { %v1774_v62 = vsel %vm156_vm2, %v1770_v0, 0.0 }
 0x99b   :  { %5560 = vmatmul.msk.f32.vlgmr.msrb.gmra.mxu2 %vm798_vm3, %v1774_v62 }
 0x9a0   :  { %v1737_v54 = vpop.permute.xlu1 %1736 }
 0x9a1   :  { %1742 = vst.msk [vmem:[#allocation3 + $0x38] sm:$0xff] %vm192_vm0, %v1737_v54  ;;  %v1771_v3 = vsel %vm192_vm0, %v1737_v54, %v1767_v1 }
 0x9a2   :  { %v1775_v4 = vsel %vm156_vm2, %v1771_v3, 0.0 }
 0x9a3   :  { %5561 = vmatmul.msk.f32.gmra.mxu2 %vm798_vm3, %v1775_v4 }
 0x9a8   :  { %v1746_v25 = vpop.permute.xlu0 %1745  ;;  %v1759_v5 = vpop.permute.xlu1 %1758 }
 0x9a9   :  { %1752 = vst.msk [vmem:[#allocation3 + $0x40] sm:$0xff] %vm1010_vm4, %v1746_v25  ;;  %v1772_v7 = vsel %vm192_vm0, %v1759_v5, %v1746_v25 }
 0x9aa   :  { %v1776_v9 = vsel %vm165_vm5, %v1772_v7, 0.0 }
 0x9ab   :  { %5562 = vmatmul.msk.f32.gmra.mxu2 %vm798_vm3, %v1776_v9 }
 0x9ad   :  { %v521_v27 = vpop.f32.mrf.mxu0 }
 0x9ae   :  { %v522_v43 = vadd.f32 %v521_v27, %v6590_v38 }
 0x9b0   :  { %v1748_v10 = vpop.permute.xlu2 %1747 }
 0x9b1   :  { %1753 = vst.msk [vmem:[#allocation3 + $0x48] sm:$0xff] %vm1010_vm4, %v1748_v10 }
 0x9b5   :  { %v524_v2 = vpop.f32.mrf.mxu0 }
 0x9b6   :  { %v525_v11 = vadd.f32 %v524_v2, %v6590_v38 }
 0x9c8   :  { %v1761_v12 = vpop.permute.xlu0 %1760 }
 0x9c9   :  { %v1773_v13 = vsel %vm192_vm0, %v1761_v12, %v1748_v10 }
 0x9ca   :  { %v1777_v17 = vsel %vm165_vm5, %v1773_v13, 0.0 }
 0x9cb   :  { %5563 = vmatmul.msk.f32.gmra.mxu2 %vm798_vm3, %v1777_v17 }
 0xa1e   :  { %v1815_v28 = vpop.f32.mrf.mxu2 }
 0xa1f   :  { %v1827_v48 = vadd.f32 %v1815_v28, %v522_v43 }
 0xa21   :  { %5844 = vtanh.f32 %v1827_v48  ;;  %v5564_v58 = vmul.f32 -1.442695, %v1827_v48 }
 0xa26   :  { %v1818_v51 = vpop.f32.mrf.mxu2 }
 0xa27   :  { %v5845_v50 = vpop.eup %5844  ;;  %v1828_v29 = vadd.f32 %v1818_v51, %v525_v11 }
 0xa28   :  { %1919 = vrot.lane.b32.xlu1 %v5845_v50, %s6443_s28 }
 0xa29   :  { %5846 = vtanh.f32 %v1828_v29  ;;  %v5565_v41 = vmul.f32 -1.442695, %v1828_v29 }
 0xa2e   :  { %v1821_v6 = vpop.f32.mrf.mxu2 }
 0xa2f   :  { %v5847_v22 = vpop.eup %5846  ;;  %v1829_v30 = vadd.f32 %v1821_v6, %v554_v52 }
 0xa30   :  { %1921 = vrot.lane.b32.xlu2 %v5847_v22, %s6443_s28 }
 0xa31   :  { %5848 = vtanh.f32 %v1829_v30  ;;  %v5566_v53 = vmul.f32 -1.442695, %v1829_v30 }
 0xa37   :  { %v5849_v55 = vpop.eup %5848 }
 0xa38   :  { %1923 = vrot.lane.b32.xlu0 %v5849_v55, %s6443_s28 }
 0xa4e   :  { %v1824_v14 = vpop.f32.mrf.mxu2 }
 0xa4f   :  { %v1830_v56 = vadd.f32 %v1824_v14, %v557_v18 }
 0xa51   :  { %5850 = vtanh.f32 %v1830_v56  ;;  %v5567_v6 = vmul.f32 -1.442695, %v1830_v56 }
 0xa52   :  { %5852 = vpow2.f32 %v5565_v41 }
 0xa57   :  { %v5851_v19 = vpop.eup %5850 }
 0xa58   :  { %1925 = vrot.lane.b32.xlu1 %v5851_v19, %s6443_s28  ;;  %v5853_v32 = vpop.eup %5852 }
 0xa59   :  { %v1844_v57 = vadd.f32 1.0, %v5853_v32 }
 0xa5b   :  { %5854 = vrcp.f32 %v1844_v57  ;;  %v1873_v62 = vand.u32 2147483648, %v1844_v57  ;;  %vm1867_vm11 = vweird.f32 %v1844_v57  ;;  %v1871_v1 = vand.u32 2147483647, %v1844_v57 }
 0xa5c   :  { %5856 = vpow2.f32 %v5564_v58 }
 0xa5d   :  { %v1874_v25 = vor.u32 1.1754944e-38, %v1873_v62  ;;  %vm1872_vm13 = vcmp.eq.f32.partialorder %v1871_v1, 8.507059e+37 }
 0xa61   :  { %v5855_v60 = vpop.eup %5854 }
 0xa62   :  { %v5857_v16 = vpop.eup %5856  ;;  %v1863_v31 = vmul.f32 %v5855_v60, %v1844_v57  ;;  %vm1868_vm10 = vweird.f32 %v5855_v60 }
 0xa63   :  { %v1843_v59 = vadd.f32 1.0, %v5857_v16  ;;  %vm1869_vm12 = vmor %vm1867_vm11, %vm1868_vm10 }
 0xa64   :  { %v1864_v45 = vsub.f32 1.0, %v1863_v31 }
 0xa65   :  { %5858 = vrcp.f32 %v1843_v59  ;;  %v1858_v43 = vand.u32 2147483648, %v1843_v59  ;;  %vm1852_vm15 = vweird.f32 %v1843_v59  ;;  %v1856_v28 = vand.u32 2147483647, %v1843_v59 }
 0xa66   :  { %v1865_v33 = vmul.f32 %v5855_v60, %v1864_v45  ;;  %5860 = vpow2.f32 %v5566_v53 }
 0xa67   :  { %v1859_v11 = vor.u32 1.1754944e-38, %v1858_v43  ;;  %vm1857_vm6 = vcmp.eq.f32.partialorder %v1856_v28, 8.507059e+37 }
 0xa68   :  { %v1866_v61 = vadd.f32 %v5855_v60, %v1865_v33 }
 0xa6a   :  { %v1870_v3 = vsel %vm1869_vm12, %v5855_v60, %v1866_v61 }
 0xa6b   :  { %v5859_v0 = vpop.eup %5858  ;;  %v6940_v7 = vsel %vm1872_vm13, %v1874_v25, %v1870_v3 }
 0xa6c   :  { %v5861_v54 = vpop.eup %5860  ;;  %v1848_v4 = vmul.f32 %v5859_v0, %v1843_v59  ;;  %vm1853_vm14 = vweird.f32 %v5859_v0 }
 0xa6d   :  { %v1845_v5 = vadd.f32 1.0, %v5861_v54  ;;  %vm1854_vm1 = vmor %vm1852_vm15, %vm1853_vm14 }
 0xa6e   :  { %v1849_v12 = vsub.f32 1.0, %v1848_v4 }
 0xa6f   :  { %5862 = vrcp.f32 %v1845_v5  ;;  %v1888_v55 = vand.u32 2147483648, %v1845_v5  ;;  %vm1882_vm8 = vweird.f32 %v1845_v5  ;;  %v1886_v18 = vand.u32 2147483647, %v1845_v5 }
 0xa70   :  { %v1850_v13 = vmul.f32 %v5859_v0, %v1849_v12  ;;  %5864 = vpow2.f32 %v5567_v6 }
 0xa71   :  { %v1889_v41 = vor.u32 1.1754944e-38, %v1888_v55  ;;  %vm1887_vm10 = vcmp.eq.f32.partialorder %v1886_v18, 8.507059e+37 }
 0xa72   :  { %v1851_v17 = vadd.f32 %v5859_v0, %v1850_v13 }
 0xa74   :  { %v1855_v48 = vsel %vm1854_vm1, %v5859_v0, %v1851_v17 }
 0xa75   :  { %v5863_v27 = vpop.eup %5862  ;;  %v6944_v50 = vsel %vm1857_vm6, %v1859_v11, %v1855_v48 }
 0xa76   :  { %v1878_v2 = vmul.f32 %v5863_v27, %v1845_v5  ;;  %vm1883_vm7 = vweird.f32 %v5863_v27  ;;  %v5865_v14 = vpop.eup %5864  ;;  %v1911_v3 = vmul.f32 %v6944_v50, %v6878_v37  ;;  %v1912_v5 = vmul.f32 %v6940_v7, %v6888_v46 }
 0xa77   :  { %vm1884_vm9 = vmor %vm1882_vm8, %vm1883_vm7  ;;  %v1846_v32 = vadd.f32 1.0, %v5865_v14 }
 0xa78   :  { %v1879_v52 = vsub.f32 1.0, %v1878_v2 }
 0xa79   :  { %5866 = vrcp.f32 %v1846_v32  ;;  %v1903_v53 = vand.u32 2147483648, %v1846_v32  ;;  %vm1897_vm12 = vweird.f32 %v1846_v32  ;;  %v1901_v33 = vand.u32 2147483647, %v1846_v32 }
 0xa7a   :  { %v1880_v22 = vmul.f32 %v5863_v27, %v1879_v52 }
 0xa7b   :  { %v1904_v0 = vor.u32 1.1754944e-38, %v1903_v53  ;;  %vm1902_vm14 = vcmp.eq.f32.partialorder %v1901_v33, 8.507059e+37 }
 0xa7c   :  { %v1881_v30 = vadd.f32 %v5863_v27, %v1880_v22 }
 0xa7e   :  { %v1885_v19 = vsel %vm1884_vm9, %v5863_v27, %v1881_v30 }
 0xa7f   :  { %v1890_v58 = vsel %vm1887_vm10, %v1889_v41, %v1885_v19  ;;  %v5867_v56 = vpop.eup %5866 }
 0xa80   :  { %v1893_v16 = vmul.f32 %v5867_v56, %v1846_v32  ;;  %vm1898_vm11 = vweird.f32 %v5867_v56  ;;  %v1913_v37 = vmul.f32 %v1890_v58, %v6883_v49 }
 0xa81   :  { %vm1899_vm13 = vmor %vm1897_vm12, %vm1898_vm11 }
 0xa82   :  { %v1894_v31 = vsub.f32 1.0, %v1893_v16 }
 0xa84   :  { %v1895_v59 = vmul.f32 %v5867_v56, %v1894_v31 }
 0xa86   :  { %v1896_v45 = vadd.f32 %v5867_v56, %v1895_v59 }
 0xa88   :  { %v1900_v61 = vsel %vm1899_vm13, %v5867_v56, %v1896_v45  ;;  %v597_v45 = vadd.f32 %v6757_v20, %v6590_v38 }
 0xa89   :  { %v1905_v1 = vsel %vm1902_vm14, %v1904_v0, %v1900_v61  ;;  %v600_v61 = vadd.f32 %v6759_v21, %v6590_v38  ;;  %v632_v21 = vadd.f32 %v6853_v42, %v6595_v47 }
 0xa8a   :  { %v1922_v9 = vpop.permute.xlu2 %1921  ;;  %v1914_v46 = vmul.f32 %v1905_v1, %v6893_v15 }
 0xa8b   :  { %v1932_v10 = vmul.f32 %v1922_v9, %v6940_v7 }
 0xa8d   :  { %1941 = vrot.lane.b32.xlu0 %v1932_v10, %s6442_s5 }
 0xa9a   :  { %v1920_v51 = vpop.permute.xlu1 %1919 }
 0xa9b   :  { %v1931_v29 = vmul.f32 %v1920_v51, %v6944_v50 }
 0xa9d   :  { %1939 = vrot.lane.b32.xlu2 %v1931_v29, %s6442_s5 }
 0xaaa   :  { %v1924_v57 = vpop.permute.xlu0 %1923 }
 0xaab   :  { %v1933_v60 = vmul.f32 %v1924_v57, %v1890_v58 }
 0xaad   :  { %1943 = vrot.lane.b32.xlu1 %v1933_v60, %s6442_s5 }
 0xaca   :  { %v1926_v62 = vpop.permute.xlu1 %1925 }
 0xacb   :  { %v1934_v54 = vmul.f32 %v1926_v62, %v1905_v1 }
 0xacd   :  { %1945 = vrot.lane.b32.xlu2 %v1934_v54, %s6442_s5  ;;  %v629_v54 = vadd.f32 %v6851_v40, %v6595_v47 }
 0xaf7   :  { %v1940_v4 = vpop.permute.xlu2 %1939 }
 0xaf8   :  { %v6952_v25 = vadd.f32 %v1940_v4, %v1911_v3 }
 0xafa   :  { %5868 = vtanh.f32 %v6952_v25 }
 0xaff   :  { %v1942_v9 = vpop.permute.xlu0 %1941 }
 0xb00   :  { %v5869_v10 = vpop.eup %5868  ;;  %v6957_v12 = vadd.f32 %v1942_v9, %v1912_v5 }
 0xb01   :  { %1963 = vrot.lane.b32.xlu0 %v5869_v10, %s6443_s28 }
 0xb02   :  { %5870 = vtanh.f32 %v6957_v12 }
 0xb08   :  { %v5871_v13 = vpop.eup %5870 }
 0xb09   :  { %1965 = vrot.lane.b32.xlu1 %v5871_v13, %s6443_s28 }
 0xb1f   :  { %v1944_v17 = vpop.permute.xlu1 %1943 }
 0xb20   :  { %v6963_v27 = vadd.f32 %v1944_v17, %v1913_v37 }
 0xb22   :  { %5872 = vtanh.f32 %v6963_v27 }
 0xb27   :  { %v1946_v43 = vpop.permute.xlu2 %1945 }
 0xb28   :  { %v5873_v28 = vpop.eup %5872  ;;  %v6967_v48 = vadd.f32 %v1946_v43, %v1914_v46 }
 0xb29   :  { %1967 = vrot.lane.b32.xlu2 %v5873_v28, %s6443_s28 }
 0xb2a   :  { %5874 = vtanh.f32 %v6967_v48 }
 0xb30   :  { %v5875_v2 = vpop.eup %5874 }
 0xb31   :  { %1969 = vrot.lane.b32.xlu0 %v5875_v2, %s6443_s28 }
 0xb73   :  { %v1964_v11 = vpop.permute.xlu0 %1963 }
 0xb74   :  { %v1975_v49 = vmul.f32 %v1964_v11, %v6944_v50 }
 0xb76   :  { %2009 = vrot.lane.b32.xlu2 %v1975_v49, %s6443_s28  ;;  %1981 = vrot.lane.b32.xlu1 %v1975_v49, %s6442_s5 }
 0xb7b   :  { %v1966_v51 = vpop.permute.xlu1 %1965 }
 0xb7c   :  { %v1976_v15 = vmul.f32 %v1966_v51, %v6940_v7 }
 0xb7e   :  { %2011 = vrot.lane.b32.xlu1 %v1976_v15, %s6443_s28  ;;  %1983 = vrot.lane.b32.xlu0 %v1976_v15, %s6442_s5 }
 0xb83   :  { %v1968_v29 = vpop.permute.xlu2 %1967 }
 0xb84   :  { %v1977_v52 = vmul.f32 %v1968_v29, %v1890_v58 }
 0xb86   :  { %2003 = vrot.lane.b32.xlu0 %v1977_v52, %s6442_s5  ;;  %1991 = vrot.lane.b32.xlu2 %v1977_v52, %s6443_s28 }
 0xba3   :  { %v1970_v6 = vpop.permute.xlu0 %1969 }
 0xba4   :  { %v1978_v22 = vmul.f32 %v1970_v6, %v1905_v1 }
 0xba6   :  { %1993 = vrot.lane.b32.xlu1 %v1978_v22, %s6443_s28  ;;  %2005 = vrot.lane.b32.xlu2 %v1978_v22, %s6442_s5 }
 0xbd0   :  { %v2010_v50 = vpop.permute.xlu2 %2009 }
 0xbe0   :  { %v1992_v30 = vpop.permute.xlu2 %1991 }
 0xbe1   :  { %1997 = vst.msk [vmem:[#allocation3 + $0x30] sm:$0xff] %vm1010_vm4, %v1992_v30 }
 0xbe8   :  { %v1982_v7 = vpop.permute.xlu1 %1981 }
 0xbe9   :  { %1987 = vst.msk [vmem:[#allocation3 + $0x40] sm:$0xff] %vm192_vm0, %v1982_v7  ;;  %v2015_v55 = vsel %vm192_vm0, %v1982_v7, %v2010_v50 }
 0xbea   :  { %v2019_v18 = vsel %vm156_vm2, %v2015_v55, 0.0 }
 0xbeb   :  { %5568 = vmatmul.msk.f32.vlgmr.msra.gmra.mxu1 %vm798_vm3, %v2019_v18 }
 0xbf0   :  { %v2012_v14 = vpop.permute.xlu1 %2011  ;;  %v1984_v19 = vpop.permute.xlu0 %1983 }
 0xbf1   :  { %1988 = vst.msk [vmem:[#allocation3 + $0x48] sm:$0xff] %vm192_vm0, %v1984_v19  ;;  %v2016_v41 = vsel %vm192_vm0, %v1984_v19, %v2012_v14 }
 0xbf2   :  { %v2020_v32 = vsel %vm156_vm2, %v2016_v41, 0.0 }
 0xbf3   :  { %5569 = vmatmul.msk.f32.gmra.mxu1 %vm798_vm3, %v2020_v32 }
 0xbf8   :  { %v2004_v57 = vpop.permute.xlu0 %2003 }
 0xbf9   :  { %v2017_v58 = vsel %vm192_vm0, %v2004_v57, %v1992_v30 }
 0xbfa   :  { %v2021_v60 = vsel %vm165_vm5, %v2017_v58, 0.0 }
 0xbfb   :  { %5570 = vmatmul.msk.f32.gmra.mxu1 %vm798_vm3, %v2021_v60 }
 0xc00   :  { %v2006_v56 = vpop.permute.xlu2 %2005 }
 0xc18   :  { %v1994_v16 = vpop.permute.xlu1 %1993 }
 0xc19   :  { %1998 = vst.msk [vmem:[#allocation3 + $0x38] sm:$0xff] %vm1010_vm4, %v1994_v16  ;;  %v2018_v31 = vsel %vm192_vm0, %v2006_v56, %v1994_v16 }
 0xc1a   :  { %v2022_v59 = vsel %vm165_vm5, %v2018_v31, 0.0 }
 0xc1b   :  { %5571 = vmatmul.msk.f32.gmra.mxu1 %vm798_vm3, %v2022_v59 }
 0xc68   :  { %v2060_v53 = vpop.f32.mrf.mxu1 }
 0xc69   :  { %v2072_v33 = vadd.f32 %v2060_v53, %v597_v45 }
 0xc6b   :  { %5876 = vtanh.f32 %v2072_v33  ;;  %v5572_v40 = vmul.f32 -1.442695, %v2072_v33 }
 0xc70   :  { %v2063_v0 = vpop.f32.mrf.mxu1 }
 0xc71   :  { %v5877_v62 = vpop.eup %5876  ;;  %v2073_v1 = vadd.f32 %v2063_v0, %v600_v61 }
 0xc72   :  { %2164 = vrot.lane.b32.xlu0 %v5877_v62, %s6443_s28 }
 0xc73   :  { %5878 = vtanh.f32 %v2073_v1  ;;  %v5573_v43 = vmul.f32 -1.442695, %v2073_v1 }
 0xc78   :  { %v2066_v3 = vpop.f32.mrf.mxu1 }
 0xc79   :  { %v5879_v4 = vpop.eup %5878  ;;  %v2074_v5 = vadd.f32 %v2066_v3, %v629_v54 }
 0xc7a   :  { %2166 = vrot.lane.b32.xlu1 %v5879_v4, %s6443_s28 }
 0xc7b   :  { %5880 = vtanh.f32 %v2074_v5  ;;  %v5574_v37 = vmul.f32 -1.442695, %v2074_v5 }
 0xc81   :  { %v5881_v20 = vpop.eup %5880 }
 0xc82   :  { %2168 = vrot.lane.b32.xlu2 %v5881_v20, %s6443_s28 }
 0xc98   :  { %v2069_v9 = vpop.f32.mrf.mxu1 }
 0xc99   :  { %v2075_v10 = vadd.f32 %v2069_v9, %v632_v21 }
 0xc9b   :  { %5882 = vtanh.f32 %v2075_v10  ;;  %v5575_v54 = vmul.f32 -1.442695, %v2075_v10 }
 0xc9c   :  { %5884 = vpow2.f32 %v5574_v37 }
 0xc9d   :  { %5886 = vpow2.f32 %v5572_v40 }
 0xca1   :  { %v5883_v13 = vpop.eup %5882 }
 0xca2   :  { %2170 = vrot.lane.b32.xlu0 %v5883_v13, %s6443_s28  ;;  %v5885_v17 = vpop.eup %5884 }
 0xca3   :  { %v2090_v46 = vadd.f32 1.0, %v5885_v17  ;;  %v5887_v28 = vpop.eup %5886 }
 0xca4   :  { %v2088_v2 = vadd.f32 1.0, %v5887_v28 }
 0xca5   :  { %5888 = vrcp.f32 %v2090_v46  ;;  %v2133_v7 = vand.u32 2147483648, %v2090_v46  ;;  %vm2127_vm1 = vweird.f32 %v2090_v46  ;;  %v2131_v55 = vand.u32 2147483647, %v2090_v46 }
 0xca6   :  { %5890 = vpow2.f32 %v5573_v43  ;;  %v2103_v16 = vand.u32 2147483648, %v2088_v2  ;;  %vm2097_vm9 = vweird.f32 %v2088_v2  ;;  %v2101_v31 = vand.u32 2147483647, %v2088_v2 }
 0xca7   :  { %5892 = vrcp.f32 %v2088_v2  ;;  %v2134_v41 = vor.u32 1.1754944e-38, %v2133_v7  ;;  %vm2132_vm7 = vcmp.eq.f32.partialorder %v2131_v55, 8.507059e+37 }
 0xca8   :  { %v2104_v53 = vor.u32 1.1754944e-38, %v2103_v16  ;;  %vm2102_vm11 = vcmp.eq.f32.partialorder %v2101_v31, 8.507059e+37 }
 0xcab   :  { %v5889_v11 = vpop.eup %5888 }
 0xcac   :  { %v5891_v42 = vpop.eup %5890  ;;  %v2123_v49 = vmul.f32 %v5889_v11, %v2090_v46  ;;  %vm2128_vm15 = vweird.f32 %v5889_v11 }
 0xcad   :  { %v2089_v51 = vadd.f32 1.0, %v5891_v42  ;;  %v5893_v29 = vpop.eup %5892  ;;  %vm2129_vm6 = vmor %vm2127_vm1, %vm2128_vm15 }
 0xcae   :  { %v2124_v15 = vsub.f32 1.0, %v2123_v49  ;;  %v2093_v6 = vmul.f32 %v5893_v29, %v2088_v2  ;;  %vm2098_vm8 = vweird.f32 %v5893_v29 }
 0xcaf   :  { %5894 = vrcp.f32 %v2089_v51  ;;  %vm2099_vm10 = vmor %vm2097_vm9, %vm2098_vm8  ;;  %v2118_v1 = vand.u32 2147483648, %v2089_v51  ;;  %vm2112_vm13 = vweird.f32 %v2089_v51  ;;  %v2116_v3 = vand.u32 2147483647, %v2089_v51 }
 0xcb0   :  { %v2125_v52 = vmul.f32 %v5889_v11, %v2124_v15  ;;  %v2094_v50 = vsub.f32 1.0, %v2093_v6  ;;  %5896 = vpow2.f32 %v5575_v54  ;;  %v2268_v54 = vld [vmem:[#allocation11] sm:$0xff] }
 0xcb1   :  { %v2119_v5 = vor.u32 1.1754944e-38, %v2118_v1  ;;  %vm2117_vm15 = vcmp.eq.f32.partialorder %v2116_v3, 8.507059e+37  ;;  %v2269_v1 = vld [vmem:[#allocation11 + $0x8] sm:$0xff]  ;;  %v636_v3 = vld [vmem:[#allocation5 + $0x60] sm:$0xff] }
 0xcb2   :  { %v2126_v22 = vadd.f32 %v5889_v11, %v2125_v52  ;;  %v2095_v14 = vmul.f32 %v5893_v29, %v2094_v50  ;;  %5524 = vmatmul.msk.f32.vlgmr.msrb.gmra.mxu0 %vm192_vm0, %v636_v3 }
 0xcb4   :  { %v2130_v18 = vsel %vm2129_vm6, %v5889_v11, %v2126_v22  ;;  %v2096_v60 = vadd.f32 %v5893_v29, %v2095_v14 }
 0xcb5   :  { %v5895_v30 = vpop.eup %5894  ;;  %v7014_v32 = vsel %vm2132_vm7, %v2134_v41, %v2130_v18 }
 0xcb6   :  { %v2108_v19 = vmul.f32 %v5895_v30, %v2089_v51  ;;  %v2100_v59 = vsel %vm2099_vm10, %v5893_v29, %v2096_v60  ;;  %vm2113_vm12 = vweird.f32 %v5895_v30  ;;  %v5897_v13 = vpop.eup %5896  ;;  %v2158_v22 = vmul.f32 %v7014_v32, %v6963_v27 }
 0xcb7   :  { %v7018_v61 = vsel %vm2102_vm11, %v2104_v53, %v2100_v59  ;;  %vm2114_vm14 = vmor %vm2112_vm13, %vm2113_vm12  ;;  %v2091_v37 = vadd.f32 1.0, %v5897_v13  ;;  %v2275_v59 = vld [vmem:[#allocation11 + $0x38] sm:$0xff]  ;;  %v2273_v53 = vld [vmem:[#allocation11 + $0x28] sm:$0xff] }
 0xcb8   :  { %v2109_v56 = vsub.f32 1.0, %v2108_v19  ;;  %v2156_v55 = vmul.f32 %v7018_v61, %v6952_v25  ;;  %2296 = vmatpush.msra.mxu2 %v2275_v59  ;;  %2541 = vmatpush.msrb.mxu3 %v2275_v59 }
 0xcb9   :  { %5898 = vrcp.f32 %v2091_v37  ;;  %v2148_v28 = vand.u32 2147483648, %v2091_v37  ;;  %vm2142_vm6 = vweird.f32 %v2091_v37  ;;  %v2146_v2 = vand.u32 2147483647, %v2091_v37 }
 0xcba   :  { %v2110_v45 = vmul.f32 %v5895_v30, %v2109_v56 }
 0xcbb   :  { %v2149_v42 = vor.u32 1.1754944e-38, %v2148_v28  ;;  %vm2147_vm8 = vcmp.eq.f32.partialorder %v2146_v2, 8.507059e+37 }
 0xcbc   :  { %v2111_v62 = vadd.f32 %v5895_v30, %v2110_v45  ;;  %v2274_v45 = vld [vmem:[#allocation11 + $0x30] sm:$0xff] }
 0xcbd   :  { %2297 = vmatpush.msra.mxu2 %v2274_v45  ;;  %2542 = vmatpush.msrb.mxu3 %v2274_v45 }
 0xcbe   :  { %v2115_v4 = vsel %vm2114_vm14, %v5895_v30, %v2111_v62  ;;  %v2270_v62 = vld [vmem:[#allocation11 + $0x10] sm:$0xff] }
 0xcbf   :  { %v2120_v21 = vsel %vm2117_vm15, %v2119_v5, %v2115_v4  ;;  %v5899_v40 = vpop.eup %5898  ;;  %2298 = vmatpush.msra.mxu2 %v2273_v53  ;;  %2543 = vmatpush.msrb.mxu3 %v2273_v53  ;;  %v637_v4 = vld [vmem:[#allocation5 + $0x68] sm:$0xff] }
 0xcc0   :  { %v2138_v17 = vmul.f32 %v5899_v40, %v2091_v37  ;;  %vm2143_vm1 = vweird.f32 %v5899_v40  ;;  %v2157_v29 = vmul.f32 %v2120_v21, %v6957_v12  ;;  %5525 = vmatmul.msk.f32.gmra.mxu0 %vm192_vm0, %v637_v4 }
 0xcc1   :  { %vm2144_vm7 = vmor %vm2142_vm6, %vm2143_vm1 }
 0xcc2   :  { %v2139_v10 = vsub.f32 1.0, %v2138_v17 }
 0xcc4   :  { %v2140_v46 = vmul.f32 %v5899_v40, %v2139_v10 }
 0xcc6   :  { %v2141_v43 = vadd.f32 %v5899_v40, %v2140_v46 }
 0xcc8   :  { %v2145_v11 = vsel %vm2144_vm7, %v5899_v40, %v2141_v43 }
 0xcc9   :  { %v2150_v51 = vsel %vm2147_vm8, %v2149_v42, %v2145_v11 }
 0xcca   :  { %v2159_v19 = vmul.f32 %v2150_v51, %v6967_v48 }
 0xcdc   :  { %v2169_v57 = vpop.permute.xlu2 %2168 }
 0xcdd   :  { %v2178_v58 = vmul.f32 %v2169_v57, %v7014_v32 }
 0xcdf   :  { %2188 = vrot.lane.b32.xlu0 %v2178_v58, %s6442_s5 }
 0xce4   :  { %v2165_v33 = vpop.permute.xlu0 %2164 }
 0xce5   :  { %v2176_v0 = vmul.f32 %v2165_v33, %v7018_v61  ;;  %v2272_v33 = vld [vmem:[#allocation11 + $0x20] sm:$0xff] }
 0xce6   :  { %2299 = vmatpush.msra.mxu2 %v2272_v33  ;;  %2544 = vmatpush.msrb.mxu3 %v2272_v33 }
 0xce7   :  { %2184 = vrot.lane.b32.xlu1 %v2176_v0, %s6442_s5 }
 0xcec   :  { %v2167_v20 = vpop.permute.xlu1 %2166 }
 0xced   :  { %v2177_v9 = vmul.f32 %v2167_v20, %v2120_v21 }
 0xcef   :  { %2186 = vrot.lane.b32.xlu2 %v2177_v9, %s6442_s5 }
 0xd14   :  { %v2171_v49 = vpop.permute.xlu0 %2170 }
 0xd15   :  { %v2179_v15 = vmul.f32 %v2171_v49, %v2150_v51 }
 0xd17   :  { %2190 = vrot.lane.b32.xlu1 %v2179_v15, %s6442_s5 }
 0xd49   :  { %v2187_v52 = vpop.permute.xlu2 %2186 }
 0xd4a   :  { %v7025_v6 = vadd.f32 %v2187_v52, %v2157_v29 }
 0xd4c   :  { %5900 = vtanh.f32 %v7025_v6 }
 0xd51   :  { %v2189_v50 = vpop.permute.xlu0 %2188 }
 0xd52   :  { %v5901_v30 = vpop.eup %5900  ;;  %v7030_v7 = vadd.f32 %v2189_v50, %v2158_v22 }
 0xd53   :  { %2210 = vrot.lane.b32.xlu0 %v5901_v30, %s6443_s28 }
 0xd54   :  { %5902 = vtanh.f32 %v7030_v7 }
 0xd59   :  { %v2185_v12 = vpop.permute.xlu1 %2184 }
 0xd5a   :  { %v5903_v18 = vpop.eup %5902  ;;  %v7036_v14 = vadd.f32 %v2185_v12, %v2156_v55 }
 0xd5b   :  { %2212 = vrot.lane.b32.xlu1 %v5903_v18, %s6443_s28  ;;  %v704_v18 = vadd.f32 %v6583_v34, %v6595_v47 }
 0xd5c   :  { %5904 = vtanh.f32 %v7036_v14 }
 0xd62   :  { %v5905_v27 = vpop.eup %5904 }
 0xd63   :  { %2208 = vrot.lane.b32.xlu2 %v5905_v27, %s6443_s28 }
 0xd89   :  { %v2191_v41 = vpop.permute.xlu1 %2190 }
 0xd8a   :  { %v7042_v57 = vadd.f32 %v2191_v41, %v2159_v19 }
 0xd8c   :  { %5906 = vtanh.f32 %v7042_v57 }
 0xd92   :  { %v5907_v58 = vpop.eup %5906 }
 0xd93   :  { %2214 = vrot.lane.b32.xlu2 %v5907_v58, %s6443_s28 }
 0xdbd   :  { %v2209_v25 = vpop.permute.xlu2 %2208 }
 0xdbe   :  { %v2220_v60 = vmul.f32 %v2209_v25, %v7018_v61  ;;  %v707_v25 = vadd.f32 %v6588_v36, %v6595_v47 }
 0xdc0   :  { %2254 = vrot.lane.b32.xlu1 %v2220_v60, %s6443_s28  ;;  %2226 = vrot.lane.b32.xlu0 %v2220_v60, %s6442_s5 }
 0xdc5   :  { %v2211_v56 = vpop.permute.xlu0 %2210 }
 0xdc6   :  { %v2221_v16 = vmul.f32 %v2211_v56, %v2120_v21 }
 0xdc8   :  { %2228 = vrot.lane.b32.xlu2 %v2221_v16, %s6442_s5  ;;  %2256 = vrot.lane.b32.xlu0 %v2221_v16, %s6443_s28 }
 0xdcd   :  { %v2213_v48 = vpop.permute.xlu1 %2212 }
 0xdce   :  { %v2222_v31 = vmul.f32 %v2213_v48, %v7014_v32  ;;  %v2271_v32 = vld [vmem:[#allocation11 + $0x18] sm:$0xff] }
 0xdcf   :  { %2300 = vmatpush.msra.mxu2 %v2271_v32  ;;  %2545 = vmatpush.msrb.mxu3 %v2271_v32 }
 0xdd0   :  { %2248 = vrot.lane.b32.xlu2 %v2222_v31, %s6442_s5  ;;  %2236 = vrot.lane.b32.xlu1 %v2222_v31, %s6443_s28 }
 0xdd1   :  { %2301 = vmatpush.msra.mxu2 %v2270_v62  ;;  %2546 = vmatpush.msrb.mxu3 %v2270_v62 }
 0xdd3   :  { %2302 = vmatpush.msra.mxu2 %v2269_v1  ;;  %2547 = vmatpush.msrb.mxu3 %v2269_v1 }
 0xdd5   :  { %2303 = vmatpush.msra.mxu2 %v2268_v54  ;;  %2548 = vmatpush.msrb.mxu3 %v2268_v54 }
 0xded   :  { %v2215_v61 = vpop.permute.xlu2 %2214 }
 0xdee   :  { %v2223_v0 = vmul.f32 %v2215_v61, %v2150_v51  ;;  %v671_v51 = vpop.f32.mrf.mxu0 }
 0xdef   :  { %v672_v15 = vadd.f32 %v671_v51, %v6590_v38 }
 0xdf0   :  { %2250 = vrot.lane.b32.xlu1 %v2223_v0, %s6442_s5  ;;  %2238 = vrot.lane.b32.xlu0 %v2223_v0, %s6443_s28 }
 0xdf6   :  { %v674_v22 = vpop.f32.mrf.mxu0 }
 0xdf7   :  { %v675_v50 = vadd.f32 %v674_v22, %v6590_v38 }
 0xe22   :  { %v2229_v5 = vpop.permute.xlu2 %2228 }
 0xe23   :  { %2233 = vst.msk [vmem:[#allocation3 + $0x58] sm:$0xff] %vm192_vm0, %v2229_v5 }
 0xe2a   :  { %v2249_v10 = vpop.permute.xlu2 %2248 }
 0xe32   :  { %v2255_v20 = vpop.permute.xlu1 %2254  ;;  %v2227_v21 = vpop.permute.xlu0 %2226 }
 0xe33   :  { %2232 = vst.msk [vmem:[#allocation3 + $0x50] sm:$0xff] %vm192_vm0, %v2227_v21  ;;  %v2260_v9 = vsel %vm192_vm0, %v2227_v21, %v2255_v20 }
 0xe34   :  { %v2264_v13 = vsel %vm156_vm2, %v2260_v9, 0.0 }
 0xe35   :  { %5576 = vmatmul.msk.f32.vlgmr.msra.gmra.mxu2 %vm798_vm3, %v2264_v13 }
 0xe3a   :  { %v2257_v37 = vpop.permute.xlu0 %2256 }
 0xe3b   :  { %v2261_v40 = vsel %vm192_vm0, %v2229_v5, %v2257_v37 }
 0xe3c   :  { %v2265_v17 = vsel %vm156_vm2, %v2261_v40, 0.0 }
 0xe3d   :  { %5577 = vmatmul.msk.f32.gmra.mxu2 %vm798_vm3, %v2265_v17 }
 0xe42   :  { %v2237_v46 = vpop.permute.xlu1 %2236 }
 0xe43   :  { %2242 = vst.msk [vmem:[#allocation3 + $0x20] sm:$0xff] %vm1010_vm4, %v2237_v46  ;;  %v2262_v43 = vsel %vm192_vm0, %v2249_v10, %v2237_v46 }
 0xe44   :  { %v2266_v28 = vsel %vm165_vm5, %v2262_v43, 0.0 }
 0xe45   :  { %5578 = vmatmul.msk.f32.gmra.mxu2 %vm798_vm3, %v2266_v28 }
 0xe62   :  { %v2251_v2 = vpop.permute.xlu1 %2250  ;;  %v2239_v11 = vpop.permute.xlu0 %2238 }
 0xe63   :  { %2243 = vst.msk [vmem:[#allocation3 + $0x28] sm:$0xff] %vm1010_vm4, %v2239_v11  ;;  %v2263_v42 = vsel %vm192_vm0, %v2251_v2, %v2239_v11 }
 0xe64   :  { %v2267_v49 = vsel %vm165_vm5, %v2263_v42, 0.0 }
 0xe65   :  { %5579 = vmatmul.msk.f32.gmra.mxu2 %vm798_vm3, %v2267_v49 }
 0xeb8   :  { %v2305_v29 = vpop.f32.mrf.mxu2 }
 0xeb9   :  { %v2317_v52 = vadd.f32 %v2305_v29, %v672_v15 }
 0xebb   :  { %5908 = vtanh.f32 %v2317_v52  ;;  %v5580_v16 = vmul.f32 -1.442695, %v2317_v52 }
 0xec0   :  { %v2308_v30 = vpop.f32.mrf.mxu2 }
 0xec1   :  { %v5909_v55 = vpop.eup %5908  ;;  %v2318_v12 = vadd.f32 %v2308_v30, %v675_v50 }
 0xec2   :  { %2409 = vrot.lane.b32.xlu2 %v5909_v55, %s6443_s28 }
 0xec3   :  { %5910 = vtanh.f32 %v2318_v12  ;;  %v5581_v33 = vmul.f32 -1.442695, %v2318_v12 }
 0xec8   :  { %v2311_v27 = vpop.f32.mrf.mxu2 }
 0xec9   :  { %v5911_v19 = vpop.eup %5910  ;;  %v2319_v41 = vadd.f32 %v2311_v27, %v704_v18 }
 0xeca   :  { %2411 = vrot.lane.b32.xlu0 %v5911_v19, %s6443_s28 }
 0xecb   :  { %5912 = vtanh.f32 %v2319_v41  ;;  %v5582_v32 = vmul.f32 -1.442695, %v2319_v41 }
 0xed1   :  { %v5913_v58 = vpop.eup %5912 }
 0xed2   :  { %2413 = vrot.lane.b32.xlu1 %v5913_v58, %s6443_s28 }
 0xee8   :  { %v2314_v60 = vpop.f32.mrf.mxu2 }
 0xee9   :  { %v2320_v56 = vadd.f32 %v2314_v60, %v707_v25 }
 0xeeb   :  { %5914 = vtanh.f32 %v2320_v56  ;;  %v5583_v9 = vmul.f32 -1.442695, %v2320_v56 }
 0xeec   :  { %5916 = vpow2.f32 %v5580_v16 }
 0xef1   :  { %v5915_v48 = vpop.eup %5914 }
 0xef2   :  { %2415 = vrot.lane.b32.xlu2 %v5915_v48, %s6443_s28  ;;  %v5917_v34 = vpop.eup %5916 }
 0xef3   :  { %v2333_v31 = vadd.f32 1.0, %v5917_v34 }
 0xef5   :  { %5918 = vrcp.f32 %v2333_v31  ;;  %v2348_v36 = vand.u32 2147483648, %v2333_v31  ;;  %vm2342_vm10 = vweird.f32 %v2333_v31  ;;  %v2346_v62 = vand.u32 2147483647, %v2333_v31 }
 0xef6   :  { %5920 = vpow2.f32 %v5581_v33 }
 0xef7   :  { %v2349_v3 = vor.u32 1.1754944e-38, %v2348_v36  ;;  %5922 = vpow2.f32 %v5582_v32  ;;  %vm2347_vm12 = vcmp.eq.f32.partialorder %v2346_v62, 8.507059e+37 }
 0xefb   :  { %v5919_v59 = vpop.eup %5918 }
 0xefc   :  { %v2338_v45 = vmul.f32 %v5919_v59, %v2333_v31  ;;  %vm2343_vm9 = vweird.f32 %v5919_v59  ;;  %v5921_v1 = vpop.eup %5920 }
 0xefd   :  { %vm2344_vm11 = vmor %vm2342_vm10, %vm2343_vm9  ;;  %v2334_v4 = vadd.f32 1.0, %v5921_v1  ;;  %v5923_v13 = vpop.eup %5922 }
 0xefe   :  { %v2339_v53 = vsub.f32 1.0, %v2338_v45  ;;  %v2335_v37 = vadd.f32 1.0, %v5923_v13 }
 0xeff   :  { %5924 = vrcp.f32 %v2334_v4  ;;  %v2363_v15 = vand.u32 2147483648, %v2334_v4  ;;  %vm2357_vm14 = vweird.f32 %v2334_v4  ;;  %v2361_v29 = vand.u32 2147483647, %v2334_v4 }
 0xf00   :  { %v2340_v61 = vmul.f32 %v5919_v59, %v2339_v53  ;;  %5926 = vpow2.f32 %v5583_v9  ;;  %v2378_v41 = vand.u32 2147483648, %v2335_v37  ;;  %vm2372_vm7 = vweird.f32 %v2335_v37 }
 0xf01   :  { %5928 = vrcp.f32 %v2335_v37  ;;  %v2364_v30 = vor.u32 1.1754944e-38, %v2363_v15  ;;  %vm2362_vm1 = vcmp.eq.f32.partialorder %v2361_v29, 8.507059e+37  ;;  %v2376_v58 = vand.u32 2147483647, %v2335_v37  ;;  %v7132_v15 = vld [vmem:[#allocation13 + $0x50] sm:$0xff]  ;;  %v7136_v29 = vld [vmem:[#allocation13 + $0x40] sm:$0xff] }
 0xf02   :  { %v2341_v0 = vadd.f32 %v5919_v59, %v2340_v61  ;;  %v2379_v56 = vor.u32 1.1754944e-38, %v2378_v41 }
 0xf03   :  { %vm2377_vm9 = vcmp.eq.f32.partialorder %v2376_v58, 8.507059e+37  ;;  %v7180_v58 = vld [vmem:[#allocation13 + $0x78] sm:$0xff] }
 0xf04   :  { %v2345_v54 = vsel %vm2344_vm11, %v5919_v59, %v2341_v0  ;;  %2884 = vmatpush.msra.mxu3 %v7180_v58  ;;  %2802 = vmatpush.msrb.mxu1 %v7180_v58 }
 0xf05   :  { %v7088_v5 = vsel %vm2347_vm12, %v2349_v3, %v2345_v54  ;;  %v5925_v40 = vpop.eup %5924 }
 0xf06   :  { %v5927_v17 = vpop.eup %5926  ;;  %v2353_v10 = vmul.f32 %v5925_v40, %v2334_v4  ;;  %vm2358_vm13 = vweird.f32 %v5925_v40  ;;  %v2401_v32 = vmul.f32 %v7088_v5, %v7036_v14 }
 0xf07   :  { %v2336_v46 = vadd.f32 1.0, %v5927_v17  ;;  %v5929_v28 = vpop.eup %5928  ;;  %vm2359_vm15 = vmor %vm2357_vm14, %vm2358_vm13 }
 0xf08   :  { %v2354_v43 = vsub.f32 1.0, %v2353_v10  ;;  %v2368_v11 = vmul.f32 %v5929_v28, %v2335_v37  ;;  %vm2373_vm6 = vweird.f32 %v5929_v28 }
 0xf09   :  { %5930 = vrcp.f32 %v2336_v46  ;;  %vm2374_vm8 = vmor %vm2372_vm7, %vm2373_vm6  ;;  %v2393_v59 = vand.u32 2147483648, %v2336_v46  ;;  %vm2387_vm11 = vweird.f32 %v2336_v46  ;;  %v2391_v45 = vand.u32 2147483647, %v2336_v46 }
 0xf0a   :  { %v2355_v2 = vmul.f32 %v5925_v40, %v2354_v43  ;;  %v2369_v49 = vsub.f32 1.0, %v2368_v11 }
 0xf0b   :  { %v2394_v33 = vor.u32 1.1754944e-38, %v2393_v59  ;;  %vm2392_vm13 = vcmp.eq.f32.partialorder %v2391_v45, 8.507059e+37  ;;  %v7204_v45 = vld [vmem:[#allocation13 + $0x38] sm:$0xff] }
 0xf0c   :  { %v2356_v42 = vadd.f32 %v5925_v40, %v2355_v2  ;;  %v2370_v22 = vmul.f32 %v5929_v28, %v2369_v49  ;;  %v7126_v49 = vld [vmem:[#allocation13 + $0x70] sm:$0xff] }
 0xf0d   :  { %2853 = vmatpush.msrb.mxu2 %v7126_v49  ;;  %2771 = vmatpush.msra.mxu0 %v7126_v49 }
 0xf0e   :  { %v2360_v52 = vsel %vm2359_vm15, %v5925_v40, %v2356_v42  ;;  %v2371_v27 = vadd.f32 %v5929_v28, %v2370_v22  ;;  %v7146_v22 = vld [vmem:[#allocation13 + $0x20] sm:$0xff] }
 0xf0f   :  { %v5931_v51 = vpop.eup %5930  ;;  %v2365_v12 = vsel %vm2362_vm1, %v2364_v30, %v2360_v52  ;;  %v7142_v52 = vld [vmem:[#allocation13 + $0x30] sm:$0xff]  ;;  %v7152_v30 = vld [vmem:[#allocation13] sm:$0xff] }
 0xf10   :  { %v2383_v50 = vmul.f32 %v5931_v51, %v2336_v46  ;;  %v2375_v25 = vsel %vm2374_vm8, %v5929_v28, %v2371_v27  ;;  %vm2388_vm10 = vweird.f32 %v5931_v51  ;;  %v2402_v14 = vmul.f32 %v2365_v12, %v7025_v6 }
 0xf11   :  { %v2380_v48 = vsel %vm2377_vm9, %v2379_v56, %v2375_v25  ;;  %vm2389_vm12 = vmor %vm2387_vm11, %vm2388_vm10  ;;  %v7182_v25 = vld [vmem:[#allocation13 + $0x68] sm:$0xff]  ;;  %v7189_v56 = vld [vmem:[#allocation13 + $0x58] sm:$0xff] }
 0xf12   :  { %v2384_v19 = vsub.f32 1.0, %v2383_v50  ;;  %v2403_v3 = vmul.f32 %v2380_v48, %v7030_v7  ;;  %v7148_v50 = vld [vmem:[#allocation13 + $0x10] sm:$0xff]  ;;  %2885 = vmatpush.msra.mxu3 %v7182_v25  ;;  %2803 = vmatpush.msrb.mxu1 %v7182_v25 }
 0xf14   :  { %v2385_v60 = vmul.f32 %v5931_v51, %v2384_v19  ;;  %2886 = vmatpush.msra.mxu3 %v7189_v56  ;;  %2804 = vmatpush.msrb.mxu1 %v7189_v56 }
 0xf16   :  { %v2386_v31 = vadd.f32 %v5931_v51, %v2385_v60 }
 0xf18   :  { %v2390_v53 = vsel %vm2389_vm12, %v5931_v51, %v2386_v31  ;;  %v7130_v51 = vld [vmem:[#allocation13 + $0x60] sm:$0xff]  ;;  %v7197_v31 = vld [vmem:[#allocation13 + $0x48] sm:$0xff] }
 0xf19   :  { %v2395_v61 = vsel %vm2392_vm13, %v2394_v33, %v2390_v53  ;;  %2854 = vmatpush.msrb.mxu2 %v7130_v51  ;;  %2772 = vmatpush.msra.mxu0 %v7130_v51  ;;  %v7206_v53 = vld [vmem:[#allocation13 + $0x28] sm:$0xff]  ;;  %v7210_v33 = vld [vmem:[#allocation13 + $0x18] sm:$0xff] }
 0xf1a   :  { %v2404_v7 = vmul.f32 %v2395_v61, %v7042_v57  ;;  %2887 = vmatpush.msra.mxu3 %v7197_v31  ;;  %2805 = vmatpush.msrb.mxu1 %v7197_v31 }
 0xf1b   :  { %2855 = vmatpush.msrb.mxu2 %v7132_v15  ;;  %2773 = vmatpush.msra.mxu0 %v7132_v15 }
 0xf1c   :  { %v2410_v20 = vpop.permute.xlu2 %2409  ;;  %2888 = vmatpush.msra.mxu3 %v7204_v45  ;;  %2806 = vmatpush.msrb.mxu1 %v7204_v45 }
 0xf1d   :  { %v2421_v21 = vmul.f32 %v2410_v20, %v7088_v5  ;;  %2856 = vmatpush.msrb.mxu2 %v7136_v29  ;;  %2774 = vmatpush.msra.mxu0 %v7136_v29 }
 0xf1e   :  { %2889 = vmatpush.msra.mxu3 %v7206_v53  ;;  %2807 = vmatpush.msrb.mxu1 %v7206_v53 }
 0xf1f   :  { %2429 = vrot.lane.b32.xlu0 %v2421_v21, %s6442_s5  ;;  %2857 = vmatpush.msrb.mxu2 %v7142_v52 }
 0xf20   :  { %2775 = vmatpush.msra.mxu0 %v7142_v52  ;;  %2890 = vmatpush.msra.mxu3 %v7210_v33 }
 0xf21   :  { %2858 = vmatpush.msrb.mxu2 %v7146_v22  ;;  %2808 = vmatpush.msrb.mxu1 %v7210_v33 }
 0xf22   :  { %2776 = vmatpush.msra.mxu0 %v7146_v22 }
 0xf23   :  { %2859 = vmatpush.msrb.mxu2 %v7148_v50 }
 0xf24   :  { %2777 = vmatpush.msra.mxu0 %v7148_v50 }
 0xf25   :  { %2860 = vmatpush.msrb.mxu2 %v7152_v30 }
 0xf26   :  { %2778 = vmatpush.msra.mxu0 %v7152_v30 }
 0xf27   :  { %3017 = vmatpush.msra.mxu2 %v7126_v49 }
 0xf28   :  { %2935 = vmatpush.msrb.mxu0 %v7126_v49 }
 0xf29   :  { %3018 = vmatpush.msra.mxu2 %v7130_v51 }
 0xf2a   :  { %2936 = vmatpush.msrb.mxu0 %v7130_v51 }
 0xf2b   :  { %3019 = vmatpush.msra.mxu2 %v7132_v15 }
 0xf2c   :  { %2937 = vmatpush.msrb.mxu0 %v7132_v15 }
 0xf2d   :  { %3020 = vmatpush.msra.mxu2 %v7136_v29 }
 0xf2e   :  { %2938 = vmatpush.msrb.mxu0 %v7136_v29 }
 0xf2f   :  { %3021 = vmatpush.msra.mxu2 %v7142_v52 }
 0xf30   :  { %2939 = vmatpush.msrb.mxu0 %v7142_v52 }
 0xf31   :  { %3022 = vmatpush.msra.mxu2 %v7146_v22 }
 0xf32   :  { %2940 = vmatpush.msrb.mxu0 %v7146_v22 }
 0xf33   :  { %3023 = vmatpush.msra.mxu2 %v7148_v50 }
 0xf34   :  { %2941 = vmatpush.msrb.mxu0 %v7148_v50 }
 0xf35   :  { %3024 = vmatpush.msra.mxu2 %v7152_v30 }
 0xf36   :  { %2942 = vmatpush.msrb.mxu0 %v7152_v30 }
 0xf3c   :  { %v2412_v55 = vpop.permute.xlu0 %2411 }
 0xf3d   :  { %v2422_v18 = vmul.f32 %v2412_v55, %v2365_v12 }
 0xf3f   :  { %2431 = vrot.lane.b32.xlu1 %v2422_v18, %s6442_s5 }
 0xf44   :  { %v2414_v16 = vpop.permute.xlu1 %2413 }
 0xf45   :  { %v2423_v34 = vmul.f32 %v2414_v16, %v2380_v48 }
 0xf47   :  { %2433 = vrot.lane.b32.xlu2 %v2423_v34, %s6442_s5 }
 0xf4c   :  { %v2416_v0 = vpop.permute.xlu2 %2415 }
 0xf4d   :  { %v2424_v36 = vmul.f32 %v2416_v0, %v2395_v61 }
 0xf4f   :  { %2435 = vrot.lane.b32.xlu0 %v2424_v36, %s6442_s5  ;;  %v7221_v36 = vld [vmem:[#allocation13 + $0x8] sm:$0xff] }
 0xf50   :  { %2891 = vmatpush.msra.mxu3 %v7221_v36  ;;  %2809 = vmatpush.msrb.mxu1 %v7221_v36 }
 0xf52   :  { %2966 = vmatpush.msra.mxu1 %v7180_v58 }
 0xf54   :  { %2967 = vmatpush.msra.mxu1 %v7182_v25 }
 0xf56   :  { %2968 = vmatpush.msra.mxu1 %v7189_v56 }
 0xf58   :  { %2969 = vmatpush.msra.mxu1 %v7197_v31 }
 0xf5a   :  { %2970 = vmatpush.msra.mxu1 %v7204_v45 }
 0xf5c   :  { %2971 = vmatpush.msra.mxu1 %v7206_v53 }
 0xf5e   :  { %2972 = vmatpush.msra.mxu1 %v7210_v33 }
 0xf60   :  { %2973 = vmatpush.msra.mxu1 %v7221_v36 }
 0xf91   :  { %v2430_v62 = vpop.permute.xlu0 %2429 }
 0xf92   :  { %v7097_v1 = vadd.f32 %v2430_v62, %v2401_v32  ;;  %v7249_v62 = vld [vmem:[#allocation3 + $0x30] sm:$0xff] }
 0xf94   :  { %5932 = vtanh.f32 %v7097_v1 }
 0xf9a   :  { %v5933_v54 = vpop.eup %5932 }
 0xf9b   :  { %2453 = vrot.lane.b32.xlu1 %v5933_v54, %s6443_s28 }
 0xfa1   :  { %v2434_v4 = vpop.permute.xlu2 %2433 }
 0xfa2   :  { %v7102_v20 = vadd.f32 %v2434_v4, %v2403_v3  ;;  %v7260_v3 = vld [vmem:[#allocation3 + $0x38] sm:$0xff] }
 0xfa4   :  { %5934 = vtanh.f32 %v7102_v20 }
 0xfaa   :  { %v5935_v21 = vpop.eup %5934 }
 0xfab   :  { %2457 = vrot.lane.b32.xlu0 %v5935_v21, %s6443_s28 }
 0xfb1   :  { %v2432_v9 = vpop.permute.xlu1 %2431 }
 0xfb2   :  { %v7107_v13 = vadd.f32 %v2432_v9, %v2402_v14  ;;  %v7272_v14 = vld [vmem:[#allocation3 + $0x50] sm:$0xff] }
 0xfb4   :  { %5936 = vtanh.f32 %v7107_v13 }
 0xfba   :  { %v5937_v37 = vpop.eup %5936 }
 0xfbb   :  { %2455 = vrot.lane.b32.xlu2 %v5937_v37, %s6443_s28  ;;  %v7283_v37 = vld [vmem:[#allocation3 + $0x58] sm:$0xff] }
 0xfc1   :  { %v2436_v40 = vpop.permute.xlu0 %2435 }
 0xfc2   :  { %v7112_v17 = vadd.f32 %v2436_v40, %v2404_v7  ;;  %v7296_v40 = vld [vmem:[#allocation3 + $0x40] sm:$0xff] }
 0xfc4   :  { %5938 = vtanh.f32 %v7112_v17 }
 0xfca   :  { %v5939_v10 = vpop.eup %5938 }
 0xfcb   :  { %2459 = vrot.lane.b32.xlu1 %v5939_v10, %s6443_s28  ;;  %v7304_v10 = vld [vmem:[#allocation3 + $0x48] sm:$0xff] }
0x100d   :  { %v2454_v46 = vpop.permute.xlu1 %2453 }
0x100e   :  { %v2465_v6 = vmul.f32 %v2454_v46, %v7088_v5  ;;  %v7312_v46 = vld [vmem:[#allocation3 + $0x20] sm:$0xff] }
0x1010   :  { %2471 = vrot.lane.b32.xlu2 %v2465_v6, %s6442_s5  ;;  %2499 = vrot.lane.b32.xlu0 %v2465_v6, %s6443_s28  ;;  %v7317_v6 = vld [vmem:[#allocation3 + $0x28] sm:$0xff] }
0x1015   :  { %v2456_v43 = vpop.permute.xlu2 %2455 }
0x1016   :  { %v2466_v28 = vmul.f32 %v2456_v43, %v2365_v12  ;;  %v747_v43 = vadd.f32 %v6761_v23, %v6590_v38 }
0x1018   :  { %2501 = vrot.lane.b32.xlu2 %v2466_v28, %s6443_s28  ;;  %2473 = vrot.lane.b32.xlu1 %v2466_v28, %s6442_s5 }
0x101d   :  { %v2458_v57 = vpop.permute.xlu0 %2457 }
0x101e   :  { %v2467_v2 = vmul.f32 %v2458_v57, %v2380_v48 }
0x1020   :  { %2481 = vrot.lane.b32.xlu0 %v2467_v2, %s6443_s28  ;;  %2493 = vrot.lane.b32.xlu1 %v2467_v2, %s6442_s5 }
0x103d   :  { %v2460_v11 = vpop.permute.xlu1 %2459 }
0x103e   :  { %v2468_v42 = vmul.f32 %v2460_v11, %v2395_v61 }
0x1040   :  { %2495 = vrot.lane.b32.xlu0 %v2468_v42, %s6442_s5  ;;  %2483 = vrot.lane.b32.xlu2 %v2468_v42, %s6443_s28  ;;  %v779_v42 = vadd.f32 %v6855_v39, %v6595_v47 }
0x106a   :  { %v2472_v5 = vpop.permute.xlu2 %2471 }
0x106b   :  { %2477 = vst.msk [vmem:[#allocation3 + $0x60] sm:$0xff] %vm192_vm0, %v2472_v5 }
0x1072   :  { %v2502_v27 = vpop.permute.xlu2 %2501  ;;  %v7277_v9 = vld [vmem:[#allocation3 + $0x60] sm:$0xff] }
0x1082   :  { %v2500_v55 = vpop.permute.xlu0 %2499 }
0x1083   :  { %v2505_v12 = vsel %vm192_vm0, %v2472_v5, %v2500_v55 }
0x1084   :  { %v2509_v18 = vsel %vm156_vm2, %v2505_v12, 0.0 }
0x1085   :  { %5584 = vmatmul.msk.f32.vlgmr.msrb.gmra.mxu3 %vm798_vm3, %v2509_v18  ;;  %v782_v18 = vadd.f32 %v6857_v44, %v6595_v47 }
0x1086   :  { %3048 = vmatpush.msrb.mxu3 %v7180_v58 }
0x1088   :  { %3049 = vmatpush.msrb.mxu3 %v7182_v25 }
0x108a   :  { %v2474_v19 = vpop.permute.xlu1 %2473  ;;  %3050 = vmatpush.msrb.mxu3 %v7189_v56 }
0x108b   :  { %2478 = vst.msk [vmem:[#allocation3 + $0x68] sm:$0xff] %vm192_vm0, %v2474_v19  ;;  %v2506_v41 = vsel %vm192_vm0, %v2474_v19, %v2502_v27  ;;  %v750_v19 = vadd.f32 %v6763_v24, %v6590_v38 }
0x108c   :  { %v2510_v60 = vsel %vm156_vm2, %v2506_v41, 0.0  ;;  %3051 = vmatpush.msrb.mxu3 %v7197_v31 }
0x108d   :  { %5585 = vmatmul.msk.f32.gmra.mxu3 %vm798_vm3, %v2510_v60 }
0x108e   :  { %3052 = vmatpush.msrb.mxu3 %v7204_v45 }
0x1090   :  { %3053 = vmatpush.msrb.mxu3 %v7206_v53 }
0x1092   :  { %v2482_v16 = vpop.permute.xlu0 %2481  ;;  %v2494_v48 = vpop.permute.xlu1 %2493  ;;  %3054 = vmatpush.msrb.mxu3 %v7210_v33  ;;  %v7288_v7 = vld [vmem:[#allocation3 + $0x68] sm:$0xff] }
0x1093   :  { %2487 = vst.msk [vmem:[#allocation3 + $0x10] sm:$0xff] %vm1010_vm4, %v2482_v16  ;;  %v2507_v34 = vsel %vm192_vm0, %v2494_v48, %v2482_v16 }
0x1094   :  { %v2511_v59 = vsel %vm165_vm5, %v2507_v34, 0.0  ;;  %3055 = vmatpush.msrb.mxu3 %v7221_v36 }
0x1095   :  { %5586 = vmatmul.msk.f32.gmra.mxu3 %vm798_vm3, %v2511_v59 }
0x109a   :  { %v2484_v61 = vpop.permute.xlu2 %2483  ;;  %v7214_v0 = vld [vmem:[#allocation3 + $0x10] sm:$0xff] }
0x109b   :  { %2488 = vst.msk [vmem:[#allocation3 + $0x18] sm:$0xff] %vm1010_vm4, %v2484_v61  ;;  %5596 = vmatmul.msk.f32.vlgmr.msrb.gmra.mxu2 %vm798_vm3, %v7214_v0 }
0x109c   :  { %3181 = vmatpush.msrb.mxu2 %v7126_v49 }
0x109e   :  { %3182 = vmatpush.msrb.mxu2 %v7130_v51 }
0x10a0   :  { %3183 = vmatpush.msrb.mxu2 %v7132_v15 }
0x10a2   :  { %v7233_v32 = vld [vmem:[#allocation3 + $0x18] sm:$0xff]  ;;  %3184 = vmatpush.msrb.mxu2 %v7136_v29 }
0x10a3   :  { %5597 = vmatmul.msk.f32.gmra.mxu2 %vm798_vm3, %v7233_v32 }
0x10a4   :  { %3185 = vmatpush.msrb.mxu2 %v7142_v52 }
0x10a6   :  { %3186 = vmatpush.msrb.mxu2 %v7146_v22 }
0x10a8   :  { %3187 = vmatpush.msrb.mxu2 %v7148_v50 }
0x10aa   :  { %3188 = vmatpush.msrb.mxu2 %v7152_v30 }
0x10ab   :  { %5604 = vmatmul.msk.f32.vlgmr.msra.gmra.mxu2 %vm798_vm3, %v7249_v62 }
0x10ac   :  { %3345 = vmatpush.msra.mxu2 %v7126_v49 }
0x10ae   :  { %3346 = vmatpush.msra.mxu2 %v7130_v51 }
0x10b0   :  { %3347 = vmatpush.msra.mxu2 %v7132_v15 }
0x10b2   :  { %v2496_v54 = vpop.permute.xlu0 %2495  ;;  %3348 = vmatpush.msra.mxu2 %v7136_v29 }
0x10b3   :  { %v2508_v4 = vsel %vm192_vm0, %v2496_v54, %v2484_v61  ;;  %5605 = vmatmul.msk.f32.gmra.mxu2 %vm798_vm3, %v7260_v3 }
0x10b4   :  { %v2512_v21 = vsel %vm165_vm5, %v2508_v4, 0.0  ;;  %3349 = vmatpush.msra.mxu2 %v7142_v52 }
0x10b5   :  { %5587 = vmatmul.msk.f32.gmra.mxu3 %vm798_vm3, %v2512_v21 }
0x10b6   :  { %3350 = vmatpush.msra.mxu2 %v7146_v22 }
0x10b8   :  { %3351 = vmatpush.msra.mxu2 %v7148_v50 }
0x10ba   :  { %3352 = vmatpush.msra.mxu2 %v7152_v30 }
0x10bb   :  { %5612 = vmatmul.msk.f32.vlgmr.msrb.gmra.mxu2 %vm798_vm3, %v7272_v14 }
0x10bd   :  { %5598 = vmatmul.msk.f32.vlgmr.msra.gmra.mxu3 %vm798_vm3, %v7277_v9 }
0x10be   :  { %3212 = vmatpush.msra.mxu3 %v7180_v58 }
0x10c0   :  { %3213 = vmatpush.msra.mxu3 %v7182_v25 }
0x10c2   :  { %3214 = vmatpush.msra.mxu3 %v7189_v56 }
0x10c3   :  { %5613 = vmatmul.msk.f32.gmra.mxu2 %vm798_vm3, %v7283_v37 }
0x10c4   :  { %3215 = vmatpush.msra.mxu3 %v7197_v31 }
0x10c5   :  { %5599 = vmatmul.msk.f32.gmra.mxu3 %vm798_vm3, %v7288_v7 }
0x10c6   :  { %3216 = vmatpush.msra.mxu3 %v7204_v45 }
0x10c8   :  { %3217 = vmatpush.msra.mxu3 %v7206_v53 }
0x10ca   :  { %3218 = vmatpush.msra.mxu3 %v7210_v33 }
0x10cc   :  { %3219 = vmatpush.msra.mxu3 %v7221_v36 }
0x10cd   :  { %5606 = vmatmul.msk.f32.vlgmr.msrb.gmra.mxu3 %vm798_vm3, %v7296_v40 }
0x10ce   :  { %3376 = vmatpush.msrb.mxu3 %v7180_v58 }
0x10d0   :  { %3377 = vmatpush.msrb.mxu3 %v7182_v25 }
0x10d2   :  { %3378 = vmatpush.msrb.mxu3 %v7189_v56 }
0x10d4   :  { %3379 = vmatpush.msrb.mxu3 %v7197_v31 }
0x10d5   :  { %5607 = vmatmul.msk.f32.gmra.mxu3 %vm798_vm3, %v7304_v10 }
0x10d6   :  { %3380 = vmatpush.msrb.mxu3 %v7204_v45 }
0x10d8   :  { %3381 = vmatpush.msrb.mxu3 %v7206_v53 }
0x10da   :  { %3382 = vmatpush.msrb.mxu3 %v7210_v33 }
0x10dc   :  { %3383 = vmatpush.msrb.mxu3 %v7221_v36 }
0x10dd   :  { %5614 = vmatmul.msk.f32.vlgmr.msra.gmra.mxu3 %vm798_vm3, %v7312_v46 }
0x10e5   :  { %5615 = vmatmul.msk.f32.gmra.mxu3 %vm798_vm3, %v7317_v6 }
0x1108   :  { %v2550_v28 = vpop.f32.mrf.mxu3 }
0x1109   :  { %v2562_v57 = vadd.f32 %v2550_v28, %v747_v43 }
0x110b   :  { %5940 = vtanh.f32 %v2562_v57  ;;  %v5588_v48 = vmul.f32 -1.442695, %v2562_v57 }
0x1110   :  { %v2553_v2 = vpop.f32.mrf.mxu3 }
0x1111   :  { %v5941_v11 = vpop.eup %5940  ;;  %v2563_v41 = vadd.f32 %v2553_v2, %v750_v19 }
0x1112   :  { %2654 = vrot.lane.b32.xlu0 %v5941_v11, %s6443_s28 }
0x1113   :  { %v5589_v44 = vmul.f32 -1.442695, %v2563_v41 }
0x1118   :  { %v2556_v5 = vpop.f32.mrf.mxu3 }
0x1119   :  { %v2564_v55 = vadd.f32 %v2556_v5, %v779_v42 }
0x111b   :  { %5942 = vtanh.f32 %v2564_v55  ;;  %v5590_v16 = vmul.f32 -1.442695, %v2564_v55 }
0x1121   :  { %v5943_v12 = vpop.eup %5942 }
0x1122   :  { %2658 = vrot.lane.b32.xlu1 %v5943_v12, %s6443_s28 }
0x1138   :  { %v2559_v23 = vpop.f32.mrf.mxu3 }
0x1139   :  { %v2565_v27 = vadd.f32 %v2559_v23, %v782_v18 }
0x113b   :  { %5944 = vtanh.f32 %v2565_v27  ;;  %v5591_v34 = vmul.f32 -1.442695, %v2565_v27 }
0x113c   :  { %5946 = vtanh.f32 %v2563_v41 }
0x113d   :  { %5948 = vpow2.f32 %v5590_v16 }
0x113e   :  { %5950 = vpow2.f32 %v5588_v48 }
0x113f   :  { %5952 = vpow2.f32 %v5591_v34 }
0x1141   :  { %v5945_v60 = vpop.eup %5944 }
0x1142   :  { %2660 = vrot.lane.b32.xlu2 %v5945_v60, %s6443_s28  ;;  %v5947_v39 = vpop.eup %5946 }
0x1143   :  { %v5949_v59 = vpop.eup %5948 }
0x1144   :  { %v2580_v47 = vadd.f32 1.0, %v5949_v59  ;;  %v5951_v61 = vpop.eup %5950 }
0x1145   :  { %v5953_v38 = vpop.eup %5952  ;;  %v2578_v24 = vadd.f32 1.0, %v5951_v61 }
0x1146   :  { %5954 = vrcp.f32 %v2580_v47  ;;  %v2581_v54 = vadd.f32 1.0, %v5953_v38  ;;  %v2623_v19 = vand.u32 2147483648, %v2580_v47  ;;  %vm2617_vm15 = vweird.f32 %v2580_v47 }
0x1147   :  { %5956 = vpow2.f32 %v5589_v44  ;;  %v2621_v41 = vand.u32 2147483647, %v2580_v47  ;;  %vm2587_vm9 = vweird.f32 %v2578_v24 }
0x1148   :  { %5958 = vrcp.f32 %v2578_v24  ;;  %v2624_v34 = vor.u32 1.1754944e-38, %v2623_v19  ;;  %vm2632_vm11 = vweird.f32 %v2581_v54 }
0x1149   :  { %5960 = vrcp.f32 %v2581_v54  ;;  %vm2622_vm6 = vcmp.eq.f32.partialorder %v2621_v41, 8.507059e+37 }
0x114a   :  { %2656 = vrot.lane.b32.xlu2 %v5947_v39, %s6443_s28 }
0x114c   :  { %v5955_v4 = vpop.eup %5954 }
0x114d   :  { %v5957_v21 = vpop.eup %5956  ;;  %v2613_v43 = vmul.f32 %v5955_v4, %v2580_v47  ;;  %vm2618_vm14 = vweird.f32 %v5955_v4  ;;  %v2593_v47 = vand.u32 2147483648, %v2578_v24 }
0x114e   :  { %v7333_v28 = vadd.f32 1.0, %v5957_v21  ;;  %v5959_v57 = vpop.eup %5958  ;;  %vm2619_vm1 = vmor %vm2617_vm15, %vm2618_vm14 }
0x114f   :  { %v2614_v2 = vsub.f32 1.0, %v2613_v43  ;;  %v5961_v11 = vpop.eup %5960  ;;  %v2583_v42 = vmul.f32 %v5959_v57, %v2578_v24  ;;  %vm2588_vm7 = vweird.f32 %v5959_v57 }
0x1150   :  { %5962 = vrcp.f32 %v7333_v28  ;;  %v2628_v55 = vmul.f32 %v5961_v11, %v2581_v54  ;;  %vm2633_vm8 = vweird.f32 %v5961_v11  ;;  %vm2589_vm10 = vmor %vm2587_vm9, %vm2588_vm7 }
0x1151   :  { %v2615_v5 = vmul.f32 %v5955_v4, %v2614_v2  ;;  %v2584_v12 = vsub.f32 1.0, %v2583_v42  ;;  %v2638_v2 = vand.u32 2147483648, %v2581_v54  ;;  %v2636_v42 = vand.u32 2147483647, %v2581_v54  ;;  %vm2634_vm12 = vmor %vm2632_vm11, %vm2633_vm8 }
0x1152   :  { %v2629_v23 = vsub.f32 1.0, %v2628_v55  ;;  %v2606_v54 = vand.u32 2147483647, %v7333_v28 }
0x1153   :  { %v2616_v18 = vadd.f32 %v5955_v4, %v2615_v5  ;;  %v2585_v60 = vmul.f32 %v5959_v57, %v2584_v12  ;;  %v2639_v19 = vor.u32 1.1754944e-38, %v2638_v2  ;;  %vm2637_vm14 = vcmp.eq.f32.partialorder %v2636_v42, 8.507059e+37 }
0x1154   :  { %v2630_v16 = vmul.f32 %v5961_v11, %v2629_v23  ;;  %v2594_v23 = vor.u32 1.1754944e-38, %v2593_v47  ;;  %vm2607_vm7 = vcmp.eq.f32.partialorder %v2606_v54, 8.507059e+37 }
0x1155   :  { %v2620_v39 = vsel %vm2619_vm1, %v5955_v4, %v2616_v18  ;;  %v2586_v59 = vadd.f32 %v5959_v57, %v2585_v60  ;;  %v2591_v4 = vand.u32 2147483647, %v2578_v24  ;;  %v2608_v24 = vand.u32 2147483648, %v7333_v28 }
0x1156   :  { %v5963_v27 = vpop.eup %5962  ;;  %v7337_v61 = vsel %vm2622_vm6, %v2624_v34, %v2620_v39  ;;  %v2631_v21 = vadd.f32 %v5961_v11, %v2630_v16  ;;  %vm2602_vm1 = vweird.f32 %v7333_v28 }
0x1157   :  { %v2598_v48 = vmul.f32 %v5963_v27, %v7333_v28  ;;  %v2590_v5 = vsel %vm2589_vm10, %v5959_v57, %v2586_v59  ;;  %vm2592_vm13 = vcmp.eq.f32.partialorder %v2591_v4, 8.507059e+37  ;;  %vm2603_vm15 = vweird.f32 %v5963_v27 }
0x1158   :  { %v2635_v55 = vsel %vm2634_vm12, %v5961_v11, %v2631_v21  ;;  %v2595_v41 = vsel %vm2592_vm13, %v2594_v23, %v2590_v5  ;;  %vm2604_vm6 = vmor %vm2602_vm1, %vm2603_vm15  ;;  %v2609_v11 = vor.u32 1.1754944e-38, %v2608_v24  ;;  %v2648_v21 = vmul.f32 %v7337_v61, %v7102_v20 }
0x1159   :  { %v2599_v43 = vsub.f32 1.0, %v2598_v48  ;;  %v2640_v39 = vsel %vm2637_vm14, %v2639_v19, %v2635_v55  ;;  %v2646_v2 = vmul.f32 %v2595_v41, %v7097_v1 }
0x115a   :  { %v2649_v4 = vmul.f32 %v2640_v39, %v7112_v17 }
0x115b   :  { %v2600_v12 = vmul.f32 %v5963_v27, %v2599_v43 }
0x115d   :  { %v2601_v34 = vadd.f32 %v5963_v27, %v2600_v12 }
0x115f   :  { %v2605_v57 = vsel %vm2604_vm6, %v5963_v27, %v2601_v34 }
0x1160   :  { %v2610_v59 = vsel %vm2607_vm7, %v2609_v11, %v2605_v57  ;;  %v7361_v57 = vld [vmem:[#allocation14 + $0x38] sm:$0xff]  ;;  %v7363_v11 = vld [vmem:[#allocation14 + $0x30] sm:$0xff] }
0x1161   :  { %3413 = vmatpush.msra.mxu3 %v7361_v57 }
0x1163   :  { %3414 = vmatpush.msra.mxu3 %v7363_v11 }
0x1184   :  { %v2655_v18 = vpop.permute.xlu0 %2654 }
0x1185   :  { %v2666_v16 = vmul.f32 %v2655_v18, %v2595_v41  ;;  %v2647_v18 = vmul.f32 %v2610_v59, %v7107_v13 }
0x1194   :  { %v2659_v44 = vpop.permute.xlu1 %2658 }
0x1195   :  { %v2668_v38 = vmul.f32 %v2659_v44, %v7337_v61 }
0x1197   :  { %2678 = vrot.lane.b32.xlu1 %v2668_v38, %s6442_s5 }
0x119c   :  { %v2661_v60 = vpop.permute.xlu2 %2660 }
0x119d   :  { %v2669_v48 = vmul.f32 %v2661_v60, %v2640_v39 }
0x119f   :  { %2674 = vrot.lane.b32.xlu1 %v2666_v16, %s6442_s5  ;;  %2680 = vrot.lane.b32.xlu0 %v2669_v48, %s6442_s5 }
0x11a4   :  { %v2657_v44 = vpop.permute.xlu2 %2656 }
0x11a5   :  { %v2667_v38 = vmul.f32 %v2657_v44, %v2610_v59  ;;  %v7376_v44 = vld [vmem:[#allocation14 + $0x10] sm:$0xff] }
0x11a7   :  { %2676 = vrot.lane.b32.xlu2 %v2667_v38, %s6442_s5  ;;  %v7379_v38 = vld [vmem:[#allocation14 + $0x8] sm:$0xff] }
0x1201   :  { %v2677_v12 = vpop.permute.xlu2 %2676 }
0x1202   :  { %v2687_v20 = vadd.f32 %v2677_v12, %v2647_v18 }
0x1209   :  { %v2679_v43 = vpop.permute.xlu1 %2678 }
0x120a   :  { %v2688_v47 = vadd.f32 %v2679_v43, %v2648_v21  ;;  %v7382_v21 = vld [vmem:[#allocation14] sm:$0xff] }
0x120c   :  { %5964 = vtanh.f32 %v2688_v47 }
0x1211   :  { %v2675_v28 = vpop.permute.xlu1 %2674  ;;  %v2681_v42 = vpop.permute.xlu0 %2680 }
0x1212   :  { %v5965_v27 = vpop.eup %5964  ;;  %v2686_v5 = vadd.f32 %v2675_v28, %v2646_v2  ;;  %v2689_v55 = vadd.f32 %v2681_v42, %v2649_v4 }
0x1213   :  { %2702 = vrot.lane.b32.xlu0 %v5965_v27, %s6443_s28 }
0x1214   :  { %5966 = vtanh.f32 %v2686_v5 }
0x1215   :  { %5968 = vtanh.f32 %v2689_v55 }
0x1216   :  { %5970 = vtanh.f32 %v2687_v20 }
0x121a   :  { %v5967_v23 = vpop.eup %5966 }
0x121b   :  { %v5969_v19 = vpop.eup %5968  ;;  %2698 = vrot.lane.b32.xlu2 %v5967_v23, %s6443_s28 }
0x121c   :  { %2704 = vrot.lane.b32.xlu1 %v5969_v19, %s6443_s28  ;;  %v5971_v1 = vpop.eup %5970 }
0x1224   :  { %2700 = vrot.lane.b32.xlu1 %v5971_v1, %s6443_s28 }
0x1275   :  { %v2699_v16 = vpop.permute.xlu2 %2698 }
0x1276   :  { %v2710_v48 = vmul.f32 %v2699_v16, %v2595_v41  ;;  %v7369_v41 = vld [vmem:[#allocation14 + $0x20] sm:$0xff] }
0x1285   :  { %v2703_v17 = vpop.permute.xlu0 %2702 }
0x1286   :  { %v2712_v60 = vmul.f32 %v2703_v17, %v7337_v61  ;;  %v7366_v61 = vld [vmem:[#allocation14 + $0x28] sm:$0xff] }
0x1287   :  { %3415 = vmatpush.msra.mxu3 %v7366_v61 }
0x1288   :  { %2726 = vrot.lane.b32.xlu0 %v2712_v60, %s6443_s28 }
0x1289   :  { %3416 = vmatpush.msra.mxu3 %v7369_v41 }
0x128e   :  { %v2705_v34 = vpop.permute.xlu1 %2704 }
0x128f   :  { %v2713_v13 = vmul.f32 %v2705_v34, %v2640_v39 }
0x1290   :  { %2716 = vrot.lane.b32.xlu0 %v2710_v48, %s6442_s5 }
0x1291   :  { %2728 = vrot.lane.b32.xlu2 %v2713_v13, %s6443_s28 }
0x1296   :  { %v2701_v24 = vpop.permute.xlu1 %2700 }
0x1297   :  { %v2711_v54 = vmul.f32 %v2701_v24, %v2610_v59  ;;  %v7374_v59 = vld [vmem:[#allocation14 + $0x18] sm:$0xff] }
0x1298   :  { %3417 = vmatpush.msra.mxu3 %v7374_v59 }
0x1299   :  { %2718 = vrot.lane.b32.xlu1 %v2711_v54, %s6442_s5 }
0x129a   :  { %3418 = vmatpush.msra.mxu3 %v7376_v44 }
0x129c   :  { %3419 = vmatpush.msra.mxu3 %v7379_v38 }
0x129e   :  { %3420 = vmatpush.msra.mxu3 %v7382_v21 }
0x12eb   :  { %v2729_v39 = vpop.permute.xlu2 %2728 }
0x12ec   :  { %2733 = vst.msk [vmem:[#allocation3 + $0x8] sm:$0xff] %vm1010_vm4, %v2729_v39 }
0x12f3   :  { %v2738_v4 = vld [vmem:[#allocation3 + $0x8] sm:$0xff] }
0x12fa   :  { %v2727_v43 = vpop.permute.xlu0 %2726 }
0x12fb   :  { %2732 = vst.msk [vmem:[#allocation3] sm:$0xff] %vm1010_vm4, %v2727_v43 }
0x1302   :  { %v2717_v47 = vpop.permute.xlu0 %2716  ;;  %v2737_v2 = vld [vmem:[#allocation3] sm:$0xff] }
0x1303   :  { %2722 = vst.msk [vmem:[#allocation3 + $0x70] sm:$0xff] %vm192_vm0, %v2717_v47  ;;  %5592 = vmatmul.msk.f32.vlgmr.msra.gmra.mxu0 %vm798_vm3, %v2737_v2  ;;  %5622 = vmatmul.msk.f32.vlgmr.msrb.gmra.mxu3 %vm798_vm3, %v2737_v2 }
0x1304   :  { %3099 = vmatpush.msra.mxu0 %v7126_v49 }
0x1306   :  { %3100 = vmatpush.msra.mxu0 %v7130_v51 }
0x1308   :  { %3101 = vmatpush.msra.mxu0 %v7132_v15 }
0x130a   :  { %v2747_v28 = vld [vmem:[#allocation3 + $0x70] sm:$0xff]  ;;  %3102 = vmatpush.msra.mxu0 %v7136_v29 }
0x130b   :  { %v2719_v42 = vpop.permute.xlu1 %2718  ;;  %5593 = vmatmul.msk.f32.gmra.mxu0 %vm798_vm3, %v2738_v4  ;;  %5594 = vmatmul.msk.f32.vlgmr.msrb.gmra.mxu1 %vm798_vm3, %v2747_v28 }
0x130c   :  { %2723 = vst.msk [vmem:[#allocation3 + $0x78] sm:$0xff] %vm192_vm0, %v2719_v42  ;;  %5620 = vmatmul.msk.f32.vlgmr.msra.gmra.mxu2 %vm798_vm3, %v2747_v28  ;;  %5623 = vmatmul.msk.f32.gmra.mxu3 %vm798_vm3, %v2738_v4 }
0x130d   :  { %3103 = vmatpush.msra.mxu0 %v7142_v52  ;;  %3130 = vmatpush.msrb.mxu1 %v7180_v58 }
0x130f   :  { %3104 = vmatpush.msra.mxu0 %v7146_v22  ;;  %3131 = vmatpush.msrb.mxu1 %v7182_v25 }
0x1311   :  { %3105 = vmatpush.msra.mxu0 %v7148_v50  ;;  %3132 = vmatpush.msrb.mxu1 %v7189_v56 }
0x1313   :  { %v2748_v27 = vld [vmem:[#allocation3 + $0x78] sm:$0xff]  ;;  %5600 = vmatmul.msk.f32.vlgmr.msrb.gmra.mxu0 %vm798_vm3, %v7312_v46  ;;  %3133 = vmatpush.msrb.mxu1 %v7197_v31 }
0x1314   :  { %5595 = vmatmul.msk.f32.gmra.mxu1 %vm798_vm3, %v2748_v27  ;;  %5621 = vmatmul.msk.f32.gmra.mxu2 %vm798_vm3, %v2748_v27 }
0x1315   :  { %3421 = vmatmul.f32.vlgmr.msra.gmra.mxu3 %v6441_v26  ;;  %3106 = vmatpush.msra.mxu0 %v7152_v30 }
0x1316   :  { %3134 = vmatpush.msrb.mxu1 %v7204_v45 }
0x1317   :  { %3263 = vmatpush.msrb.mxu0 %v7126_v49 }
0x1318   :  { %3135 = vmatpush.msrb.mxu1 %v7206_v53 }
0x1319   :  { %3264 = vmatpush.msrb.mxu0 %v7130_v51 }
0x131a   :  { %3136 = vmatpush.msrb.mxu1 %v7210_v33 }
0x131b   :  { %3265 = vmatpush.msrb.mxu0 %v7132_v15 }
0x131c   :  { %5601 = vmatmul.msk.f32.gmra.mxu0 %vm798_vm3, %v7317_v6  ;;  %5602 = vmatmul.msk.f32.vlgmr.msra.gmra.mxu1 %vm798_vm3, %v7272_v14 }
0x131d   :  { %3266 = vmatpush.msrb.mxu0 %v7136_v29  ;;  %3424 = vmatmul.f32.gmra.mxu3 %v6441_v26 }
0x131e   :  { %3137 = vmatpush.msrb.mxu1 %v7221_v36 }
0x131f   :  { %3267 = vmatpush.msrb.mxu0 %v7142_v52 }
0x1320   :  { %3294 = vmatpush.msra.mxu1 %v7180_v58 }
0x1321   :  { %3268 = vmatpush.msrb.mxu0 %v7146_v22 }
0x1322   :  { %3295 = vmatpush.msra.mxu1 %v7182_v25 }
0x1323   :  { %3269 = vmatpush.msrb.mxu0 %v7148_v50 }
0x1324   :  { %3296 = vmatpush.msra.mxu1 %v7189_v56  ;;  %5608 = vmatmul.msk.f32.vlgmr.msra.gmra.mxu0 %vm798_vm3, %v7296_v40 }
0x1325   :  { %5603 = vmatmul.msk.f32.gmra.mxu1 %vm798_vm3, %v7283_v37  ;;  %3270 = vmatpush.msrb.mxu0 %v7152_v30  ;;  %v2734_v30 = vld [vmem:[%s8138_s7] sm:$0x3] }
0x1326   :  { %3427 = vmatmul.f32.gmra.mxu3 %v6441_v26  ;;  %3297 = vmatpush.msra.mxu1 %v7197_v31  ;;  %v7484_v25 = vperm.slane %v2734_v30, 0 }
0x1328   :  { %3298 = vmatpush.msra.mxu1 %v7204_v45 }
0x132a   :  { %3299 = vmatpush.msra.mxu1 %v7206_v53 }
0x132c   :  { %5609 = vmatmul.msk.f32.gmra.mxu0 %vm798_vm3, %v7304_v10  ;;  %3300 = vmatpush.msra.mxu1 %v7210_v33 }
0x132d   :  { %5610 = vmatmul.msk.f32.vlgmr.msrb.gmra.mxu1 %vm798_vm3, %v7249_v62 }
0x132e   :  { %3430 = vmatmul.f32.gmra.mxu3 %v6441_v26  ;;  %3301 = vmatpush.msra.mxu1 %v7221_v36  ;;  %v7465_v26 = vpop.f32.mrf.mxu3 }
0x1330   :  { %3658 = vmatpush.msrb.mxu1 %v7361_v57 }
0x1332   :  { %3659 = vmatpush.msrb.mxu1 %v7363_v11 }
0x1334   :  { %3660 = vmatpush.msrb.mxu1 %v7366_v61  ;;  %5616 = vmatmul.msk.f32.vlgmr.msrb.gmra.mxu0 %vm798_vm3, %v7277_v9 }
0x1335   :  { %5611 = vmatmul.msk.f32.gmra.mxu1 %vm798_vm3, %v7260_v3  ;;  %v7489_v3 = vperm.slane %v2734_v30, 1 }
0x1336   :  { %3661 = vmatpush.msrb.mxu1 %v7369_v41  ;;  %v7467_v49 = vpop.f32.mrf.mxu3 }
0x1338   :  { %3662 = vmatpush.msrb.mxu1 %v7374_v59 }
0x133a   :  { %3663 = vmatpush.msrb.mxu1 %v7376_v44 }
0x133c   :  { %5617 = vmatmul.msk.f32.gmra.mxu0 %vm798_vm3, %v7288_v7  ;;  %3664 = vmatpush.msrb.mxu1 %v7379_v38 }
0x133d   :  { %5618 = vmatmul.msk.f32.vlgmr.msra.gmra.mxu1 %vm798_vm3, %v7214_v0 }
0x133e   :  { %3665 = vmatpush.msrb.mxu1 %v7382_v21  ;;  %v7469_v51 = vpop.f32.mrf.mxu3 }
0x1345   :  { %5619 = vmatmul.msk.f32.gmra.mxu1 %vm798_vm3, %v7233_v32 }
0x1346   :  { %v7471_v15 = vpop.f32.mrf.mxu3 }
0x134e   :  { %v7473_v29 = vpop.f32.mrf.mxu3 }
0x1356   :  { %v7475_v52 = vpop.f32.mrf.mxu3 }
0x1380   :  { %v2780_v58 = vpop.f32.mrf.mxu0 }
0x1381   :  { %v2781_v56 = vadd.f32 %v2780_v58, %v7484_v25 }
0x1386   :  { %v7477_v22 = vpop.f32.mrf.mxu3 }
0x1388   :  { %v2783_v53 = vpop.f32.mrf.mxu0  ;;  %v2811_v62 = vpop.f32.mrf.mxu1 }
0x1389   :  { %v2784_v33 = vadd.f32 %v2783_v53, %v7484_v25  ;;  %v2812_v14 = vadd.f32 %v2811_v62, %v7489_v3 }
0x138f   :  { %v7479_v50 = vpop.f32.mrf.mxu3 }
0x1391   :  { %v2814_v40 = vpop.f32.mrf.mxu1 }
0x1392   :  { %v2815_v10 = vadd.f32 %v2814_v40, %v7489_v3 }
0x1398   :  { %v3422_v31 = vpop.f32.mrf.mxu3 }
0x1399   :  { %v3434_v45 = vadd.f32 %v3422_v31, %v2781_v56 }
0x139b   :  { %5972 = vtanh.f32 %v3434_v45  ;;  %v5624_v12 = vmul.f32 -1.442695, %v3434_v45 }
0x13a0   :  { %v3425_v0 = vpop.f32.mrf.mxu3 }
0x13a1   :  { %v5973_v36 = vpop.eup %5972  ;;  %v3435_v32 = vadd.f32 %v3425_v0, %v2784_v33 }
0x13a2   :  { %3526 = vrot.lane.b32.xlu2 %v5973_v36, %s6443_s28 }
0x13a3   :  { %5974 = vtanh.f32 %v3435_v32  ;;  %v5625_v60 = vmul.f32 -1.442695, %v3435_v32 }
0x13a9   :  { %v3428_v9 = vpop.f32.mrf.mxu3  ;;  %v5975_v37 = vpop.eup %5974 }
0x13aa   :  { %v3436_v7 = vadd.f32 %v3428_v9, %v2812_v14  ;;  %3528 = vrot.lane.b32.xlu0 %v5975_v37, %s6443_s28 }
0x13ac   :  { %5976 = vtanh.f32 %v3436_v7  ;;  %v5626_v54 = vmul.f32 -1.442695, %v3436_v7 }
0x13b1   :  { %v3431_v46 = vpop.f32.mrf.mxu3 }
0x13b2   :  { %v5977_v6 = vpop.eup %5976  ;;  %v3437_v5 = vadd.f32 %v3431_v46, %v2815_v10 }
0x13b3   :  { %3530 = vrot.lane.b32.xlu1 %v5977_v6, %s6443_s28 }
0x13b4   :  { %5978 = vtanh.f32 %v3437_v5  ;;  %v5627_v19 = vmul.f32 -1.442695, %v3437_v5 }
0x13b5   :  { %5980 = vpow2.f32 %v5624_v12 }
0x13ba   :  { %v5979_v55 = vpop.eup %5978 }
0x13bb   :  { %3532 = vrot.lane.b32.xlu2 %v5979_v55, %s6443_s28  ;;  %v5981_v18 = vpop.eup %5980 }
0x13bc   :  { %v3450_v20 = vadd.f32 1.0, %v5981_v18 }
0x13be   :  { %5982 = vrcp.f32 %v3450_v20  ;;  %v3465_v24 = vand.u32 2147483648, %v3450_v20  ;;  %vm3459_vm9 = vweird.f32 %v3450_v20  ;;  %v3463_v57 = vand.u32 2147483647, %v3450_v20 }
0x13bf   :  { %5984 = vpow2.f32 %v5627_v19 }
0x13c0   :  { %5986 = vpow2.f32 %v5625_v60  ;;  %v3466_v47 = vor.u32 1.1754944e-38, %v3465_v24  ;;  %vm3464_vm11 = vcmp.eq.f32.partialorder %v3463_v57, 8.507059e+37 }
0x13c4   :  { %v5983_v23 = vpop.eup %5982 }
0x13c5   :  { %v3455_v1 = vmul.f32 %v5983_v23, %v3450_v20  ;;  %v5985_v16 = vpop.eup %5984  ;;  %vm3460_vm8 = vweird.f32 %v5983_v23 }
0x13c6   :  { %v3453_v34 = vadd.f32 1.0, %v5985_v16  ;;  %vm3461_vm10 = vmor %vm3459_vm9, %vm3460_vm8  ;;  %v5987_v39 = vpop.eup %5986 }
0x13c7   :  { %v3456_v17 = vsub.f32 1.0, %v3455_v1  ;;  %v3451_v2 = vadd.f32 1.0, %v5987_v39 }
0x13c8   :  { %5988 = vrcp.f32 %v3453_v34  ;;  %v3510_v62 = vand.u32 2147483648, %v3453_v34  ;;  %vm3504_vm13 = vweird.f32 %v3453_v34  ;;  %v3508_v14 = vand.u32 2147483647, %v3453_v34 }
0x13c9   :  { %v3457_v48 = vmul.f32 %v5983_v23, %v3456_v17  ;;  %5990 = vpow2.f32 %v5626_v54  ;;  %v3480_v12 = vand.u32 2147483648, %v3451_v2  ;;  %vm3474_vm6 = vweird.f32 %v3451_v2 }
0x13ca   :  { %5992 = vrcp.f32 %v3451_v2  ;;  %v3511_v40 = vor.u32 1.1754944e-38, %v3510_v62  ;;  %vm3509_vm15 = vcmp.eq.f32.partialorder %v3508_v14, 8.507059e+37  ;;  %v3478_v18 = vand.u32 2147483647, %v3451_v2 }
0x13cb   :  { %v3458_v13 = vadd.f32 %v5983_v23, %v3457_v48  ;;  %v3481_v19 = vor.u32 1.1754944e-38, %v3480_v12 }
0x13cc   :  { %vm3479_vm8 = vcmp.eq.f32.partialorder %v3478_v18, 8.507059e+37 }
0x13cd   :  { %v3462_v43 = vsel %vm3461_vm10, %v5983_v23, %v3458_v13 }
0x13ce   :  { %v7496_v28 = vsel %vm3464_vm11, %v3466_v47, %v3462_v43  ;;  %v5989_v27 = vpop.eup %5988 }
0x13cf   :  { %v5991_v30 = vpop.eup %5990  ;;  %v3500_v58 = vmul.f32 %v5989_v27, %v3453_v34  ;;  %vm3505_vm12 = vweird.f32 %v5989_v27  ;;  %v3518_v43 = vmul.f32 %v7496_v28, %v6613_v63 }
0x13d0   :  { %v3452_v56 = vadd.f32 1.0, %v5991_v30  ;;  %v5993_v45 = vpop.eup %5992  ;;  %vm3506_vm14 = vmor %vm3504_vm13, %vm3505_vm12 }
0x13d1   :  { %v3501_v31 = vsub.f32 1.0, %v3500_v58  ;;  %v3470_v33 = vmul.f32 %v5993_v45, %v3451_v2  ;;  %vm3475_vm1 = vweird.f32 %v5993_v45 }
0x13d2   :  { %5994 = vrcp.f32 %v3452_v56  ;;  %vm3476_vm7 = vmor %vm3474_vm6, %vm3475_vm1  ;;  %v3495_v48 = vand.u32 2147483648, %v3452_v56  ;;  %vm3489_vm10 = vweird.f32 %v3452_v56  ;;  %v3493_v34 = vand.u32 2147483647, %v3452_v56 }
0x13d3   :  { %v3502_v53 = vmul.f32 %v5989_v27, %v3501_v31  ;;  %v3471_v36 = vsub.f32 1.0, %v3470_v33 }
0x13d4   :  { %v3496_v24 = vor.u32 1.1754944e-38, %v3495_v48  ;;  %vm3494_vm12 = vcmp.eq.f32.partialorder %v3493_v34, 8.507059e+37  ;;  %v7558_v34 = vpop.f32.mrf.mxu1 }
0x13d5   :  { %v3503_v0 = vadd.f32 %v5989_v27, %v3502_v53  ;;  %v3472_v37 = vmul.f32 %v5993_v45, %v3471_v36 }
0x13d7   :  { %v3507_v9 = vsel %vm3506_vm14, %v5989_v27, %v3503_v0  ;;  %v3473_v5 = vadd.f32 %v5993_v45, %v3472_v37 }
0x13d8   :  { %v5995_v32 = vpop.eup %5994  ;;  %v7500_v46 = vsel %vm3509_vm15, %v3511_v40, %v3507_v9 }
0x13d9   :  { %v3485_v7 = vmul.f32 %v5995_v32, %v3452_v56  ;;  %v3477_v20 = vsel %vm3476_vm7, %v5993_v45, %v3473_v5  ;;  %vm3490_vm9 = vweird.f32 %v5995_v32  ;;  %v3521_v58 = vmul.f32 %v7500_v46, %v6626_v8 }
0x13da   :  { %v3482_v17 = vsel %vm3479_vm8, %v3481_v19, %v3477_v20  ;;  %vm3491_vm11 = vmor %vm3489_vm10, %vm3490_vm9 }
0x13db   :  { %v3486_v55 = vsub.f32 1.0, %v3485_v7  ;;  %v3519_v53 = vmul.f32 %v3482_v17, %v6626_v8 }
0x13dd   :  { %v3487_v23 = vmul.f32 %v5995_v32, %v3486_v55 }
0x13df   :  { %v3488_v16 = vadd.f32 %v5995_v32, %v3487_v23 }
0x13e1   :  { %v3492_v13 = vsel %vm3491_vm11, %v5995_v32, %v3488_v16 }
0x13e2   :  { %v3497_v54 = vsel %vm3494_vm12, %v3496_v24, %v3492_v13  ;;  %v7560_v13 = vpop.f32.mrf.mxu1 }
0x13ea   :  { %v7562_v24 = vpop.f32.mrf.mxu1 }
0x13fc   :  { %v3527_v4 = vpop.permute.xlu2 %3526 }
0x13fd   :  { %v3538_v42 = vmul.f32 %v3527_v4, %v7496_v28 }
0x13ff   :  { %3546 = vrot.lane.b32.xlu0 %v3538_v42, %s6442_s5  ;;  %v3520_v42 = vmul.f32 %v3497_v54, %v6613_v63 }
0x1415   :  { %v3533_v10 = vpop.permute.xlu2 %3532 }
0x1416   :  { %v3541_v6 = vmul.f32 %v3533_v10, %v7500_v46 }
0x1418   :  { %3552 = vrot.lane.b32.xlu0 %v3541_v6, %s6442_s5 }
0x141c   :  { %v3529_v1 = vpop.permute.xlu0 %3528 }
0x141d   :  { %v3539_v60 = vmul.f32 %v3529_v1, %v3482_v17 }
0x141f   :  { %3548 = vrot.lane.b32.xlu1 %v3539_v60, %s6442_s5 }
0x1425   :  { %v3531_v57 = vpop.permute.xlu1 %3530 }
0x1426   :  { %v3540_v39 = vmul.f32 %v3531_v57, %v3497_v54 }
0x1428   :  { %3550 = vrot.lane.b32.xlu2 %v3540_v39, %s6442_s5 }
0x1471   :  { %v3547_v47 = vpop.permute.xlu0 %3546 }
0x1472   :  { %v7508_v2 = vadd.f32 %v3547_v47, %v3518_v43  ;;  %v2862_v43 = vpop.f32.mrf.mxu2 }
0x1473   :  { %v2863_v47 = vadd.f32 %v2862_v43, %v7484_v25 }
0x1474   :  { %5996 = vtanh.f32 %v7508_v2 }
0x147a   :  { %v5997_v4 = vpop.eup %5996 }
0x147b   :  { %3570 = vrot.lane.b32.xlu1 %v5997_v4, %s6443_s28 }
0x1482   :  { %v3551_v27 = vpop.permute.xlu2 %3550 }
0x1483   :  { %v7513_v30 = vadd.f32 %v3551_v27, %v3520_v42  ;;  %v2865_v27 = vpop.f32.mrf.mxu2 }
0x1485   :  { %5998 = vtanh.f32 %v7513_v30 }
0x148a   :  { %v3553_v56 = vpop.permute.xlu0 %3552 }
0x148b   :  { %v5999_v31 = vpop.eup %5998  ;;  %v7518_v45 = vadd.f32 %v3553_v56, %v3521_v58  ;;  %v2866_v58 = vadd.f32 %v2865_v27, %v7484_v25 }
0x148c   :  { %3574 = vrot.lane.b32.xlu0 %v5999_v31, %s6443_s28 }
0x148d   :  { %6000 = vtanh.f32 %v7518_v45 }
0x1491   :  { %v3549_v33 = vpop.permute.xlu1 %3548 }
0x1492   :  { %v7523_v0 = vadd.f32 %v3549_v33, %v3519_v53  ;;  %v2894_v33 = vadd.f32 %v7465_v26, %v7489_v3 }
0x1493   :  { %v6001_v63 = vpop.eup %6000 }
0x1494   :  { %3576 = vrot.lane.b32.xlu1 %v6001_v63, %s6443_s28  ;;  %6002 = vtanh.f32 %v7523_v0 }
0x149a   :  { %v6003_v36 = vpop.eup %6002 }
0x149b   :  { %3572 = vrot.lane.b32.xlu2 %v6003_v36, %s6443_s28 }
0x14ed   :  { %v3571_v32 = vpop.permute.xlu1 %3570 }
0x14ee   :  { %v3582_v62 = vmul.f32 %v3571_v32, %v7496_v28 }
0x14f0   :  { %3616 = vrot.lane.b32.xlu0 %v3582_v62, %s6443_s28  ;;  %3588 = vrot.lane.b32.xlu2 %v3582_v62, %s6442_s5  ;;  %v2897_v62 = vadd.f32 %v7467_v49, %v7489_v3 }
0x14f5   :  { %v3573_v14 = vpop.permute.xlu2 %3572 }
0x14f6   :  { %v3583_v8 = vmul.f32 %v3573_v14, %v3482_v17 }
0x14f8   :  { %3590 = vrot.lane.b32.xlu1 %v3583_v8, %s6442_s5  ;;  %3618 = vrot.lane.b32.xlu2 %v3583_v8, %s6443_s28 }
0x14fe   :  { %v3575_v9 = vpop.permute.xlu0 %3574 }
0x14ff   :  { %v3584_v37 = vmul.f32 %v3575_v9, %v3497_v54  ;;  %v7564_v54 = vpop.f32.mrf.mxu1 }
0x1501   :  { %3610 = vrot.lane.b32.xlu1 %v3584_v37, %s6442_s5  ;;  %3598 = vrot.lane.b32.xlu0 %v3584_v37, %s6443_s28 }
0x1506   :  { %v3577_v7 = vpop.permute.xlu1 %3576 }
0x1507   :  { %v3585_v40 = vmul.f32 %v3577_v7, %v7500_v46  ;;  %v7566_v57 = vpop.f32.mrf.mxu1 }
0x1509   :  { %3612 = vrot.lane.b32.xlu0 %v3585_v40, %s6442_s5  ;;  %3600 = vrot.lane.b32.xlu2 %v3585_v40, %s6443_s28 }
0x150f   :  { %v7568_v39 = vpop.f32.mrf.mxu1 }
0x154a   :  { %v3589_v28 = vpop.permute.xlu2 %3588 }
0x154b   :  { %3594 = vst.msk [vmem:[#allocation4] sm:$0xff] %vm192_vm0, %v3589_v28 }
0x1552   :  { %v3619_v10 = vpop.permute.xlu2 %3618 }
0x1562   :  { %v3617_v6 = vpop.permute.xlu0 %3616 }
0x1563   :  { %v3601_v5 = vpop.permute.xlu2 %3600  ;;  %v3622_v55 = vsel %vm192_vm0, %v3589_v28, %v3617_v6 }
0x1564   :  { %3605 = vst.msk [vmem:[#allocation4 + $0x78] sm:$0xff] %vm1010_vm4, %v3601_v5  ;;  %v3626_v12 = vsel %vm156_vm2, %v3622_v55, 0.0 }
0x1565   :  { %5628 = vmatmul.msk.f32.vlgmr.msrb.gmra.mxu1 %vm798_vm3, %v3626_v12 }
0x156a   :  { %v3591_v46 = vpop.permute.xlu1 %3590 }
0x156b   :  { %3595 = vst.msk [vmem:[#allocation4 + $0x8] sm:$0xff] %vm192_vm0, %v3591_v46  ;;  %v3623_v18 = vsel %vm192_vm0, %v3591_v46, %v3619_v10 }
0x156c   :  { %v3627_v20 = vsel %vm156_vm2, %v3623_v18, 0.0 }
0x156d   :  { %5629 = vmatmul.msk.f32.gmra.mxu1 %vm798_vm3, %v3627_v20 }
0x1573   :  { %v3599_v23 = vpop.permute.xlu0 %3598  ;;  %v3611_v19 = vpop.permute.xlu1 %3610 }
0x1574   :  { %3604 = vst.msk [vmem:[#allocation4 + $0x70] sm:$0xff] %vm1010_vm4, %v3599_v23  ;;  %v3624_v1 = vsel %vm192_vm0, %v3611_v19, %v3599_v23 }
0x1575   :  { %v3628_v17 = vsel %vm165_vm5, %v3624_v1, 0.0 }
0x1576   :  { %5630 = vmatmul.msk.f32.gmra.mxu1 %vm798_vm3, %v3628_v17 }
0x157b   :  { %v3613_v60 = vpop.permute.xlu0 %3612 }
0x157c   :  { %v3625_v16 = vsel %vm192_vm0, %v3613_v60, %v3601_v5 }
0x157d   :  { %v3629_v48 = vsel %vm165_vm5, %v3625_v16, 0.0 }
0x157e   :  { %5631 = vmatmul.msk.f32.gmra.mxu1 %vm798_vm3, %v3629_v48 }
0x15e2   :  { %v3667_v4 = vpop.f32.mrf.mxu1 }
0x15e3   :  { %v3679_v42 = vadd.f32 %v3667_v4, %v2863_v47 }
0x15e5   :  { %6004 = vtanh.f32 %v3679_v42  ;;  %v5632_v28 = vmul.f32 -1.442695, %v3679_v42 }
0x15ea   :  { %v3670_v56 = vpop.f32.mrf.mxu1 }
0x15eb   :  { %v6005_v31 = vpop.eup %6004  ;;  %v3680_v53 = vadd.f32 %v3670_v56, %v2866_v58 }
0x15ec   :  { %3771 = vrot.lane.b32.xlu1 %v6005_v31, %s6443_s28 }
0x15ed   :  { %6006 = vtanh.f32 %v3680_v53  ;;  %v5633_v7 = vmul.f32 -1.442695, %v3680_v53 }
0x15f3   :  { %v3673_v63 = vpop.f32.mrf.mxu1  ;;  %v6007_v36 = vpop.eup %6006 }
0x15f4   :  { %v3681_v32 = vadd.f32 %v3673_v63, %v2894_v33  ;;  %3773 = vrot.lane.b32.xlu2 %v6007_v36, %s6443_s28 }
0x15f6   :  { %6008 = vtanh.f32 %v3681_v32  ;;  %v5634_v12 = vmul.f32 -1.442695, %v3681_v32 }
0x15fb   :  { %v3676_v14 = vpop.f32.mrf.mxu1 }
0x15fc   :  { %v6009_v8 = vpop.eup %6008  ;;  %v3682_v9 = vadd.f32 %v3676_v14, %v2897_v62 }
0x15fd   :  { %3775 = vrot.lane.b32.xlu0 %v6009_v8, %s6443_s28 }
0x15fe   :  { %6010 = vtanh.f32 %v3682_v9  ;;  %v5635_v19 = vmul.f32 -1.442695, %v3682_v9 }
0x15ff   :  { %6012 = vpow2.f32 %v5633_v7 }
0x1604   :  { %v6011_v37 = vpop.eup %6010 }
0x1605   :  { %3777 = vrot.lane.b32.xlu1 %v6011_v37, %s6443_s28  ;;  %v6013_v26 = vpop.eup %6012 }
0x1606   :  { %v3696_v40 = vadd.f32 1.0, %v6013_v26 }
0x1608   :  { %6014 = vrcp.f32 %v3696_v40  ;;  %v3725_v23 = vand.u32 2147483648, %v3696_v40  ;;  %vm3719_vm14 = vweird.f32 %v3696_v40  ;;  %v3723_v1 = vand.u32 2147483647, %v3696_v40 }
0x1609   :  { %6016 = vpow2.f32 %v5632_v28 }
0x160a   :  { %v3726_v48 = vor.u32 1.1754944e-38, %v3725_v23  ;;  %vm3724_vm1 = vcmp.eq.f32.partialorder %v3723_v1, 8.507059e+37 }
0x160e   :  { %v6015_v10 = vpop.eup %6014 }
0x160f   :  { %v6017_v6 = vpop.eup %6016  ;;  %v3715_v5 = vmul.f32 %v6015_v10, %v3696_v40  ;;  %vm3720_vm13 = vweird.f32 %v6015_v10 }
0x1610   :  { %v3695_v49 = vadd.f32 1.0, %v6017_v6  ;;  %vm3721_vm15 = vmor %vm3719_vm14, %vm3720_vm13 }
0x1611   :  { %v3716_v55 = vsub.f32 1.0, %v3715_v5 }
0x1612   :  { %6018 = vrcp.f32 %v3695_v49  ;;  %v3710_v63 = vand.u32 2147483648, %v3695_v49  ;;  %vm3704_vm7 = vweird.f32 %v3695_v49  ;;  %v3708_v36 = vand.u32 2147483647, %v3695_v49 }
0x1613   :  { %v3717_v46 = vmul.f32 %v6015_v10, %v3716_v55  ;;  %6020 = vpow2.f32 %v5634_v12 }
0x1614   :  { %6022 = vpow2.f32 %v5635_v19  ;;  %v3711_v14 = vor.u32 1.1754944e-38, %v3710_v63  ;;  %vm3709_vm9 = vcmp.eq.f32.partialorder %v3708_v36, 8.507059e+37 }
0x1615   :  { %v3718_v18 = vadd.f32 %v6015_v10, %v3717_v46 }
0x1617   :  { %v3722_v60 = vsel %vm3721_vm15, %v6015_v10, %v3718_v18 }
0x1618   :  { %v6019_v20 = vpop.eup %6018  ;;  %v7580_v4 = vsel %vm3724_vm1, %v3726_v48, %v3722_v60 }
0x1619   :  { %v6021_v17 = vpop.eup %6020  ;;  %v3700_v16 = vmul.f32 %v6019_v20, %v3695_v49  ;;  %vm3705_vm6 = vweird.f32 %v6019_v20 }
0x161a   :  { %v3697_v43 = vadd.f32 1.0, %v6021_v17  ;;  %v6023_v58 = vpop.eup %6022  ;;  %vm3706_vm8 = vmor %vm3704_vm7, %vm3705_vm6 }
0x161b   :  { %v3701_v27 = vsub.f32 1.0, %v3700_v16  ;;  %v3698_v31 = vadd.f32 1.0, %v6023_v58 }
0x161c   :  { %6024 = vrcp.f32 %v3697_v43  ;;  %v3740_v5 = vand.u32 2147483648, %v3697_v43  ;;  %vm3734_vm11 = vweird.f32 %v3697_v43  ;;  %v3738_v49 = vand.u32 2147483647, %v3697_v43 }
0x161d   :  { %v3702_v56 = vmul.f32 %v6019_v20, %v3701_v27  ;;  %6026 = vrcp.f32 %v3698_v31  ;;  %v3755_v1 = vand.u32 2147483648, %v3698_v31  ;;  %vm3749_vm15 = vweird.f32 %v3698_v31 }
0x161e   :  { %v3741_v46 = vor.u32 1.1754944e-38, %v3740_v5  ;;  %vm3739_vm13 = vcmp.eq.f32.partialorder %v3738_v49, 8.507059e+37  ;;  %v3753_v17 = vand.u32 2147483647, %v3698_v31 }
0x161f   :  { %v3703_v53 = vadd.f32 %v6019_v20, %v3702_v56  ;;  %v3756_v16 = vor.u32 1.1754944e-38, %v3755_v1  ;;  %v3764_v56 = vmul.f32 %v7580_v4, %v7523_v0 }
0x1620   :  { %vm3754_vm6 = vcmp.eq.f32.partialorder %v3753_v17, 8.507059e+37 }
0x1621   :  { %v3707_v32 = vsel %vm3706_vm8, %v6019_v20, %v3703_v53 }
0x1622   :  { %v6025_v33 = vpop.eup %6024  ;;  %v3712_v9 = vsel %vm3709_vm9, %v3711_v14, %v3707_v32 }
0x1623   :  { %v3730_v62 = vmul.f32 %v6025_v33, %v3697_v43  ;;  %v6027_v26 = vpop.eup %6026  ;;  %vm3735_vm10 = vweird.f32 %v6025_v33 }
0x1624   :  { %v3745_v28 = vmul.f32 %v6027_v26, %v3698_v31  ;;  %vm3736_vm12 = vmor %vm3734_vm11, %vm3735_vm10  ;;  %vm3750_vm14 = vweird.f32 %v6027_v26 }
0x1625   :  { %v3731_v7 = vsub.f32 1.0, %v3730_v62  ;;  %vm3751_vm1 = vmor %vm3749_vm15, %vm3750_vm14 }
0x1626   :  { %v3746_v6 = vsub.f32 1.0, %v3745_v28 }
0x1627   :  { %v3732_v40 = vmul.f32 %v6025_v33, %v3731_v7 }
0x1628   :  { %v3747_v12 = vmul.f32 %v6027_v26, %v3746_v6 }
0x1629   :  { %v3733_v10 = vadd.f32 %v6025_v33, %v3732_v40 }
0x162a   :  { %v3748_v19 = vadd.f32 %v6027_v26, %v3747_v12 }
0x162b   :  { %v3737_v55 = vsel %vm3736_vm12, %v6025_v33, %v3733_v10 }
0x162c   :  { %v3742_v20 = vsel %vm3739_vm13, %v3741_v46, %v3737_v55  ;;  %v3752_v60 = vsel %vm3751_vm1, %v6027_v26, %v3748_v19  ;;  %v7644_v19 = vpop.f32.mrf.mxu2 }
0x162d   :  { %v3757_v43 = vsel %vm3754_vm6, %v3756_v16, %v3752_v60  ;;  %v3765_v0 = vmul.f32 %v3742_v20, %v7513_v30 }
0x1634   :  { %v7646_v1 = vpop.f32.mrf.mxu2 }
0x163c   :  { %v7648_v17 = vpop.f32.mrf.mxu2 }
0x1644   :  { %v7650_v60 = vpop.f32.mrf.mxu2 }
0x164c   :  { %v7652_v16 = vpop.f32.mrf.mxu2 }
0x164e   :  { %v3774_v47 = vpop.permute.xlu2 %3773 }
0x164f   :  { %v3784_v42 = vmul.f32 %v3774_v47, %v7580_v4 }
0x1651   :  { %3793 = vrot.lane.b32.xlu0 %v3784_v42, %s6442_s5  ;;  %v3763_v42 = vmul.f32 %v3712_v9, %v7508_v2  ;;  %v3766_v2 = vmul.f32 %v3757_v43, %v7518_v45 }
0x165e   :  { %v3772_v8 = vpop.permute.xlu1 %3771 }
0x165f   :  { %v3783_v37 = vmul.f32 %v3772_v8, %v3712_v9 }
0x1661   :  { %3791 = vrot.lane.b32.xlu2 %v3783_v37, %s6442_s5 }
0x166f   :  { %v3776_v18 = vpop.permute.xlu0 %3775 }
0x1670   :  { %v3785_v23 = vmul.f32 %v3776_v18, %v3742_v20 }
0x1672   :  { %3795 = vrot.lane.b32.xlu1 %v3785_v23, %s6442_s5 }
0x1677   :  { %v3778_v48 = vpop.permute.xlu1 %3777 }
0x1678   :  { %v3786_v47 = vmul.f32 %v3778_v48, %v3757_v43  ;;  %v7654_v48 = vpop.f32.mrf.mxu2 }
0x167a   :  { %3797 = vrot.lane.b32.xlu2 %v3786_v47, %s6442_s5 }
0x16bb   :  { %v3792_v27 = vpop.permute.xlu2 %3791 }
0x16bc   :  { %v7588_v58 = vadd.f32 %v3792_v27, %v3763_v42 }
0x16be   :  { %6028 = vtanh.f32 %v7588_v58 }
0x16c3   :  { %v3794_v31 = vpop.permute.xlu0 %3793 }
0x16c4   :  { %v6029_v53 = vpop.eup %6028  ;;  %v7593_v33 = vadd.f32 %v3794_v31, %v3764_v56 }
0x16c5   :  { %3815 = vrot.lane.b32.xlu0 %v6029_v53, %s6443_s28 }
0x16c6   :  { %6030 = vtanh.f32 %v7593_v33 }
0x16cc   :  { %v6031_v63 = vpop.eup %6030 }
0x16cd   :  { %3817 = vrot.lane.b32.xlu1 %v6031_v63, %s6443_s28 }
0x16d4   :  { %v3798_v36 = vpop.permute.xlu2 %3797 }
0x16d5   :  { %v7599_v32 = vadd.f32 %v3798_v36, %v3766_v2  ;;  %v2976_v36 = vadd.f32 %v7558_v34, %v7489_v3 }
0x16d7   :  { %6032 = vtanh.f32 %v7599_v32 }
0x16dd   :  { %v6033_v62 = vpop.eup %6032 }
0x16de   :  { %3821 = vrot.lane.b32.xlu0 %v6033_v62, %s6443_s28 }
0x16e4   :  { %v3796_v14 = vpop.permute.xlu1 %3795 }
0x16e5   :  { %v7604_v8 = vadd.f32 %v3796_v14, %v3765_v0 }
0x16e7   :  { %6034 = vtanh.f32 %v7604_v8 }
0x16ed   :  { %v6035_v37 = vpop.eup %6034 }
0x16ee   :  { %3819 = vrot.lane.b32.xlu2 %v6035_v37, %s6443_s28  ;;  %v2979_v37 = vadd.f32 %v7560_v13, %v7489_v3 }
0x1737   :  { %v3816_v7 = vpop.permute.xlu0 %3815 }
0x1738   :  { %v3827_v45 = vmul.f32 %v3816_v7, %v3712_v9  ;;  %v3882_v9 = vld [vmem:[#allocation14 + $0x38] sm:$0xff] }
0x1739   :  { %3903 = vmatpush.msrb.mxu2 %v3882_v9  ;;  %4148 = vmatpush.msrb.mxu3 %v3882_v9 }
0x173a   :  { %3861 = vrot.lane.b32.xlu2 %v3827_v45, %s6443_s28  ;;  %3833 = vrot.lane.b32.xlu1 %v3827_v45, %s6442_s5 }
0x173b   :  { %4393 = vmatpush.msra.mxu0 %v3882_v9  ;;  %3904 = vmatpush.msrb.mxu2 %v7363_v11 }
0x173d   :  { %3905 = vmatpush.msrb.mxu2 %v7366_v61 }
0x173f   :  { %v3818_v26 = vpop.permute.xlu1 %3817  ;;  %3906 = vmatpush.msrb.mxu2 %v7369_v41 }
0x1740   :  { %v3828_v40 = vmul.f32 %v3818_v26, %v7580_v4 }
0x1741   :  { %3907 = vmatpush.msrb.mxu2 %v7374_v59 }
0x1742   :  { %3863 = vrot.lane.b32.xlu1 %v3828_v40, %s6443_s28  ;;  %3835 = vrot.lane.b32.xlu0 %v3828_v40, %s6442_s5 }
0x1743   :  { %3908 = vmatpush.msrb.mxu2 %v7376_v44 }
0x1745   :  { %3909 = vmatpush.msrb.mxu2 %v7379_v38 }
0x1747   :  { %3910 = vmatpush.msrb.mxu2 %v7382_v21 }
0x1748   :  { %v3820_v30 = vpop.permute.xlu2 %3819 }
0x1749   :  { %v3829_v28 = vmul.f32 %v3820_v30, %v3742_v20 }
0x174b   :  { %3843 = vrot.lane.b32.xlu2 %v3829_v28, %s6443_s28  ;;  %3855 = vrot.lane.b32.xlu0 %v3829_v28, %s6442_s5 }
0x1750   :  { %v3822_v10 = vpop.permute.xlu0 %3821 }
0x1751   :  { %v3830_v6 = vmul.f32 %v3822_v10, %v3757_v43  ;;  %v2944_v43 = vpop.f32.mrf.mxu0 }
0x1752   :  { %v2945_v47 = vadd.f32 %v2944_v43, %v7484_v25 }
0x1753   :  { %3857 = vrot.lane.b32.xlu2 %v3830_v6, %s6442_s5  ;;  %3845 = vrot.lane.b32.xlu1 %v3830_v6, %s6443_s28 }
0x1759   :  { %v2947_v56 = vpop.f32.mrf.mxu0 }
0x175a   :  { %v2948_v31 = vadd.f32 %v2947_v56, %v7484_v25 }
0x1794   :  { %v3862_v4 = vpop.permute.xlu2 %3861 }
0x17a5   :  { %v3844_v5 = vpop.permute.xlu2 %3843 }
0x17a6   :  { %3849 = vst.msk [vmem:[#allocation4 + $0x60] sm:$0xff] %vm1010_vm4, %v3844_v5 }
0x17ac   :  { %v3834_v49 = vpop.permute.xlu1 %3833 }
0x17ad   :  { %3839 = vst.msk [vmem:[#allocation4 + $0x10] sm:$0xff] %vm192_vm0, %v3834_v49  ;;  %v3867_v11 = vsel %vm192_vm0, %v3834_v49, %v3862_v4  ;;  %v3858_v46 = vpop.permute.xlu2 %3857 }
0x17ae   :  { %v3871_v61 = vsel %vm156_vm2, %v3867_v11, 0.0 }
0x17af   :  { %5636 = vmatmul.msk.f32.vlgmr.msrb.gmra.mxu2 %vm798_vm3, %v3871_v61 }
0x17b4   :  { %v3836_v41 = vpop.permute.xlu0 %3835  ;;  %v3864_v59 = vpop.permute.xlu1 %3863 }
0x17b5   :  { %3840 = vst.msk [vmem:[#allocation4 + $0x18] sm:$0xff] %vm192_vm0, %v3836_v41  ;;  %v3868_v44 = vsel %vm192_vm0, %v3836_v41, %v3864_v59 }
0x17b6   :  { %v3872_v38 = vsel %vm156_vm2, %v3868_v44, 0.0 }
0x17b7   :  { %5637 = vmatmul.msk.f32.gmra.mxu2 %vm798_vm3, %v3872_v38 }
0x17bd   :  { %v3856_v21 = vpop.permute.xlu0 %3855 }
0x17be   :  { %v3869_v55 = vsel %vm192_vm0, %v3856_v21, %v3844_v5 }
0x17bf   :  { %v3873_v12 = vsel %vm165_vm5, %v3869_v55, 0.0 }
0x17c0   :  { %5638 = vmatmul.msk.f32.gmra.mxu2 %vm798_vm3, %v3873_v12 }
0x17c5   :  { %v3846_v18 = vpop.permute.xlu1 %3845 }
0x17c6   :  { %3850 = vst.msk [vmem:[#allocation4 + $0x68] sm:$0xff] %vm1010_vm4, %v3846_v18  ;;  %v3870_v20 = vsel %vm192_vm0, %v3858_v46, %v3846_v18 }
0x17c7   :  { %v3874_v23 = vsel %vm165_vm5, %v3870_v20, 0.0 }
0x17c8   :  { %5639 = vmatmul.msk.f32.gmra.mxu2 %vm798_vm3, %v3874_v23 }
0x1832   :  { %v3912_v42 = vpop.f32.mrf.mxu2 }
0x1833   :  { %v3924_v27 = vadd.f32 %v3912_v42, %v2945_v47 }
0x1835   :  { %6036 = vtanh.f32 %v3924_v27  ;;  %v5640_v34 = vmul.f32 -1.442695, %v3924_v27 }
0x183a   :  { %v3915_v53 = vpop.f32.mrf.mxu2 }
0x183b   :  { %v6037_v63 = vpop.eup %6036  ;;  %v3925_v2 = vadd.f32 %v3915_v53, %v2948_v31 }
0x183c   :  { %4016 = vrot.lane.b32.xlu0 %v6037_v63, %s6443_s28 }
0x183d   :  { %6038 = vtanh.f32 %v3925_v2  ;;  %v5641_v6 = vmul.f32 -1.442695, %v3925_v2 }
0x1843   :  { %v3918_v62 = vpop.f32.mrf.mxu2  ;;  %v6039_v0 = vpop.eup %6038 }
0x1844   :  { %v3926_v14 = vadd.f32 %v3918_v62, %v2976_v36  ;;  %4018 = vrot.lane.b32.xlu1 %v6039_v0, %s6443_s28 }
0x1846   :  { %6040 = vtanh.f32 %v3926_v14  ;;  %v5642_v30 = vmul.f32 -1.442695, %v3926_v14 }
0x184b   :  { %v3921_v7 = vpop.f32.mrf.mxu2 }
0x184c   :  { %v6041_v45 = vpop.eup %6040  ;;  %v3927_v26 = vadd.f32 %v3921_v7, %v2979_v37 }
0x184d   :  { %4020 = vrot.lane.b32.xlu2 %v6041_v45, %s6443_s28 }
0x184e   :  { %6042 = vtanh.f32 %v3927_v26  ;;  %v5643_v59 = vmul.f32 -1.442695, %v3927_v26 }
0x184f   :  { %6044 = vpow2.f32 %v5642_v30 }
0x1850   :  { %6046 = vpow2.f32 %v5640_v34 }
0x1854   :  { %v6043_v40 = vpop.eup %6042 }
0x1855   :  { %4022 = vrot.lane.b32.xlu0 %v6043_v40, %s6443_s28  ;;  %v6045_v28 = vpop.eup %6044 }
0x1856   :  { %v3942_v10 = vadd.f32 1.0, %v6045_v28  ;;  %v6047_v9 = vpop.eup %6046 }
0x1857   :  { %v3940_v13 = vadd.f32 1.0, %v6047_v9 }
0x1858   :  { %6048 = vrcp.f32 %v3942_v10  ;;  %v3985_v46 = vand.u32 2147483648, %v3942_v10  ;;  %vm3979_vm8 = vweird.f32 %v3942_v10  ;;  %v3983_v18 = vand.u32 2147483647, %v3942_v10 }
0x1859   :  { %6050 = vpow2.f32 %v5641_v6  ;;  %v3955_v36 = vand.u32 2147483648, %v3940_v13  ;;  %vm3949_vm12 = vweird.f32 %v3940_v13  ;;  %v3953_v62 = vand.u32 2147483647, %v3940_v13 }
0x185a   :  { %6052 = vrcp.f32 %v3940_v13  ;;  %v3986_v42 = vor.u32 1.1754944e-38, %v3985_v46  ;;  %vm3984_vm10 = vcmp.eq.f32.partialorder %v3983_v18, 8.507059e+37 }
0x185b   :  { %v3956_v37 = vor.u32 1.1754944e-38, %v3955_v36  ;;  %vm3954_vm14 = vcmp.eq.f32.partialorder %v3953_v62, 8.507059e+37 }
0x185e   :  { %v6049_v4 = vpop.eup %6048 }
0x185f   :  { %v6051_v5 = vpop.eup %6050  ;;  %v3975_v49 = vmul.f32 %v6049_v4, %v3942_v10  ;;  %vm3980_vm7 = vweird.f32 %v6049_v4 }
0x1860   :  { %v3941_v11 = vadd.f32 1.0, %v6051_v5  ;;  %v6053_v41 = vpop.eup %6052  ;;  %vm3981_vm9 = vmor %vm3979_vm8, %vm3980_vm7 }
0x1861   :  { %v3976_v61 = vsub.f32 1.0, %v3975_v49  ;;  %v3945_v38 = vmul.f32 %v6053_v41, %v3940_v13  ;;  %vm3950_vm11 = vweird.f32 %v6053_v41 }
0x1862   :  { %6054 = vrcp.f32 %v3941_v11  ;;  %vm3951_vm13 = vmor %vm3949_vm12, %vm3950_vm11  ;;  %v3970_v34 = vand.u32 2147483648, %v3941_v11  ;;  %vm3964_vm1 = vweird.f32 %v3941_v11  ;;  %v3968_v28 = vand.u32 2147483647, %v3941_v11 }
0x1863   :  { %v3977_v44 = vmul.f32 %v6049_v4, %v3976_v61  ;;  %6056 = vpow2.f32 %v5643_v59  ;;  %v3946_v55 = vsub.f32 1.0, %v3945_v38 }
0x1864   :  { %v3971_v9 = vor.u32 1.1754944e-38, %v3970_v34  ;;  %vm3969_vm7 = vcmp.eq.f32.partialorder %v3968_v28, 8.507059e+37 }
0x1865   :  { %v3978_v21 = vadd.f32 %v6049_v4, %v3977_v44  ;;  %v3947_v43 = vmul.f32 %v6053_v41, %v3946_v55 }
0x1867   :  { %v3982_v23 = vsel %vm3981_vm9, %v6049_v4, %v3978_v21  ;;  %v3948_v63 = vadd.f32 %v6053_v41, %v3947_v43 }
0x1868   :  { %v6055_v12 = vpop.eup %6054  ;;  %v7666_v31 = vsel %vm3984_vm10, %v3986_v42, %v3982_v23 }
0x1869   :  { %v6057_v20 = vpop.eup %6056  ;;  %v3960_v47 = vmul.f32 %v6055_v12, %v3941_v11  ;;  %v3952_v0 = vsel %vm3951_vm13, %v6053_v41, %v3948_v63  ;;  %vm3965_vm15 = vweird.f32 %v6055_v12  ;;  %v4010_v23 = vmul.f32 %v7666_v31, %v7604_v8 }
0x186a   :  { %v3943_v27 = vadd.f32 1.0, %v6057_v20  ;;  %v7670_v45 = vsel %vm3954_vm14, %v3956_v37, %v3952_v0  ;;  %vm3966_vm6 = vmor %vm3964_vm1, %vm3965_vm15  ;;  %v7700_v0 = vld [vmem:[#allocation14 + $0x28] sm:$0xff] }
0x186b   :  { %v3961_v2 = vsub.f32 1.0, %v3960_v47 }
0x186c   :  { %6058 = vrcp.f32 %v3943_v27  ;;  %v4000_v59 = vand.u32 2147483648, %v3943_v27  ;;  %vm3994_vm9 = vweird.f32 %v3943_v27  ;;  %v3998_v44 = vand.u32 2147483647, %v3943_v27 }
0x186d   :  { %v3962_v14 = vmul.f32 %v6055_v12, %v3961_v2 }
0x186e   :  { %v4001_v11 = vor.u32 1.1754944e-38, %v4000_v59  ;;  %vm3999_vm11 = vcmp.eq.f32.partialorder %v3998_v44, 8.507059e+37 }
0x186f   :  { %v3963_v40 = vadd.f32 %v6055_v12, %v3962_v14  ;;  %v7704_v14 = vld [vmem:[#allocation14 + $0x20] sm:$0xff] }
0x1871   :  { %v3967_v10 = vsel %vm3966_vm6, %v6055_v12, %v3963_v40 }
0x1872   :  { %v6059_v30 = vpop.eup %6058  ;;  %v3972_v13 = vsel %vm3969_vm7, %v3971_v9, %v3967_v10  ;;  %v7722_v10 = vld [vmem:[#allocation14 + $0x10] sm:$0xff] }
0x1873   :  { %v3990_v6 = vmul.f32 %v6059_v30, %v3943_v27  ;;  %vm3995_vm8 = vweird.f32 %v6059_v30  ;;  %v4009_v46 = vmul.f32 %v3972_v13, %v7593_v33  ;;  %v4008_v27 = vmul.f32 %v7670_v45, %v7588_v58  ;;  %v7698_v58 = vld [vmem:[#allocation14 + $0x30] sm:$0xff] }
0x1874   :  { %vm3996_vm10 = vmor %vm3994_vm9, %vm3995_vm8  ;;  %4149 = vmatpush.msrb.mxu3 %v7698_v58  ;;  %4394 = vmatpush.msra.mxu0 %v7698_v58 }
0x1875   :  { %v3991_v49 = vsub.f32 1.0, %v3990_v6  ;;  %v7730_v6 = vld [vmem:[#allocation14] sm:$0xff] }
0x1876   :  { %4150 = vmatpush.msrb.mxu3 %v7700_v0  ;;  %4395 = vmatpush.msra.mxu0 %v7700_v0 }
0x1877   :  { %v3992_v61 = vmul.f32 %v6059_v30, %v3991_v49 }
0x1878   :  { %4151 = vmatpush.msrb.mxu3 %v7704_v14  ;;  %4396 = vmatpush.msra.mxu0 %v7704_v14 }
0x1879   :  { %v3993_v41 = vadd.f32 %v6059_v30, %v3992_v61 }
0x187b   :  { %v3997_v38 = vsel %vm3996_vm10, %v6059_v30, %v3993_v41 }
0x187c   :  { %v4002_v55 = vsel %vm3999_vm11, %v4001_v11, %v3997_v38 }
0x187d   :  { %v4011_v63 = vmul.f32 %v4002_v55, %v7599_v32 }
0x18a7   :  { %v4021_v56 = vpop.permute.xlu2 %4020 }
0x18a8   :  { %v4030_v53 = vmul.f32 %v4021_v56, %v7666_v31 }
0x18aa   :  { %4040 = vrot.lane.b32.xlu0 %v4030_v53, %s6442_s5 }
0x18ae   :  { %v4017_v7 = vpop.permute.xlu0 %4016 }
0x18af   :  { %v4028_v26 = vmul.f32 %v4017_v7, %v7670_v45 }
0x18b1   :  { %4036 = vrot.lane.b32.xlu1 %v4028_v26, %s6442_s5 }
0x18b6   :  { %v4019_v4 = vpop.permute.xlu1 %4018 }
0x18b7   :  { %v4029_v5 = vmul.f32 %v4019_v4, %v3972_v13 }
0x18b9   :  { %4038 = vrot.lane.b32.xlu2 %v4029_v5, %s6442_s5 }
0x18c7   :  { %v4023_v21 = vpop.permute.xlu0 %4022 }
0x18c8   :  { %v4031_v12 = vmul.f32 %v4023_v21, %v4002_v55 }
0x18ca   :  { %4042 = vrot.lane.b32.xlu1 %v4031_v12, %s6442_s5 }
0x1913   :  { %v4039_v18 = vpop.permute.xlu2 %4038 }
0x1914   :  { %v7677_v20 = vadd.f32 %v4039_v18, %v4009_v46 }
0x1916   :  { %6060 = vtanh.f32 %v7677_v20 }
0x191c   :  { %v4041_v43 = vpop.permute.xlu0 %4040  ;;  %v6061_v47 = vpop.eup %6060 }
0x191d   :  { %v7682_v42 = vadd.f32 %v4041_v43, %v4010_v23  ;;  %4062 = vrot.lane.b32.xlu0 %v6061_v47, %s6443_s28  ;;  %v3027_v23 = vadd.f32 %v7644_v19, %v7484_v25  ;;  %v3061_v19 = vadd.f32 %v7471_v15, %v7489_v3 }
0x191f   :  { %6062 = vtanh.f32 %v7682_v42 }
0x1923   :  { %v4037_v33 = vpop.permute.xlu1 %4036 }
0x1924   :  { %v7688_v53 = vadd.f32 %v4037_v33, %v4008_v27  ;;  %v3030_v27 = vadd.f32 %v7646_v1, %v7484_v25 }
0x1925   :  { %v6063_v56 = vpop.eup %6062 }
0x1926   :  { %4064 = vrot.lane.b32.xlu1 %v6063_v56, %s6443_s28  ;;  %6064 = vtanh.f32 %v7688_v53 }
0x192c   :  { %v6065_v8 = vpop.eup %6064 }
0x192d   :  { %4060 = vrot.lane.b32.xlu2 %v6065_v8, %s6443_s28 }
0x193c   :  { %v4043_v2 = vpop.permute.xlu1 %4042 }
0x193d   :  { %v7694_v36 = vadd.f32 %v4043_v2, %v4011_v63  ;;  %v3058_v63 = vadd.f32 %v7469_v51, %v7489_v3 }
0x193f   :  { %6066 = vtanh.f32 %v7694_v36 }
0x1945   :  { %v6067_v62 = vpop.eup %6066 }
0x1946   :  { %4066 = vrot.lane.b32.xlu2 %v6067_v62, %s6443_s28 }
0x1987   :  { %v4061_v32 = vpop.permute.xlu2 %4060 }
0x1988   :  { %v4072_v37 = vmul.f32 %v4061_v32, %v7670_v45  ;;  %v7720_v45 = vld [vmem:[#allocation14 + $0x18] sm:$0xff] }
0x1989   :  { %4152 = vmatpush.msrb.mxu3 %v7720_v45  ;;  %4397 = vmatpush.msra.mxu0 %v7720_v45 }
0x198a   :  { %4106 = vrot.lane.b32.xlu1 %v4072_v37, %s6443_s28  ;;  %4078 = vrot.lane.b32.xlu0 %v4072_v37, %s6442_s5 }
0x198b   :  { %4153 = vmatpush.msrb.mxu3 %v7722_v10  ;;  %4398 = vmatpush.msra.mxu0 %v7722_v10 }
0x198f   :  { %v4063_v7 = vpop.permute.xlu0 %4062 }
0x1990   :  { %v4073_v26 = vmul.f32 %v4063_v7, %v3972_v13 }
0x1992   :  { %4108 = vrot.lane.b32.xlu0 %v4073_v26, %s6443_s28  ;;  %4080 = vrot.lane.b32.xlu2 %v4073_v26, %s6442_s5 }
0x1998   :  { %v4065_v40 = vpop.permute.xlu1 %4064 }
0x1999   :  { %v4074_v30 = vmul.f32 %v4065_v40, %v7666_v31  ;;  %v7728_v31 = vld [vmem:[#allocation14 + $0x8] sm:$0xff] }
0x199a   :  { %4154 = vmatpush.msrb.mxu3 %v7728_v31  ;;  %4399 = vmatpush.msra.mxu0 %v7728_v31 }
0x199b   :  { %4100 = vrot.lane.b32.xlu2 %v4074_v30, %s6442_s5  ;;  %4088 = vrot.lane.b32.xlu1 %v4074_v30, %s6443_s28 }
0x199c   :  { %4155 = vmatpush.msrb.mxu3 %v7730_v6  ;;  %4400 = vmatpush.msra.mxu0 %v7730_v6 }
0x19a0   :  { %v4067_v34 = vpop.permute.xlu2 %4066 }
0x19a1   :  { %v4075_v28 = vmul.f32 %v4067_v34, %v4002_v55 }
0x19a3   :  { %4090 = vrot.lane.b32.xlu0 %v4075_v28, %s6443_s28  ;;  %4102 = vrot.lane.b32.xlu1 %v4075_v28, %s6442_s5 }
0x19ec   :  { %v4081_v9 = vpop.permute.xlu2 %4080 }
0x19ed   :  { %4085 = vst.msk [vmem:[#allocation4 + $0x28] sm:$0xff] %vm192_vm0, %v4081_v9 }
0x19f5   :  { %v4101_v44 = vpop.permute.xlu2 %4100 }
0x19fc   :  { %v4079_v13 = vpop.permute.xlu0 %4078  ;;  %v4107_v4 = vpop.permute.xlu1 %4106 }
0x19fd   :  { %4084 = vst.msk [vmem:[#allocation4 + $0x20] sm:$0xff] %vm192_vm0, %v4079_v13  ;;  %v4112_v5 = vsel %vm192_vm0, %v4079_v13, %v4107_v4 }
0x19fe   :  { %v4116_v49 = vsel %vm156_vm2, %v4112_v5, 0.0 }
0x19ff   :  { %5644 = vmatmul.msk.f32.vlgmr.msrb.gmra.mxu3 %vm798_vm3, %v4116_v49 }
0x1a04   :  { %v4109_v61 = vpop.permute.xlu0 %4108 }
0x1a05   :  { %v4113_v41 = vsel %vm192_vm0, %v4081_v9, %v4109_v61 }
0x1a06   :  { %v4117_v59 = vsel %vm156_vm2, %v4113_v41, 0.0 }
0x1a07   :  { %5645 = vmatmul.msk.f32.gmra.mxu3 %vm798_vm3, %v4117_v59 }
0x1a0d   :  { %v4089_v38 = vpop.permute.xlu1 %4088 }
0x1a0e   :  { %4094 = vst.msk [vmem:[#allocation4 + $0x50] sm:$0xff] %vm1010_vm4, %v4089_v38  ;;  %v4114_v11 = vsel %vm192_vm0, %v4101_v44, %v4089_v38 }
0x1a0f   :  { %v4118_v21 = vsel %vm165_vm5, %v4114_v11, 0.0 }
0x1a10   :  { %5646 = vmatmul.msk.f32.gmra.mxu3 %vm798_vm3, %v4118_v21 }
0x1a15   :  { %v4091_v55 = vpop.permute.xlu0 %4090  ;;  %v4103_v12 = vpop.permute.xlu1 %4102 }
0x1a16   :  { %4095 = vst.msk [vmem:[#allocation4 + $0x58] sm:$0xff] %vm1010_vm4, %v4091_v55  ;;  %v4115_v46 = vsel %vm192_vm0, %v4103_v12, %v4091_v55 }
0x1a17   :  { %v4119_v18 = vsel %vm165_vm5, %v4115_v46, 0.0 }
0x1a18   :  { %5647 = vmatmul.msk.f32.gmra.mxu3 %vm798_vm3, %v4119_v18 }
0x1a82   :  { %v4157_v43 = vpop.f32.mrf.mxu3 }
0x1a83   :  { %v4169_v47 = vadd.f32 %v4157_v43, %v3027_v23 }
0x1a85   :  { %6068 = vtanh.f32 %v4169_v47  ;;  %v5648_v40 = vmul.f32 -1.442695, %v4169_v47 }
0x1a8a   :  { %v4160_v33 = vpop.f32.mrf.mxu3 }
0x1a8b   :  { %v6069_v56 = vpop.eup %6068  ;;  %v4170_v8 = vadd.f32 %v4160_v33, %v3030_v27 }
0x1a8c   :  { %4261 = vrot.lane.b32.xlu2 %v6069_v56, %s6443_s28 }
0x1a8d   :  { %6070 = vtanh.f32 %v4170_v8  ;;  %v5649_v15 = vmul.f32 -1.442695, %v4170_v8 }
0x1a93   :  { %v4163_v2 = vpop.f32.mrf.mxu3  ;;  %v6071_v62 = vpop.eup %6070 }
0x1a94   :  { %v4171_v32 = vadd.f32 %v4163_v2, %v3058_v63  ;;  %4263 = vrot.lane.b32.xlu0 %v6071_v62, %s6443_s28 }
0x1a96   :  { %6072 = vtanh.f32 %v4171_v32  ;;  %v5650_v59 = vmul.f32 -1.442695, %v4171_v32 }
0x1a9b   :  { %v4166_v37 = vpop.f32.mrf.mxu3 }
0x1a9c   :  { %v6073_v1 = vpop.eup %6072  ;;  %v4172_v7 = vadd.f32 %v4166_v37, %v3061_v19 }
0x1a9d   :  { %4265 = vrot.lane.b32.xlu1 %v6073_v1, %s6443_s28 }
0x1a9e   :  { %6074 = vtanh.f32 %v4172_v7  ;;  %v5651_v28 = vmul.f32 -1.442695, %v4172_v7 }
0x1a9f   :  { %6076 = vpow2.f32 %v5648_v40 }
0x1aa4   :  { %v6075_v26 = vpop.eup %6074 }
0x1aa5   :  { %4267 = vrot.lane.b32.xlu2 %v6075_v26, %s6443_s28  ;;  %v6077_v51 = vpop.eup %6076 }
0x1aa6   :  { %v4185_v30 = vadd.f32 1.0, %v6077_v51 }
0x1aa8   :  { %6078 = vrcp.f32 %v4185_v30  ;;  %v4200_v41 = vand.u32 2147483648, %v4185_v30  ;;  %vm4194_vm13 = vweird.f32 %v4185_v30  ;;  %v4198_v44 = vand.u32 2147483647, %v4185_v30 }
0x1aa9   :  { %6080 = vpow2.f32 %v5651_v28 }
0x1aaa   :  { %6082 = vpow2.f32 %v5649_v15  ;;  %v4201_v21 = vor.u32 1.1754944e-38, %v4200_v41  ;;  %vm4199_vm15 = vcmp.eq.f32.partialorder %v4198_v44, 8.507059e+37 }
0x1aae   :  { %v6079_v34 = vpop.eup %6078 }
0x1aaf   :  { %v4190_v9 = vmul.f32 %v6079_v34, %v4185_v30  ;;  %v6081_v4 = vpop.eup %6080  ;;  %vm4195_vm12 = vweird.f32 %v6079_v34 }
0x1ab0   :  { %v4188_v49 = vadd.f32 1.0, %v6081_v4  ;;  %vm4196_vm14 = vmor %vm4194_vm13, %vm4195_vm12  ;;  %v6083_v38 = vpop.eup %6082 }
0x1ab1   :  { %v4191_v13 = vsub.f32 1.0, %v4190_v9  ;;  %v4186_v55 = vadd.f32 1.0, %v6083_v38 }
0x1ab2   :  { %6084 = vrcp.f32 %v4188_v49  ;;  %v4245_v19 = vand.u32 2147483648, %v4188_v49  ;;  %vm4239_vm6 = vweird.f32 %v4188_v49  ;;  %v4243_v37 = vand.u32 2147483647, %v4188_v49 }
0x1ab3   :  { %v4192_v5 = vmul.f32 %v6079_v34, %v4191_v13  ;;  %6086 = vpow2.f32 %v5650_v59  ;;  %v4215_v13 = vand.u32 2147483648, %v4186_v55  ;;  %vm4209_vm10 = vweird.f32 %v4186_v55 }
0x1ab4   :  { %6088 = vrcp.f32 %v4186_v55  ;;  %v4246_v40 = vor.u32 1.1754944e-38, %v4245_v19  ;;  %vm4244_vm8 = vcmp.eq.f32.partialorder %v4243_v37, 8.507059e+37  ;;  %v4213_v15 = vand.u32 2147483647, %v4186_v55 }
0x1ab5   :  { %v4193_v61 = vadd.f32 %v6079_v34, %v4192_v5 }
0x1ab6   :  { %vm4214_vm12 = vcmp.eq.f32.partialorder %v4213_v15, 8.507059e+37 }
0x1ab7   :  { %v4197_v11 = vsel %vm4196_vm14, %v6079_v34, %v4193_v61 }
0x1ab8   :  { %v7768_v46 = vsel %vm4199_vm15, %v4201_v21, %v4197_v11  ;;  %v6085_v23 = vpop.eup %6084 }
0x1ab9   :  { %v6087_v43 = vpop.eup %6086  ;;  %v4235_v47 = vmul.f32 %v6085_v23, %v4188_v49  ;;  %vm4240_vm1 = vweird.f32 %v6085_v23  ;;  %v4216_v49 = vor.u32 1.1754944e-38, %v4215_v13 }
0x1aba   :  { %v4187_v27 = vadd.f32 1.0, %v6087_v43  ;;  %v6089_v56 = vpop.eup %6088  ;;  %vm4241_vm7 = vmor %vm4239_vm6, %vm4240_vm1  ;;  %v4253_v43 = vmul.f32 %v7768_v46, %v7688_v53 }
0x1abb   :  { %v4236_v33 = vsub.f32 1.0, %v4235_v47  ;;  %v4205_v63 = vmul.f32 %v6089_v56, %v4186_v55  ;;  %vm4210_vm9 = vweird.f32 %v6089_v56 }
0x1abc   :  { %6090 = vrcp.f32 %v4187_v27  ;;  %vm4211_vm11 = vmor %vm4209_vm10, %vm4210_vm9  ;;  %v4230_v38 = vand.u32 2147483648, %v4187_v27  ;;  %vm4224_vm14 = vweird.f32 %v4187_v27  ;;  %v4228_v11 = vand.u32 2147483647, %v4187_v27 }
0x1abd   :  { %v4237_v8 = vmul.f32 %v6085_v23, %v4236_v33  ;;  %v4206_v62 = vsub.f32 1.0, %v4205_v63 }
0x1abe   :  { %vm4229_vm1 = vcmp.eq.f32.partialorder %v4228_v11, 8.507059e+37 }
0x1abf   :  { %v4238_v2 = vadd.f32 %v6085_v23, %v4237_v8  ;;  %v4207_v7 = vmul.f32 %v6089_v56, %v4206_v62 }
0x1ac1   :  { %v4242_v1 = vsel %vm4241_vm7, %v6085_v23, %v4238_v2  ;;  %v4208_v28 = vadd.f32 %v6089_v56, %v4207_v7 }
0x1ac2   :  { %v6091_v32 = vpop.eup %6090  ;;  %v7772_v30 = vsel %vm4244_vm8, %v4246_v40, %v4242_v1 }
0x1ac3   :  { %v4220_v26 = vmul.f32 %v6091_v32, %v4187_v27  ;;  %v4212_v4 = vsel %vm4211_vm11, %v6089_v56, %v4208_v28  ;;  %vm4225_vm13 = vweird.f32 %v6091_v32  ;;  %v4256_v2 = vmul.f32 %v7772_v30, %v7694_v36 }
0x1ac4   :  { %v4217_v41 = vsel %vm4214_vm12, %v4216_v49, %v4212_v4  ;;  %vm4226_vm15 = vmor %vm4224_vm14, %vm4225_vm13 }
0x1ac5   :  { %v4221_v9 = vsub.f32 1.0, %v4220_v26  ;;  %v4254_v19 = vmul.f32 %v4217_v41, %v7677_v20 }
0x1ac7   :  { %v4222_v5 = vmul.f32 %v6091_v32, %v4221_v9 }
0x1ac9   :  { %v4223_v44 = vadd.f32 %v6091_v32, %v4222_v5 }
0x1acb   :  { %v4227_v21 = vsel %vm4226_vm15, %v6091_v32, %v4223_v44 }
0x1ae6   :  { %v4262_v12 = vpop.permute.xlu2 %4261 }
0x1ae7   :  { %v4273_v18 = vmul.f32 %v4262_v12, %v7768_v46  ;;  %v4231_v12 = vor.u32 1.1754944e-38, %v4230_v38 }
0x1ae9   :  { %4281 = vrot.lane.b32.xlu0 %v4273_v18, %s6442_s5  ;;  %v4232_v55 = vsel %vm4229_vm1, %v4231_v12, %v4227_v21 }
0x1aea   :  { %v4255_v27 = vmul.f32 %v4232_v55, %v7682_v42 }
0x1aff   :  { %v4268_v51 = vpop.permute.xlu2 %4267 }
0x1b00   :  { %v4276_v34 = vmul.f32 %v4268_v51, %v7772_v30 }
0x1b02   :  { %4287 = vrot.lane.b32.xlu0 %v4276_v34, %s6442_s5 }
0x1b06   :  { %v4264_v61 = vpop.permute.xlu0 %4263 }
0x1b07   :  { %v4274_v59 = vmul.f32 %v4264_v61, %v4217_v41 }
0x1b09   :  { %4283 = vrot.lane.b32.xlu1 %v4274_v59, %s6442_s5 }
0x1b0f   :  { %v4266_v18 = vpop.permute.xlu1 %4265 }
0x1b10   :  { %v4275_v23 = vmul.f32 %v4266_v18, %v4232_v55  ;;  %v3108_v18 = vpop.f32.mrf.mxu0 }
0x1b12   :  { %4285 = vrot.lane.b32.xlu2 %v4275_v23, %s6442_s5 }
0x1b18   :  { %v3111_v23 = vpop.f32.mrf.mxu0 }
0x1b5b   :  { %v4282_v47 = vpop.permute.xlu0 %4281 }
0x1b5c   :  { %v7780_v33 = vadd.f32 %v4282_v47, %v4253_v43  ;;  %v7830_v43 = vpop.f32.mrf.mxu0 }
0x1b5e   :  { %6092 = vtanh.f32 %v7780_v33 }
0x1b64   :  { %v6093_v56 = vpop.eup %6092  ;;  %v7832_v47 = vpop.f32.mrf.mxu0 }
0x1b65   :  { %4305 = vrot.lane.b32.xlu1 %v6093_v56, %s6443_s28  ;;  %v3109_v56 = vadd.f32 %v3108_v18, %v7484_v25 }
0x1b6c   :  { %v4286_v8 = vpop.permute.xlu2 %4285 }
0x1b6d   :  { %v7785_v63 = vadd.f32 %v4286_v8, %v4255_v27 }
0x1b6f   :  { %6094 = vtanh.f32 %v7785_v63 }
0x1b74   :  { %v4288_v62 = vpop.permute.xlu0 %4287 }
0x1b75   :  { %v6095_v53 = vpop.eup %6094  ;;  %v7790_v32 = vadd.f32 %v4288_v62, %v4256_v2  ;;  %v3112_v2 = vadd.f32 %v3111_v23, %v7484_v25 }
0x1b76   :  { %4309 = vrot.lane.b32.xlu0 %v6095_v53, %s6443_s28 }
0x1b77   :  { %6096 = vtanh.f32 %v7790_v32 }
0x1b7b   :  { %v4284_v37 = vpop.permute.xlu1 %4283 }
0x1b7c   :  { %v7795_v1 = vadd.f32 %v4284_v37, %v4254_v19  ;;  %v3140_v37 = vadd.f32 %v7562_v24, %v7489_v3 }
0x1b7d   :  { %v6097_v42 = vpop.eup %6096 }
0x1b7e   :  { %4311 = vrot.lane.b32.xlu1 %v6097_v42, %s6443_s28  ;;  %6098 = vtanh.f32 %v7795_v1 }
0x1b84   :  { %v6099_v7 = vpop.eup %6098 }
0x1b85   :  { %4307 = vrot.lane.b32.xlu2 %v6099_v7, %s6443_s28 }
0x1bd7   :  { %v4306_v36 = vpop.permute.xlu1 %4305 }
0x1bd8   :  { %v4317_v26 = vmul.f32 %v4306_v36, %v7768_v46 }
0x1bda   :  { %4351 = vrot.lane.b32.xlu0 %v4317_v26, %s6443_s28  ;;  %4323 = vrot.lane.b32.xlu2 %v4317_v26, %s6442_s5  ;;  %v3143_v26 = vadd.f32 %v7564_v54, %v7489_v3 }
0x1bdf   :  { %v4308_v40 = vpop.permute.xlu2 %4307 }
0x1be0   :  { %v4318_v20 = vmul.f32 %v4308_v40, %v4217_v41 }
0x1be2   :  { %4325 = vrot.lane.b32.xlu1 %v4318_v20, %s6442_s5  ;;  %4353 = vrot.lane.b32.xlu2 %v4318_v20, %s6443_s28 }
0x1be8   :  { %v4310_v51 = vpop.permute.xlu0 %4309 }
0x1be9   :  { %v4319_v34 = vmul.f32 %v4310_v51, %v4232_v55 }
0x1beb   :  { %4345 = vrot.lane.b32.xlu1 %v4319_v34, %s6442_s5  ;;  %4333 = vrot.lane.b32.xlu0 %v4319_v34, %s6443_s28 }
0x1bf0   :  { %v4312_v28 = vpop.permute.xlu1 %4311 }
0x1bf1   :  { %v4320_v9 = vmul.f32 %v4312_v28, %v7772_v30 }
0x1bf3   :  { %4347 = vrot.lane.b32.xlu0 %v4320_v9, %s6442_s5  ;;  %4335 = vrot.lane.b32.xlu2 %v4320_v9, %s6443_s28 }
0x1c34   :  { %v4324_v46 = vpop.permute.xlu2 %4323 }
0x1c35   :  { %4329 = vst.msk [vmem:[#allocation4 + $0x30] sm:$0xff] %vm192_vm0, %v4324_v46 }
0x1c3c   :  { %v4354_v13 = vpop.permute.xlu2 %4353 }
0x1c4c   :  { %v4352_v15 = vpop.permute.xlu0 %4351 }
0x1c4d   :  { %v4336_v4 = vpop.permute.xlu2 %4335  ;;  %v4357_v5 = vsel %vm192_vm0, %v4324_v46, %v4352_v15 }
0x1c4e   :  { %4340 = vst.msk [vmem:[#allocation4 + $0x48] sm:$0xff] %vm1010_vm4, %v4336_v4  ;;  %v4361_v49 = vsel %vm156_vm2, %v4357_v5, 0.0 }
0x1c4f   :  { %5652 = vmatmul.msk.f32.vlgmr.msra.gmra.mxu0 %vm798_vm3, %v4361_v49 }
0x1c54   :  { %v4326_v30 = vpop.permute.xlu1 %4325 }
0x1c55   :  { %4330 = vst.msk [vmem:[#allocation4 + $0x38] sm:$0xff] %vm192_vm0, %v4326_v30  ;;  %v4358_v61 = vsel %vm192_vm0, %v4326_v30, %v4354_v13 }
0x1c56   :  { %v4362_v41 = vsel %vm156_vm2, %v4358_v61, 0.0 }
0x1c57   :  { %5653 = vmatmul.msk.f32.gmra.mxu0 %vm798_vm3, %v4362_v41 }
0x1c5d   :  { %v4334_v59 = vpop.permute.xlu0 %4333  ;;  %v4346_v44 = vpop.permute.xlu1 %4345 }
0x1c5e   :  { %4339 = vst.msk [vmem:[#allocation4 + $0x40] sm:$0xff] %vm1010_vm4, %v4334_v59  ;;  %v4359_v38 = vsel %vm192_vm0, %v4346_v44, %v4334_v59 }
0x1c5f   :  { %v4363_v11 = vsel %vm165_vm5, %v4359_v38, 0.0 }
0x1c60   :  { %5654 = vmatmul.msk.f32.gmra.mxu0 %vm798_vm3, %v4363_v11 }
0x1c65   :  { %v4348_v21 = vpop.permute.xlu0 %4347 }
0x1c66   :  { %v4360_v12 = vsel %vm192_vm0, %v4348_v21, %v4336_v4 }
0x1c67   :  { %v4364_v55 = vsel %vm165_vm5, %v4360_v12, 0.0 }
0x1c68   :  { %5655 = vmatmul.msk.f32.gmra.mxu0 %vm798_vm3, %v4364_v55 }
0x1ccc   :  { %v4402_v27 = vpop.f32.mrf.mxu0 }
0x1ccd   :  { %v4414_v8 = vadd.f32 %v4402_v27, %v3109_v56 }
0x1ccf   :  { %6100 = vtanh.f32 %v4414_v8  ;;  %v5656_v46 = vmul.f32 -1.442695, %v4414_v8 }
0x1cd4   :  { %v4405_v62 = vpop.f32.mrf.mxu0 }
0x1cd5   :  { %v6101_v53 = vpop.eup %6100  ;;  %v4415_v19 = vadd.f32 %v4405_v62, %v3112_v2 }
0x1cd6   :  { %4506 = vrot.lane.b32.xlu1 %v6101_v53, %s6443_s28 }
0x1cd7   :  { %6102 = vtanh.f32 %v4415_v19  ;;  %v5657_v28 = vmul.f32 -1.442695, %v4415_v19 }
0x1cdd   :  { %v4408_v42 = vpop.f32.mrf.mxu0  ;;  %v6103_v7 = vpop.eup %6102 }
0x1cde   :  { %v4416_v36 = vadd.f32 %v4408_v42, %v3140_v37  ;;  %4508 = vrot.lane.b32.xlu2 %v6103_v7, %s6443_s28 }
0x1ce0   :  { %6104 = vtanh.f32 %v4416_v36  ;;  %v5658_v49 = vmul.f32 -1.442695, %v4416_v36 }
0x1ce5   :  { %v4411_v40 = vpop.f32.mrf.mxu0 }
0x1ce6   :  { %v6105_v20 = vpop.eup %6104  ;;  %v4417_v51 = vadd.f32 %v4411_v40, %v3143_v26 }
0x1ce7   :  { %4510 = vrot.lane.b32.xlu0 %v6105_v20, %s6443_s28 }
0x1ce8   :  { %6106 = vtanh.f32 %v4417_v51  ;;  %v5659_v44 = vmul.f32 -1.442695, %v4417_v51 }
0x1ce9   :  { %6108 = vpow2.f32 %v5657_v28 }
0x1cee   :  { %v6107_v34 = vpop.eup %6106 }
0x1cef   :  { %4512 = vrot.lane.b32.xlu1 %v6107_v34, %s6443_s28  ;;  %v6109_v24 = vpop.eup %6108 }
0x1cf0   :  { %v4431_v9 = vadd.f32 1.0, %v6109_v24 }
0x1cf2   :  { %6110 = vrcp.f32 %v4431_v9  ;;  %v4460_v59 = vand.u32 2147483648, %v4431_v9  ;;  %vm4454_vm7 = vweird.f32 %v4431_v9  ;;  %v4458_v38 = vand.u32 2147483647, %v4431_v9 }
0x1cf3   :  { %6112 = vpow2.f32 %v5656_v46 }
0x1cf4   :  { %v4461_v55 = vor.u32 1.1754944e-38, %v4460_v59  ;;  %vm4459_vm9 = vcmp.eq.f32.partialorder %v4458_v38, 8.507059e+37 }
0x1cf8   :  { %v6111_v13 = vpop.eup %6110 }
0x1cf9   :  { %v6113_v15 = vpop.eup %6112  ;;  %v4450_v4 = vmul.f32 %v6111_v13, %v4431_v9  ;;  %vm4455_vm6 = vweird.f32 %v6111_v13 }
0x1cfa   :  { %v4430_v54 = vadd.f32 1.0, %v6113_v15  ;;  %vm4456_vm8 = vmor %vm4454_vm7, %vm4455_vm6 }
0x1cfb   :  { %v4451_v5 = vsub.f32 1.0, %v4450_v4 }
0x1cfc   :  { %6114 = vrcp.f32 %v4430_v54  ;;  %v4445_v42 = vand.u32 2147483648, %v4430_v54  ;;  %vm4439_vm11 = vweird.f32 %v4430_v54  ;;  %v4443_v7 = vand.u32 2147483647, %v4430_v54 }
0x1cfd   :  { %v4452_v30 = vmul.f32 %v6111_v13, %v4451_v5  ;;  %6116 = vpow2.f32 %v5658_v49 }
0x1cfe   :  { %6118 = vpow2.f32 %v5659_v44  ;;  %v4446_v40 = vor.u32 1.1754944e-38, %v4445_v42  ;;  %vm4444_vm13 = vcmp.eq.f32.partialorder %v4443_v7, 8.507059e+37 }
0x1cff   :  { %v4453_v61 = vadd.f32 %v6111_v13, %v4452_v30 }
0x1d01   :  { %v4457_v21 = vsel %vm4456_vm8, %v6111_v13, %v4453_v61 }
0x1d02   :  { %v6115_v41 = vpop.eup %6114  ;;  %v7844_v56 = vsel %vm4459_vm9, %v4461_v55, %v4457_v21 }
0x1d03   :  { %v6117_v11 = vpop.eup %6116  ;;  %v4435_v12 = vmul.f32 %v6115_v41, %v4430_v54  ;;  %vm4440_vm10 = vweird.f32 %v6115_v41 }
0x1d04   :  { %v4432_v18 = vadd.f32 1.0, %v6117_v11  ;;  %v6119_v2 = vpop.eup %6118  ;;  %vm4441_vm12 = vmor %vm4439_vm11, %vm4440_vm10 }
0x1d05   :  { %v4436_v8 = vsub.f32 1.0, %v4435_v12  ;;  %v4433_v53 = vadd.f32 1.0, %v6119_v2 }
0x1d06   :  { %6120 = vrcp.f32 %v4432_v18  ;;  %v4475_v4 = vand.u32 2147483648, %v4432_v18  ;;  %vm4469_vm15 = vweird.f32 %v4432_v18  ;;  %v4473_v54 = vand.u32 2147483647, %v4432_v18 }
0x1d07   :  { %v4437_v62 = vmul.f32 %v6115_v41, %v4436_v8  ;;  %6122 = vrcp.f32 %v4433_v53  ;;  %v4490_v38 = vand.u32 2147483648, %v4433_v53  ;;  %vm4484_vm8 = vweird.f32 %v4433_v53 }
0x1d08   :  { %v4476_v30 = vor.u32 1.1754944e-38, %v4475_v4  ;;  %vm4474_vm6 = vcmp.eq.f32.partialorder %v4473_v54, 8.507059e+37  ;;  %v4488_v11 = vand.u32 2147483647, %v4433_v53 }
0x1d09   :  { %v4438_v19 = vadd.f32 %v6115_v41, %v4437_v62  ;;  %v4491_v12 = vor.u32 1.1754944e-38, %v4490_v38  ;;  %v4499_v62 = vmul.f32 %v7844_v56, %v7795_v1 }
0x1d0a   :  { %vm4489_vm10 = vcmp.eq.f32.partialorder %v4488_v11, 8.507059e+37 }
0x1d0b   :  { %v4442_v36 = vsel %vm4441_vm12, %v6115_v41, %v4438_v19 }
0x1d0c   :  { %v6121_v37 = vpop.eup %6120  ;;  %v7848_v20 = vsel %vm4444_vm13, %v4446_v40, %v4442_v36 }
0x1d0d   :  { %v4465_v26 = vmul.f32 %v6121_v37, %v4432_v18  ;;  %v6123_v24 = vpop.eup %6122  ;;  %vm4470_vm14 = vweird.f32 %v6121_v37 }
0x1d0e   :  { %v4480_v46 = vmul.f32 %v6123_v24, %v4433_v53  ;;  %vm4471_vm1 = vmor %vm4469_vm15, %vm4470_vm14  ;;  %vm4485_vm7 = vweird.f32 %v6123_v24 }
0x1d0f   :  { %v4466_v28 = vsub.f32 1.0, %v4465_v26  ;;  %vm4486_vm9 = vmor %vm4484_vm8, %vm4485_vm7 }
0x1d10   :  { %v4481_v15 = vsub.f32 1.0, %v4480_v46 }
0x1d11   :  { %v4467_v9 = vmul.f32 %v6121_v37, %v4466_v28  ;;  %v4617_v28 = vld [vmem:[#allocation14 + $0x38] sm:$0xff] }
0x1d12   :  { %v4482_v49 = vmul.f32 %v6123_v24, %v4481_v15  ;;  %4638 = vmatpush.msra.mxu1 %v4617_v28  ;;  %4883 = vmatpush.msra.mxu2 %v4617_v28 }
0x1d13   :  { %v4468_v13 = vadd.f32 %v6121_v37, %v4467_v9  ;;  %5128 = vmatpush.msra.mxu3 %v4617_v28 }
0x1d14   :  { %v4483_v44 = vadd.f32 %v6123_v24, %v4482_v49  ;;  %4639 = vmatpush.msra.mxu1 %v7698_v58 }
0x1d15   :  { %v4472_v5 = vsel %vm4471_vm1, %v6121_v37, %v4468_v13 }
0x1d16   :  { %v4477_v41 = vsel %vm4474_vm6, %v4476_v30, %v4472_v5  ;;  %v4487_v21 = vsel %vm4486_vm9, %v6123_v24, %v4483_v44  ;;  %4640 = vmatpush.msra.mxu1 %v7700_v0  ;;  %v3191_v44 = vadd.f32 %v7648_v17, %v7484_v25  ;;  %v3225_v17 = vadd.f32 %v7475_v52, %v7489_v3 }
0x1d17   :  { %v4492_v55 = vsel %vm4489_vm10, %v4491_v12, %v4487_v21  ;;  %v4500_v1 = vmul.f32 %v4477_v41, %v7785_v63  ;;  %v3194_v21 = vadd.f32 %v7650_v60, %v7484_v25 }
0x1d18   :  { %4641 = vmatpush.msra.mxu1 %v7704_v14 }
0x1d1a   :  { %4642 = vmatpush.msra.mxu1 %v7720_v45 }
0x1d1c   :  { %4643 = vmatpush.msra.mxu1 %v7722_v10 }
0x1d1e   :  { %4644 = vmatpush.msra.mxu1 %v7728_v31 }
0x1d20   :  { %4645 = vmatpush.msra.mxu1 %v7730_v6 }
0x1d38   :  { %v4509_v23 = vpop.permute.xlu2 %4508 }
0x1d39   :  { %v4519_v27 = vmul.f32 %v4509_v23, %v7844_v56 }
0x1d3b   :  { %4528 = vrot.lane.b32.xlu0 %v4519_v27, %s6442_s5  ;;  %v4498_v27 = vmul.f32 %v7848_v20, %v7780_v33  ;;  %v4501_v33 = vmul.f32 %v4492_v55, %v7790_v32 }
0x1d48   :  { %v4507_v51 = vpop.permute.xlu1 %4506 }
0x1d49   :  { %v4518_v34 = vmul.f32 %v4507_v51, %v7848_v20 }
0x1d4b   :  { %4526 = vrot.lane.b32.xlu2 %v4518_v34, %s6442_s5 }
0x1d59   :  { %v4511_v61 = vpop.permute.xlu0 %4510 }
0x1d5a   :  { %v4520_v59 = vmul.f32 %v4511_v61, %v4477_v41 }
0x1d5c   :  { %4530 = vrot.lane.b32.xlu1 %v4520_v59, %s6442_s5 }
0x1d61   :  { %v4513_v18 = vpop.permute.xlu1 %4512 }
0x1d62   :  { %v4521_v23 = vmul.f32 %v4513_v18, %v4492_v55 }
0x1d64   :  { %4532 = vrot.lane.b32.xlu2 %v4521_v23, %s6442_s5  ;;  %v3222_v23 = vadd.f32 %v7473_v29, %v7489_v3 }
0x1da5   :  { %v4527_v8 = vpop.permute.xlu2 %4526 }
0x1da6   :  { %v7856_v2 = vadd.f32 %v4527_v8, %v4498_v27 }
0x1da8   :  { %6124 = vtanh.f32 %v7856_v2 }
0x1dad   :  { %v4529_v53 = vpop.permute.xlu0 %4528 }
0x1dae   :  { %v6125_v19 = vpop.eup %6124  ;;  %v7861_v37 = vadd.f32 %v4529_v53, %v4499_v62 }
0x1daf   :  { %4550 = vrot.lane.b32.xlu0 %v6125_v19, %s6443_s28 }
0x1db0   :  { %6126 = vtanh.f32 %v7861_v37 }
0x1db6   :  { %v6127_v42 = vpop.eup %6126 }
0x1db7   :  { %4552 = vrot.lane.b32.xlu1 %v6127_v42, %s6443_s28 }
0x1dbe   :  { %v4533_v7 = vpop.permute.xlu2 %4532 }
0x1dbf   :  { %v7867_v36 = vadd.f32 %v4533_v7, %v4501_v33 }
0x1dc1   :  { %6128 = vtanh.f32 %v7867_v36 }
0x1dc7   :  { %v6129_v26 = vpop.eup %6128 }
0x1dc8   :  { %4556 = vrot.lane.b32.xlu0 %v6129_v26, %s6443_s28 }
0x1dce   :  { %v4531_v40 = vpop.permute.xlu1 %4530 }
0x1dcf   :  { %v7872_v51 = vadd.f32 %v4531_v40, %v4500_v1 }
0x1dd1   :  { %6130 = vtanh.f32 %v7872_v51 }
0x1dd7   :  { %v6131_v34 = vpop.eup %6130 }
0x1dd8   :  { %4554 = vrot.lane.b32.xlu2 %v6131_v34, %s6443_s28 }
0x1e21   :  { %v4551_v32 = vpop.permute.xlu0 %4550 }
0x1e22   :  { %v4562_v24 = vmul.f32 %v4551_v32, %v7848_v20 }
0x1e24   :  { %4568 = vrot.lane.b32.xlu1 %v4562_v24, %s6442_s5  ;;  %4596 = vrot.lane.b32.xlu2 %v4562_v24, %s6443_s28 }
0x1e29   :  { %v4553_v63 = vpop.permute.xlu1 %4552 }
0x1e2a   :  { %v4563_v58 = vmul.f32 %v4553_v63, %v7844_v56 }
0x1e2c   :  { %4598 = vrot.lane.b32.xlu1 %v4563_v58, %s6443_s28  ;;  %4570 = vrot.lane.b32.xlu0 %v4563_v58, %s6442_s5 }
0x1e32   :  { %v4555_v0 = vpop.permute.xlu2 %4554 }
0x1e33   :  { %v4564_v14 = vmul.f32 %v4555_v0, %v4477_v41 }
0x1e35   :  { %4578 = vrot.lane.b32.xlu2 %v4564_v14, %s6443_s28  ;;  %4590 = vrot.lane.b32.xlu0 %v4564_v14, %s6442_s5 }
0x1e3a   :  { %v4557_v45 = vpop.permute.xlu0 %4556 }
0x1e3b   :  { %v4565_v20 = vmul.f32 %v4557_v45, %v4492_v55 }
0x1e3d   :  { %4592 = vrot.lane.b32.xlu2 %v4565_v20, %s6442_s5  ;;  %4580 = vrot.lane.b32.xlu1 %v4565_v20, %s6443_s28 }
0x1e7e   :  { %v4597_v10 = vpop.permute.xlu2 %4596 }
0x1e8f   :  { %v4579_v31 = vpop.permute.xlu2 %4578 }
0x1e90   :  { %4584 = vst.msk [vmem:[#allocation4 + $0x30] sm:$0xff] %vm1010_vm4, %v4579_v31 }
0x1e96   :  { %v4569_v6 = vpop.permute.xlu1 %4568 }
0x1e97   :  { %4574 = vst.msk [vmem:[#allocation4 + $0x40] sm:$0xff] %vm192_vm0, %v4569_v6  ;;  %v4602_v56 = vsel %vm192_vm0, %v4569_v6, %v4597_v10  ;;  %v4593_v30 = vpop.permute.xlu2 %4592 }
0x1e98   :  { %v4606_v9 = vsel %vm156_vm2, %v4602_v56, 0.0 }
0x1e99   :  { %5660 = vmatmul.msk.f32.vlgmr.msra.gmra.mxu1 %vm798_vm3, %v4606_v9 }
0x1e9e   :  { %v4571_v46 = vpop.permute.xlu0 %4570  ;;  %v4599_v13 = vpop.permute.xlu1 %4598 }
0x1e9f   :  { %4575 = vst.msk [vmem:[#allocation4 + $0x48] sm:$0xff] %vm192_vm0, %v4571_v46  ;;  %v4603_v15 = vsel %vm192_vm0, %v4571_v46, %v4599_v13 }
0x1ea0   :  { %v4607_v4 = vsel %vm156_vm2, %v4603_v15, 0.0 }
0x1ea1   :  { %5661 = vmatmul.msk.f32.gmra.mxu1 %vm798_vm3, %v4607_v4 }
0x1ea7   :  { %v4591_v54 = vpop.permute.xlu0 %4590 }
0x1ea8   :  { %v4604_v5 = vsel %vm192_vm0, %v4591_v54, %v4579_v31 }
0x1ea9   :  { %v4608_v49 = vsel %vm165_vm5, %v4604_v5, 0.0 }
0x1eaa   :  { %5662 = vmatmul.msk.f32.gmra.mxu1 %vm798_vm3, %v4608_v49 }
0x1eaf   :  { %v4581_v61 = vpop.permute.xlu1 %4580 }
0x1eb0   :  { %4585 = vst.msk [vmem:[#allocation4 + $0x38] sm:$0xff] %vm1010_vm4, %v4581_v61  ;;  %v4605_v41 = vsel %vm192_vm0, %v4593_v30, %v4581_v61 }
0x1eb1   :  { %v4609_v59 = vsel %vm165_vm5, %v4605_v41, 0.0 }
0x1eb2   :  { %5663 = vmatmul.msk.f32.gmra.mxu1 %vm798_vm3, %v4609_v59 }
0x1f16   :  { %v4647_v38 = vpop.f32.mrf.mxu1 }
0x1f17   :  { %v4659_v11 = vadd.f32 %v4647_v38, %v3191_v44 }
0x1f19   :  { %6132 = vtanh.f32 %v4659_v11  ;;  %v5664_v29 = vmul.f32 -1.442695, %v4659_v11 }
0x1f1e   :  { %v4650_v12 = vpop.f32.mrf.mxu1 }
0x1f1f   :  { %v6133_v55 = vpop.eup %6132  ;;  %v4660_v18 = vadd.f32 %v4650_v12, %v3194_v21 }
0x1f20   :  { %4751 = vrot.lane.b32.xlu0 %v6133_v55, %s6443_s28 }
0x1f21   :  { %6134 = vtanh.f32 %v4660_v18  ;;  %v5665_v1 = vmul.f32 -1.442695, %v4660_v18 }
0x1f27   :  { %v4653_v27 = vpop.f32.mrf.mxu1  ;;  %v6135_v8 = vpop.eup %6134 }
0x1f28   :  { %v4661_v62 = vadd.f32 %v4653_v27, %v3222_v23  ;;  %4753 = vrot.lane.b32.xlu1 %v6135_v8, %s6443_s28 }
0x1f2a   :  { %6136 = vtanh.f32 %v4661_v62  ;;  %v5666_v33 = vmul.f32 -1.442695, %v4661_v62 }
0x1f2f   :  { %v4656_v53 = vpop.f32.mrf.mxu1 }
0x1f30   :  { %v6137_v60 = vpop.eup %6136  ;;  %v4662_v19 = vadd.f32 %v4656_v53, %v3225_v17 }
0x1f31   :  { %4755 = vrot.lane.b32.xlu2 %v6137_v60, %s6443_s28 }
0x1f32   :  { %6138 = vtanh.f32 %v4662_v19  ;;  %v5667_v0 = vmul.f32 -1.442695, %v4662_v19 }
0x1f33   :  { %6140 = vpow2.f32 %v5666_v33 }
0x1f34   :  { %6142 = vpow2.f32 %v5664_v29 }
0x1f38   :  { %v6139_v42 = vpop.eup %6138 }
0x1f39   :  { %4757 = vrot.lane.b32.xlu0 %v6139_v42, %s6443_s28  ;;  %v6141_v7 = vpop.eup %6140 }
0x1f3a   :  { %v4677_v26 = vadd.f32 1.0, %v6141_v7  ;;  %v6143_v40 = vpop.eup %6142 }
0x1f3b   :  { %v4675_v52 = vadd.f32 1.0, %v6143_v40 }
0x1f3c   :  { %6144 = vrcp.f32 %v4677_v26  ;;  %v4720_v6 = vand.u32 2147483648, %v4677_v26  ;;  %vm4714_vm12 = vweird.f32 %v4677_v26  ;;  %v4718_v56 = vand.u32 2147483647, %v4677_v26 }
0x1f3d   :  { %6146 = vpow2.f32 %v5665_v1  ;;  %v4690_v59 = vand.u32 2147483648, %v4675_v52  ;;  %vm4684_vm1 = vweird.f32 %v4675_v52  ;;  %v4688_v44 = vand.u32 2147483647, %v4675_v52 }
0x1f3e   :  { %6148 = vrcp.f32 %v4675_v52  ;;  %v4721_v4 = vor.u32 1.1754944e-38, %v4720_v6  ;;  %vm4719_vm14 = vcmp.eq.f32.partialorder %v4718_v56, 8.507059e+37 }
0x1f3f   :  { %v4691_v21 = vor.u32 1.1754944e-38, %v4690_v59  ;;  %vm4689_vm7 = vcmp.eq.f32.partialorder %v4688_v44, 8.507059e+37 }
0x1f42   :  { %v6145_v34 = vpop.eup %6144 }
0x1f43   :  { %v6147_v28 = vpop.eup %6146  ;;  %v4710_v32 = vmul.f32 %v6145_v34, %v4677_v26  ;;  %vm4715_vm11 = vweird.f32 %v6145_v34 }
0x1f44   :  { %v4676_v24 = vadd.f32 1.0, %v6147_v28  ;;  %v6149_v58 = vpop.eup %6148  ;;  %vm4716_vm13 = vmor %vm4714_vm12, %vm4715_vm11 }
0x1f45   :  { %v4711_v63 = vsub.f32 1.0, %v4710_v32  ;;  %v4680_v45 = vmul.f32 %v6149_v58, %v4675_v52  ;;  %vm4685_vm15 = vweird.f32 %v6149_v58 }
0x1f46   :  { %6150 = vrcp.f32 %v4676_v24  ;;  %vm4686_vm6 = vmor %vm4684_vm1, %vm4685_vm15  ;;  %v4705_v8 = vand.u32 2147483648, %v4676_v24  ;;  %vm4699_vm9 = vweird.f32 %v4676_v24  ;;  %v4703_v62 = vand.u32 2147483647, %v4676_v24 }
0x1f47   :  { %v4712_v14 = vmul.f32 %v6145_v34, %v4711_v63  ;;  %6152 = vpow2.f32 %v5667_v0  ;;  %v4681_v10 = vsub.f32 1.0, %v4680_v45 }
0x1f48   :  { %v4706_v60 = vor.u32 1.1754944e-38, %v4705_v8  ;;  %vm4704_vm11 = vcmp.eq.f32.partialorder %v4703_v62, 8.507059e+37 }
0x1f49   :  { %v4713_v20 = vadd.f32 %v6145_v34, %v4712_v14  ;;  %v4682_v13 = vmul.f32 %v6149_v58, %v4681_v10 }
0x1f4b   :  { %v4717_v46 = vsel %vm4716_vm13, %v6145_v34, %v4713_v20  ;;  %v4683_v61 = vadd.f32 %v6149_v58, %v4682_v13 }
0x1f4c   :  { %v6151_v31 = vpop.eup %6150  ;;  %v7925_v49 = vsel %vm4719_vm14, %v4721_v4, %v4717_v46  ;;  %v4860_v4 = vld [vmem:[#allocation14 + $0x28] sm:$0xff] }
0x1f4d   :  { %v6153_v9 = vpop.eup %6152  ;;  %v4695_v15 = vmul.f32 %v6151_v31, %v4676_v24  ;;  %v4687_v38 = vsel %vm4686_vm6, %v6149_v58, %v4683_v61  ;;  %vm4700_vm8 = vweird.f32 %v6151_v31  ;;  %v4745_v14 = vmul.f32 %v7925_v49, %v7872_v51 }
0x1f4e   :  { %v4678_v54 = vadd.f32 1.0, %v6153_v9  ;;  %v7929_v55 = vsel %vm4689_vm7, %v4691_v21, %v4687_v38  ;;  %vm4701_vm10 = vmor %vm4699_vm9, %vm4700_vm8  ;;  %v4857_v21 = vld [vmem:[#allocation14 + $0x10] sm:$0xff] }
0x1f4f   :  { %v4696_v41 = vsub.f32 1.0, %v4695_v15 }
0x1f50   :  { %6154 = vrcp.f32 %v4678_v54  ;;  %v4735_v1 = vand.u32 2147483648, %v4678_v54  ;;  %vm4729_vm13 = vweird.f32 %v4678_v54  ;;  %v4733_v40 = vand.u32 2147483647, %v4678_v54 }
0x1f51   :  { %v4697_v11 = vmul.f32 %v6151_v31, %v4696_v41 }
0x1f52   :  { %v4736_v34 = vor.u32 1.1754944e-38, %v4735_v1  ;;  %vm4734_vm15 = vcmp.eq.f32.partialorder %v4733_v40, 8.507059e+37  ;;  %v3273_v40 = vadd.f32 %v7830_v43, %v7484_v25  ;;  %v3307_v43 = vadd.f32 %v7568_v39, %v7489_v3 }
0x1f53   :  { %v4698_v23 = vadd.f32 %v6151_v31, %v4697_v11  ;;  %v4858_v11 = vld [vmem:[#allocation14 + $0x18] sm:$0xff] }
0x1f55   :  { %v4702_v17 = vsel %vm4701_vm10, %v6151_v31, %v4698_v23  ;;  %v4743_v31 = vmul.f32 %v7929_v55, %v7856_v2  ;;  %v4861_v2 = vld [vmem:[#allocation14 + $0x30] sm:$0xff] }
0x1f56   :  { %v6155_v27 = vpop.eup %6154  ;;  %v4707_v19 = vsel %vm4704_vm11, %v4706_v60, %v4702_v17  ;;  %4884 = vmatpush.msra.mxu2 %v4861_v2  ;;  %5129 = vmatpush.msra.mxu3 %v4861_v2 }
0x1f57   :  { %v4725_v53 = vmul.f32 %v6155_v27, %v4678_v54  ;;  %vm4730_vm12 = vweird.f32 %v6155_v27  ;;  %v4744_v63 = vmul.f32 %v4707_v19, %v7861_v37  ;;  %v4859_v54 = vld [vmem:[#allocation14 + $0x20] sm:$0xff] }
0x1f58   :  { %vm4731_vm14 = vmor %vm4729_vm13, %vm4730_vm12  ;;  %4885 = vmatpush.msra.mxu2 %v4860_v4  ;;  %5130 = vmatpush.msra.mxu3 %v4860_v4 }
0x1f59   :  { %v4726_v29 = vsub.f32 1.0, %v4725_v53 }
0x1f5a   :  { %4886 = vmatpush.msra.mxu2 %v4859_v54  ;;  %5131 = vmatpush.msra.mxu3 %v4859_v54 }
0x1f5b   :  { %v4727_v7 = vmul.f32 %v6155_v27, %v4726_v29 }
0x1f5c   :  { %4887 = vmatpush.msra.mxu2 %v4858_v11  ;;  %5132 = vmatpush.msra.mxu3 %v4858_v11 }
0x1f5d   :  { %v4728_v26 = vadd.f32 %v6155_v27, %v4727_v7 }
0x1f5e   :  { %4888 = vmatpush.msra.mxu2 %v4857_v21  ;;  %5133 = vmatpush.msra.mxu3 %v4857_v21 }
0x1f5f   :  { %v4732_v52 = vsel %vm4731_vm14, %v6155_v27, %v4728_v26 }
0x1f60   :  { %v4737_v32 = vsel %vm4734_vm15, %v4736_v34, %v4732_v52 }
0x1f61   :  { %v4746_v9 = vmul.f32 %v4737_v32, %v7867_v36 }
0x1f8b   :  { %v4756_v5 = vpop.permute.xlu2 %4755 }
0x1f8c   :  { %v4765_v30 = vmul.f32 %v4756_v5, %v7925_v49 }
0x1f8e   :  { %4775 = vrot.lane.b32.xlu0 %v4765_v30, %s6442_s5 }
0x1f92   :  { %v4752_v12 = vpop.permute.xlu0 %4751 }
0x1f93   :  { %v4763_v18 = vmul.f32 %v4752_v12, %v7929_v55  ;;  %v4856_v12 = vld [vmem:[#allocation14 + $0x8] sm:$0xff] }
0x1f94   :  { %4889 = vmatpush.msra.mxu2 %v4856_v12  ;;  %5134 = vmatpush.msra.mxu3 %v4856_v12 }
0x1f95   :  { %4771 = vrot.lane.b32.xlu1 %v4763_v18, %s6442_s5 }
0x1f9a   :  { %v4754_v42 = vpop.permute.xlu1 %4753 }
0x1f9b   :  { %v4764_v33 = vmul.f32 %v4754_v42, %v4707_v19 }
0x1f9d   :  { %4773 = vrot.lane.b32.xlu2 %v4764_v33, %s6442_s5 }
0x1fab   :  { %v4758_v28 = vpop.permute.xlu0 %4757 }
0x1fac   :  { %v4766_v24 = vmul.f32 %v4758_v28, %v4737_v32  ;;  %v3276_v28 = vadd.f32 %v7832_v47, %v7484_v25 }
0x1fae   :  { %4777 = vrot.lane.b32.xlu1 %v4766_v24, %s6442_s5 }
0x1ff7   :  { %v4774_v58 = vpop.permute.xlu2 %4773 }
0x1ff8   :  { %v7936_v0 = vadd.f32 %v4774_v58, %v4744_v63  ;;  %v3304_v58 = vadd.f32 %v7566_v57, %v7489_v3 }
0x1ffa   :  { %6156 = vtanh.f32 %v7936_v0 }
0x2000   :  { %v4776_v45 = vpop.permute.xlu0 %4775  ;;  %v6157_v20 = vpop.eup %6156 }
0x2001   :  { %v7941_v10 = vadd.f32 %v4776_v45, %v4745_v14  ;;  %4797 = vrot.lane.b32.xlu0 %v6157_v20, %s6443_s28 }
0x2003   :  { %6158 = vtanh.f32 %v7941_v10 }
0x2007   :  { %v4772_v37 = vpop.permute.xlu1 %4771 }
0x2008   :  { %v7947_v56 = vadd.f32 %v4772_v37, %v4743_v31 }
0x2009   :  { %v6159_v6 = vpop.eup %6158 }
0x200a   :  { %4799 = vrot.lane.b32.xlu1 %v6159_v6, %s6443_s28  ;;  %6160 = vtanh.f32 %v7947_v56 }
0x2010   :  { %v6161_v51 = vpop.eup %6160 }
0x2011   :  { %4795 = vrot.lane.b32.xlu2 %v6161_v51, %s6443_s28 }
0x2020   :  { %v4778_v46 = vpop.permute.xlu1 %4777 }
0x2021   :  { %v7953_v13 = vadd.f32 %v4778_v46, %v4746_v9 }
0x2023   :  { %6162 = vtanh.f32 %v7953_v13 }
0x2029   :  { %v6163_v15 = vpop.eup %6162 }
0x202a   :  { %4801 = vrot.lane.b32.xlu2 %v6163_v15, %s6443_s28 }
0x206b   :  { %v4796_v5 = vpop.permute.xlu2 %4795 }
0x206c   :  { %v4807_v36 = vmul.f32 %v4796_v5, %v7929_v55  ;;  %v4855_v55 = vld [vmem:[#allocation14] sm:$0xff] }
0x206d   :  { %4890 = vmatpush.msra.mxu2 %v4855_v55  ;;  %5135 = vmatpush.msra.mxu3 %v4855_v55 }
0x206e   :  { %4841 = vrot.lane.b32.xlu1 %v4807_v36, %s6443_s28  ;;  %4813 = vrot.lane.b32.xlu0 %v4807_v36, %s6442_s5 }
0x2073   :  { %v4798_v30 = vpop.permute.xlu0 %4797 }
0x2074   :  { %v4808_v61 = vmul.f32 %v4798_v30, %v4707_v19 }
0x2076   :  { %4843 = vrot.lane.b32.xlu0 %v4808_v61, %s6443_s28  ;;  %4815 = vrot.lane.b32.xlu2 %v4808_v61, %s6442_s5 }
0x207c   :  { %v4800_v41 = vpop.permute.xlu1 %4799 }
0x207d   :  { %v4809_v59 = vmul.f32 %v4800_v41, %v7925_v49 }
0x207f   :  { %4835 = vrot.lane.b32.xlu2 %v4809_v59, %s6442_s5  ;;  %4823 = vrot.lane.b32.xlu1 %v4809_v59, %s6443_s28 }
0x2084   :  { %v4802_v44 = vpop.permute.xlu2 %4801 }
0x2085   :  { %v4810_v38 = vmul.f32 %v4802_v44, %v4737_v32 }
0x2087   :  { %4825 = vrot.lane.b32.xlu0 %v4810_v38, %s6443_s28  ;;  %4837 = vrot.lane.b32.xlu1 %v4810_v38, %s6442_s5 }
0x20d0   :  { %v4816_v49 = vpop.permute.xlu2 %4815 }
0x20d1   :  { %4820 = vst.msk [vmem:[#allocation4 + $0x58] sm:$0xff] %vm192_vm0, %v4816_v49 }
0x20d9   :  { %v4836_v60 = vpop.permute.xlu2 %4835 }
0x20e0   :  { %v4814_v18 = vpop.permute.xlu0 %4813  ;;  %v4842_v23 = vpop.permute.xlu1 %4841 }
0x20e1   :  { %4819 = vst.msk [vmem:[#allocation4 + $0x50] sm:$0xff] %vm192_vm0, %v4814_v18  ;;  %v4847_v27 = vsel %vm192_vm0, %v4814_v18, %v4842_v23 }
0x20e2   :  { %v4851_v8 = vsel %vm156_vm2, %v4847_v27, 0.0 }
0x20e3   :  { %5668 = vmatmul.msk.f32.vlgmr.msra.gmra.mxu2 %vm798_vm3, %v4851_v8 }
0x20e8   :  { %v4844_v62 = vpop.permute.xlu0 %4843 }
0x20e9   :  { %v4848_v17 = vsel %vm192_vm0, %v4816_v49, %v4844_v62 }
0x20ea   :  { %v4852_v53 = vsel %vm156_vm2, %v4848_v17, 0.0 }
0x20eb   :  { %5669 = vmatmul.msk.f32.gmra.mxu2 %vm798_vm3, %v4852_v53 }
0x20f1   :  { %v4824_v19 = vpop.permute.xlu1 %4823 }
0x20f2   :  { %4829 = vst.msk [vmem:[#allocation4 + $0x20] sm:$0xff] %vm1010_vm4, %v4824_v19  ;;  %v4849_v42 = vsel %vm192_vm0, %v4836_v60, %v4824_v19 }
0x20f3   :  { %v4853_v33 = vsel %vm165_vm5, %v4849_v42, 0.0 }
0x20f4   :  { %5670 = vmatmul.msk.f32.gmra.mxu2 %vm798_vm3, %v4853_v33 }
0x20f9   :  { %v4826_v29 = vpop.permute.xlu0 %4825  ;;  %v4838_v7 = vpop.permute.xlu1 %4837 }
0x20fa   :  { %4830 = vst.msk [vmem:[#allocation4 + $0x28] sm:$0xff] %vm1010_vm4, %v4826_v29  ;;  %v4850_v26 = vsel %vm192_vm0, %v4838_v7, %v4826_v29 }
0x20fb   :  { %v4854_v1 = vsel %vm165_vm5, %v4850_v26, 0.0 }
0x20fc   :  { %5671 = vmatmul.msk.f32.gmra.mxu2 %vm798_vm3, %v4854_v1 }
0x2166   :  { %v4892_v52 = vpop.f32.mrf.mxu2 }
0x2167   :  { %v4904_v34 = vadd.f32 %v4892_v52, %v3273_v40 }
0x2169   :  { %6164 = vtanh.f32 %v4904_v34  ;;  %v5672_v51 = vmul.f32 -1.442695, %v4904_v34 }
0x216e   :  { %v4895_v32 = vpop.f32.mrf.mxu2 }
0x216f   :  { %v6165_v24 = vpop.eup %6164  ;;  %v4905_v63 = vadd.f32 %v4895_v32, %v3276_v28 }
0x2170   :  { %4996 = vrot.lane.b32.xlu2 %v6165_v24, %s6443_s28 }
0x2171   :  { %6166 = vtanh.f32 %v4905_v63  ;;  %v5673_v39 = vmul.f32 -1.442695, %v4905_v63 }
0x2177   :  { %v4898_v14 = vpop.f32.mrf.mxu2  ;;  %v6167_v45 = vpop.eup %6166 }
0x2178   :  { %v4906_v20 = vadd.f32 %v4898_v14, %v3304_v58  ;;  %4998 = vrot.lane.b32.xlu0 %v6167_v45, %s6443_s28 }
0x217a   :  { %6168 = vtanh.f32 %v4906_v20  ;;  %v5674_v41 = vmul.f32 -1.442695, %v4906_v20 }
0x217f   :  { %v4901_v31 = vpop.f32.mrf.mxu2 }
0x2180   :  { %v6169_v47 = vpop.eup %6168  ;;  %v4907_v37 = vadd.f32 %v4901_v31, %v3307_v43 }
0x2181   :  { %5000 = vrot.lane.b32.xlu1 %v6169_v47, %s6443_s28 }
0x2182   :  { %6170 = vtanh.f32 %v4907_v37  ;;  %v5675_v15 = vmul.f32 -1.442695, %v4907_v37 }
0x2183   :  { %6172 = vpow2.f32 %v5672_v51 }
0x2188   :  { %v6171_v6 = vpop.eup %6170 }
0x2189   :  { %5002 = vrot.lane.b32.xlu2 %v6171_v6, %s6443_s28  ;;  %v6173_v57 = vpop.eup %6172 }
0x218a   :  { %v4920_v9 = vadd.f32 1.0, %v6173_v57 }
0x218c   :  { %6174 = vrcp.f32 %v4920_v9  ;;  %v4935_v61 = vand.u32 2147483648, %v4920_v9  ;;  %vm4929_vm6 = vweird.f32 %v4920_v9  ;;  %v4933_v59 = vand.u32 2147483647, %v4920_v9 }
0x218d   :  { %6176 = vpow2.f32 %v5675_v15 }
0x218e   :  { %6178 = vpow2.f32 %v5673_v39  ;;  %v4936_v11 = vor.u32 1.1754944e-38, %v4935_v61  ;;  %vm4934_vm8 = vcmp.eq.f32.partialorder %v4933_v59, 8.507059e+37 }
0x2192   :  { %v6175_v46 = vpop.eup %6174 }
0x2193   :  { %v4925_v2 = vmul.f32 %v6175_v46, %v4920_v9  ;;  %v6177_v54 = vpop.eup %6176  ;;  %vm4930_vm1 = vweird.f32 %v6175_v46 }
0x2194   :  { %v4923_v36 = vadd.f32 1.0, %v6177_v54  ;;  %vm4931_vm7 = vmor %vm4929_vm6, %vm4930_vm1  ;;  %v6179_v44 = vpop.eup %6178 }
0x2195   :  { %v4926_v4 = vsub.f32 1.0, %v4925_v2  ;;  %v4921_v21 = vadd.f32 1.0, %v6179_v44 }
0x2196   :  { %6180 = vrcp.f32 %v4923_v36  ;;  %v4980_v29 = vand.u32 2147483648, %v4923_v36  ;;  %vm4974_vm10 = vweird.f32 %v4923_v36  ;;  %v4978_v7 = vand.u32 2147483647, %v4923_v36 }
0x2197   :  { %v4927_v5 = vmul.f32 %v6175_v46, %v4926_v4  ;;  %6182 = vpow2.f32 %v5674_v41  ;;  %v4950_v58 = vand.u32 2147483648, %v4921_v21  ;;  %vm4944_vm14 = vweird.f32 %v4921_v21 }
0x2198   :  { %6184 = vrcp.f32 %v4921_v21  ;;  %v4981_v52 = vor.u32 1.1754944e-38, %v4980_v29  ;;  %vm4979_vm12 = vcmp.eq.f32.partialorder %v4978_v7, 8.507059e+37  ;;  %v4948_v14 = vand.u32 2147483647, %v4921_v21 }
0x2199   :  { %v4928_v30 = vadd.f32 %v6175_v46, %v4927_v5  ;;  %v4951_v43 = vor.u32 1.1754944e-38, %v4950_v58 }
0x219a   :  { %vm4949_vm1 = vcmp.eq.f32.partialorder %v4948_v14, 8.507059e+37 }
0x219b   :  { %v4932_v38 = vsel %vm4931_vm7, %v6175_v46, %v4928_v30 }
0x219c   :  { %v7999_v55 = vsel %vm4934_vm8, %v4936_v11, %v4932_v38  ;;  %v6181_v18 = vpop.eup %6180 }
0x219d   :  { %v6183_v23 = vpop.eup %6182  ;;  %v4970_v27 = vmul.f32 %v6181_v18, %v4923_v36  ;;  %vm4975_vm9 = vweird.f32 %v6181_v18  ;;  %v4988_v39 = vmul.f32 %v7999_v55, %v7947_v56 }
0x219e   :  { %v4922_v8 = vadd.f32 1.0, %v6183_v23  ;;  %v6185_v17 = vpop.eup %6184  ;;  %vm4976_vm11 = vmor %vm4974_vm10, %vm4975_vm9 }
0x219f   :  { %v4971_v62 = vsub.f32 1.0, %v4970_v27  ;;  %v4940_v60 = vmul.f32 %v6185_v17, %v4921_v21  ;;  %vm4945_vm13 = vweird.f32 %v6185_v17 }
0x21a0   :  { %6186 = vrcp.f32 %v4922_v8  ;;  %vm4946_vm15 = vmor %vm4944_vm14, %vm4945_vm13  ;;  %v4965_v51 = vand.u32 2147483648, %v4922_v8  ;;  %vm4959_vm7 = vweird.f32 %v4922_v8  ;;  %v4963_v57 = vand.u32 2147483647, %v4922_v8 }
0x21a1   :  { %v4972_v53 = vmul.f32 %v6181_v18, %v4971_v62  ;;  %v4941_v42 = vsub.f32 1.0, %v4940_v60 }
0x21a2   :  { %v4966_v46 = vor.u32 1.1754944e-38, %v4965_v51  ;;  %vm4964_vm9 = vcmp.eq.f32.partialorder %v4963_v57, 8.507059e+37 }
0x21a3   :  { %v4973_v19 = vadd.f32 %v6181_v18, %v4972_v53  ;;  %v4942_v1 = vmul.f32 %v6185_v17, %v4941_v42 }
0x21a5   :  { %v4977_v26 = vsel %vm4976_vm11, %v6181_v18, %v4973_v19  ;;  %v4943_v24 = vadd.f32 %v6185_v17, %v4942_v1 }
0x21a6   :  { %v6187_v33 = vpop.eup %6186  ;;  %v8003_v28 = vsel %vm4979_vm12, %v4981_v52, %v4977_v26 }
0x21a7   :  { %v4955_v40 = vmul.f32 %v6187_v33, %v4922_v8  ;;  %v4947_v45 = vsel %vm4946_vm15, %v6185_v17, %v4943_v24  ;;  %vm4960_vm6 = vweird.f32 %v6187_v33  ;;  %v4991_v59 = vmul.f32 %v8003_v28, %v7953_v13 }
0x21a8   :  { %v4952_v47 = vsel %vm4949_vm1, %v4951_v43, %v4947_v45  ;;  %vm4961_vm8 = vmor %vm4959_vm7, %vm4960_vm6 }
0x21a9   :  { %v4956_v63 = vsub.f32 1.0, %v4955_v40  ;;  %v4989_v11 = vmul.f32 %v4952_v47, %v7936_v0 }
0x21ab   :  { %v4957_v20 = vmul.f32 %v6187_v33, %v4956_v63  ;;  %v3355_v63 = vadd.f32 %v7652_v16, %v7484_v25 }
0x21ad   :  { %v4958_v6 = vadd.f32 %v6187_v33, %v4957_v20  ;;  %v3386_v20 = vadd.f32 %v7477_v22, %v7489_v3 }
0x21af   :  { %v4962_v9 = vsel %vm4961_vm8, %v6187_v33, %v4958_v6 }
0x21b0   :  { %v4967_v15 = vsel %vm4964_vm9, %v4966_v46, %v4962_v9 }
0x21b1   :  { %v4990_v30 = vmul.f32 %v4967_v15, %v7941_v10 }
0x21ca   :  { %v4997_v12 = vpop.permute.xlu2 %4996 }
0x21cb   :  { %v5008_v49 = vmul.f32 %v4997_v12, %v7999_v55 }
0x21cd   :  { %5016 = vrot.lane.b32.xlu0 %v5008_v49, %s6442_s5 }
0x21e3   :  { %v5003_v34 = vpop.permute.xlu2 %5002 }
0x21e4   :  { %v5011_v32 = vmul.f32 %v5003_v34, %v8003_v28 }
0x21e6   :  { %5022 = vrot.lane.b32.xlu0 %v5011_v32, %s6442_s5 }
0x21ea   :  { %v4999_v31 = vpop.permute.xlu0 %4998 }
0x21eb   :  { %v5009_v37 = vmul.f32 %v4999_v31, %v4952_v47 }
0x21ed   :  { %5018 = vrot.lane.b32.xlu1 %v5009_v37, %s6442_s5 }
0x21f3   :  { %v5001_v2 = vpop.permute.xlu1 %5000 }
0x21f4   :  { %v5010_v4 = vmul.f32 %v5001_v2, %v4967_v15 }
0x21f6   :  { %5020 = vrot.lane.b32.xlu2 %v5010_v4, %s6442_s5 }
0x223f   :  { %v5017_v54 = vpop.permute.xlu0 %5016 }
0x2240   :  { %v8011_v5 = vadd.f32 %v5017_v54, %v4988_v39 }
0x2242   :  { %6188 = vtanh.f32 %v8011_v5 }
0x2248   :  { %v6189_v36 = vpop.eup %6188 }
0x2249   :  { %5040 = vrot.lane.b32.xlu1 %v6189_v36, %s6443_s28 }
0x2250   :  { %v5021_v61 = vpop.permute.xlu2 %5020 }
0x2251   :  { %v8016_v41 = vadd.f32 %v5021_v61, %v4990_v30 }
0x2253   :  { %6190 = vtanh.f32 %v8016_v41 }
0x2258   :  { %v5023_v44 = vpop.permute.xlu0 %5022 }
0x2259   :  { %v6191_v56 = vpop.eup %6190  ;;  %v8021_v38 = vadd.f32 %v5023_v44, %v4991_v59 }
0x225a   :  { %5044 = vrot.lane.b32.xlu0 %v6191_v56, %s6443_s28 }
0x225b   :  { %6192 = vtanh.f32 %v8021_v38 }
0x225f   :  { %v5019_v21 = vpop.permute.xlu1 %5018 }
0x2260   :  { %v8026_v12 = vadd.f32 %v5019_v21, %v4989_v11 }
0x2261   :  { %v6193_v10 = vpop.eup %6192 }
0x2262   :  { %5046 = vrot.lane.b32.xlu1 %v6193_v10, %s6443_s28  ;;  %6194 = vtanh.f32 %v8026_v12 }
0x2268   :  { %v6195_v49 = vpop.eup %6194 }
0x2269   :  { %5042 = vrot.lane.b32.xlu2 %v6195_v49, %s6443_s28 }
0x22bb   :  { %v5041_v13 = vpop.permute.xlu1 %5040 }
0x22bc   :  { %v5052_v18 = vmul.f32 %v5041_v13, %v7999_v55 }
0x22be   :  { %5086 = vrot.lane.b32.xlu0 %v5052_v18, %s6443_s28  ;;  %5058 = vrot.lane.b32.xlu2 %v5052_v18, %s6442_s5 }
0x22c3   :  { %v5043_v23 = vpop.permute.xlu2 %5042 }
0x22c4   :  { %v5053_v0 = vmul.f32 %v5043_v23, %v4952_v47  ;;  %v3389_v47 = vadd.f32 %v7479_v50, %v7489_v3 }
0x22c6   :  { %5060 = vrot.lane.b32.xlu1 %v5053_v0, %s6442_s5  ;;  %5088 = vrot.lane.b32.xlu2 %v5053_v0, %s6443_s28 }
0x22cc   :  { %v5045_v27 = vpop.permute.xlu0 %5044 }
0x22cd   :  { %v5054_v8 = vmul.f32 %v5045_v27, %v4967_v15 }
0x22cf   :  { %5080 = vrot.lane.b32.xlu1 %v5054_v8, %s6442_s5  ;;  %5068 = vrot.lane.b32.xlu0 %v5054_v8, %s6443_s28 }
0x22d4   :  { %v5047_v62 = vpop.permute.xlu1 %5046 }
0x22d5   :  { %v5055_v17 = vmul.f32 %v5047_v62, %v8003_v28 }
0x22d7   :  { %5082 = vrot.lane.b32.xlu0 %v5055_v17, %s6442_s5  ;;  %5070 = vrot.lane.b32.xlu2 %v5055_v17, %s6443_s28 }
0x2318   :  { %v5059_v55 = vpop.permute.xlu2 %5058 }
0x2319   :  { %5064 = vst.msk [vmem:[#allocation4 + $0x60] sm:$0xff] %vm192_vm0, %v5059_v55 }
0x2320   :  { %v5089_v53 = vpop.permute.xlu2 %5088 }
0x2330   :  { %v5087_v60 = vpop.permute.xlu0 %5086 }
0x2331   :  { %v5071_v19 = vpop.permute.xlu2 %5070  ;;  %v5092_v42 = vsel %vm192_vm0, %v5059_v55, %v5087_v60 }
0x2332   :  { %5075 = vst.msk [vmem:[#allocation4 + $0x18] sm:$0xff] %vm1010_vm4, %v5071_v19  ;;  %v5096_v33 = vsel %vm156_vm2, %v5092_v42, 0.0 }
0x2333   :  { %5676 = vmatmul.msk.f32.vlgmr.msra.gmra.mxu3 %vm798_vm3, %v5096_v33 }
0x2338   :  { %v5061_v29 = vpop.permute.xlu1 %5060 }
0x2339   :  { %5065 = vst.msk [vmem:[#allocation4 + $0x68] sm:$0xff] %vm192_vm0, %v5061_v29  ;;  %v5093_v7 = vsel %vm192_vm0, %v5061_v29, %v5089_v53 }
0x233a   :  { %v5097_v26 = vsel %vm156_vm2, %v5093_v7, 0.0 }
0x233b   :  { %5677 = vmatmul.msk.f32.gmra.mxu3 %vm798_vm3, %v5097_v26 }
0x2341   :  { %v5069_v1 = vpop.permute.xlu0 %5068  ;;  %v5081_v40 = vpop.permute.xlu1 %5080 }
0x2342   :  { %5074 = vst.msk [vmem:[#allocation4 + $0x10] sm:$0xff] %vm1010_vm4, %v5069_v1  ;;  %v5094_v52 = vsel %vm192_vm0, %v5081_v40, %v5069_v1 }
0x2343   :  { %v5098_v34 = vsel %vm165_vm5, %v5094_v52, 0.0 }
0x2344   :  { %5678 = vmatmul.msk.f32.gmra.mxu3 %vm798_vm3, %v5098_v34 }
0x2349   :  { %v5083_v28 = vpop.permute.xlu0 %5082 }
0x234a   :  { %v5095_v32 = vsel %vm192_vm0, %v5083_v28, %v5071_v19  ;;  %v3358_v28 = vadd.f32 %v7654_v48, %v7484_v25 }
0x234b   :  { %v5099_v24 = vsel %vm165_vm5, %v5095_v32, 0.0 }
0x234c   :  { %5679 = vmatmul.msk.f32.gmra.mxu3 %vm798_vm3, %v5099_v24 }
0x23b6   :  { %v5137_v58 = vpop.f32.mrf.mxu3 }
0x23b7   :  { %v5149_v14 = vadd.f32 %v5137_v58, %v3355_v63 }
0x23b9   :  { %v5680_v53 = vmul.f32 -1.442695, %v5149_v14 }
0x23be   :  { %v8063_v45 = vpop.f32.mrf.mxu3 }
0x23c7   :  { %v5143_v43 = vpop.f32.mrf.mxu3 }
0x23c8   :  { %v5151_v31 = vadd.f32 %v5143_v43, %v3386_v20 }
0x23ca   :  { %6196 = vtanh.f32 %v5151_v31  ;;  %v5682_v22 = vmul.f32 -1.442695, %v5151_v31 }
0x23cf   :  { %v5146_v35 = vpop.f32.mrf.mxu3 }
0x23d0   :  { %v6197_v37 = vpop.eup %6196  ;;  %v5152_v6 = vadd.f32 %v5146_v35, %v3389_v47 }
0x23d1   :  { %5245 = vrot.lane.b32.xlu1 %v6197_v37, %s6443_s28 }
0x23d2   :  { %6198 = vtanh.f32 %v5152_v6  ;;  %v5683_v51 = vmul.f32 -1.442695, %v5152_v6 }
0x23d4   :  { %6200 = vpow2.f32 %v5683_v51 }
0x23d8   :  { %v6199_v16 = vpop.eup %6198 }
0x23d9   :  { %5247 = vrot.lane.b32.xlu2 %v6199_v16, %s6443_s28 }
0x23da   :  { %v6201_v57 = vpop.eup %6200 }
0x23db   :  { %v5168_v9 = vadd.f32 1.0, %v6201_v57  ;;  %v5344_v57 = vld [vmem:[#allocation16 + $0x38] sm:$0xff] }
0x23dc   :  { %5405 = vmatpush.msrb.mxu0 %v5344_v57 }
0x23dd   :  { %6202 = vrcp.f32 %v5168_v9  ;;  %v5225_v36 = vand.u32 2147483648, %v5168_v9  ;;  %vm5219_vm5 = vweird.f32 %v5168_v9  ;;  %v5223_v30 = vand.u32 2147483647, %v5168_v9 }
0x23de   :  { %6204 = vpow2.f32 %v5682_v22  ;;  %v5342_v22 = vld [vmem:[#allocation16 + $0x28] sm:$0xff] }
0x23df   :  { %v5226_v44 = vor.u32 1.1754944e-38, %v5225_v36  ;;  %vm5224_vm11 = vcmp.eq.f32.partialorder %v5223_v30, 8.507059e+37 }
0x23e3   :  { %v6203_v46 = vpop.eup %6202 }
0x23e4   :  { %v6205_v15 = vpop.eup %6204  ;;  %v5215_v2 = vmul.f32 %v6203_v46, %v5168_v9  ;;  %vm5220_vm2 = vweird.f32 %v6203_v46  ;;  %v5343_v9 = vld [vmem:[#allocation16 + $0x30] sm:$0xff] }
0x23e5   :  { %v5167_v50 = vadd.f32 1.0, %v6205_v15  ;;  %vm5221_vm10 = vmor %vm5219_vm5, %vm5220_vm2  ;;  %5406 = vmatpush.msrb.mxu0 %v5343_v9  ;;  %v5341_v15 = vld [vmem:[#allocation16 + $0x20] sm:$0xff] }
0x23e6   :  { %v5216_v3 = vsub.f32 1.0, %v5215_v2 }
0x23e7   :  { %6206 = vrcp.f32 %v5167_v50  ;;  %v5210_v23 = vand.u32 2147483648, %v5167_v50  ;;  %vm5204_vm13 = vweird.f32 %v5167_v50  ;;  %v5208_v0 = vand.u32 2147483647, %v5167_v50  ;;  %5407 = vmatpush.msrb.mxu0 %v5342_v22 }
0x23e8   :  { %v5217_v4 = vmul.f32 %v6203_v46, %v5216_v3  ;;  %6208 = vtanh.f32 %v5149_v14 }
0x23e9   :  { %v5211_v8 = vor.u32 1.1754944e-38, %v5210_v23  ;;  %vm5209_vm15 = vcmp.eq.f32.partialorder %v5208_v0, 8.507059e+37  ;;  %6210 = vpow2.f32 %v5680_v53  ;;  %5408 = vmatpush.msrb.mxu0 %v5341_v15  ;;  %v5339_v23 = vld [vmem:[#allocation16 + $0x10] sm:$0xff]  ;;  %v5338_v0 = vld [vmem:[#allocation16 + $0x8] sm:$0xff] }
0x23ea   :  { %v5218_v39 = vadd.f32 %v6203_v46, %v5217_v4 }
0x23ec   :  { %v5222_v61 = vsel %vm5221_vm10, %v6203_v46, %v5218_v39 }
0x23ed   :  { %v6207_v54 = vpop.eup %6206  ;;  %v8071_v11 = vsel %vm5224_vm11, %v5226_v44, %v5222_v61 }
0x23ee   :  { %v5200_v59 = vmul.f32 %v6207_v54, %v5167_v50  ;;  %vm5205_vm12 = vweird.f32 %v6207_v54  ;;  %v6209_v18 = vpop.eup %6208  ;;  %v5236_v60 = vmul.f32 %v8071_v11, %v8021_v38  ;;  %v5150_v38 = vadd.f32 %v8063_v45, %v3358_v28  ;;  %v5332_v28 = vld [vmem:[#allocation4 + $0x58] sm:$0xff] }
0x23ef   :  { %vm5206_vm14 = vmor %vm5204_vm13, %vm5205_vm12  ;;  %v6211_v33 = vpop.eup %6210 }
0x23f0   :  { %v5201_v10 = vsub.f32 1.0, %v5200_v59  ;;  %v5165_v29 = vadd.f32 1.0, %v6211_v33  ;;  %v5681_v47 = vmul.f32 -1.442695, %v5150_v38  ;;  %v5323_v33 = vld [vmem:[#allocation4 + $0x10] sm:$0xff] }
0x23f2   :  { %v5202_v49 = vmul.f32 %v6207_v54, %v5201_v10  ;;  %vm5174_vm6 = vweird.f32 %v5165_v29  ;;  %v5178_v20 = vand.u32 2147483647, %v5165_v29 }
0x23f4   :  { %v5203_v13 = vadd.f32 %v6207_v54, %v5202_v49  ;;  %vm5179_vm8 = vcmp.eq.f32.partialorder %v5178_v20, 8.507059e+37 }
0x23f6   :  { %v5207_v27 = vsel %vm5206_vm14, %v6207_v54, %v5203_v13 }
0x23f7   :  { %v5212_v17 = vsel %vm5209_vm15, %v5211_v8, %v5207_v27  ;;  %v5337_v27 = vld [vmem:[#allocation16] sm:$0xff] }
0x23f8   :  { %v5235_v26 = vmul.f32 %v5212_v17, %v8016_v41  ;;  %v5180_v41 = vand.u32 2147483648, %v5165_v29 }
0x23fa   :  { %v5181_v31 = vor.u32 1.1754944e-38, %v5180_v41 }
0x2433   :  { %v5248_v56 = vpop.permute.xlu2 %5247 }
0x2434   :  { %v5256_v21 = vmul.f32 %v5248_v56, %v8071_v11 }
0x2436   :  { %5267 = vrot.lane.b32.xlu1 %v5256_v21, %s6442_s5 }
0x243e   :  { %5241 = vrot.lane.b32.xlu1 %v6209_v18, %s6443_s28  ;;  %v5340_v18 = vld [vmem:[#allocation16 + $0x18] sm:$0xff] }
0x243f   :  { %5409 = vmatpush.msrb.mxu0 %v5340_v18 }
0x2441   :  { %5410 = vmatpush.msrb.mxu0 %v5339_v23 }
0x2443   :  { %v5246_v62 = vpop.permute.xlu1 %5245  ;;  %5411 = vmatpush.msrb.mxu0 %v5338_v0 }
0x2444   :  { %v5255_v55 = vmul.f32 %v5246_v62, %v5212_v17 }
0x2445   :  { %5412 = vmatpush.msrb.mxu0 %v5337_v27 }
0x2446   :  { %5265 = vrot.lane.b32.xlu0 %v5255_v55, %s6442_s5 }
0x24a8   :  { %v5268_v19 = vpop.permute.xlu1 %5267 }
0x24a9   :  { %v5276_v42 = vadd.f32 %v5268_v19, %v5236_v60 }
0x24ab   :  { %6212 = vtanh.f32 %v5276_v42 }
0x24ac   :  { %6214 = vrcp.f32 %v5165_v29 }
0x24b0   :  { %v5242_v25 = vpop.permute.xlu1 %5241 }
0x24b1   :  { %v6213_v7 = vpop.eup %6212 }
0x24b2   :  { %5291 = vrot.lane.b32.xlu0 %v6213_v7, %s6443_s28  ;;  %v6215_v40 = vpop.eup %6214  ;;  %v5326_v7 = vld [vmem:[#allocation4 + $0x28] sm:$0xff] }
0x24b3   :  { %v5170_v34 = vmul.f32 %v6215_v40, %v5165_v29  ;;  %vm5175_vm1 = vweird.f32 %v6215_v40  ;;  %v5325_v29 = vld [vmem:[#allocation4 + $0x20] sm:$0xff] }
0x24b4   :  { %vm5176_vm7 = vmor %vm5174_vm6, %vm5175_vm1 }
0x24b5   :  { %v5171_v32 = vsub.f32 1.0, %v5170_v34  ;;  %v5331_v34 = vld [vmem:[#allocation4 + $0x50] sm:$0xff] }
0x24b7   :  { %v5172_v63 = vmul.f32 %v6215_v40, %v5171_v32 }
0x24b8   :  { %v5266_v1 = vpop.permute.xlu0 %5265 }
0x24b9   :  { %v5275_v52 = vadd.f32 %v5266_v1, %v5235_v26  ;;  %v5173_v58 = vadd.f32 %v6215_v40, %v5172_v63  ;;  %v5327_v26 = vld [vmem:[#allocation4 + $0x30] sm:$0xff]  ;;  %v5328_v1 = vld [vmem:[#allocation4 + $0x38] sm:$0xff]  ;;  %v5334_v63 = vld [vmem:[#allocation4 + $0x68] sm:$0xff] }
0x24bb   :  { %6216 = vtanh.f32 %v5275_v52  ;;  %v5177_v43 = vsel %vm5176_vm7, %v6215_v40, %v5173_v58  ;;  %v5329_v40 = vld [vmem:[#allocation4 + $0x40] sm:$0xff]  ;;  %v5330_v52 = vld [vmem:[#allocation4 + $0x48] sm:$0xff] }
0x24bc   :  { %6218 = vtanh.f32 %v5150_v38  ;;  %v8086_v48 = vsel %vm5179_vm8, %v5181_v31, %v5177_v43  ;;  %v5333_v38 = vld [vmem:[#allocation4 + $0x60] sm:$0xff] }
0x24bd   :  { %v5253_v45 = vmul.f32 %v5242_v25, %v8086_v48  ;;  %6220 = vpow2.f32 %v5681_v47  ;;  %v5233_v21 = vmul.f32 %v8086_v48, %v8011_v5  ;;  %v5715_v58 = vld [vmem:[%s8140_s9] ss:$0 sm:$0xff]  ;;  %s6444_s9 = smov [#allocation17]  }
0x24be   :  { %s5482_s11 = sshll.u32 %s6444_s9, 4  ;;  %s5483_s11 = int_to_ptr.vmem [resolvable:$true] %s5482_s11 }
0x24c1   :  { %v6217_v24 = vpop.eup %6216 }
0x24c2   :  { %5289 = vrot.lane.b32.xlu2 %v6217_v24, %s6443_s28  ;;  %v6219_v14 = vpop.eup %6218 }
0x24c3   :  { %v6221_v35 = vpop.eup %6220 }
0x24c4   :  { %v5166_v37 = vadd.f32 1.0, %v6221_v35 }
0x24c6   :  { %6222 = vrcp.f32 %v5166_v37  ;;  %v5195_v4 = vand.u32 2147483648, %v5166_v37  ;;  %vm5189_vm2 = vweird.f32 %v5166_v37  ;;  %v5193_v39 = vand.u32 2147483647, %v5166_v37 }
0x24c8   :  { %v5196_v36 = vor.u32 1.1754944e-38, %v5195_v4  ;;  %vm5194_vm10 = vcmp.eq.f32.partialorder %v5193_v39, 8.507059e+37 }
0x24ca   :  { %5243 = vrot.lane.b32.xlu2 %v6219_v14, %s6443_s28 }
0x24cc   :  { %v6223_v6 = vpop.eup %6222 }
0x24cd   :  { %v5185_v16 = vmul.f32 %v6223_v6, %v5166_v37  ;;  %vm5190_vm9 = vweird.f32 %v6223_v6 }
0x24ce   :  { %vm5191_vm5 = vmor %vm5189_vm2, %vm5190_vm9 }
0x24cf   :  { %v5186_v51 = vsub.f32 1.0, %v5185_v16 }
0x24d1   :  { %v5187_v46 = vmul.f32 %v6223_v6, %v5186_v51 }
0x24d2   :  { %5261 = vrot.lane.b32.xlu2 %v5253_v45, %s6442_s5 }
0x24d3   :  { %v5188_v3 = vadd.f32 %v6223_v6, %v5187_v46 }
0x24d5   :  { %v5192_v54 = vsel %vm5191_vm5, %v6223_v6, %v5188_v3 }
0x24d6   :  { %v5197_v30 = vsel %vm5194_vm10, %v5196_v36, %v5192_v54 }
0x24d7   :  { %v5234_v8 = vmul.f32 %v5197_v30, %v8026_v12  ;;  %v5324_v12 = vld [vmem:[#allocation4 + $0x18] sm:$0xff] }
0x251c   :  { %v5290_v2 = vpop.permute.xlu2 %5289 }
0x251d   :  { %v5299_v50 = vmul.f32 %v5290_v2, %v5212_v17 }
0x251f   :  { %5313 = vrot.lane.b32.xlu0 %v5299_v50, %s6443_s28 }
0x2524   :  { %v5244_v61 = vpop.permute.xlu2 %5243  ;;  %v5292_v59 = vpop.permute.xlu0 %5291 }
0x2525   :  { %v5254_v44 = vmul.f32 %v5244_v61, %v5197_v30  ;;  %v5300_v56 = vmul.f32 %v5292_v59, %v8071_v11 }
0x2527   :  { %5263 = vrot.lane.b32.xlu0 %v5254_v44, %s6442_s5  ;;  %5315 = vrot.lane.b32.xlu1 %v5300_v56, %s6443_s28 }
0x252c   :  { %v5262_v10 = vpop.permute.xlu2 %5261 }
0x252d   :  { %v5273_v49 = vadd.f32 %v5262_v10, %v5233_v21 }
0x252f   :  { %6224 = vtanh.f32 %v5273_v49 }
0x2535   :  { %v6225_v13 = vpop.eup %6224 }
0x2536   :  { %5285 = vrot.lane.b32.xlu1 %v6225_v13, %s6443_s28 }
0x2591   :  { %v5314_v11 = vpop.permute.xlu0 %5313 }
0x2592   :  { %5319 = vst.msk [vmem:[#allocation4] sm:$0xff] %vm1010_vm4, %v5314_v11 }
0x2599   :  { %v5316_v5 = vpop.permute.xlu1 %5315  ;;  %v5264_v62 = vpop.permute.xlu0 %5263  ;;  %v5321_v17 = vld [vmem:[#allocation4] sm:$0xff] }
0x259a   :  { %5320 = vst.msk [vmem:[#allocation4 + $0x8] sm:$0xff] %vm1010_vm4, %v5316_v5  ;;  %v5274_v55 = vadd.f32 %v5264_v62, %v5234_v8  ;;  %5684 = vmatmul.msk.f32.vlgmr.msrb.gmra.mxu0 %vm798_vm3, %v5321_v17 }
0x259c   :  { %6226 = vtanh.f32 %v5274_v55 }
0x25a1   :  { %v5322_v53 = vld [vmem:[#allocation4 + $0x8] sm:$0xff] }
0x25a2   :  { %v6227_v60 = vpop.eup %6226  ;;  %5685 = vmatmul.msk.f32.gmra.mxu0 %vm798_vm3, %v5322_v53 }
0x25a3   :  { %5287 = vrot.lane.b32.xlu2 %v6227_v60, %s6443_s28 }
0x25a8   :  { %v5286_v19 = vpop.permute.xlu1 %5285 }
0x25a9   :  { %v5297_v42 = vmul.f32 %v5286_v19, %v8086_v48 }
0x25aa   :  { %5686 = vmatmul.msk.f32.gmra.mxu0 %vm798_vm3, %v5323_v33 }
0x25ab   :  { %5303 = vrot.lane.b32.xlu0 %v5297_v42, %s6442_s5 }
0x25b2   :  { %5687 = vmatmul.msk.f32.gmra.mxu0 %vm798_vm3, %v5324_v12 }
0x25ba   :  { %5688 = vmatmul.msk.f32.gmra.mxu0 %vm798_vm3, %v5325_v29 }
0x25c2   :  { %5689 = vmatmul.msk.f32.gmra.mxu0 %vm798_vm3, %v5326_v7 }
0x25ca   :  { %5690 = vmatmul.msk.f32.gmra.mxu0 %vm798_vm3, %v5327_v26 }
0x25d2   :  { %5691 = vmatmul.msk.f32.gmra.mxu0 %vm798_vm3, %v5328_v1 }
0x25da   :  { %5692 = vmatmul.msk.f32.gmra.mxu0 %vm798_vm3, %v5329_v40 }
0x25e2   :  { %5693 = vmatmul.msk.f32.gmra.mxu0 %vm798_vm3, %v5330_v52 }
0x25ea   :  { %5694 = vmatmul.msk.f32.gmra.mxu0 %vm798_vm3, %v5331_v34 }
0x25f2   :  { %5695 = vmatmul.msk.f32.gmra.mxu0 %vm798_vm3, %v5332_v28 }
0x25fa   :  { %5696 = vmatmul.msk.f32.gmra.mxu0 %vm798_vm3, %v5333_v38 }
0x25fd   :  { %v5288_v32 = vpop.permute.xlu2 %5287 }
0x25fe   :  { %v5298_v24 = vmul.f32 %v5288_v32, %v5197_v30 }
0x2600   :  { %5305 = vrot.lane.b32.xlu1 %v5298_v24, %s6442_s5 }
0x2602   :  { %5697 = vmatmul.msk.f32.gmra.mxu0 %vm798_vm3, %v5334_v63 }
0x2617   :  { %v5414_v14 = vpop.f32.mrf.mxu0 }
0x2618   :  { %v5415_v41 = vadd.f32 %v5715_v58, %v5414_v14 }
0x261a   :  { %5462 = vst [vmem:[#allocation17] sm:$0xff] %v5415_v41 }
0x261d   :  { %v5304_v20 = vpop.permute.xlu0 %5303 }
0x261e   :  { %5309 = vst.msk [vmem:[#allocation4 + $0x70] sm:$0xff] %vm192_vm0, %v5304_v20 }
0x261f   :  { %v5417_v43 = vpop.f32.mrf.mxu0 }
0x2620   :  { %v5418_v31 = vadd.f32 %v5715_v58, %v5417_v43 }
0x2622   :  { %5463 = vst [vmem:[#allocation17 + $0x8] sm:$0xff] %v5418_v31 }
0x2625   :  { %v5335_v25 = vld [vmem:[#allocation4 + $0x70] sm:$0xff] }
0x2626   :  { %5698 = vmatmul.msk.f32.gmra.mxu0 %vm798_vm3, %v5335_v25 }
0x2627   :  { %v5420_v48 = vpop.f32.mrf.mxu0 }
0x2628   :  { %v5421_v45 = vadd.f32 %v5715_v58, %v5420_v48 }
0x262a   :  { %5464 = vst [vmem:[#allocation17 + $0x10] sm:$0xff] %v5421_v45 }
0x262f   :  { %v5423_v47 = vpop.f32.mrf.mxu0 }
0x2630   :  { %v5424_v35 = vadd.f32 %v5715_v58, %v5423_v47 }
0x2632   :  { %5465 = vst [vmem:[#allocation17 + $0x18] sm:$0xff] %v5424_v35 }
0x2637   :  { %v5426_v37 = vpop.f32.mrf.mxu0 }
0x2638   :  { %v5427_v6 = vadd.f32 %v5715_v58, %v5426_v37 }
0x263a   :  { %5466 = vst [vmem:[#allocation17 + $0x20] sm:$0xff] %v5427_v6 }
0x263f   :  { %v5429_v16 = vpop.f32.mrf.mxu0 }
0x2640   :  { %v5430_v51 = vadd.f32 %v5715_v58, %v5429_v16 }
0x2642   :  { %5467 = vst [vmem:[#allocation17 + $0x28] sm:$0xff] %v5430_v51 }
0x2647   :  { %v5432_v57 = vpop.f32.mrf.mxu0 }
0x2648   :  { %v5433_v9 = vadd.f32 %v5715_v58, %v5432_v57 }
0x264a   :  { %5468 = vst [vmem:[#allocation17 + $0x30] sm:$0xff] %v5433_v9 }
0x264f   :  { %v5435_v22 = vpop.f32.mrf.mxu0 }
0x2650   :  { %v5436_v46 = vadd.f32 %v5715_v58, %v5435_v22 }
0x2652   :  { %5469 = vst [vmem:[#allocation17 + $0x38] sm:$0xff] %v5436_v46 }
0x2657   :  { %v5438_v15 = vpop.f32.mrf.mxu0 }
0x2658   :  { %v5439_v2 = vadd.f32 %v5715_v58, %v5438_v15 }
0x265a   :  { %5470 = vst [vmem:[#allocation17 + $0x40] sm:$0xff] %v5439_v2 }
0x265f   :  { %v5441_v50 = vpop.f32.mrf.mxu0 }
0x2660   :  { %v5442_v3 = vadd.f32 %v5715_v58, %v5441_v50 }
0x2662   :  { %5471 = vst [vmem:[#allocation17 + $0x48] sm:$0xff] %v5442_v3 }
0x2667   :  { %v5444_v4 = vpop.f32.mrf.mxu0 }
0x2668   :  { %v5445_v39 = vadd.f32 %v5715_v58, %v5444_v4 }
0x266a   :  { %5472 = vst [vmem:[#allocation17 + $0x50] sm:$0xff] %v5445_v39 }
0x266f   :  { %v5447_v54 = vpop.f32.mrf.mxu0 }
0x2670   :  { %v5448_v36 = vadd.f32 %v5715_v58, %v5447_v54 }
0x2672   :  { %5473 = vst [vmem:[#allocation17 + $0x58] sm:$0xff] %v5448_v36  ;;  %v5306_v30 = vpop.permute.xlu1 %5305 }
0x2673   :  { %5310 = vst.msk [vmem:[#allocation4 + $0x78] sm:$0xff] %vm192_vm0, %v5306_v30 }
0x2677   :  { %v5450_v61 = vpop.f32.mrf.mxu0 }
0x2678   :  { %v5451_v59 = vadd.f32 %v5715_v58, %v5450_v61 }
0x267a   :  { %5474 = vst [vmem:[#allocation17 + $0x60] sm:$0xff] %v5451_v59  ;;  %v5336_v44 = vld [vmem:[#allocation4 + $0x78] sm:$0xff] }
0x267b   :  { %5699 = vmatmul.msk.f32.gmra.mxu0 %vm798_vm3, %v5336_v44 }
0x267f   :  { %v5453_v56 = vpop.f32.mrf.mxu0 }
0x2680   :  { %v5454_v21 = vadd.f32 %v5715_v58, %v5453_v56 }
0x2682   :  { %5475 = vst [vmem:[#allocation17 + $0x68] sm:$0xff] %v5454_v21 }
0x26a3   :  { %v5456_v10 = vpop.f32.mrf.mxu0 }
0x26a4   :  { %v5457_v49 = vadd.f32 %v5715_v58, %v5456_v10 }
0x26a6   :  { %5476 = vst [vmem:[#allocation17 + $0x70] sm:$0xff] %v5457_v49 }
0x26f8   :  { %v5459_v13 = vpop.f32.mrf.mxu0 }
0x26f9   :  { %v5460_v18 = vadd.f32 %v5715_v58, %v5459_v13 }
0x26fb   :  { %5477 = vst [vmem:[#allocation17 + $0x78] sm:$0xff] %v5460_v18 }
0x26fc   :  { %5490 = dma.vmem_to_hbm [thread:$0]  %s5483_s11, 2048, %s5485_s13, [#allocation7], %s6431_s21, %s6431_s21, %s6432_s22  }
0x26fd   :  { %6428 = dma.done.wait [#allocation7], 2048  }
0x26fe   :  { %6429 = vsyncadd [#allocation7], 4294965248 }
0x26ff   :  { %5495 = vsyncpa [#allocation6], 1 }
0x2700   :  { %5496 = vsyncpa [#allocation9], 1 }
0x2701   :  { %5497 = vsyncpa [#allocation12], 1 }
0x2702   :  { %5498 = vsyncpa [#allocation15], 1 }
0x2703   :  { %5499 = vsyncpa [#allocation7], 1 }

</bundles_post_ra>
